<compile_context>
chip_gen: v7x
topology: tpu7x:2x2x1
jax: 0.10.0
libtpu: 0.0.40
codegen_flags: <defaults>
</compile_context>

<pallas_src>
import functools

import jax
import jax.numpy as jnp
from jax.experimental import pallas as pl
from jax.experimental.pallas import tpu as pltpu

EPS = 1e-5  # PyTorch BatchNorm default eps
VH = 32     # value-head conv1 output channels (fixed by the module)


# -----------------------------------------------------------------------------
# Trunk mega-kernel: stem + all residual blocks, activation resident in VMEM.
# -----------------------------------------------------------------------------
def _trunk_kernel(x0_ref, w1_ref, g1_ref, be1_ref, w2_ref, g2_ref, be2_ref,
                  sw1_ref, sb1_ref, sw2_ref, sb2_ref,
                  early_ref, final_ref, xpad_ref, act_ref, *, early_step):
    i = pl.program_id(0)
    B, Hp, Wp, C = xpad_ref.shape
    H, W = Hp - 2, Wp - 2
    M = B * H * W

    # Zero the conv-padding border; the interior is overwritten before each use.
    xpad_ref[...] = jnp.zeros_like(xpad_ref)

    def conv3x3(inp_f32, w_ref):
        """3x3 'same' conv as 9 accumulating per-tap MXU matmuls (bf16->f32)."""
        xpad_ref[:, 1:H + 1, 1:W + 1, :] = inp_f32
        cout = w_ref.shape[-1]
        z = jnp.zeros((M, cout), jnp.float32)
        for t in range(9):
            dy, dx = t // 3, t % 3
            patch = xpad_ref[:, dy:dy + H, dx:dx + W, :]
            patch = patch.reshape(M, C).astype(jnp.bfloat16)
            z = z + jnp.dot(patch, w_ref[t], preferred_element_type=jnp.float32)
        return z

    def batchnorm(z, gamma, beta, relu):
        # PyTorch training-mode BN: biased batch stats over all M = N*H*W rows.
        m = z.shape[0]
        s = jnp.sum(z, axis=0, keepdims=True)
        sq = jnp.sum(z * z, axis=0, keepdims=True)
        mean = s * (1.0 / m)
        var = jnp.maximum(sq * (1.0 / m) - mean * mean, 0.0)
        zn = (z - mean) * (jax.lax.rsqrt(var + EPS) * gamma) + beta
        return jnp.maximum(zn, 0.0) if relu else zn

    @pl.when(i == 0)
    def _stem():
        z = conv3x3(x0_ref[...], w1_ref)
        y = batchnorm(z, g1_ref[...], be1_ref[...], relu=True)
        act_ref[...] = y.reshape(B, H, W, C)

    @pl.when(i > 0)
    def _residual_block():
        res = act_ref[...]                                              # (B,H,W,C)
        h1 = batchnorm(conv3x3(res, w1_ref),
                       g1_ref[...], be1_ref[...], relu=True)            # (M, C)
        z2 = batchnorm(conv3x3(h1.reshape(B, H, W, C), w2_ref),
                       g2_ref[...], be2_ref[...], relu=False)           # (M, C)
        # Squeeze-Excitation gate.
        z3 = z2.reshape(B, H * W, C)
        pooled = jnp.mean(z3, axis=1)                                   # (B, C)
        hh = jnp.dot(pooled, sw1_ref[...], preferred_element_type=jnp.float32)
        hh = jnp.maximum(hh + sb1_ref[...], 0.0)
        gate = jnp.dot(hh, sw2_ref[...], preferred_element_type=jnp.float32)
        gate = 1.0 / (1.0 + jnp.exp(-(gate + sb2_ref[...])))            # (B, C)
        y = z3 * gate[:, None, :] + res.reshape(B, H * W, C)
        y = jnp.maximum(y, 0.0)
        act_ref[...] = y.reshape(B, H, W, C)
        # TODO(synk): dropout omitted (identity / eval semantics).

    @pl.when(i == early_step)
    def _snapshot_early():
        early_ref[...] = act_ref[...]

    @pl.when(i == pl.num_programs(0) - 1)
    def _write_final():
        final_ref[...] = act_ref[...]


def trunk_forward(params, x0):
    B, H, W, C = x0.shape
    CR = params['sw1s'].shape[-1]
    nsteps = params['w1s'].shape[0]        # 1 (stem) + num residual blocks

    conv_spec = pl.BlockSpec((None, 9, C, C), lambda i: (i, 0, 0, 0))
    vec_spec = lambda n: pl.BlockSpec((None, 1, n), lambda i: (i, 0, 0))
    full_spec = pl.BlockSpec((B, H, W, C), lambda i: (0, 0, 0, 0))

    return pl.pallas_call(
        functools.partial(_trunk_kernel, early_step=4),   # stem + 4 early blocks
        grid=(nsteps,),
        in_specs=[
            full_spec,                                           # x0 (channel-padded)
            conv_spec, vec_spec(C), vec_spec(C),                 # conv1 w / gamma / beta
            conv_spec, vec_spec(C), vec_spec(C),                 # conv2 w / gamma / beta
            pl.BlockSpec((None, C, CR), lambda i: (i, 0, 0)),    # SE fc1 w
            vec_spec(CR),                                        # SE fc1 b
            pl.BlockSpec((None, CR, C), lambda i: (i, 0, 0)),    # SE fc2 w
            vec_spec(C),                                         # SE fc2 b
        ],
        out_specs=(full_spec, full_spec),
        out_shape=(jax.ShapeDtypeStruct((B, H, W, C), jnp.float32),   # post-early
                   jax.ShapeDtypeStruct((B, H, W, C), jnp.float32)),  # post-trunk
        scratch_shapes=[pltpu.VMEM((B, H + 2, W + 2, C), jnp.float32),
                        pltpu.VMEM((B, H, W, C), jnp.float32)],
        compiler_params=pltpu.CompilerParams(
            dimension_semantics=("arbitrary",),          # sequential block chain
            vmem_limit_bytes=32 * 1024 * 1024),
    )(x0, params['w1s'], params['g1s'], params['be1s'],
      params['w2s'], params['g2s'], params['be2s'],
      params['sw1s'], params['sb1s'], params['sw2s'], params['sb2s'])


# -----------------------------------------------------------------------------
# Heads kernel: all four heads in one call, grid=(2,) parallel over
# {aux heads (post-early act), final heads (post-trunk act)}.
# -----------------------------------------------------------------------------
def _heads_kernel(act_ref, wc1_ref, gc1_ref, bc1_ref, wp2_ref, bp2_ref,
                  wv2_ref, gv2_ref, bv2_ref, pol_ref, val_ref, xpad_ref):
    B, Hp, Wp, C = xpad_ref.shape
    H, W = Hp - 2, Wp - 2
    M = B * H * W

    xpad_ref[...] = jnp.zeros_like(xpad_ref)
    xpad_ref[:, 1:H + 1, 1:W + 1, :] = act_ref[...]

    cout = wc1_ref.shape[-1]                      # C + 32 (policy | value packed)
    z = jnp.zeros((M, cout), jnp.float32)
    for t in range(9):
        dy, dx = t // 3, t % 3
        patch = xpad_ref[:, dy:dy + H, dx:dx + W, :]
        patch = patch.reshape(M, C).astype(jnp.bfloat16)
        z = z + jnp.dot(patch, wc1_ref[t], preferred_element_type=jnp.float32)

    def batchnorm(v, gamma, beta):
        m = v.shape[0]
        s = jnp.sum(v, axis=0, keepdims=True)
        sq = jnp.sum(v * v, axis=0, keepdims=True)
        mean = s * (1.0 / m)
        var = jnp.maximum(sq * (1.0 / m) - mean * mean, 0.0)
        return (v - mean) * (jax.lax.rsqrt(var + EPS) * gamma) + beta

    # Packed conv3x3 + BN + ReLU (BN is per-channel, so packing is exact).
    hcat = jnp.maximum(batchnorm(z, gc1_ref[...], bc1_ref[...]), 0.0)    # (M, C+32)

    # Policy 1x1 conv (bias kept; no BN after it).  Value-branch weight rows are
    # zero, so no lane-dim channel split is needed.
    pol_ref[...] = (jnp.dot(hcat, wp2_ref[...],
                            preferred_element_type=jnp.float32) + bp2_ref[...])

    # Value 1x1 conv -> BN -> ReLU (conv bias omitted: cancelled by BN).
    v = jnp.dot(hcat, wv2_ref[...], preferred_element_type=jnp.float32)  # (M, 2)
    v = jnp.maximum(batchnorm(v, gv2_ref[...], bv2_ref[...]), 0.0)
    val_ref[...] = v


def heads_forward(params, acts):
    _, B, H, W, C = acts.shape
    M = B * H * W
    CH = params['h_wc1'].shape[-1]

    def hspec(shape):
        nd = len(shape)
        return pl.BlockSpec((None,) + tuple(shape), lambda h: (h,) + (0,) * nd)

    return pl.pallas_call(
        _heads_kernel,
        grid=(2,),
        in_specs=[
            hspec((B, H, W, C)),       # stacked activations (aux | final)
            hspec((9, C, CH)),         # packed conv3x3 weights
            hspec((1, CH)), hspec((1, CH)),      # BN gamma / beta
            hspec((CH, 73)), hspec((1, 73)),     # policy 1x1 w / b
            hspec((CH, 2)),                      # value 1x1 w
            hspec((1, 2)), hspec((1, 2)),        # value BN gamma / beta
        ],
        out_specs=(hspec((M, 73)), hspec((M, 2))),
        out_shape=(jax.ShapeDtypeStruct((2, M, 73), jnp.float32),
                   jax.ShapeDtypeStruct((2, M, 2), jnp.float32)),
        scratch_shapes=[pltpu.VMEM((B, H + 2, W + 2, C), jnp.float32)],
        compiler_params=pltpu.CompilerParams(
            dimension_semantics=("parallel",),   # independent head sets (v7x megacore)
            vmem_limit_bytes=32 * 1024 * 1024),
    )(acts, params['h_wc1'], params['h_gc1'], params['h_bc1'],
      params['h_wp2'], params['h_bp2'], params['h_wv2'],
      params['h_gv2'], params['h_bv2'])


# -----------------------------------------------------------------------------
# Parameter initialization (deterministic, synthetic; conv weights in bf16)
# -----------------------------------------------------------------------------
def init_params(key, filters=32, blocks=12, in_planes=17):
    C, NB = filters, blocks
    CR = max(C // 8, 1)
    HW = 8 * 8
    assert C >= in_planes, "input planes are zero-padded up to `filters`"

    kit = iter(jax.random.split(key, 4 * NB + 64))
    nk = lambda: next(kit)

    def conv_w(cin, cout, cin_pad=None):
        w = jax.random.normal(nk(), (9, cin, cout), jnp.float32) * (2.0 / (9 * cin)) ** 0.5
        if cin_pad is not None and cin_pad > cin:
            w = jnp.concatenate(
                [w, jnp.zeros((9, cin_pad - cin, cout), jnp.float32)], axis=1)
        return w

    def lin_w(cin, cout):
        return jax.random.normal(nk(), (cin, cout), jnp.float32) * (1.0 / cin) ** 0.5

    ones = lambda n: jnp.ones((1, n), jnp.float32)
    zeros = lambda n: jnp.zeros((1, n), jnp.float32)

    # Trunk: entry 0 = stem conv (zero-padded input planes); 1..NB = blocks.
    # Conv biases are omitted everywhere a BN follows (cancelled by the mean).
    w1 = [conv_w(in_planes, C, cin_pad=C)] + [conv_w(C, C) for _ in range(NB)]
    w2 = [jnp.zeros((9, C, C), jnp.float32)] + [conv_w(C, C) for _ in range(NB)]
    sw1 = [jnp.zeros((C, CR), jnp.float32)] + [lin_w(C, CR) for _ in range(NB)]
    sb1 = [jnp.zeros((1, CR), jnp.float32) for _ in range(NB + 1)]
    sw2 = [jnp.zeros((CR, C), jnp.float32)] + [lin_w(CR, C) for _ in range(NB)]
    sb2 = [jnp.zeros((1, C), jnp.float32) for _ in range(NB + 1)]
    g1 = [ones(C) for _ in range(NB + 1)]
    be1 = [zeros(C) for _ in range(NB + 1)]
    g2 = [ones(C) for _ in range(NB + 1)]
    be2 = [zeros(C) for _ in range(NB + 1)]

    # Heads: index 0 = aux heads, index 1 = final heads.
    def head_set():
        wc1 = jnp.concatenate([conv_w(C, C), conv_w(C, VH)], axis=2)        # (9, C, C+VH)
        wp2 = jnp.concatenate([lin_w(C, 73),
                               jnp.zeros((VH, 73), jnp.float32)], axis=0)   # (C+VH, 73)
        bp2 = jax.random.normal(nk(), (1, 73), jnp.float32) * 0.01
        wv2 = jnp.concatenate([jnp.zeros((C, 2), jnp.float32),
                               lin_w(VH, 2)], axis=0)                       # (C+VH, 2)
        # FC weight stored in (c, hw)-input order (same ordering PyTorch's
        # NCHW flatten produces); an equivalent reparameterization.
        fcw = lin_w(2 * HW, 3)
        fcb = jnp.zeros((1, 3), jnp.float32)
        return wc1, wp2, bp2, wv2, fcw, fcb

    hs = [head_set(), head_set()]
    stack = lambda idx: jnp.stack([hs[0][idx], hs[1][idx]], axis=0)

    return dict(
        w1s=jnp.stack(w1).astype(jnp.bfloat16),
        w2s=jnp.stack(w2).astype(jnp.bfloat16),
        g1s=jnp.stack(g1), be1s=jnp.stack(be1),
        g2s=jnp.stack(g2), be2s=jnp.stack(be2),
        sw1s=jnp.stack(sw1), sb1s=jnp.stack(sb1),
        sw2s=jnp.stack(sw2), sb2s=jnp.stack(sb2),
        h_wc1=stack(0).astype(jnp.bfloat16),
        h_gc1=jnp.ones((2, 1, C + VH), jnp.float32),
        h_bc1=jnp.zeros((2, 1, C + VH), jnp.float32),
        h_wp2=stack(1), h_bp2=stack(2), h_wv2=stack(3),
        h_gv2=jnp.ones((2, 1, 2), jnp.float32),
        h_bv2=jnp.zeros((2, 1, 2), jnp.float32),
        h_fcw=stack(4), h_fcb=stack(5),
    )


# -----------------------------------------------------------------------------
# Model forward
# -----------------------------------------------------------------------------
def chess_resnet_forward(params, x_nchw):
    C = params['w1s'].shape[-1]
    x = jnp.transpose(x_nchw, (0, 2, 3, 1)).astype(jnp.float32)    # NCHW -> NHWC
    B, H, W, cin = x.shape
    if cin < C:   # zero-pad input planes so the stem shares the trunk layout
        x = jnp.pad(x, ((0, 0), (0, 0), (0, 0), (0, C - cin)))

    act_early, act_final = trunk_forward(params, x)
    acts = jnp.stack([act_early, act_final], axis=0)               # (2, B, H, W, C)
    pol, val = heads_forward(params, acts)                         # (2,M,73), (2,M,2)

    # Policy logits: NHWC -> NCHW (B, 73, 8, 8).
    p = pol.reshape(2, B, H, W, 73)
    p = jnp.transpose(p, (0, 1, 4, 2, 3))

    # Value head: flatten in PyTorch NCHW order, then the 2*H*W -> 3 FC.
    v = val.reshape(2, B, H * W, 2)
    v = jnp.swapaxes(v, 2, 3).reshape(2, B, 2 * H * W)
    v = jnp.einsum('hbk,hkj->hbj', v, params['h_fcw']) + params['h_fcb']

    policy, aux_policy = p[1], p[0]
    value, aux_value = v[1], v[0]
    return policy, value, aux_policy, aux_value


# -----------------------------------------------------------------------------
# Main
# -----------------------------------------------------------------------------
if __name__ == "__main__":
    key = jax.random.PRNGKey(0)
    pkey, xkey = jax.random.split(key)

    batch, filters, blocks = 2, 32, 12   # small filters; same block structure
    params = init_params(pkey, filters=filters, blocks=blocks)
    x = jax.random.normal(xkey, (batch, 17, 8, 8), jnp.float32)    # NCHW like PyTorch

    fwd = jax.jit(chess_resnet_forward)
    policy, value, aux_policy, aux_value = fwd(params, x)
    jax.block_until_ready((policy, value, aux_policy, aux_value))

    assert policy.shape == (batch, 73, 8, 8)
    assert value.shape == (batch, 3)
    assert aux_policy.shape == (batch, 73, 8, 8)
    assert aux_value.shape == (batch, 3)
    assert jnp.all(jnp.isfinite(policy)) and jnp.all(jnp.isfinite(value))
    assert jnp.all(jnp.isfinite(aux_policy)) and jnp.all(jnp.isfinite(aux_value))
    print("KERNEL_OK")
</pallas_src>

<mosaic_0001>
module attributes {stable_mosaic.version = 11 : i64} {
  func.func @_trunk_kernel(%arg0: i32, %arg1: memref<2x8x8x32xf32, #tpu.memory_space<vmem>>, %arg2: memref<1x9x32x32xbf16, #tpu.memory_space<vmem>>, %arg3: memref<1x1x32xf32, #tpu.memory_space<vmem>>, %arg4: memref<1x1x32xf32, #tpu.memory_space<vmem>>, %arg5: memref<1x9x32x32xbf16, #tpu.memory_space<vmem>>, %arg6: memref<1x1x32xf32, #tpu.memory_space<vmem>>, %arg7: memref<1x1x32xf32, #tpu.memory_space<vmem>>, %arg8: memref<1x32x4xf32, #tpu.memory_space<vmem>>, %arg9: memref<1x1x4xf32, #tpu.memory_space<vmem>>, %arg10: memref<1x4x32xf32, #tpu.memory_space<vmem>>, %arg11: memref<1x1x32xf32, #tpu.memory_space<vmem>>, %arg12: memref<2x8x8x32xf32, #tpu.memory_space<vmem>>, %arg13: memref<2x8x8x32xf32, #tpu.memory_space<vmem>>, %arg14: memref<2x10x10x32xf32, #tpu.memory_space<vmem>>, %arg15: memref<2x8x8x32xf32, #tpu.memory_space<vmem>>) attributes {dimension_semantics = [#tpu.dimension_semantics<arbitrary>], iteration_bounds = array<i64: 13>, scalar_prefetch = 0 : i64, scratch_operands = 2 : i64, tpu.core_type = #tpu.core_type<tc>, window_params = [{pipeline_mode = #tpu.pipeline_mode<synchronous>, transform_indices = @transform_0, window_bounds = array<i64: 2, 8, 8, 32>}, {transform_indices = @transform_1, window_bounds = array<i64: 1, 9, 32, 32>}, {transform_indices = @transform_2, window_bounds = array<i64: 1, 1, 32>}, {transform_indices = @transform_3, window_bounds = array<i64: 1, 1, 32>}, {transform_indices = @transform_4, window_bounds = array<i64: 1, 9, 32, 32>}, {transform_indices = @transform_5, window_bounds = array<i64: 1, 1, 32>}, {transform_indices = @transform_6, window_bounds = array<i64: 1, 1, 32>}, {transform_indices = @transform_7, window_bounds = array<i64: 1, 32, 4>}, {transform_indices = @transform_8, window_bounds = array<i64: 1, 1, 4>}, {transform_indices = @transform_9, window_bounds = array<i64: 1, 4, 32>}, {transform_indices = @transform_10, window_bounds = array<i64: 1, 1, 32>}, {pipeline_mode = #tpu.pipeline_mode<synchronous>, transform_indices = @transform_11, window_bounds = array<i64: 2, 8, 8, 32>}, {pipeline_mode = #tpu.pipeline_mode<synchronous>, transform_indices = @transform_12, window_bounds = array<i64: 2, 8, 8, 32>}]} {
    %cst = arith.constant 0.000000e+00 : f32
    %0 = vector.broadcast %cst : f32 to vector<2x10x10x32xf32>
    %c0 = arith.constant 0 : index
    %c0_0 = arith.constant 0 : index
    %c0_1 = arith.constant 0 : index
    %c0_2 = arith.constant 0 : index
    %1 = vector.load %arg14[%c0, %c0_0, %c0_1, %c0_2] : memref<2x10x10x32xf32, #tpu.memory_space<vmem>>, vector<2x10x10x32xf32>
    tpu.vector_store %arg14[%c0, %c0_0, %c0_1, %c0_2], %0 {strides = array<i32>} : memref<2x10x10x32xf32, #tpu.memory_space<vmem>>, vector<2x10x10x32xf32>,
    %c0_i32 = arith.constant 0 : i32
    %2 = arith.cmpi eq, %arg0, %c0_i32 : i32
    %3 = arith.extui %2 : i1 to i32
    %c0_i32_3 = arith.constant 0 : i32
    %4 = arith.cmpi ne, %3, %c0_i32_3 : i32
    scf.if %4 {
      %c0_8 = arith.constant 0 : index
      %c0_9 = arith.constant 0 : index
      %c0_10 = arith.constant 0 : index
      %c0_11 = arith.constant 0 : index
      %14 = vector.load %arg1[%c0_8, %c0_9, %c0_10, %c0_11] : memref<2x8x8x32xf32, #tpu.memory_space<vmem>>, vector<2x8x8x32xf32>
      %c0_12 = arith.constant 0 : index
      %c1 = arith.constant 1 : index
      %c1_13 = arith.constant 1 : index
      %c0_14 = arith.constant 0 : index
      %15 = vector.load %arg14[%c0_12, %c1, %c1_13, %c0_14] : memref<2x10x10x32xf32, #tpu.memory_space<vmem>>, vector<2x8x8x32xf32>
      tpu.vector_store %arg14[%c0_12, %c1, %c1_13, %c0_14], %14 {strides = array<i32>} : memref<2x10x10x32xf32, #tpu.memory_space<vmem>>, vector<2x8x8x32xf32>,
      %cst_15 = arith.constant 0.000000e+00 : f32
      %16 = vector.broadcast %cst_15 : f32 to vector<128x32xf32>
      %c0_16 = arith.constant 0 : index
      %c0_17 = arith.constant 0 : index
      %c0_18 = arith.constant 0 : index
      %c0_19 = arith.constant 0 : index
      %17 = vector.load %arg14[%c0_16, %c0_17, %c0_18, %c0_19] : memref<2x10x10x32xf32, #tpu.memory_space<vmem>>, vector<2x8x8x32xf32>
      %18 = vector.shape_cast %17 : vector<2x8x8x32xf32> to vector<128x32xf32>
      %19 = arith.truncf %18 : vector<128x32xf32> to vector<128x32xbf16>
      %c0_20 = arith.constant 0 : index
      %c0_21 = arith.constant 0 : index
      %c0_22 = arith.constant 0 : index
      %c0_23 = arith.constant 0 : index
      %20 = vector.load %arg2[%c0_20, %c0_21, %c0_22, %c0_23] : memref<1x9x32x32xbf16, #tpu.memory_space<vmem>>, vector<1x1x32x32xbf16>
      %21 = vector.shape_cast %20 : vector<1x1x32x32xbf16> to vector<32x32xbf16>
      %cst_24 = arith.constant dense<0.000000e+00> : vector<128x32xf32>
      %22 = tpu.matmul %19, %21, %cst_24 {dimension_numbers = #tpu.dot_dimension_numbers<[1], [0], [0], [1], [0, 0, 1, 1], [], []>} : vector<128x32xbf16>, vector<32x32xbf16>, vector<128x32xf32> -> vector<128x32xf32>
      %23 = arith.addf %16, %22 : vector<128x32xf32>
      %c0_25 = arith.constant 0 : index
      %c0_26 = arith.constant 0 : index
      %c1_27 = arith.constant 1 : index
      %c0_28 = arith.constant 0 : index
      %24 = vector.load %arg14[%c0_25, %c0_26, %c1_27, %c0_28] : memref<2x10x10x32xf32, #tpu.memory_space<vmem>>, vector<2x8x8x32xf32>
      %25 = vector.shape_cast %24 : vector<2x8x8x32xf32> to vector<128x32xf32>
      %26 = arith.truncf %25 : vector<128x32xf32> to vector<128x32xbf16>
      %c0_29 = arith.constant 0 : index
      %c1_30 = arith.constant 1 : index
      %c0_31 = arith.constant 0 : index
      %c0_32 = arith.constant 0 : index
      %27 = vector.load %arg2[%c0_29, %c1_30, %c0_31, %c0_32] : memref<1x9x32x32xbf16, #tpu.memory_space<vmem>>, vector<1x1x32x32xbf16>
      %28 = vector.shape_cast %27 : vector<1x1x32x32xbf16> to vector<32x32xbf16>
      %cst_33 = arith.constant dense<0.000000e+00> : vector<128x32xf32>
      %29 = tpu.matmul %26, %28, %cst_33 {dimension_numbers = #tpu.dot_dimension_numbers<[1], [0], [0], [1], [0, 0, 1, 1], [], []>} : vector<128x32xbf16>, vector<32x32xbf16>, vector<128x32xf32> -> vector<128x32xf32>
      %30 = arith.addf %23, %29 : vector<128x32xf32>
      %c0_34 = arith.constant 0 : index
      %c0_35 = arith.constant 0 : index
      %c2 = arith.constant 2 : index
      %c0_36 = arith.constant 0 : index
      %31 = vector.load %arg14[%c0_34, %c0_35, %c2, %c0_36] : memref<2x10x10x32xf32, #tpu.memory_space<vmem>>, vector<2x8x8x32xf32>
      %32 = vector.shape_cast %31 : vector<2x8x8x32xf32> to vector<128x32xf32>
      %33 = arith.truncf %32 : vector<128x32xf32> to vector<128x32xbf16>
      %c0_37 = arith.constant 0 : index
      %c2_38 = arith.constant 2 : index
      %c0_39 = arith.constant 0 : index
      %c0_40 = arith.constant 0 : index
      %34 = vector.load %arg2[%c0_37, %c2_38, %c0_39, %c0_40] : memref<1x9x32x32xbf16, #tpu.memory_space<vmem>>, vector<1x1x32x32xbf16>
      %35 = vector.shape_cast %34 : vector<1x1x32x32xbf16> to vector<32x32xbf16>
      %cst_41 = arith.constant dense<0.000000e+00> : vector<128x32xf32>
      %36 = tpu.matmul %33, %35, %cst_41 {dimension_numbers = #tpu.dot_dimension_numbers<[1], [0], [0], [1], [0, 0, 1, 1], [], []>} : vector<128x32xbf16>, vector<32x32xbf16>, vector<128x32xf32> -> vector<128x32xf32>
      %37 = arith.addf %30, %36 : vector<128x32xf32>
      %c0_42 = arith.constant 0 : index
      %c1_43 = arith.constant 1 : index
      %c0_44 = arith.constant 0 : index
      %c0_45 = arith.constant 0 : index
      %38 = vector.load %arg14[%c0_42, %c1_43, %c0_44, %c0_45] : memref<2x10x10x32xf32, #tpu.memory_space<vmem>>, vector<2x8x8x32xf32>
      %39 = vector.shape_cast %38 : vector<2x8x8x32xf32> to vector<128x32xf32>
      %40 = arith.truncf %39 : vector<128x32xf32> to vector<128x32xbf16>
      %c0_46 = arith.constant 0 : index
      %c3 = arith.constant 3 : index
      %c0_47 = arith.constant 0 : index
      %c0_48 = arith.constant 0 : index
      %41 = vector.load %arg2[%c0_46, %c3, %c0_47, %c0_48] : memref<1x9x32x32xbf16, #tpu.memory_space<vmem>>, vector<1x1x32x32xbf16>
      %42 = vector.shape_cast %41 : vector<1x1x32x32xbf16> to vector<32x32xbf16>
      %cst_49 = arith.constant dense<0.000000e+00> : vector<128x32xf32>
      %43 = tpu.matmul %40, %42, %cst_49 {dimension_numbers = #tpu.dot_dimension_numbers<[1], [0], [0], [1], [0, 0, 1, 1], [], []>} : vector<128x32xbf16>, vector<32x32xbf16>, vector<128x32xf32> -> vector<128x32xf32>
      %44 = arith.addf %37, %43 : vector<128x32xf32>
      %c0_50 = arith.constant 0 : index
      %c1_51 = arith.constant 1 : index
      %c1_52 = arith.constant 1 : index
      %c0_53 = arith.constant 0 : index
      %45 = vector.load %arg14[%c0_50, %c1_51, %c1_52, %c0_53] : memref<2x10x10x32xf32, #tpu.memory_space<vmem>>, vector<2x8x8x32xf32>
      %46 = vector.shape_cast %45 : vector<2x8x8x32xf32> to vector<128x32xf32>
      %47 = arith.truncf %46 : vector<128x32xf32> to vector<128x32xbf16>
      %c0_54 = arith.constant 0 : index
      %c4 = arith.constant 4 : index
      %c0_55 = arith.constant 0 : index
      %c0_56 = arith.constant 0 : index
      %48 = vector.load %arg2[%c0_54, %c4, %c0_55, %c0_56] : memref<1x9x32x32xbf16, #tpu.memory_space<vmem>>, vector<1x1x32x32xbf16>
      %49 = vector.shape_cast %48 : vector<1x1x32x32xbf16> to vector<32x32xbf16>
      %cst_57 = arith.constant dense<0.000000e+00> : vector<128x32xf32>
      %50 = tpu.matmul %47, %49, %cst_57 {dimension_numbers = #tpu.dot_dimension_numbers<[1], [0], [0], [1], [0, 0, 1, 1], [], []>} : vector<128x32xbf16>, vector<32x32xbf16>, vector<128x32xf32> -> vector<128x32xf32>
      %51 = arith.addf %44, %50 : vector<128x32xf32>
      %c0_58 = arith.constant 0 : index
      %c1_59 = arith.constant 1 : index
      %c2_60 = arith.constant 2 : index
      %c0_61 = arith.constant 0 : index
      %52 = vector.load %arg14[%c0_58, %c1_59, %c2_60, %c0_61] : memref<2x10x10x32xf32, #tpu.memory_space<vmem>>, vector<2x8x8x32xf32>
      %53 = vector.shape_cast %52 : vector<2x8x8x32xf32> to vector<128x32xf32>
      %54 = arith.truncf %53 : vector<128x32xf32> to vector<128x32xbf16>
      %c0_62 = arith.constant 0 : index
      %c5 = arith.constant 5 : index
      %c0_63 = arith.constant 0 : index
      %c0_64 = arith.constant 0 : index
      %55 = vector.load %arg2[%c0_62, %c5, %c0_63, %c0_64] : memref<1x9x32x32xbf16, #tpu.memory_space<vmem>>, vector<1x1x32x32xbf16>
      %56 = vector.shape_cast %55 : vector<1x1x32x32xbf16> to vector<32x32xbf16>
      %cst_65 = arith.constant dense<0.000000e+00> : vector<128x32xf32>
      %57 = tpu.matmul %54, %56, %cst_65 {dimension_numbers = #tpu.dot_dimension_numbers<[1], [0], [0], [1], [0, 0, 1, 1], [], []>} : vector<128x32xbf16>, vector<32x32xbf16>, vector<128x32xf32> -> vector<128x32xf32>
      %58 = arith.addf %51, %57 : vector<128x32xf32>
      %c0_66 = arith.constant 0 : index
      %c2_67 = arith.constant 2 : index
      %c0_68 = arith.constant 0 : index
      %c0_69 = arith.constant 0 : index
      %59 = vector.load %arg14[%c0_66, %c2_67, %c0_68, %c0_69] : memref<2x10x10x32xf32, #tpu.memory_space<vmem>>, vector<2x8x8x32xf32>
      %60 = vector.shape_cast %59 : vector<2x8x8x32xf32> to vector<128x32xf32>
      %61 = arith.truncf %60 : vector<128x32xf32> to vector<128x32xbf16>
      %c0_70 = arith.constant 0 : index
      %c6 = arith.constant 6 : index
      %c0_71 = arith.constant 0 : index
      %c0_72 = arith.constant 0 : index
      %62 = vector.load %arg2[%c0_70, %c6, %c0_71, %c0_72] : memref<1x9x32x32xbf16, #tpu.memory_space<vmem>>, vector<1x1x32x32xbf16>
      %63 = vector.shape_cast %62 : vector<1x1x32x32xbf16> to vector<32x32xbf16>
      %cst_73 = arith.constant dense<0.000000e+00> : vector<128x32xf32>
      %64 = tpu.matmul %61, %63, %cst_73 {dimension_numbers = #tpu.dot_dimension_numbers<[1], [0], [0], [1], [0, 0, 1, 1], [], []>} : vector<128x32xbf16>, vector<32x32xbf16>, vector<128x32xf32> -> vector<128x32xf32>
      %65 = arith.addf %58, %64 : vector<128x32xf32>
      %c0_74 = arith.constant 0 : index
      %c2_75 = arith.constant 2 : index
      %c1_76 = arith.constant 1 : index
      %c0_77 = arith.constant 0 : index
      %66 = vector.load %arg14[%c0_74, %c2_75, %c1_76, %c0_77] : memref<2x10x10x32xf32, #tpu.memory_space<vmem>>, vector<2x8x8x32xf32>
      %67 = vector.shape_cast %66 : vector<2x8x8x32xf32> to vector<128x32xf32>
      %68 = arith.truncf %67 : vector<128x32xf32> to vector<128x32xbf16>
      %c0_78 = arith.constant 0 : index
      %c7 = arith.constant 7 : index
      %c0_79 = arith.constant 0 : index
      %c0_80 = arith.constant 0 : index
      %69 = vector.load %arg2[%c0_78, %c7, %c0_79, %c0_80] : memref<1x9x32x32xbf16, #tpu.memory_space<vmem>>, vector<1x1x32x32xbf16>
      %70 = vector.shape_cast %69 : vector<1x1x32x32xbf16> to vector<32x32xbf16>
      %cst_81 = arith.constant dense<0.000000e+00> : vector<128x32xf32>
      %71 = tpu.matmul %68, %70, %cst_81 {dimension_numbers = #tpu.dot_dimension_numbers<[1], [0], [0], [1], [0, 0, 1, 1], [], []>} : vector<128x32xbf16>, vector<32x32xbf16>, vector<128x32xf32> -> vector<128x32xf32>
      %72 = arith.addf %65, %71 : vector<128x32xf32>
      %c0_82 = arith.constant 0 : index
      %c2_83 = arith.constant 2 : index
      %c2_84 = arith.constant 2 : index
      %c0_85 = arith.constant 0 : index
      %73 = vector.load %arg14[%c0_82, %c2_83, %c2_84, %c0_85] : memref<2x10x10x32xf32, #tpu.memory_space<vmem>>, vector<2x8x8x32xf32>
      %74 = vector.shape_cast %73 : vector<2x8x8x32xf32> to vector<128x32xf32>
      %75 = arith.truncf %74 : vector<128x32xf32> to vector<128x32xbf16>
      %c0_86 = arith.constant 0 : index
      %c8 = arith.constant 8 : index
      %c0_87 = arith.constant 0 : index
      %c0_88 = arith.constant 0 : index
      %76 = vector.load %arg2[%c0_86, %c8, %c0_87, %c0_88] : memref<1x9x32x32xbf16, #tpu.memory_space<vmem>>, vector<1x1x32x32xbf16>
      %77 = vector.shape_cast %76 : vector<1x1x32x32xbf16> to vector<32x32xbf16>
      %cst_89 = arith.constant dense<0.000000e+00> : vector<128x32xf32>
      %78 = tpu.matmul %75, %77, %cst_89 {dimension_numbers = #tpu.dot_dimension_numbers<[1], [0], [0], [1], [0, 0, 1, 1], [], []>} : vector<128x32xbf16>, vector<32x32xbf16>, vector<128x32xf32> -> vector<128x32xf32>
      %79 = arith.addf %72, %78 : vector<128x32xf32>
      %c0_90 = arith.constant 0 : index
      %c0_91 = arith.constant 0 : index
      %c0_92 = arith.constant 0 : index
      %80 = vector.load %arg3[%c0_90, %c0_91, %c0_92] : memref<1x1x32xf32, #tpu.memory_space<vmem>>, vector<1x1x32xf32>
      %81 = vector.shape_cast %80 : vector<1x1x32xf32> to vector<1x32xf32>
      %c0_93 = arith.constant 0 : index
      %c0_94 = arith.constant 0 : index
      %c0_95 = arith.constant 0 : index
      %82 = vector.load %arg4[%c0_93, %c0_94, %c0_95] : memref<1x1x32xf32, #tpu.memory_space<vmem>>, vector<1x1x32xf32>
      %83 = vector.shape_cast %82 : vector<1x1x32xf32> to vector<1x32xf32>
      %cst_96 = arith.constant dense<0.000000e+00> : vector<32xf32>
      %84 = vector.multi_reduction <add>, %79, %cst_96 [0] : vector<128x32xf32> to vector<32xf32>
      %85 = vector.shape_cast %84 : vector<32xf32> to vector<1x32xf32>
      %86 = arith.mulf %79, %79 : vector<128x32xf32>
      %cst_97 = arith.constant dense<0.000000e+00> : vector<32xf32>
      %87 = vector.multi_reduction <add>, %86, %cst_97 [0] : vector<128x32xf32> to vector<32xf32>
      %88 = vector.shape_cast %87 : vector<32xf32> to vector<1x32xf32>
      %cst_98 = arith.constant 7.812500e-03 : f32
      %89 = vector.broadcast %cst_98 : f32 to vector<1x32xf32>
      %90 = arith.mulf %85, %89 : vector<1x32xf32>
      %cst_99 = arith.constant 7.812500e-03 : f32
      %91 = vector.broadcast %cst_99 : f32 to vector<1x32xf32>
      %92 = arith.mulf %88, %91 : vector<1x32xf32>
      %93 = arith.mulf %90, %90 : vector<1x32xf32>
      %94 = arith.subf %92, %93 : vector<1x32xf32>
      %cst_100 = arith.constant 0.000000e+00 : f32
      %95 = vector.broadcast %cst_100 : f32 to vector<1x32xf32>
      %96 = arith.maximumf %94, %95 : vector<1x32xf32>
      %97 = vector.broadcast %90 : vector<1x32xf32> to vector<128x32xf32>
      %98 = arith.subf %79, %97 : vector<128x32xf32>
      %cst_101 = arith.constant 9.99999974E-6 : f32
      %99 = vector.broadcast %cst_101 : f32 to vector<1x32xf32>
      %100 = arith.addf %96, %99 : vector<1x32xf32>
      %101 = math.rsqrt %100 : vector<1x32xf32>
      %102 = arith.mulf %101, %81 : vector<1x32xf32>
      %103 = vector.broadcast %102 : vector<1x32xf32> to vector<128x32xf32>
      %104 = arith.mulf %98, %103 : vector<128x32xf32>
      %105 = vector.broadcast %83 : vector<1x32xf32> to vector<128x32xf32>
      %106 = arith.addf %104, %105 : vector<128x32xf32>
      %cst_102 = arith.constant 0.000000e+00 : f32
      %107 = vector.broadcast %cst_102 : f32 to vector<128x32xf32>
      %108 = arith.maximumf %106, %107 : vector<128x32xf32>
      %109 = vector.shape_cast %108 : vector<128x32xf32> to vector<2x8x8x32xf32>
      %c0_103 = arith.constant 0 : index
      %c0_104 = arith.constant 0 : index
      %c0_105 = arith.constant 0 : index
      %c0_106 = arith.constant 0 : index
      %110 = vector.load %arg15[%c0_103, %c0_104, %c0_105, %c0_106] : memref<2x8x8x32xf32, #tpu.memory_space<vmem>>, vector<2x8x8x32xf32>
      tpu.vector_store %arg15[%c0_103, %c0_104, %c0_105, %c0_106], %109 {strides = array<i32>} : memref<2x8x8x32xf32, #tpu.memory_space<vmem>>, vector<2x8x8x32xf32>,
    } else {
    }
    %c0_i32_4 = arith.constant 0 : i32
    %5 = arith.cmpi sgt, %arg0, %c0_i32_4 : i32
    %6 = arith.extui %5 : i1 to i32
    %c0_i32_5 = arith.constant 0 : i32
    %7 = arith.cmpi ne, %6, %c0_i32_5 : i32
    scf.if %7 {
      %c0_8 = arith.constant 0 : index
      %c0_9 = arith.constant 0 : index
      %c0_10 = arith.constant 0 : index
      %c0_11 = arith.constant 0 : index
      %14 = vector.load %arg15[%c0_8, %c0_9, %c0_10, %c0_11] : memref<2x8x8x32xf32, #tpu.memory_space<vmem>>, vector<2x8x8x32xf32>
      %c0_12 = arith.constant 0 : index
      %c1 = arith.constant 1 : index
      %c1_13 = arith.constant 1 : index
      %c0_14 = arith.constant 0 : index
      %15 = vector.load %arg14[%c0_12, %c1, %c1_13, %c0_14] : memref<2x10x10x32xf32, #tpu.memory_space<vmem>>, vector<2x8x8x32xf32>
      tpu.vector_store %arg14[%c0_12, %c1, %c1_13, %c0_14], %14 {strides = array<i32>} : memref<2x10x10x32xf32, #tpu.memory_space<vmem>>, vector<2x8x8x32xf32>,
      %cst_15 = arith.constant 0.000000e+00 : f32
      %16 = vector.broadcast %cst_15 : f32 to vector<128x32xf32>
      %c0_16 = arith.constant 0 : index
      %c0_17 = arith.constant 0 : index
      %c0_18 = arith.constant 0 : index
      %c0_19 = arith.constant 0 : index
      %17 = vector.load %arg14[%c0_16, %c0_17, %c0_18, %c0_19] : memref<2x10x10x32xf32, #tpu.memory_space<vmem>>, vector<2x8x8x32xf32>
      %18 = vector.shape_cast %17 : vector<2x8x8x32xf32> to vector<128x32xf32>
      %19 = arith.truncf %18 : vector<128x32xf32> to vector<128x32xbf16>
      %c0_20 = arith.constant 0 : index
      %c0_21 = arith.constant 0 : index
      %c0_22 = arith.constant 0 : index
      %c0_23 = arith.constant 0 : index
      %20 = vector.load %arg2[%c0_20, %c0_21, %c0_22, %c0_23] : memref<1x9x32x32xbf16, #tpu.memory_space<vmem>>, vector<1x1x32x32xbf16>
      %21 = vector.shape_cast %20 : vector<1x1x32x32xbf16> to vector<32x32xbf16>
      %cst_24 = arith.constant dense<0.000000e+00> : vector<128x32xf32>
      %22 = tpu.matmul %19, %21, %cst_24 {dimension_numbers = #tpu.dot_dimension_numbers<[1], [0], [0], [1], [0, 0, 1, 1], [], []>} : vector<128x32xbf16>, vector<32x32xbf16>, vector<128x32xf32> -> vector<128x32xf32>
      %23 = arith.addf %16, %22 : vector<128x32xf32>
      %c0_25 = arith.constant 0 : index
      %c0_26 = arith.constant 0 : index
      %c1_27 = arith.constant 1 : index
      %c0_28 = arith.constant 0 : index
      %24 = vector.load %arg14[%c0_25, %c0_26, %c1_27, %c0_28] : memref<2x10x10x32xf32, #tpu.memory_space<vmem>>, vector<2x8x8x32xf32>
      %25 = vector.shape_cast %24 : vector<2x8x8x32xf32> to vector<128x32xf32>
      %26 = arith.truncf %25 : vector<128x32xf32> to vector<128x32xbf16>
      %c0_29 = arith.constant 0 : index
      %c1_30 = arith.constant 1 : index
      %c0_31 = arith.constant 0 : index
      %c0_32 = arith.constant 0 : index
      %27 = vector.load %arg2[%c0_29, %c1_30, %c0_31, %c0_32] : memref<1x9x32x32xbf16, #tpu.memory_space<vmem>>, vector<1x1x32x32xbf16>
      %28 = vector.shape_cast %27 : vector<1x1x32x32xbf16> to vector<32x32xbf16>
      %cst_33 = arith.constant dense<0.000000e+00> : vector<128x32xf32>
      %29 = tpu.matmul %26, %28, %cst_33 {dimension_numbers = #tpu.dot_dimension_numbers<[1], [0], [0], [1], [0, 0, 1, 1], [], []>} : vector<128x32xbf16>, vector<32x32xbf16>, vector<128x32xf32> -> vector<128x32xf32>
      %30 = arith.addf %23, %29 : vector<128x32xf32>
      %c0_34 = arith.constant 0 : index
      %c0_35 = arith.constant 0 : index
      %c2 = arith.constant 2 : index
      %c0_36 = arith.constant 0 : index
      %31 = vector.load %arg14[%c0_34, %c0_35, %c2, %c0_36] : memref<2x10x10x32xf32, #tpu.memory_space<vmem>>, vector<2x8x8x32xf32>
      %32 = vector.shape_cast %31 : vector<2x8x8x32xf32> to vector<128x32xf32>
      %33 = arith.truncf %32 : vector<128x32xf32> to vector<128x32xbf16>
      %c0_37 = arith.constant 0 : index
      %c2_38 = arith.constant 2 : index
      %c0_39 = arith.constant 0 : index
      %c0_40 = arith.constant 0 : index
      %34 = vector.load %arg2[%c0_37, %c2_38, %c0_39, %c0_40] : memref<1x9x32x32xbf16, #tpu.memory_space<vmem>>, vector<1x1x32x32xbf16>
      %35 = vector.shape_cast %34 : vector<1x1x32x32xbf16> to vector<32x32xbf16>
      %cst_41 = arith.constant dense<0.000000e+00> : vector<128x32xf32>
      %36 = tpu.matmul %33, %35, %cst_41 {dimension_numbers = #tpu.dot_dimension_numbers<[1], [0], [0], [1], [0, 0, 1, 1], [], []>} : vector<128x32xbf16>, vector<32x32xbf16>, vector<128x32xf32> -> vector<128x32xf32>
      %37 = arith.addf %30, %36 : vector<128x32xf32>
      %c0_42 = arith.constant 0 : index
      %c1_43 = arith.constant 1 : index
      %c0_44 = arith.constant 0 : index
      %c0_45 = arith.constant 0 : index
      %38 = vector.load %arg14[%c0_42, %c1_43, %c0_44, %c0_45] : memref<2x10x10x32xf32, #tpu.memory_space<vmem>>, vector<2x8x8x32xf32>
      %39 = vector.shape_cast %38 : vector<2x8x8x32xf32> to vector<128x32xf32>
      %40 = arith.truncf %39 : vector<128x32xf32> to vector<128x32xbf16>
      %c0_46 = arith.constant 0 : index
      %c3 = arith.constant 3 : index
      %c0_47 = arith.constant 0 : index
      %c0_48 = arith.constant 0 : index
      %41 = vector.load %arg2[%c0_46, %c3, %c0_47, %c0_48] : memref<1x9x32x32xbf16, #tpu.memory_space<vmem>>, vector<1x1x32x32xbf16>
      %42 = vector.shape_cast %41 : vector<1x1x32x32xbf16> to vector<32x32xbf16>
      %cst_49 = arith.constant dense<0.000000e+00> : vector<128x32xf32>
      %43 = tpu.matmul %40, %42, %cst_49 {dimension_numbers = #tpu.dot_dimension_numbers<[1], [0], [0], [1], [0, 0, 1, 1], [], []>} : vector<128x32xbf16>, vector<32x32xbf16>, vector<128x32xf32> -> vector<128x32xf32>
      %44 = arith.addf %37, %43 : vector<128x32xf32>
      %c0_50 = arith.constant 0 : index
      %c1_51 = arith.constant 1 : index
      %c1_52 = arith.constant 1 : index
      %c0_53 = arith.constant 0 : index
      %45 = vector.load %arg14[%c0_50, %c1_51, %c1_52, %c0_53] : memref<2x10x10x32xf32, #tpu.memory_space<vmem>>, vector<2x8x8x32xf32>
      %46 = vector.shape_cast %45 : vector<2x8x8x32xf32> to vector<128x32xf32>
      %47 = arith.truncf %46 : vector<128x32xf32> to vector<128x32xbf16>
      %c0_54 = arith.constant 0 : index
      %c4 = arith.constant 4 : index
      %c0_55 = arith.constant 0 : index
      %c0_56 = arith.constant 0 : index
      %48 = vector.load %arg2[%c0_54, %c4, %c0_55, %c0_56] : memref<1x9x32x32xbf16, #tpu.memory_space<vmem>>, vector<1x1x32x32xbf16>
      %49 = vector.shape_cast %48 : vector<1x1x32x32xbf16> to vector<32x32xbf16>
      %cst_57 = arith.constant dense<0.000000e+00> : vector<128x32xf32>
      %50 = tpu.matmul %47, %49, %cst_57 {dimension_numbers = #tpu.dot_dimension_numbers<[1], [0], [0], [1], [0, 0, 1, 1], [], []>} : vector<128x32xbf16>, vector<32x32xbf16>, vector<128x32xf32> -> vector<128x32xf32>
      %51 = arith.addf %44, %50 : vector<128x32xf32>
      %c0_58 = arith.constant 0 : index
      %c1_59 = arith.constant 1 : index
      %c2_60 = arith.constant 2 : index
      %c0_61 = arith.constant 0 : index
      %52 = vector.load %arg14[%c0_58, %c1_59, %c2_60, %c0_61] : memref<2x10x10x32xf32, #tpu.memory_space<vmem>>, vector<2x8x8x32xf32>
      %53 = vector.shape_cast %52 : vector<2x8x8x32xf32> to vector<128x32xf32>
      %54 = arith.truncf %53 : vector<128x32xf32> to vector<128x32xbf16>
      %c0_62 = arith.constant 0 : index
      %c5 = arith.constant 5 : index
      %c0_63 = arith.constant 0 : index
      %c0_64 = arith.constant 0 : index
      %55 = vector.load %arg2[%c0_62, %c5, %c0_63, %c0_64] : memref<1x9x32x32xbf16, #tpu.memory_space<vmem>>, vector<1x1x32x32xbf16>
      %56 = vector.shape_cast %55 : vector<1x1x32x32xbf16> to vector<32x32xbf16>
      %cst_65 = arith.constant dense<0.000000e+00> : vector<128x32xf32>
      %57 = tpu.matmul %54, %56, %cst_65 {dimension_numbers = #tpu.dot_dimension_numbers<[1], [0], [0], [1], [0, 0, 1, 1], [], []>} : vector<128x32xbf16>, vector<32x32xbf16>, vector<128x32xf32> -> vector<128x32xf32>
      %58 = arith.addf %51, %57 : vector<128x32xf32>
      %c0_66 = arith.constant 0 : index
      %c2_67 = arith.constant 2 : index
      %c0_68 = arith.constant 0 : index
      %c0_69 = arith.constant 0 : index
      %59 = vector.load %arg14[%c0_66, %c2_67, %c0_68, %c0_69] : memref<2x10x10x32xf32, #tpu.memory_space<vmem>>, vector<2x8x8x32xf32>
      %60 = vector.shape_cast %59 : vector<2x8x8x32xf32> to vector<128x32xf32>
      %61 = arith.truncf %60 : vector<128x32xf32> to vector<128x32xbf16>
      %c0_70 = arith.constant 0 : index
      %c6 = arith.constant 6 : index
      %c0_71 = arith.constant 0 : index
      %c0_72 = arith.constant 0 : index
      %62 = vector.load %arg2[%c0_70, %c6, %c0_71, %c0_72] : memref<1x9x32x32xbf16, #tpu.memory_space<vmem>>, vector<1x1x32x32xbf16>
      %63 = vector.shape_cast %62 : vector<1x1x32x32xbf16> to vector<32x32xbf16>
      %cst_73 = arith.constant dense<0.000000e+00> : vector<128x32xf32>
      %64 = tpu.matmul %61, %63, %cst_73 {dimension_numbers = #tpu.dot_dimension_numbers<[1], [0], [0], [1], [0, 0, 1, 1], [], []>} : vector<128x32xbf16>, vector<32x32xbf16>, vector<128x32xf32> -> vector<128x32xf32>
      %65 = arith.addf %58, %64 : vector<128x32xf32>
      %c0_74 = arith.constant 0 : index
      %c2_75 = arith.constant 2 : index
      %c1_76 = arith.constant 1 : index
      %c0_77 = arith.constant 0 : index
      %66 = vector.load %arg14[%c0_74, %c2_75, %c1_76, %c0_77] : memref<2x10x10x32xf32, #tpu.memory_space<vmem>>, vector<2x8x8x32xf32>
      %67 = vector.shape_cast %66 : vector<2x8x8x32xf32> to vector<128x32xf32>
      %68 = arith.truncf %67 : vector<128x32xf32> to vector<128x32xbf16>
      %c0_78 = arith.constant 0 : index
      %c7 = arith.constant 7 : index
      %c0_79 = arith.constant 0 : index
      %c0_80 = arith.constant 0 : index
      %69 = vector.load %arg2[%c0_78, %c7, %c0_79, %c0_80] : memref<1x9x32x32xbf16, #tpu.memory_space<vmem>>, vector<1x1x32x32xbf16>
      %70 = vector.shape_cast %69 : vector<1x1x32x32xbf16> to vector<32x32xbf16>
      %cst_81 = arith.constant dense<0.000000e+00> : vector<128x32xf32>
      %71 = tpu.matmul %68, %70, %cst_81 {dimension_numbers = #tpu.dot_dimension_numbers<[1], [0], [0], [1], [0, 0, 1, 1], [], []>} : vector<128x32xbf16>, vector<32x32xbf16>, vector<128x32xf32> -> vector<128x32xf32>
      %72 = arith.addf %65, %71 : vector<128x32xf32>
      %c0_82 = arith.constant 0 : index
      %c2_83 = arith.constant 2 : index
      %c2_84 = arith.constant 2 : index
      %c0_85 = arith.constant 0 : index
      %73 = vector.load %arg14[%c0_82, %c2_83, %c2_84, %c0_85] : memref<2x10x10x32xf32, #tpu.memory_space<vmem>>, vector<2x8x8x32xf32>
      %74 = vector.shape_cast %73 : vector<2x8x8x32xf32> to vector<128x32xf32>
      %75 = arith.truncf %74 : vector<128x32xf32> to vector<128x32xbf16>
      %c0_86 = arith.constant 0 : index
      %c8 = arith.constant 8 : index
      %c0_87 = arith.constant 0 : index
      %c0_88 = arith.constant 0 : index
      %76 = vector.load %arg2[%c0_86, %c8, %c0_87, %c0_88] : memref<1x9x32x32xbf16, #tpu.memory_space<vmem>>, vector<1x1x32x32xbf16>
      %77 = vector.shape_cast %76 : vector<1x1x32x32xbf16> to vector<32x32xbf16>
      %cst_89 = arith.constant dense<0.000000e+00> : vector<128x32xf32>
      %78 = tpu.matmul %75, %77, %cst_89 {dimension_numbers = #tpu.dot_dimension_numbers<[1], [0], [0], [1], [0, 0, 1, 1], [], []>} : vector<128x32xbf16>, vector<32x32xbf16>, vector<128x32xf32> -> vector<128x32xf32>
      %79 = arith.addf %72, %78 : vector<128x32xf32>
      %c0_90 = arith.constant 0 : index
      %c0_91 = arith.constant 0 : index
      %c0_92 = arith.constant 0 : index
      %80 = vector.load %arg3[%c0_90, %c0_91, %c0_92] : memref<1x1x32xf32, #tpu.memory_space<vmem>>, vector<1x1x32xf32>
      %81 = vector.shape_cast %80 : vector<1x1x32xf32> to vector<1x32xf32>
      %c0_93 = arith.constant 0 : index
      %c0_94 = arith.constant 0 : index
      %c0_95 = arith.constant 0 : index
      %82 = vector.load %arg4[%c0_93, %c0_94, %c0_95] : memref<1x1x32xf32, #tpu.memory_space<vmem>>, vector<1x1x32xf32>
      %83 = vector.shape_cast %82 : vector<1x1x32xf32> to vector<1x32xf32>
      %cst_96 = arith.constant dense<0.000000e+00> : vector<32xf32>
      %84 = vector.multi_reduction <add>, %79, %cst_96 [0] : vector<128x32xf32> to vector<32xf32>
      %85 = vector.shape_cast %84 : vector<32xf32> to vector<1x32xf32>
      %86 = arith.mulf %79, %79 : vector<128x32xf32>
      %cst_97 = arith.constant dense<0.000000e+00> : vector<32xf32>
      %87 = vector.multi_reduction <add>, %86, %cst_97 [0] : vector<128x32xf32> to vector<32xf32>
      %88 = vector.shape_cast %87 : vector<32xf32> to vector<1x32xf32>
      %cst_98 = arith.constant 7.812500e-03 : f32
      %89 = vector.broadcast %cst_98 : f32 to vector<1x32xf32>
      %90 = arith.mulf %85, %89 : vector<1x32xf32>
      %cst_99 = arith.constant 7.812500e-03 : f32
      %91 = vector.broadcast %cst_99 : f32 to vector<1x32xf32>
      %92 = arith.mulf %88, %91 : vector<1x32xf32>
      %93 = arith.mulf %90, %90 : vector<1x32xf32>
      %94 = arith.subf %92, %93 : vector<1x32xf32>
      %cst_100 = arith.constant 0.000000e+00 : f32
      %95 = vector.broadcast %cst_100 : f32 to vector<1x32xf32>
      %96 = arith.maximumf %94, %95 : vector<1x32xf32>
      %97 = vector.broadcast %90 : vector<1x32xf32> to vector<128x32xf32>
      %98 = arith.subf %79, %97 : vector<128x32xf32>
      %cst_101 = arith.constant 9.99999974E-6 : f32
      %99 = vector.broadcast %cst_101 : f32 to vector<1x32xf32>
      %100 = arith.addf %96, %99 : vector<1x32xf32>
      %101 = math.rsqrt %100 : vector<1x32xf32>
      %102 = arith.mulf %101, %81 : vector<1x32xf32>
      %103 = vector.broadcast %102 : vector<1x32xf32> to vector<128x32xf32>
      %104 = arith.mulf %98, %103 : vector<128x32xf32>
      %105 = vector.broadcast %83 : vector<1x32xf32> to vector<128x32xf32>
      %106 = arith.addf %104, %105 : vector<128x32xf32>
      %cst_102 = arith.constant 0.000000e+00 : f32
      %107 = vector.broadcast %cst_102 : f32 to vector<128x32xf32>
      %108 = arith.maximumf %106, %107 : vector<128x32xf32>
      %109 = vector.shape_cast %108 : vector<128x32xf32> to vector<2x8x8x32xf32>
      %c0_103 = arith.constant 0 : index
      %c1_104 = arith.constant 1 : index
      %c1_105 = arith.constant 1 : index
      %c0_106 = arith.constant 0 : index
      %110 = vector.load %arg14[%c0_103, %c1_104, %c1_105, %c0_106] : memref<2x10x10x32xf32, #tpu.memory_space<vmem>>, vector<2x8x8x32xf32>
      tpu.vector_store %arg14[%c0_103, %c1_104, %c1_105, %c0_106], %109 {strides = array<i32>} : memref<2x10x10x32xf32, #tpu.memory_space<vmem>>, vector<2x8x8x32xf32>,
      %cst_107 = arith.constant 0.000000e+00 : f32
      %111 = vector.broadcast %cst_107 : f32 to vector<128x32xf32>
      %c0_108 = arith.constant 0 : index
      %c0_109 = arith.constant 0 : index
      %c0_110 = arith.constant 0 : index
      %c0_111 = arith.constant 0 : index
      %112 = vector.load %arg14[%c0_108, %c0_109, %c0_110, %c0_111] : memref<2x10x10x32xf32, #tpu.memory_space<vmem>>, vector<2x8x8x32xf32>
      %113 = vector.shape_cast %112 : vector<2x8x8x32xf32> to vector<128x32xf32>
      %114 = arith.truncf %113 : vector<128x32xf32> to vector<128x32xbf16>
      %c0_112 = arith.constant 0 : index
      %c0_113 = arith.constant 0 : index
      %c0_114 = arith.constant 0 : index
      %c0_115 = arith.constant 0 : index
      %115 = vector.load %arg5[%c0_112, %c0_113, %c0_114, %c0_115] : memref<1x9x32x32xbf16, #tpu.memory_space<vmem>>, vector<1x1x32x32xbf16>
      %116 = vector.shape_cast %115 : vector<1x1x32x32xbf16> to vector<32x32xbf16>
      %cst_116 = arith.constant dense<0.000000e+00> : vector<128x32xf32>
      %117 = tpu.matmul %114, %116, %cst_116 {dimension_numbers = #tpu.dot_dimension_numbers<[1], [0], [0], [1], [0, 0, 1, 1], [], []>} : vector<128x32xbf16>, vector<32x32xbf16>, vector<128x32xf32> -> vector<128x32xf32>
      %118 = arith.addf %111, %117 : vector<128x32xf32>
      %c0_117 = arith.constant 0 : index
      %c0_118 = arith.constant 0 : index
      %c1_119 = arith.constant 1 : index
      %c0_120 = arith.constant 0 : index
      %119 = vector.load %arg14[%c0_117, %c0_118, %c1_119, %c0_120] : memref<2x10x10x32xf32, #tpu.memory_space<vmem>>, vector<2x8x8x32xf32>
      %120 = vector.shape_cast %119 : vector<2x8x8x32xf32> to vector<128x32xf32>
      %121 = arith.truncf %120 : vector<128x32xf32> to vector<128x32xbf16>
      %c0_121 = arith.constant 0 : index
      %c1_122 = arith.constant 1 : index
      %c0_123 = arith.constant 0 : index
      %c0_124 = arith.constant 0 : index
      %122 = vector.load %arg5[%c0_121, %c1_122, %c0_123, %c0_124] : memref<1x9x32x32xbf16, #tpu.memory_space<vmem>>, vector<1x1x32x32xbf16>
      %123 = vector.shape_cast %122 : vector<1x1x32x32xbf16> to vector<32x32xbf16>
      %cst_125 = arith.constant dense<0.000000e+00> : vector<128x32xf32>
      %124 = tpu.matmul %121, %123, %cst_125 {dimension_numbers = #tpu.dot_dimension_numbers<[1], [0], [0], [1], [0, 0, 1, 1], [], []>} : vector<128x32xbf16>, vector<32x32xbf16>, vector<128x32xf32> -> vector<128x32xf32>
      %125 = arith.addf %118, %124 : vector<128x32xf32>
      %c0_126 = arith.constant 0 : index
      %c0_127 = arith.constant 0 : index
      %c2_128 = arith.constant 2 : index
      %c0_129 = arith.constant 0 : index
      %126 = vector.load %arg14[%c0_126, %c0_127, %c2_128, %c0_129] : memref<2x10x10x32xf32, #tpu.memory_space<vmem>>, vector<2x8x8x32xf32>
      %127 = vector.shape_cast %126 : vector<2x8x8x32xf32> to vector<128x32xf32>
      %128 = arith.truncf %127 : vector<128x32xf32> to vector<128x32xbf16>
      %c0_130 = arith.constant 0 : index
      %c2_131 = arith.constant 2 : index
      %c0_132 = arith.constant 0 : index
      %c0_133 = arith.constant 0 : index
      %129 = vector.load %arg5[%c0_130, %c2_131, %c0_132, %c0_133] : memref<1x9x32x32xbf16, #tpu.memory_space<vmem>>, vector<1x1x32x32xbf16>
      %130 = vector.shape_cast %129 : vector<1x1x32x32xbf16> to vector<32x32xbf16>
      %cst_134 = arith.constant dense<0.000000e+00> : vector<128x32xf32>
      %131 = tpu.matmul %128, %130, %cst_134 {dimension_numbers = #tpu.dot_dimension_numbers<[1], [0], [0], [1], [0, 0, 1, 1], [], []>} : vector<128x32xbf16>, vector<32x32xbf16>, vector<128x32xf32> -> vector<128x32xf32>
      %132 = arith.addf %125, %131 : vector<128x32xf32>
      %c0_135 = arith.constant 0 : index
      %c1_136 = arith.constant 1 : index
      %c0_137 = arith.constant 0 : index
      %c0_138 = arith.constant 0 : index
      %133 = vector.load %arg14[%c0_135, %c1_136, %c0_137, %c0_138] : memref<2x10x10x32xf32, #tpu.memory_space<vmem>>, vector<2x8x8x32xf32>
      %134 = vector.shape_cast %133 : vector<2x8x8x32xf32> to vector<128x32xf32>
      %135 = arith.truncf %134 : vector<128x32xf32> to vector<128x32xbf16>
      %c0_139 = arith.constant 0 : index
      %c3_140 = arith.constant 3 : index
      %c0_141 = arith.constant 0 : index
      %c0_142 = arith.constant 0 : index
      %136 = vector.load %arg5[%c0_139, %c3_140, %c0_141, %c0_142] : memref<1x9x32x32xbf16, #tpu.memory_space<vmem>>, vector<1x1x32x32xbf16>
      %137 = vector.shape_cast %136 : vector<1x1x32x32xbf16> to vector<32x32xbf16>
      %cst_143 = arith.constant dense<0.000000e+00> : vector<128x32xf32>
      %138 = tpu.matmul %135, %137, %cst_143 {dimension_numbers = #tpu.dot_dimension_numbers<[1], [0], [0], [1], [0, 0, 1, 1], [], []>} : vector<128x32xbf16>, vector<32x32xbf16>, vector<128x32xf32> -> vector<128x32xf32>
      %139 = arith.addf %132, %138 : vector<128x32xf32>
      %c0_144 = arith.constant 0 : index
      %c1_145 = arith.constant 1 : index
      %c1_146 = arith.constant 1 : index
      %c0_147 = arith.constant 0 : index
      %140 = vector.load %arg14[%c0_144, %c1_145, %c1_146, %c0_147] : memref<2x10x10x32xf32, #tpu.memory_space<vmem>>, vector<2x8x8x32xf32>
      %141 = vector.shape_cast %140 : vector<2x8x8x32xf32> to vector<128x32xf32>
      %142 = arith.truncf %141 : vector<128x32xf32> to vector<128x32xbf16>
      %c0_148 = arith.constant 0 : index
      %c4_149 = arith.constant 4 : index
      %c0_150 = arith.constant 0 : index
      %c0_151 = arith.constant 0 : index
      %143 = vector.load %arg5[%c0_148, %c4_149, %c0_150, %c0_151] : memref<1x9x32x32xbf16, #tpu.memory_space<vmem>>, vector<1x1x32x32xbf16>
      %144 = vector.shape_cast %143 : vector<1x1x32x32xbf16> to vector<32x32xbf16>
      %cst_152 = arith.constant dense<0.000000e+00> : vector<128x32xf32>
      %145 = tpu.matmul %142, %144, %cst_152 {dimension_numbers = #tpu.dot_dimension_numbers<[1], [0], [0], [1], [0, 0, 1, 1], [], []>} : vector<128x32xbf16>, vector<32x32xbf16>, vector<128x32xf32> -> vector<128x32xf32>
      %146 = arith.addf %139, %145 : vector<128x32xf32>
      %c0_153 = arith.constant 0 : index
      %c1_154 = arith.constant 1 : index
      %c2_155 = arith.constant 2 : index
      %c0_156 = arith.constant 0 : index
      %147 = vector.load %arg14[%c0_153, %c1_154, %c2_155, %c0_156] : memref<2x10x10x32xf32, #tpu.memory_space<vmem>>, vector<2x8x8x32xf32>
      %148 = vector.shape_cast %147 : vector<2x8x8x32xf32> to vector<128x32xf32>
      %149 = arith.truncf %148 : vector<128x32xf32> to vector<128x32xbf16>
      %c0_157 = arith.constant 0 : index
      %c5_158 = arith.constant 5 : index
      %c0_159 = arith.constant 0 : index
      %c0_160 = arith.constant 0 : index
      %150 = vector.load %arg5[%c0_157, %c5_158, %c0_159, %c0_160] : memref<1x9x32x32xbf16, #tpu.memory_space<vmem>>, vector<1x1x32x32xbf16>
      %151 = vector.shape_cast %150 : vector<1x1x32x32xbf16> to vector<32x32xbf16>
      %cst_161 = arith.constant dense<0.000000e+00> : vector<128x32xf32>
      %152 = tpu.matmul %149, %151, %cst_161 {dimension_numbers = #tpu.dot_dimension_numbers<[1], [0], [0], [1], [0, 0, 1, 1], [], []>} : vector<128x32xbf16>, vector<32x32xbf16>, vector<128x32xf32> -> vector<128x32xf32>
      %153 = arith.addf %146, %152 : vector<128x32xf32>
      %c0_162 = arith.constant 0 : index
      %c2_163 = arith.constant 2 : index
      %c0_164 = arith.constant 0 : index
      %c0_165 = arith.constant 0 : index
      %154 = vector.load %arg14[%c0_162, %c2_163, %c0_164, %c0_165] : memref<2x10x10x32xf32, #tpu.memory_space<vmem>>, vector<2x8x8x32xf32>
      %155 = vector.shape_cast %154 : vector<2x8x8x32xf32> to vector<128x32xf32>
      %156 = arith.truncf %155 : vector<128x32xf32> to vector<128x32xbf16>
      %c0_166 = arith.constant 0 : index
      %c6_167 = arith.constant 6 : index
      %c0_168 = arith.constant 0 : index
      %c0_169 = arith.constant 0 : index
      %157 = vector.load %arg5[%c0_166, %c6_167, %c0_168, %c0_169] : memref<1x9x32x32xbf16, #tpu.memory_space<vmem>>, vector<1x1x32x32xbf16>
      %158 = vector.shape_cast %157 : vector<1x1x32x32xbf16> to vector<32x32xbf16>
      %cst_170 = arith.constant dense<0.000000e+00> : vector<128x32xf32>
      %159 = tpu.matmul %156, %158, %cst_170 {dimension_numbers = #tpu.dot_dimension_numbers<[1], [0], [0], [1], [0, 0, 1, 1], [], []>} : vector<128x32xbf16>, vector<32x32xbf16>, vector<128x32xf32> -> vector<128x32xf32>
      %160 = arith.addf %153, %159 : vector<128x32xf32>
      %c0_171 = arith.constant 0 : index
      %c2_172 = arith.constant 2 : index
      %c1_173 = arith.constant 1 : index
      %c0_174 = arith.constant 0 : index
      %161 = vector.load %arg14[%c0_171, %c2_172, %c1_173, %c0_174] : memref<2x10x10x32xf32, #tpu.memory_space<vmem>>, vector<2x8x8x32xf32>
      %162 = vector.shape_cast %161 : vector<2x8x8x32xf32> to vector<128x32xf32>
      %163 = arith.truncf %162 : vector<128x32xf32> to vector<128x32xbf16>
      %c0_175 = arith.constant 0 : index
      %c7_176 = arith.constant 7 : index
      %c0_177 = arith.constant 0 : index
      %c0_178 = arith.constant 0 : index
      %164 = vector.load %arg5[%c0_175, %c7_176, %c0_177, %c0_178] : memref<1x9x32x32xbf16, #tpu.memory_space<vmem>>, vector<1x1x32x32xbf16>
      %165 = vector.shape_cast %164 : vector<1x1x32x32xbf16> to vector<32x32xbf16>
      %cst_179 = arith.constant dense<0.000000e+00> : vector<128x32xf32>
      %166 = tpu.matmul %163, %165, %cst_179 {dimension_numbers = #tpu.dot_dimension_numbers<[1], [0], [0], [1], [0, 0, 1, 1], [], []>} : vector<128x32xbf16>, vector<32x32xbf16>, vector<128x32xf32> -> vector<128x32xf32>
      %167 = arith.addf %160, %166 : vector<128x32xf32>
      %c0_180 = arith.constant 0 : index
      %c2_181 = arith.constant 2 : index
      %c2_182 = arith.constant 2 : index
      %c0_183 = arith.constant 0 : index
      %168 = vector.load %arg14[%c0_180, %c2_181, %c2_182, %c0_183] : memref<2x10x10x32xf32, #tpu.memory_space<vmem>>, vector<2x8x8x32xf32>
      %169 = vector.shape_cast %168 : vector<2x8x8x32xf32> to vector<128x32xf32>
      %170 = arith.truncf %169 : vector<128x32xf32> to vector<128x32xbf16>
      %c0_184 = arith.constant 0 : index
      %c8_185 = arith.constant 8 : index
      %c0_186 = arith.constant 0 : index
      %c0_187 = arith.constant 0 : index
      %171 = vector.load %arg5[%c0_184, %c8_185, %c0_186, %c0_187] : memref<1x9x32x32xbf16, #tpu.memory_space<vmem>>, vector<1x1x32x32xbf16>
      %172 = vector.shape_cast %171 : vector<1x1x32x32xbf16> to vector<32x32xbf16>
      %cst_188 = arith.constant dense<0.000000e+00> : vector<128x32xf32>
      %173 = tpu.matmul %170, %172, %cst_188 {dimension_numbers = #tpu.dot_dimension_numbers<[1], [0], [0], [1], [0, 0, 1, 1], [], []>} : vector<128x32xbf16>, vector<32x32xbf16>, vector<128x32xf32> -> vector<128x32xf32>
      %174 = arith.addf %167, %173 : vector<128x32xf32>
      %c0_189 = arith.constant 0 : index
      %c0_190 = arith.constant 0 : index
      %c0_191 = arith.constant 0 : index
      %175 = vector.load %arg6[%c0_189, %c0_190, %c0_191] : memref<1x1x32xf32, #tpu.memory_space<vmem>>, vector<1x1x32xf32>
      %176 = vector.shape_cast %175 : vector<1x1x32xf32> to vector<1x32xf32>
      %c0_192 = arith.constant 0 : index
      %c0_193 = arith.constant 0 : index
      %c0_194 = arith.constant 0 : index
      %177 = vector.load %arg7[%c0_192, %c0_193, %c0_194] : memref<1x1x32xf32, #tpu.memory_space<vmem>>, vector<1x1x32xf32>
      %178 = vector.shape_cast %177 : vector<1x1x32xf32> to vector<1x32xf32>
      %cst_195 = arith.constant dense<0.000000e+00> : vector<32xf32>
      %179 = vector.multi_reduction <add>, %174, %cst_195 [0] : vector<128x32xf32> to vector<32xf32>
      %180 = vector.shape_cast %179 : vector<32xf32> to vector<1x32xf32>
      %181 = arith.mulf %174, %174 : vector<128x32xf32>
      %cst_196 = arith.constant dense<0.000000e+00> : vector<32xf32>
      %182 = vector.multi_reduction <add>, %181, %cst_196 [0] : vector<128x32xf32> to vector<32xf32>
      %183 = vector.shape_cast %182 : vector<32xf32> to vector<1x32xf32>
      %cst_197 = arith.constant 7.812500e-03 : f32
      %184 = vector.broadcast %cst_197 : f32 to vector<1x32xf32>
      %185 = arith.mulf %180, %184 : vector<1x32xf32>
      %cst_198 = arith.constant 7.812500e-03 : f32
      %186 = vector.broadcast %cst_198 : f32 to vector<1x32xf32>
      %187 = arith.mulf %183, %186 : vector<1x32xf32>
      %188 = arith.mulf %185, %185 : vector<1x32xf32>
      %189 = arith.subf %187, %188 : vector<1x32xf32>
      %cst_199 = arith.constant 0.000000e+00 : f32
      %190 = vector.broadcast %cst_199 : f32 to vector<1x32xf32>
      %191 = arith.maximumf %189, %190 : vector<1x32xf32>
      %192 = vector.broadcast %185 : vector<1x32xf32> to vector<128x32xf32>
      %193 = arith.subf %174, %192 : vector<128x32xf32>
      %cst_200 = arith.constant 9.99999974E-6 : f32
      %194 = vector.broadcast %cst_200 : f32 to vector<1x32xf32>
      %195 = arith.addf %191, %194 : vector<1x32xf32>
      %196 = math.rsqrt %195 : vector<1x32xf32>
      %197 = arith.mulf %196, %176 : vector<1x32xf32>
      %198 = vector.broadcast %197 : vector<1x32xf32> to vector<128x32xf32>
      %199 = arith.mulf %193, %198 : vector<128x32xf32>
      %200 = vector.broadcast %178 : vector<1x32xf32> to vector<128x32xf32>
      %201 = arith.addf %199, %200 : vector<128x32xf32>
      %202 = vector.shape_cast %201 : vector<128x32xf32> to vector<2x64x32xf32>
      %cst_201 = arith.constant dense<0.000000e+00> : vector<2x32xf32>
      %203 = vector.multi_reduction <add>, %202, %cst_201 [1] : vector<2x64x32xf32> to vector<2x32xf32>
      %cst_202 = arith.constant 6.400000e+01 : f32
      %204 = vector.broadcast %cst_202 : f32 to vector<2x32xf32>
      %205 = arith.divf %203, %204 : vector<2x32xf32>
      %c0_203 = arith.constant 0 : index
      %c0_204 = arith.constant 0 : index
      %c0_205 = arith.constant 0 : index
      %206 = vector.load %arg8[%c0_203, %c0_204, %c0_205] : memref<1x32x4xf32, #tpu.memory_space<vmem>>, vector<1x32x4xf32>
      %207 = vector.shape_cast %206 : vector<1x32x4xf32> to vector<32x4xf32>
      %cst_206 = arith.constant dense<0.000000e+00> : vector<2x4xf32>
      %208 = tpu.matmul %205, %207, %cst_206 {dimension_numbers = #tpu.dot_dimension_numbers<[1], [0], [0], [1], [0, 0, 1, 1], [], []>} : vector<2x32xf32>, vector<32x4xf32>, vector<2x4xf32> -> vector<2x4xf32>
      %c0_207 = arith.constant 0 : index
      %c0_208 = arith.constant 0 : index
      %c0_209 = arith.constant 0 : index
      %209 = vector.load %arg9[%c0_207, %c0_208, %c0_209] : memref<1x1x4xf32, #tpu.memory_space<vmem>>, vector<1x1x4xf32>
      %210 = vector.shape_cast %209 : vector<1x1x4xf32> to vector<1x4xf32>
      %211 = vector.broadcast %210 : vector<1x4xf32> to vector<2x4xf32>
      %212 = arith.addf %208, %211 : vector<2x4xf32>
      %cst_210 = arith.constant 0.000000e+00 : f32
      %213 = vector.broadcast %cst_210 : f32 to vector<2x4xf32>
      %214 = arith.maximumf %212, %213 : vector<2x4xf32>
      %c0_211 = arith.constant 0 : index
      %c0_212 = arith.constant 0 : index
      %c0_213 = arith.constant 0 : index
      %215 = vector.load %arg10[%c0_211, %c0_212, %c0_213] : memref<1x4x32xf32, #tpu.memory_space<vmem>>, vector<1x4x32xf32>
      %216 = vector.shape_cast %215 : vector<1x4x32xf32> to vector<4x32xf32>
      %cst_214 = arith.constant dense<0.000000e+00> : vector<2x32xf32>
      %217 = tpu.matmul %214, %216, %cst_214 {dimension_numbers = #tpu.dot_dimension_numbers<[1], [0], [0], [1], [0, 0, 1, 1], [], []>} : vector<2x4xf32>, vector<4x32xf32>, vector<2x32xf32> -> vector<2x32xf32>
      %c0_215 = arith.constant 0 : index
      %c0_216 = arith.constant 0 : index
      %c0_217 = arith.constant 0 : index
      %218 = vector.load %arg11[%c0_215, %c0_216, %c0_217] : memref<1x1x32xf32, #tpu.memory_space<vmem>>, vector<1x1x32xf32>
      %219 = vector.shape_cast %218 : vector<1x1x32xf32> to vector<1x32xf32>
      %220 = vector.broadcast %219 : vector<1x32xf32> to vector<2x32xf32>
      %221 = arith.addf %217, %220 : vector<2x32xf32>
      %cst_218 = arith.constant 0.000000e+00 : f32
      %222 = vector.broadcast %cst_218 : f32 to vector<2x32xf32>
      %223 = arith.subf %222, %221 : vector<2x32xf32>
      %224 = math.exp %223 : vector<2x32xf32>
      %cst_219 = arith.constant 1.000000e+00 : f32
      %225 = vector.broadcast %cst_219 : f32 to vector<2x32xf32>
      %226 = arith.addf %225, %224 : vector<2x32xf32>
      %cst_220 = arith.constant 1.000000e+00 : f32
      %227 = vector.broadcast %cst_220 : f32 to vector<2x32xf32>
      %228 = arith.divf %227, %226 : vector<2x32xf32>
      %229 = vector.shape_cast %228 : vector<2x32xf32> to vector<2x1x32xf32>
      %230 = vector.broadcast %229 : vector<2x1x32xf32> to vector<2x64x32xf32>
      %231 = arith.mulf %202, %230 : vector<2x64x32xf32>
      %232 = vector.shape_cast %14 : vector<2x8x8x32xf32> to vector<2x64x32xf32>
      %233 = arith.addf %231, %232 : vector<2x64x32xf32>
      %cst_221 = arith.constant 0.000000e+00 : f32
      %234 = vector.broadcast %cst_221 : f32 to vector<2x64x32xf32>
      %235 = arith.maximumf %233, %234 : vector<2x64x32xf32>
      %236 = vector.shape_cast %235 : vector<2x64x32xf32> to vector<2x8x8x32xf32>
      %c0_222 = arith.constant 0 : index
      %c0_223 = arith.constant 0 : index
      %c0_224 = arith.constant 0 : index
      %c0_225 = arith.constant 0 : index
      %237 = vector.load %arg15[%c0_222, %c0_223, %c0_224, %c0_225] : memref<2x8x8x32xf32, #tpu.memory_space<vmem>>, vector<2x8x8x32xf32>
      tpu.vector_store %arg15[%c0_222, %c0_223, %c0_224, %c0_225], %236 {strides = array<i32>} : memref<2x8x8x32xf32, #tpu.memory_space<vmem>>, vector<2x8x8x32xf32>,
    } else {
    }
    %c4_i32 = arith.constant 4 : i32
    %8 = arith.cmpi eq, %arg0, %c4_i32 : i32
    %9 = arith.extui %8 : i1 to i32
    %c0_i32_6 = arith.constant 0 : i32
    %10 = arith.cmpi ne, %9, %c0_i32_6 : i32
    scf.if %10 {
      %c0_8 = arith.constant 0 : index
      %c0_9 = arith.constant 0 : index
      %c0_10 = arith.constant 0 : index
      %c0_11 = arith.constant 0 : index
      %14 = vector.load %arg15[%c0_8, %c0_9, %c0_10, %c0_11] : memref<2x8x8x32xf32, #tpu.memory_space<vmem>>, vector<2x8x8x32xf32>
      %c0_12 = arith.constant 0 : index
      %c0_13 = arith.constant 0 : index
      %c0_14 = arith.constant 0 : index
      %c0_15 = arith.constant 0 : index
      %15 = vector.load %arg12[%c0_12, %c0_13, %c0_14, %c0_15] : memref<2x8x8x32xf32, #tpu.memory_space<vmem>>, vector<2x8x8x32xf32>
      tpu.vector_store %arg12[%c0_12, %c0_13, %c0_14, %c0_15], %14 {strides = array<i32>} : memref<2x8x8x32xf32, #tpu.memory_space<vmem>>, vector<2x8x8x32xf32>,
    } else {
    }
    %c12_i32 = arith.constant 12 : i32
    %11 = arith.cmpi eq, %arg0, %c12_i32 : i32
    %12 = arith.extui %11 : i1 to i32
    %c0_i32_7 = arith.constant 0 : i32
    %13 = arith.cmpi ne, %12, %c0_i32_7 : i32
    scf.if %13 {
      %c0_8 = arith.constant 0 : index
      %c0_9 = arith.constant 0 : index
      %c0_10 = arith.constant 0 : index
      %c0_11 = arith.constant 0 : index
      %14 = vector.load %arg15[%c0_8, %c0_9, %c0_10, %c0_11] : memref<2x8x8x32xf32, #tpu.memory_space<vmem>>, vector<2x8x8x32xf32>
      %c0_12 = arith.constant 0 : index
      %c0_13 = arith.constant 0 : index
      %c0_14 = arith.constant 0 : index
      %c0_15 = arith.constant 0 : index
      %15 = vector.load %arg13[%c0_12, %c0_13, %c0_14, %c0_15] : memref<2x8x8x32xf32, #tpu.memory_space<vmem>>, vector<2x8x8x32xf32>
      tpu.vector_store %arg13[%c0_12, %c0_13, %c0_14, %c0_15], %14 {strides = array<i32>} : memref<2x8x8x32xf32, #tpu.memory_space<vmem>>, vector<2x8x8x32xf32>,
    } else {
    }
    return
  }
  func.func @transform_0(%arg0: i32) -> (i32, i32, i32, i32) {
    %c0_i32 = arith.constant 0 : i32
    %c0_i32_0 = arith.constant 0 : i32
    %c0_i32_1 = arith.constant 0 : i32
    %c0_i32_2 = arith.constant 0 : i32
    %c0_i32_3 = arith.constant 0 : i32
    return %c0_i32, %c0_i32_0, %c0_i32_1, %c0_i32_2 : i32, i32, i32, i32
  }
  func.func @transform_1(%arg0: i32) -> (i32, i32, i32, i32) {
    %c0_i32 = arith.constant 0 : i32
    %c0_i32_0 = arith.constant 0 : i32
    %c0_i32_1 = arith.constant 0 : i32
    %c0_i32_2 = arith.constant 0 : i32
    return %arg0, %c0_i32, %c0_i32_0, %c0_i32_1 : i32, i32, i32, i32
  }
  func.func @transform_2(%arg0: i32) -> (i32, i32, i32) {
    %c0_i32 = arith.constant 0 : i32
    %c0_i32_0 = arith.constant 0 : i32
    %c0_i32_1 = arith.constant 0 : i32
    return %arg0, %c0_i32, %c0_i32_0 : i32, i32, i32
  }
  func.func @transform_3(%arg0: i32) -> (i32, i32, i32) {
    %c0_i32 = arith.constant 0 : i32
    %c0_i32_0 = arith.constant 0 : i32
    %c0_i32_1 = arith.constant 0 : i32
    return %arg0, %c0_i32, %c0_i32_0 : i32, i32, i32
  }
  func.func @transform_4(%arg0: i32) -> (i32, i32, i32, i32) {
    %c0_i32 = arith.constant 0 : i32
    %c0_i32_0 = arith.constant 0 : i32
    %c0_i32_1 = arith.constant 0 : i32
    %c0_i32_2 = arith.constant 0 : i32
    return %arg0, %c0_i32, %c0_i32_0, %c0_i32_1 : i32, i32, i32, i32
  }
  func.func @transform_5(%arg0: i32) -> (i32, i32, i32) {
    %c0_i32 = arith.constant 0 : i32
    %c0_i32_0 = arith.constant 0 : i32
    %c0_i32_1 = arith.constant 0 : i32
    return %arg0, %c0_i32, %c0_i32_0 : i32, i32, i32
  }
  func.func @transform_6(%arg0: i32) -> (i32, i32, i32) {
    %c0_i32 = arith.constant 0 : i32
    %c0_i32_0 = arith.constant 0 : i32
    %c0_i32_1 = arith.constant 0 : i32
    return %arg0, %c0_i32, %c0_i32_0 : i32, i32, i32
  }
  func.func @transform_7(%arg0: i32) -> (i32, i32, i32) {
    %c0_i32 = arith.constant 0 : i32
    %c0_i32_0 = arith.constant 0 : i32
    %c0_i32_1 = arith.constant 0 : i32
    return %arg0, %c0_i32, %c0_i32_0 : i32, i32, i32
  }
  func.func @transform_8(%arg0: i32) -> (i32, i32, i32) {
    %c0_i32 = arith.constant 0 : i32
    %c0_i32_0 = arith.constant 0 : i32
    %c0_i32_1 = arith.constant 0 : i32
    return %arg0, %c0_i32, %c0_i32_0 : i32, i32, i32
  }
  func.func @transform_9(%arg0: i32) -> (i32, i32, i32) {
    %c0_i32 = arith.constant 0 : i32
    %c0_i32_0 = arith.constant 0 : i32
    %c0_i32_1 = arith.constant 0 : i32
    return %arg0, %c0_i32, %c0_i32_0 : i32, i32, i32
  }
  func.func @transform_10(%arg0: i32) -> (i32, i32, i32) {
    %c0_i32 = arith.constant 0 : i32
    %c0_i32_0 = arith.constant 0 : i32
    %c0_i32_1 = arith.constant 0 : i32
    return %arg0, %c0_i32, %c0_i32_0 : i32, i32, i32
  }
  func.func @transform_11(%arg0: i32) -> (i32, i32, i32, i32) {
    %c0_i32 = arith.constant 0 : i32
    %c0_i32_0 = arith.constant 0 : i32
    %c0_i32_1 = arith.constant 0 : i32
    %c0_i32_2 = arith.constant 0 : i32
    %c0_i32_3 = arith.constant 0 : i32
    return %c0_i32, %c0_i32_0, %c0_i32_1, %c0_i32_2 : i32, i32, i32, i32
  }
  func.func @transform_12(%arg0: i32) -> (i32, i32, i32, i32) {
    %c0_i32 = arith.constant 0 : i32
    %c0_i32_0 = arith.constant 0 : i32
    %c0_i32_1 = arith.constant 0 : i32
    %c0_i32_2 = arith.constant 0 : i32
    %c0_i32_3 = arith.constant 0 : i32
    return %c0_i32, %c0_i32_0, %c0_i32_1, %c0_i32_2 : i32, i32, i32, i32
  }
}

module attributes {stable_mosaic.version = 11 : i64} {
  func.func @_heads_kernel(%arg0: i32, %arg1: memref<1x2x8x8x32xf32, #tpu.memory_space<vmem>>, %arg2: memref<1x9x32x64xbf16, #tpu.memory_space<vmem>>, %arg3: memref<1x1x64xf32, #tpu.memory_space<vmem>>, %arg4: memref<1x1x64xf32, #tpu.memory_space<vmem>>, %arg5: memref<1x64x73xf32, #tpu.memory_space<vmem>>, %arg6: memref<1x1x73xf32, #tpu.memory_space<vmem>>, %arg7: memref<1x64x2xf32, #tpu.memory_space<vmem>>, %arg8: memref<1x1x2xf32, #tpu.memory_space<vmem>>, %arg9: memref<1x1x2xf32, #tpu.memory_space<vmem>>, %arg10: memref<1x128x73xf32, #tpu.memory_space<vmem>>, %arg11: memref<1x128x2xf32, #tpu.memory_space<vmem>>, %arg12: memref<2x10x10x32xf32, #tpu.memory_space<vmem>>) attributes {dimension_semantics = [#tpu.dimension_semantics<parallel>], iteration_bounds = array<i64: 2>, scalar_prefetch = 0 : i64, scratch_operands = 1 : i64, tpu.core_type = #tpu.core_type<tc>, window_params = [{transform_indices = @transform_0, window_bounds = array<i64: 1, 2, 8, 8, 32>}, {transform_indices = @transform_1, window_bounds = array<i64: 1, 9, 32, 64>}, {transform_indices = @transform_2, window_bounds = array<i64: 1, 1, 64>}, {transform_indices = @transform_3, window_bounds = array<i64: 1, 1, 64>}, {transform_indices = @transform_4, window_bounds = array<i64: 1, 64, 73>}, {transform_indices = @transform_5, window_bounds = array<i64: 1, 1, 73>}, {transform_indices = @transform_6, window_bounds = array<i64: 1, 64, 2>}, {transform_indices = @transform_7, window_bounds = array<i64: 1, 1, 2>}, {transform_indices = @transform_8, window_bounds = array<i64: 1, 1, 2>}, {transform_indices = @transform_9, window_bounds = array<i64: 1, 128, 73>}, {transform_indices = @transform_10, window_bounds = array<i64: 1, 128, 2>}]} {
    %cst = arith.constant 0.000000e+00 : f32
    %0 = vector.broadcast %cst : f32 to vector<2x10x10x32xf32>
    %c0 = arith.constant 0 : index
    %c0_0 = arith.constant 0 : index
    %c0_1 = arith.constant 0 : index
    %c0_2 = arith.constant 0 : index
    %1 = vector.load %arg12[%c0, %c0_0, %c0_1, %c0_2] : memref<2x10x10x32xf32, #tpu.memory_space<vmem>>, vector<2x10x10x32xf32>
    tpu.vector_store %arg12[%c0, %c0_0, %c0_1, %c0_2], %0 {strides = array<i32>} : memref<2x10x10x32xf32, #tpu.memory_space<vmem>>, vector<2x10x10x32xf32>,
    %c0_3 = arith.constant 0 : index
    %c0_4 = arith.constant 0 : index
    %c0_5 = arith.constant 0 : index
    %c0_6 = arith.constant 0 : index
    %c0_7 = arith.constant 0 : index
    %2 = vector.load %arg1[%c0_3, %c0_4, %c0_5, %c0_6, %c0_7] : memref<1x2x8x8x32xf32, #tpu.memory_space<vmem>>, vector<1x2x8x8x32xf32>
    %3 = vector.shape_cast %2 : vector<1x2x8x8x32xf32> to vector<2x8x8x32xf32>
    %c0_8 = arith.constant 0 : index
    %c1 = arith.constant 1 : index
    %c1_9 = arith.constant 1 : index
    %c0_10 = arith.constant 0 : index
    %4 = vector.load %arg12[%c0_8, %c1, %c1_9, %c0_10] : memref<2x10x10x32xf32, #tpu.memory_space<vmem>>, vector<2x8x8x32xf32>
    tpu.vector_store %arg12[%c0_8, %c1, %c1_9, %c0_10], %3 {strides = array<i32>} : memref<2x10x10x32xf32, #tpu.memory_space<vmem>>, vector<2x8x8x32xf32>,
    %cst_11 = arith.constant 0.000000e+00 : f32
    %5 = vector.broadcast %cst_11 : f32 to vector<128x64xf32>
    %c0_12 = arith.constant 0 : index
    %c0_13 = arith.constant 0 : index
    %c0_14 = arith.constant 0 : index
    %c0_15 = arith.constant 0 : index
    %6 = vector.load %arg12[%c0_12, %c0_13, %c0_14, %c0_15] : memref<2x10x10x32xf32, #tpu.memory_space<vmem>>, vector<2x8x8x32xf32>
    %7 = vector.shape_cast %6 : vector<2x8x8x32xf32> to vector<128x32xf32>
    %8 = arith.truncf %7 : vector<128x32xf32> to vector<128x32xbf16>
    %c0_16 = arith.constant 0 : index
    %c0_17 = arith.constant 0 : index
    %c0_18 = arith.constant 0 : index
    %c0_19 = arith.constant 0 : index
    %9 = vector.load %arg2[%c0_16, %c0_17, %c0_18, %c0_19] : memref<1x9x32x64xbf16, #tpu.memory_space<vmem>>, vector<1x1x32x64xbf16>
    %10 = vector.shape_cast %9 : vector<1x1x32x64xbf16> to vector<32x64xbf16>
    %cst_20 = arith.constant dense<0.000000e+00> : vector<128x64xf32>
    %11 = tpu.matmul %8, %10, %cst_20 {dimension_numbers = #tpu.dot_dimension_numbers<[1], [0], [0], [1], [0, 0, 1, 1], [], []>} : vector<128x32xbf16>, vector<32x64xbf16>, vector<128x64xf32> -> vector<128x64xf32>
    %12 = arith.addf %5, %11 : vector<128x64xf32>
    %c0_21 = arith.constant 0 : index
    %c0_22 = arith.constant 0 : index
    %c1_23 = arith.constant 1 : index
    %c0_24 = arith.constant 0 : index
    %13 = vector.load %arg12[%c0_21, %c0_22, %c1_23, %c0_24] : memref<2x10x10x32xf32, #tpu.memory_space<vmem>>, vector<2x8x8x32xf32>
    %14 = vector.shape_cast %13 : vector<2x8x8x32xf32> to vector<128x32xf32>
    %15 = arith.truncf %14 : vector<128x32xf32> to vector<128x32xbf16>
    %c0_25 = arith.constant 0 : index
    %c1_26 = arith.constant 1 : index
    %c0_27 = arith.constant 0 : index
    %c0_28 = arith.constant 0 : index
    %16 = vector.load %arg2[%c0_25, %c1_26, %c0_27, %c0_28] : memref<1x9x32x64xbf16, #tpu.memory_space<vmem>>, vector<1x1x32x64xbf16>
    %17 = vector.shape_cast %16 : vector<1x1x32x64xbf16> to vector<32x64xbf16>
    %cst_29 = arith.constant dense<0.000000e+00> : vector<128x64xf32>
    %18 = tpu.matmul %15, %17, %cst_29 {dimension_numbers = #tpu.dot_dimension_numbers<[1], [0], [0], [1], [0, 0, 1, 1], [], []>} : vector<128x32xbf16>, vector<32x64xbf16>, vector<128x64xf32> -> vector<128x64xf32>
    %19 = arith.addf %12, %18 : vector<128x64xf32>
    %c0_30 = arith.constant 0 : index
    %c0_31 = arith.constant 0 : index
    %c2 = arith.constant 2 : index
    %c0_32 = arith.constant 0 : index
    %20 = vector.load %arg12[%c0_30, %c0_31, %c2, %c0_32] : memref<2x10x10x32xf32, #tpu.memory_space<vmem>>, vector<2x8x8x32xf32>
    %21 = vector.shape_cast %20 : vector<2x8x8x32xf32> to vector<128x32xf32>
    %22 = arith.truncf %21 : vector<128x32xf32> to vector<128x32xbf16>
    %c0_33 = arith.constant 0 : index
    %c2_34 = arith.constant 2 : index
    %c0_35 = arith.constant 0 : index
    %c0_36 = arith.constant 0 : index
    %23 = vector.load %arg2[%c0_33, %c2_34, %c0_35, %c0_36] : memref<1x9x32x64xbf16, #tpu.memory_space<vmem>>, vector<1x1x32x64xbf16>
    %24 = vector.shape_cast %23 : vector<1x1x32x64xbf16> to vector<32x64xbf16>
    %cst_37 = arith.constant dense<0.000000e+00> : vector<128x64xf32>
    %25 = tpu.matmul %22, %24, %cst_37 {dimension_numbers = #tpu.dot_dimension_numbers<[1], [0], [0], [1], [0, 0, 1, 1], [], []>} : vector<128x32xbf16>, vector<32x64xbf16>, vector<128x64xf32> -> vector<128x64xf32>
    %26 = arith.addf %19, %25 : vector<128x64xf32>
    %c0_38 = arith.constant 0 : index
    %c1_39 = arith.constant 1 : index
    %c0_40 = arith.constant 0 : index
    %c0_41 = arith.constant 0 : index
    %27 = vector.load %arg12[%c0_38, %c1_39, %c0_40, %c0_41] : memref<2x10x10x32xf32, #tpu.memory_space<vmem>>, vector<2x8x8x32xf32>
    %28 = vector.shape_cast %27 : vector<2x8x8x32xf32> to vector<128x32xf32>
    %29 = arith.truncf %28 : vector<128x32xf32> to vector<128x32xbf16>
    %c0_42 = arith.constant 0 : index
    %c3 = arith.constant 3 : index
    %c0_43 = arith.constant 0 : index
    %c0_44 = arith.constant 0 : index
    %30 = vector.load %arg2[%c0_42, %c3, %c0_43, %c0_44] : memref<1x9x32x64xbf16, #tpu.memory_space<vmem>>, vector<1x1x32x64xbf16>
    %31 = vector.shape_cast %30 : vector<1x1x32x64xbf16> to vector<32x64xbf16>
    %cst_45 = arith.constant dense<0.000000e+00> : vector<128x64xf32>
    %32 = tpu.matmul %29, %31, %cst_45 {dimension_numbers = #tpu.dot_dimension_numbers<[1], [0], [0], [1], [0, 0, 1, 1], [], []>} : vector<128x32xbf16>, vector<32x64xbf16>, vector<128x64xf32> -> vector<128x64xf32>
    %33 = arith.addf %26, %32 : vector<128x64xf32>
    %c0_46 = arith.constant 0 : index
    %c1_47 = arith.constant 1 : index
    %c1_48 = arith.constant 1 : index
    %c0_49 = arith.constant 0 : index
    %34 = vector.load %arg12[%c0_46, %c1_47, %c1_48, %c0_49] : memref<2x10x10x32xf32, #tpu.memory_space<vmem>>, vector<2x8x8x32xf32>
    %35 = vector.shape_cast %34 : vector<2x8x8x32xf32> to vector<128x32xf32>
    %36 = arith.truncf %35 : vector<128x32xf32> to vector<128x32xbf16>
    %c0_50 = arith.constant 0 : index
    %c4 = arith.constant 4 : index
    %c0_51 = arith.constant 0 : index
    %c0_52 = arith.constant 0 : index
    %37 = vector.load %arg2[%c0_50, %c4, %c0_51, %c0_52] : memref<1x9x32x64xbf16, #tpu.memory_space<vmem>>, vector<1x1x32x64xbf16>
    %38 = vector.shape_cast %37 : vector<1x1x32x64xbf16> to vector<32x64xbf16>
    %cst_53 = arith.constant dense<0.000000e+00> : vector<128x64xf32>
    %39 = tpu.matmul %36, %38, %cst_53 {dimension_numbers = #tpu.dot_dimension_numbers<[1], [0], [0], [1], [0, 0, 1, 1], [], []>} : vector<128x32xbf16>, vector<32x64xbf16>, vector<128x64xf32> -> vector<128x64xf32>
    %40 = arith.addf %33, %39 : vector<128x64xf32>
    %c0_54 = arith.constant 0 : index
    %c1_55 = arith.constant 1 : index
    %c2_56 = arith.constant 2 : index
    %c0_57 = arith.constant 0 : index
    %41 = vector.load %arg12[%c0_54, %c1_55, %c2_56, %c0_57] : memref<2x10x10x32xf32, #tpu.memory_space<vmem>>, vector<2x8x8x32xf32>
    %42 = vector.shape_cast %41 : vector<2x8x8x32xf32> to vector<128x32xf32>
    %43 = arith.truncf %42 : vector<128x32xf32> to vector<128x32xbf16>
    %c0_58 = arith.constant 0 : index
    %c5 = arith.constant 5 : index
    %c0_59 = arith.constant 0 : index
    %c0_60 = arith.constant 0 : index
    %44 = vector.load %arg2[%c0_58, %c5, %c0_59, %c0_60] : memref<1x9x32x64xbf16, #tpu.memory_space<vmem>>, vector<1x1x32x64xbf16>
    %45 = vector.shape_cast %44 : vector<1x1x32x64xbf16> to vector<32x64xbf16>
    %cst_61 = arith.constant dense<0.000000e+00> : vector<128x64xf32>
    %46 = tpu.matmul %43, %45, %cst_61 {dimension_numbers = #tpu.dot_dimension_numbers<[1], [0], [0], [1], [0, 0, 1, 1], [], []>} : vector<128x32xbf16>, vector<32x64xbf16>, vector<128x64xf32> -> vector<128x64xf32>
    %47 = arith.addf %40, %46 : vector<128x64xf32>
    %c0_62 = arith.constant 0 : index
    %c2_63 = arith.constant 2 : index
    %c0_64 = arith.constant 0 : index
    %c0_65 = arith.constant 0 : index
    %48 = vector.load %arg12[%c0_62, %c2_63, %c0_64, %c0_65] : memref<2x10x10x32xf32, #tpu.memory_space<vmem>>, vector<2x8x8x32xf32>
    %49 = vector.shape_cast %48 : vector<2x8x8x32xf32> to vector<128x32xf32>
    %50 = arith.truncf %49 : vector<128x32xf32> to vector<128x32xbf16>
    %c0_66 = arith.constant 0 : index
    %c6 = arith.constant 6 : index
    %c0_67 = arith.constant 0 : index
    %c0_68 = arith.constant 0 : index
    %51 = vector.load %arg2[%c0_66, %c6, %c0_67, %c0_68] : memref<1x9x32x64xbf16, #tpu.memory_space<vmem>>, vector<1x1x32x64xbf16>
    %52 = vector.shape_cast %51 : vector<1x1x32x64xbf16> to vector<32x64xbf16>
    %cst_69 = arith.constant dense<0.000000e+00> : vector<128x64xf32>
    %53 = tpu.matmul %50, %52, %cst_69 {dimension_numbers = #tpu.dot_dimension_numbers<[1], [0], [0], [1], [0, 0, 1, 1], [], []>} : vector<128x32xbf16>, vector<32x64xbf16>, vector<128x64xf32> -> vector<128x64xf32>
    %54 = arith.addf %47, %53 : vector<128x64xf32>
    %c0_70 = arith.constant 0 : index
    %c2_71 = arith.constant 2 : index
    %c1_72 = arith.constant 1 : index
    %c0_73 = arith.constant 0 : index
    %55 = vector.load %arg12[%c0_70, %c2_71, %c1_72, %c0_73] : memref<2x10x10x32xf32, #tpu.memory_space<vmem>>, vector<2x8x8x32xf32>
    %56 = vector.shape_cast %55 : vector<2x8x8x32xf32> to vector<128x32xf32>
    %57 = arith.truncf %56 : vector<128x32xf32> to vector<128x32xbf16>
    %c0_74 = arith.constant 0 : index
    %c7 = arith.constant 7 : index
    %c0_75 = arith.constant 0 : index
    %c0_76 = arith.constant 0 : index
    %58 = vector.load %arg2[%c0_74, %c7, %c0_75, %c0_76] : memref<1x9x32x64xbf16, #tpu.memory_space<vmem>>, vector<1x1x32x64xbf16>
    %59 = vector.shape_cast %58 : vector<1x1x32x64xbf16> to vector<32x64xbf16>
    %cst_77 = arith.constant dense<0.000000e+00> : vector<128x64xf32>
    %60 = tpu.matmul %57, %59, %cst_77 {dimension_numbers = #tpu.dot_dimension_numbers<[1], [0], [0], [1], [0, 0, 1, 1], [], []>} : vector<128x32xbf16>, vector<32x64xbf16>, vector<128x64xf32> -> vector<128x64xf32>
    %61 = arith.addf %54, %60 : vector<128x64xf32>
    %c0_78 = arith.constant 0 : index
    %c2_79 = arith.constant 2 : index
    %c2_80 = arith.constant 2 : index
    %c0_81 = arith.constant 0 : index
    %62 = vector.load %arg12[%c0_78, %c2_79, %c2_80, %c0_81] : memref<2x10x10x32xf32, #tpu.memory_space<vmem>>, vector<2x8x8x32xf32>
    %63 = vector.shape_cast %62 : vector<2x8x8x32xf32> to vector<128x32xf32>
    %64 = arith.truncf %63 : vector<128x32xf32> to vector<128x32xbf16>
    %c0_82 = arith.constant 0 : index
    %c8 = arith.constant 8 : index
    %c0_83 = arith.constant 0 : index
    %c0_84 = arith.constant 0 : index
    %65 = vector.load %arg2[%c0_82, %c8, %c0_83, %c0_84] : memref<1x9x32x64xbf16, #tpu.memory_space<vmem>>, vector<1x1x32x64xbf16>
    %66 = vector.shape_cast %65 : vector<1x1x32x64xbf16> to vector<32x64xbf16>
    %cst_85 = arith.constant dense<0.000000e+00> : vector<128x64xf32>
    %67 = tpu.matmul %64, %66, %cst_85 {dimension_numbers = #tpu.dot_dimension_numbers<[1], [0], [0], [1], [0, 0, 1, 1], [], []>} : vector<128x32xbf16>, vector<32x64xbf16>, vector<128x64xf32> -> vector<128x64xf32>
    %68 = arith.addf %61, %67 : vector<128x64xf32>
    %c0_86 = arith.constant 0 : index
    %c0_87 = arith.constant 0 : index
    %c0_88 = arith.constant 0 : index
    %69 = vector.load %arg3[%c0_86, %c0_87, %c0_88] : memref<1x1x64xf32, #tpu.memory_space<vmem>>, vector<1x1x64xf32>
    %70 = vector.shape_cast %69 : vector<1x1x64xf32> to vector<1x64xf32>
    %c0_89 = arith.constant 0 : index
    %c0_90 = arith.constant 0 : index
    %c0_91 = arith.constant 0 : index
    %71 = vector.load %arg4[%c0_89, %c0_90, %c0_91] : memref<1x1x64xf32, #tpu.memory_space<vmem>>, vector<1x1x64xf32>
    %72 = vector.shape_cast %71 : vector<1x1x64xf32> to vector<1x64xf32>
    %cst_92 = arith.constant dense<0.000000e+00> : vector<64xf32>
    %73 = vector.multi_reduction <add>, %68, %cst_92 [0] : vector<128x64xf32> to vector<64xf32>
    %74 = vector.shape_cast %73 : vector<64xf32> to vector<1x64xf32>
    %75 = arith.mulf %68, %68 : vector<128x64xf32>
    %cst_93 = arith.constant dense<0.000000e+00> : vector<64xf32>
    %76 = vector.multi_reduction <add>, %75, %cst_93 [0] : vector<128x64xf32> to vector<64xf32>
    %77 = vector.shape_cast %76 : vector<64xf32> to vector<1x64xf32>
    %cst_94 = arith.constant 7.812500e-03 : f32
    %78 = vector.broadcast %cst_94 : f32 to vector<1x64xf32>
    %79 = arith.mulf %74, %78 : vector<1x64xf32>
    %cst_95 = arith.constant 7.812500e-03 : f32
    %80 = vector.broadcast %cst_95 : f32 to vector<1x64xf32>
    %81 = arith.mulf %77, %80 : vector<1x64xf32>
    %82 = arith.mulf %79, %79 : vector<1x64xf32>
    %83 = arith.subf %81, %82 : vector<1x64xf32>
    %cst_96 = arith.constant 0.000000e+00 : f32
    %84 = vector.broadcast %cst_96 : f32 to vector<1x64xf32>
    %85 = arith.maximumf %83, %84 : vector<1x64xf32>
    %86 = vector.broadcast %79 : vector<1x64xf32> to vector<128x64xf32>
    %87 = arith.subf %68, %86 : vector<128x64xf32>
    %cst_97 = arith.constant 9.99999974E-6 : f32
    %88 = vector.broadcast %cst_97 : f32 to vector<1x64xf32>
    %89 = arith.addf %85, %88 : vector<1x64xf32>
    %90 = math.rsqrt %89 : vector<1x64xf32>
    %91 = arith.mulf %90, %70 : vector<1x64xf32>
    %92 = vector.broadcast %91 : vector<1x64xf32> to vector<128x64xf32>
    %93 = arith.mulf %87, %92 : vector<128x64xf32>
    %94 = vector.broadcast %72 : vector<1x64xf32> to vector<128x64xf32>
    %95 = arith.addf %93, %94 : vector<128x64xf32>
    %cst_98 = arith.constant 0.000000e+00 : f32
    %96 = vector.broadcast %cst_98 : f32 to vector<128x64xf32>
    %97 = arith.maximumf %95, %96 : vector<128x64xf32>
    %c0_99 = arith.constant 0 : index
    %c0_100 = arith.constant 0 : index
    %c0_101 = arith.constant 0 : index
    %98 = vector.load %arg5[%c0_99, %c0_100, %c0_101] : memref<1x64x73xf32, #tpu.memory_space<vmem>>, vector<1x64x73xf32>
    %99 = vector.shape_cast %98 : vector<1x64x73xf32> to vector<64x73xf32>
    %cst_102 = arith.constant dense<0.000000e+00> : vector<128x73xf32>
    %100 = tpu.matmul %97, %99, %cst_102 {dimension_numbers = #tpu.dot_dimension_numbers<[1], [0], [0], [1], [0, 0, 1, 1], [], []>} : vector<128x64xf32>, vector<64x73xf32>, vector<128x73xf32> -> vector<128x73xf32>
    %c0_103 = arith.constant 0 : index
    %c0_104 = arith.constant 0 : index
    %c0_105 = arith.constant 0 : index
    %101 = vector.load %arg6[%c0_103, %c0_104, %c0_105] : memref<1x1x73xf32, #tpu.memory_space<vmem>>, vector<1x1x73xf32>
    %102 = vector.shape_cast %101 : vector<1x1x73xf32> to vector<1x73xf32>
    %103 = vector.broadcast %102 : vector<1x73xf32> to vector<128x73xf32>
    %104 = arith.addf %100, %103 : vector<128x73xf32>
    %c0_106 = arith.constant 0 : index
    %c0_107 = arith.constant 0 : index
    %c0_108 = arith.constant 0 : index
    %105 = vector.load %arg10[%c0_106, %c0_107, %c0_108] : memref<1x128x73xf32, #tpu.memory_space<vmem>>, vector<1x128x73xf32>
    %106 = vector.shape_cast %105 : vector<1x128x73xf32> to vector<128x73xf32>
    %107 = vector.shape_cast %104 : vector<128x73xf32> to vector<1x128x73xf32>
    tpu.vector_store %arg10[%c0_106, %c0_107, %c0_108], %107 {strides = array<i32>} : memref<1x128x73xf32, #tpu.memory_space<vmem>>, vector<1x128x73xf32>,
    %c0_109 = arith.constant 0 : index
    %c0_110 = arith.constant 0 : index
    %c0_111 = arith.constant 0 : index
    %108 = vector.load %arg7[%c0_109, %c0_110, %c0_111] : memref<1x64x2xf32, #tpu.memory_space<vmem>>, vector<1x64x2xf32>
    %109 = vector.shape_cast %108 : vector<1x64x2xf32> to vector<64x2xf32>
    %cst_112 = arith.constant dense<0.000000e+00> : vector<128x2xf32>
    %110 = tpu.matmul %97, %109, %cst_112 {dimension_numbers = #tpu.dot_dimension_numbers<[1], [0], [0], [1], [0, 0, 1, 1], [], []>} : vector<128x64xf32>, vector<64x2xf32>, vector<128x2xf32> -> vector<128x2xf32>
    %c0_113 = arith.constant 0 : index
    %c0_114 = arith.constant 0 : index
    %c0_115 = arith.constant 0 : index
    %111 = vector.load %arg8[%c0_113, %c0_114, %c0_115] : memref<1x1x2xf32, #tpu.memory_space<vmem>>, vector<1x1x2xf32>
    %112 = vector.shape_cast %111 : vector<1x1x2xf32> to vector<1x2xf32>
    %c0_116 = arith.constant 0 : index
    %c0_117 = arith.constant 0 : index
    %c0_118 = arith.constant 0 : index
    %113 = vector.load %arg9[%c0_116, %c0_117, %c0_118] : memref<1x1x2xf32, #tpu.memory_space<vmem>>, vector<1x1x2xf32>
    %114 = vector.shape_cast %113 : vector<1x1x2xf32> to vector<1x2xf32>
    %cst_119 = arith.constant dense<0.000000e+00> : vector<2xf32>
    %115 = vector.multi_reduction <add>, %110, %cst_119 [0] : vector<128x2xf32> to vector<2xf32>
    %116 = vector.shape_cast %115 : vector<2xf32> to vector<1x2xf32>
    %117 = arith.mulf %110, %110 : vector<128x2xf32>
    %cst_120 = arith.constant dense<0.000000e+00> : vector<2xf32>
    %118 = vector.multi_reduction <add>, %117, %cst_120 [0] : vector<128x2xf32> to vector<2xf32>
    %119 = vector.shape_cast %118 : vector<2xf32> to vector<1x2xf32>
    %cst_121 = arith.constant 7.812500e-03 : f32
    %120 = vector.broadcast %cst_121 : f32 to vector<1x2xf32>
    %121 = arith.mulf %116, %120 : vector<1x2xf32>
    %cst_122 = arith.constant 7.812500e-03 : f32
    %122 = vector.broadcast %cst_122 : f32 to vector<1x2xf32>
    %123 = arith.mulf %119, %122 : vector<1x2xf32>
    %124 = arith.mulf %121, %121 : vector<1x2xf32>
    %125 = arith.subf %123, %124 : vector<1x2xf32>
    %cst_123 = arith.constant 0.000000e+00 : f32
    %126 = vector.broadcast %cst_123 : f32 to vector<1x2xf32>
    %127 = arith.maximumf %125, %126 : vector<1x2xf32>
    %128 = vector.broadcast %121 : vector<1x2xf32> to vector<128x2xf32>
    %129 = arith.subf %110, %128 : vector<128x2xf32>
    %cst_124 = arith.constant 9.99999974E-6 : f32
    %130 = vector.broadcast %cst_124 : f32 to vector<1x2xf32>
    %131 = arith.addf %127, %130 : vector<1x2xf32>
    %132 = math.rsqrt %131 : vector<1x2xf32>
    %133 = arith.mulf %132, %112 : vector<1x2xf32>
    %134 = vector.broadcast %133 : vector<1x2xf32> to vector<128x2xf32>
    %135 = arith.mulf %129, %134 : vector<128x2xf32>
    %136 = vector.broadcast %114 : vector<1x2xf32> to vector<128x2xf32>
    %137 = arith.addf %135, %136 : vector<128x2xf32>
    %cst_125 = arith.constant 0.000000e+00 : f32
    %138 = vector.broadcast %cst_125 : f32 to vector<128x2xf32>
    %139 = arith.maximumf %137, %138 : vector<128x2xf32>
    %c0_126 = arith.constant 0 : index
    %c0_127 = arith.constant 0 : index
    %c0_128 = arith.constant 0 : index
    %140 = vector.load %arg11[%c0_126, %c0_127, %c0_128] : memref<1x128x2xf32, #tpu.memory_space<vmem>>, vector<1x128x2xf32>
    %141 = vector.shape_cast %140 : vector<1x128x2xf32> to vector<128x2xf32>
    %142 = vector.shape_cast %139 : vector<128x2xf32> to vector<1x128x2xf32>
    tpu.vector_store %arg11[%c0_126, %c0_127, %c0_128], %142 {strides = array<i32>} : memref<1x128x2xf32, #tpu.memory_space<vmem>>, vector<1x128x2xf32>,
    return
  }
  func.func @transform_0(%arg0: i32) -> (i32, i32, i32, i32, i32) {
    %c0_i32 = arith.constant 0 : i32
    %c0_i32_0 = arith.constant 0 : i32
    %c0_i32_1 = arith.constant 0 : i32
    %c0_i32_2 = arith.constant 0 : i32
    %c0_i32_3 = arith.constant 0 : i32
    return %arg0, %c0_i32, %c0_i32_0, %c0_i32_1, %c0_i32_2 : i32, i32, i32, i32, i32
  }
  func.func @transform_1(%arg0: i32) -> (i32, i32, i32, i32) {
    %c0_i32 = arith.constant 0 : i32
    %c0_i32_0 = arith.constant 0 : i32
    %c0_i32_1 = arith.constant 0 : i32
    %c0_i32_2 = arith.constant 0 : i32
    return %arg0, %c0_i32, %c0_i32_0, %c0_i32_1 : i32, i32, i32, i32
  }
  func.func @transform_2(%arg0: i32) -> (i32, i32, i32) {
    %c0_i32 = arith.constant 0 : i32
    %c0_i32_0 = arith.constant 0 : i32
    %c0_i32_1 = arith.constant 0 : i32
    return %arg0, %c0_i32, %c0_i32_0 : i32, i32, i32
  }
  func.func @transform_3(%arg0: i32) -> (i32, i32, i32) {
    %c0_i32 = arith.constant 0 : i32
    %c0_i32_0 = arith.constant 0 : i32
    %c0_i32_1 = arith.constant 0 : i32
    return %arg0, %c0_i32, %c0_i32_0 : i32, i32, i32
  }
  func.func @transform_4(%arg0: i32) -> (i32, i32, i32) {
    %c0_i32 = arith.constant 0 : i32
    %c0_i32_0 = arith.constant 0 : i32
    %c0_i32_1 = arith.constant 0 : i32
    return %arg0, %c0_i32, %c0_i32_0 : i32, i32, i32
  }
  func.func @transform_5(%arg0: i32) -> (i32, i32, i32) {
    %c0_i32 = arith.constant 0 : i32
    %c0_i32_0 = arith.constant 0 : i32
    %c0_i32_1 = arith.constant 0 : i32
    return %arg0, %c0_i32, %c0_i32_0 : i32, i32, i32
  }
  func.func @transform_6(%arg0: i32) -> (i32, i32, i32) {
    %c0_i32 = arith.constant 0 : i32
    %c0_i32_0 = arith.constant 0 : i32
    %c0_i32_1 = arith.constant 0 : i32
    return %arg0, %c0_i32, %c0_i32_0 : i32, i32, i32
  }
  func.func @transform_7(%arg0: i32) -> (i32, i32, i32) {
    %c0_i32 = arith.constant 0 : i32
    %c0_i32_0 = arith.constant 0 : i32
    %c0_i32_1 = arith.constant 0 : i32
    return %arg0, %c0_i32, %c0_i32_0 : i32, i32, i32
  }
  func.func @transform_8(%arg0: i32) -> (i32, i32, i32) {
    %c0_i32 = arith.constant 0 : i32
    %c0_i32_0 = arith.constant 0 : i32
    %c0_i32_1 = arith.constant 0 : i32
    return %arg0, %c0_i32, %c0_i32_0 : i32, i32, i32
  }
  func.func @transform_9(%arg0: i32) -> (i32, i32, i32) {
    %c0_i32 = arith.constant 0 : i32
    %c0_i32_0 = arith.constant 0 : i32
    %c0_i32_1 = arith.constant 0 : i32
    return %arg0, %c0_i32, %c0_i32_0 : i32, i32, i32
  }
  func.func @transform_10(%arg0: i32) -> (i32, i32, i32) {
    %c0_i32 = arith.constant 0 : i32
    %c0_i32_0 = arith.constant 0 : i32
    %c0_i32_1 = arith.constant 0 : i32
    return %arg0, %c0_i32, %c0_i32_0 : i32, i32, i32
  }
}

</mosaic_0001>

<bundles_post_ra>
// kernel: chess_resnet_forward.3
= control target key start
LH: loop header
LB: loop body
LE: loop exit
PB: predicated region body
PF: predicated region fallthrough
CT: control target
= control target key end

     0   :  { %s3900_s13 = smov 0   ;;  %s4777_s0 = inlined_call_operand.vmem [shape: f32[2,2,8,8,32], index: 0, kind: input, shape index: {}]   ;;  %s4778_s1 = inlined_call_operand.vmem [shape: bf16[2,9,32,64], index: 1, kind: input, shape index: {}]   ;;  %s4779_s2 = inlined_call_operand.vmem [shape: f32[2,1,64], index: 2, kind: input, shape index: {}]   ;;  %s4780_s3 = inlined_call_operand.vmem [shape: f32[2,1,64], index: 3, kind: input, shape index: {}]   ;;  %s4781_s4 = inlined_call_operand.vmem [shape: f32[2,64,73], index: 4, kind: input, shape index: {}]   ;;  %s4782_s5 = inlined_call_operand.vmem [shape: f32[2,1,73], index: 5, kind: input, shape index: {}]   ;;  %s4783_s6 = inlined_call_operand.vmem [shape: f32[2,64,2], index: 6, kind: input, shape index: {}]   ;;  %s4784_s7 = inlined_call_operand.vmem [shape: f32[2,1,2], index: 7, kind: input, shape index: {}]   ;;  %s4785_s8 = inlined_call_operand.vmem [shape: f32[2,1,2], index: 8, kind: input, shape index: {}]   ;;  %s4786_s9 = inlined_call_operand.vmem [shape: f32[2,128,73], index: 9, kind: output, shape index: {0}]   ;;  %s4787_s10 = inlined_call_operand.vmem [shape: f32[2,128,2], index: 10, kind: output, shape index: {1}]  }
   0x1 LB: > { %s3062_s14 = sadd.s32 4294967295, %s3842_s13   ;;  %p3066_p0 = scmp.ge.s32.totalorder %s3842_s13, 1  ;;  %s3842_s13 = sphi %s3900_s13, %s21_s13  }
   0x2   : > { %p385_p1 = scmp.lt.s32.totalorder %s3842_s13, 3 }
   0x4   : > { %p386_p2 = pnand %p3066_p0, %p385_p1 }
   0x5   : > { %p3910_p3 = scmp.lt.s32.totalorder (!%p386_p2), %s3062_s14, 1  ;;  %vm504_vm0 = vcmask (!%p386_p2), 261120   ;;  %vm506_vm1 = vcmask (!%p386_p2), 254976   ;;  %v3844_v0 = vmov (!%p386_p2), 0.0   ;;  %vm2151_vm2 = vcmask (!%p386_p2), 523264  }
   0x6   : > { %389 = sbr.rel (%p386_p2) target bundleno = 810 (0x32a), region = 56  ;;  %505 = vst.msk [vmem:[#allocation2] sm:$0xff] (!%p386_p2), %vm504_vm0, %v3844_v0  ;;  %508 = vst.msk [vmem:[#allocation2 + $0x10] sm:$0xff] (!%p386_p2), %vm504_vm0, %v3844_v0  ;;  %vm2532_vm3 = vcmask (!%p386_p2), 596992   ;;  %vm2704_vm4 = vcmask (!%p386_p2), 15360  }
   0x7   : > { %507 = vst.msk [vmem:[#allocation2 + $0x8] sm:$0x3] (!%p386_p2), %vm506_vm1, %v3844_v0  ;;  %509 = vst.msk [vmem:[#allocation2 + $0x18] sm:$0x3] (!%p386_p2), %vm506_vm1, %v3844_v0 }
   0x8   : > { %510 = vst.msk [vmem:[#allocation2 + $0x20] sm:$0xff] (!%p386_p2), %vm504_vm0, %v3844_v0  ;;  %512 = vst.msk [vmem:[#allocation2 + $0x30] sm:$0xff] (!%p386_p2), %vm504_vm0, %v3844_v0 }
   0x9   : > { %511 = vst.msk [vmem:[#allocation2 + $0x28] sm:$0x3] (!%p386_p2), %vm506_vm1, %v3844_v0  ;;  %513 = vst.msk [vmem:[#allocation2 + $0x38] sm:$0x3] (!%p386_p2), %vm506_vm1, %v3844_v0 }
   0xa   : > { %514 = vst.msk [vmem:[#allocation2 + $0x40] sm:$0xff] (!%p386_p2), %vm504_vm0, %v3844_v0  ;;  %516 = vst.msk [vmem:[#allocation2 + $0x50] sm:$0xff] (!%p386_p2), %vm504_vm0, %v3844_v0 }
   0xb   : > { %515 = vst.msk [vmem:[#allocation2 + $0x48] sm:$0x3] (!%p386_p2), %vm506_vm1, %v3844_v0  ;;  %517 = vst.msk [vmem:[#allocation2 + $0x58] sm:$0x3] (!%p386_p2), %vm506_vm1, %v3844_v0 }
   0xc   : > { %518 = vst.msk [vmem:[#allocation2 + $0x60] sm:$0xff] (!%p386_p2), %vm504_vm0, %v3844_v0  ;;  %520 = vst.msk [vmem:[#allocation2 + $0x70] sm:$0xff] (!%p386_p2), %vm504_vm0, %v3844_v0 }
   0xd   : > { %519 = vst.msk [vmem:[#allocation2 + $0x68] sm:$0x3] %vm506_vm1, %v3844_v0  ;;  %521 = vst.msk [vmem:[#allocation2 + $0x78] sm:$0x3] %vm506_vm1, %v3844_v0  ;;  %s4790_s14 = smov (!%p3910_p3, %s3062_s14), 1  ;;  %v579_v61 = vld [vmem:[#allocation2] sm:$0xff] }
   0xe   : > { %522 = vst.msk [vmem:[#allocation2 + $0x80] sm:$0xff] %vm504_vm0, %v3844_v0  ;;  %524 = vst.msk [vmem:[#allocation2 + $0x90] sm:$0xff] %vm504_vm0, %v3844_v0  ;;  %s3804_s16 = smul.u32 144, %s4790_s14  ;;  %s3962_s17 = sshll.u32 %s4790_s14, 7  ;;  %v607_v8 = vld [vmem:[#allocation2 + $0x1] sm:$0xff] }
   0xf   : > { %523 = vst.msk [vmem:[#allocation2 + $0x88] sm:$0x3] %vm506_vm1, %v3844_v0  ;;  %525 = vst.msk [vmem:[#allocation2 + $0x98] sm:$0x3] %vm506_vm1, %v3844_v0  ;;  %s3968_s20 = scalar_lea.vmem %s4777_s0, %s3962_s17  ;;  %s3238_s24 = sshll.u32 %s4790_s14, 6 }
  0x10   : > { %526 = vst.msk [vmem:[#allocation2 + $0xa0] sm:$0xff] %vm504_vm0, %v3844_v0  ;;  %528 = vst.msk [vmem:[#allocation2 + $0xb0] sm:$0xff] %vm504_vm0, %v3844_v0  ;;  %s3973_s23 = scalar_lea.vmem %s4778_s1, %s3804_s16  ;;  %v546_v1 = vld [vmem:[%s3968_s20] sm:$0xff]  ;;  %v547_v2 = vld [vmem:[%s3968_s20 + $0x8] sm:$0xff]  ;;  %s478_s27 = scalar_lea.vmem %s4781_s4, %s3238_s24 }
  0x11   : > { %527 = vst.msk [vmem:[#allocation2 + $0xa8] sm:$0x3] %vm506_vm1, %v3844_v0  ;;  %529 = vst.msk [vmem:[#allocation2 + $0xb8] sm:$0x3] %vm506_vm1, %v3844_v0  ;;  %v548_v3 = vld [vmem:[%s3968_s20 + $0x10] sm:$0xff]  ;;  %v3816_v6 = vld [vmem:[%s3973_s23 + $0x18] sm:$0xff]   ;;  %s4286_s30 = scalar_lea.vmem %s4783_s6, %s3238_s24  ;;  %s470_s15 = scalar_lea.vmem %s4779_s2, %s4790_s14 }
  0x12   : > { %530 = vst.msk [vmem:[#allocation2 + $0xc0] sm:$0xff] %vm504_vm0, %v3844_v0  ;;  %532 = vst.msk [vmem:[#allocation2 + $0xd0] sm:$0xff] %vm504_vm0, %v3844_v0  ;;  %v3814_v4 = vld [vmem:[%s3973_s23 + $0x10] sm:$0xff]   ;;  %v3988_v7 = vld [vmem:[%s3973_s23 + $0x38] sm:$0xff]   ;;  %s473_s19 = scalar_lea.vmem %s4780_s3, %s4790_s14  ;;  %s481_s22 = scalar_lea.vmem %s4782_s5, %s4790_s14 }
  0x13   : > { %531 = vst.msk [vmem:[#allocation2 + $0xc8] sm:$0x3] %vm506_vm1, %v3844_v0  ;;  %533 = vst.msk [vmem:[#allocation2 + $0xd8] sm:$0x3] %vm506_vm1, %v3844_v0  ;;  %v3983_v5 = vld [vmem:[%s3973_s23 + $0x30] sm:$0xff]   ;;  %3380 = vmatprep.subr.bf16.mxu1 %v3814_v4  ;;  %v549_v9 = vld [vmem:[%s3968_s20 + $0x18] sm:$0xff]  ;;  %s4564_s25 = scalar_lea.vmem %s4786_s9, %s3962_s17  ;;  %s489_s28 = scalar_lea.vmem %s4784_s7, %s4790_s14 }
  0x14   : > { %534 = vst.msk [vmem:[#allocation2 + $0xe0] sm:$0xff] %vm504_vm0, %v3844_v0  ;;  %536 = vst.msk [vmem:[#allocation2 + $0xf0] sm:$0xff] %vm504_vm0, %v3844_v0  ;;  %3440 = vmatprep.subr.bf16.mxu0 %v3983_v5  ;;  %3381 = vmatpush3.bf16.msra.mxu1 %v3814_v4  ;;  %v3818_v10 = vld [vmem:[%s3973_s23 + $0x40] sm:$0xff]   ;;  %v551_v12 = vld [vmem:[%s3968_s20 + $0x28] sm:$0xff]  ;;  %s492_s11 = scalar_lea.vmem %s4785_s8, %s4790_s14 }
  0x15   : > { %535 = vst.msk [vmem:[#allocation2 + $0xe8] sm:$0x3] %vm506_vm1, %v3844_v0  ;;  %537 = vst.msk [vmem:[#allocation2 + $0xf8] sm:$0x3] %vm506_vm1, %v3844_v0  ;;  %3441 = vmatpush3.bf16.msra.mxu0 %v3983_v5  ;;  %3382 = vmatprep.subr.bf16.mxu1 %v3816_v6  ;;  %v550_v11 = vld [vmem:[%s3968_s20 + $0x20] sm:$0xff]  ;;  %v552_v13 = vld [vmem:[%s3968_s20 + $0x30] sm:$0xff] }
  0x16   : > { %538 = vst.msk [vmem:[#allocation2 + $0x100] sm:$0xff] %vm504_vm0, %v3844_v0  ;;  %540 = vst.msk [vmem:[#allocation2 + $0x110] sm:$0xff] %vm504_vm0, %v3844_v0  ;;  %3442 = vmatprep.subr.bf16.mxu0 %v3988_v7  ;;  %v553_v14 = vld [vmem:[%s3968_s20 + $0x38] sm:$0xff]  ;;  %v554_v24 = vld [vmem:[%s3968_s20 + $0x40] sm:$0xff] }
  0x17   : > { %539 = vst.msk [vmem:[#allocation2 + $0x108] sm:$0x3] %vm506_vm1, %v3844_v0  ;;  %541 = vst.msk [vmem:[#allocation2 + $0x118] sm:$0x3] %vm506_vm1, %v3844_v0  ;;  %v555_v25 = vld [vmem:[%s3968_s20 + $0x48] sm:$0xff]  ;;  %v556_v26 = vld [vmem:[%s3968_s20 + $0x50] sm:$0xff] }
  0x18   : > { %542 = vst.msk [vmem:[#allocation2 + $0x120] sm:$0xff] %vm504_vm0, %v3844_v0  ;;  %544 = vst.msk [vmem:[#allocation2 + $0x130] sm:$0xff] %vm504_vm0, %v3844_v0  ;;  %3383 = vmatpush3.bf16.msra.mxu1 %v3816_v6  ;;  %v3819_v29 = vld [vmem:[%s3973_s23 + $0x48] sm:$0xff]   ;;  %v557_v33 = vld [vmem:[%s3968_s20 + $0x58] sm:$0xff] }
  0x19   : > { %543 = vst.msk [vmem:[#allocation2 + $0x128] sm:$0x3] %vm506_vm1, %v3844_v0  ;;  %545 = vst.msk [vmem:[#allocation2 + $0x138] sm:$0x3] %vm506_vm1, %v3844_v0  ;;  %3443 = vmatpush3.bf16.msra.mxu0 %v3988_v7  ;;  %v615_v38 = vld [vmem:[#allocation2 + $0xa1] sm:$0xff]  ;;  %v560_v45 = vld [vmem:[%s3968_s20 + $0x70] sm:$0xff] }
  0x1a   : > { %563 = vst.msk [vmem:[#allocation2 + $0x11] sm:$0xff] %vm504_vm0, %v546_v1  ;;  %564 = vst.msk [vmem:[#allocation2 + $0x21] sm:$0xff] %vm504_vm0, %v547_v2  ;;  %3460 = vmatprep.subr.bf16.mxu0 %v3818_v10  ;;  %v558_v43 = vld [vmem:[%s3968_s20 + $0x60] sm:$0xff]  ;;  %v559_v44 = vld [vmem:[%s3968_s20 + $0x68] sm:$0xff] }
  0x1b   : > { %565 = vst.msk [vmem:[#allocation2 + $0x31] sm:$0xff] %vm504_vm0, %v548_v3  ;;  %566 = vst.msk [vmem:[#allocation2 + $0x41] sm:$0xff] %vm504_vm0, %v549_v9  ;;  %v3820_v46 = vld [vmem:[%s3973_s23 + $0x50] sm:$0xff]   ;;  %v3821_v47 = vld [vmem:[%s3973_s23] sm:$0xff]  }
  0x1c   : > { %567 = vst.msk [vmem:[#allocation2 + $0x51] sm:$0xff] %vm504_vm0, %v550_v11  ;;  %568 = vst.msk [vmem:[#allocation2 + $0x61] sm:$0xff] %vm504_vm0, %v551_v12  ;;  %3400 = vmatprep.subr.bf16.mxu1 %v3821_v47  ;;  %v3822_v52 = vld [vmem:[%s3973_s23 + $0x8] sm:$0xff]   ;;  %v561_v56 = vld [vmem:[%s3968_s20 + $0x78] sm:$0xff] }
  0x1d   : > { %569 = vst.msk [vmem:[#allocation2 + $0x71] sm:$0xff] %vm504_vm0, %v552_v13  ;;  %570 = vst.msk [vmem:[#allocation2 + $0x81] sm:$0xff] %vm504_vm0, %v553_v14  ;;  %v3823_v1 = vld [vmem:[%s3973_s23 + $0x58] sm:$0xff]   ;;  %v3825_v2 = vld [vmem:[%s3973_s23 + $0x20] sm:$0xff]  }
  0x1e   : > { %571 = vst.msk [vmem:[#allocation2 + $0xb1] sm:$0xff] %vm504_vm0, %v554_v24  ;;  %572 = vst.msk [vmem:[#allocation2 + $0xc1] sm:$0xff] %vm504_vm0, %v555_v25  ;;  %v3826_v13 = vld [vmem:[%s3973_s23 + $0x28] sm:$0xff]  }
  0x1f   : > { %573 = vst.msk [vmem:[#allocation2 + $0xd1] sm:$0xff] %vm504_vm0, %v556_v26  ;;  %574 = vst.msk [vmem:[#allocation2 + $0xe1] sm:$0xff] %vm504_vm0, %v557_v33 }
  0x20   : > { %575 = vst.msk [vmem:[#allocation2 + $0xf1] sm:$0xff] %vm504_vm0, %v558_v43  ;;  %576 = vst.msk [vmem:[#allocation2 + $0x101] sm:$0xff] %vm504_vm0, %v559_v44  ;;  %v902_v43 = vld [vmem:[#allocation2 + $0x2] sm:$0xff] }
  0x21   : > { %v4000_v15 = vld [vmem:[#allocation2 + $0x11] sm:$0xff]  ;;  %v4004_v17 = vld [vmem:[#allocation2 + $0x20] sm:$0xff]  ;;  %577 = vst.msk [vmem:[#allocation2 + $0x111] sm:$0xff] %vm504_vm0, %v560_v45  ;;  %578 = vst.msk [vmem:[#allocation2 + $0x121] sm:$0xff] %vm504_vm0, %v561_v56 }
  0x22   : > { %v4002_v16 = vld [vmem:[#allocation2 + $0x10] sm:$0xff]  ;;  %v623_v18 = vpack.c.bf16 %v4000_v15, %v607_v8  ;;  %v4013_v20 = vld [vmem:[#allocation2 + $0x21] sm:$0xff] }
  0x23   : > { %v1096_v19 = vpack.c.bf16 %v4004_v17, %v4002_v16  ;;  %v4015_v21 = vld [vmem:[#allocation2 + $0x31] sm:$0xff]  ;;  %v4032_v27 = vld [vmem:[#allocation2 + $0x40] sm:$0xff]  ;;  %v1274_v53 = vpack.c.bf16 %v4013_v20, %v4000_v15  ;;  %v595_v6 = vpack.c.bf16 %v4002_v16, %v579_v61  ;;  %v3827_v44 = vld [vmem:[%s3973_s23 + $0x68] sm:$0xff]  }
  0x24   : > { %v4019_v22 = vpack.c.bf16 %v4015_v21, %v4013_v20  ;;  %3384 = vmatprep.mubr.msk.bf16.mxu1 %vm504_vm0, %v623_v18  ;;  %v4023_v23 = vld [vmem:[#allocation2 + $0x30] sm:$0xff]  ;;  %v4034_v28 = vld [vmem:[#allocation2 + $0x41] sm:$0xff] }
  0x25   : > { %3444 = vmatprep.mubr.msk.bf16.mxu0 %vm504_vm0, %v1096_v19  ;;  %v1097_v30 = vpack.c.bf16 %v4032_v27, %v4023_v23  ;;  %v4040_v31 = vld [vmem:[#allocation2 + $0x51] sm:$0xff]  ;;  %v4049_v35 = vld [vmem:[#allocation2 + $0x60] sm:$0xff]  ;;  %v1275_v60 = vpack.c.bf16 %v4034_v28, %v4015_v21  ;;  %v4116_v11 = vpack.c.bf16 %v4023_v23, %v4004_v17 }
  0x26   : > { %3385 = vmatmul.mubr.msk.bf16.vlgmr.msra.gmra.mrb[0].mxu1 %vm504_vm0, %v4019_v22  ;;  %v4042_v32 = vld [vmem:[#allocation2 + $0x50] sm:$0xff]  ;;  %v4047_v34 = vpack.c.bf16 %v4040_v31, %v4034_v28  ;;  %v613_v36 = vld [vmem:[#allocation2 + $0x61] sm:$0xff] }
  0x27   : > { %v4051_v37 = vld [vmem:[#allocation2 + $0x71] sm:$0xff]  ;;  %3445 = vmatmul.mubr.msk.bf16.vlgmr.msra.gmra.mrb[0].mxu0 %vm504_vm0, %v1097_v30  ;;  %v1098_v39 = vpack.c.bf16 %v4049_v35, %v4042_v32  ;;  %v4062_v42 = vld [vmem:[#allocation2 + $0x80] sm:$0xff]  ;;  %3401 = vmatpush3.bf16.msra.mxu1 %v3821_v47  ;;  %v1276_v62 = vpack.c.bf16 %v613_v36, %v4040_v31  ;;  %v4121_v12 = vpack.c.bf16 %v4042_v32, %v4032_v27 }
  0x28   : > { %v4058_v40 = vpack.c.bf16 %v4051_v37, %v613_v36  ;;  %v4060_v41 = vld [vmem:[#allocation2 + $0x70] sm:$0xff]  ;;  %3461 = vmatpush3.bf16.msra.mxu0 %v3818_v10  ;;  %3388 = vmatprep.mubr.msk.bf16.mxu1 %vm504_vm0, %v4047_v34  ;;  %v617_v51 = vld [vmem:[#allocation2 + $0xc1] sm:$0xff] }
  0x29   : > { %3448 = vmatprep.mubr.msk.bf16.mxu0 %vm504_vm0, %v1098_v39  ;;  %3462 = vmatprep.subr.bf16.mxu0 %v3819_v29  ;;  %v616_v48 = vld [vmem:[#allocation2 + $0xb1] sm:$0xff]  ;;  %v1099_v49 = vpack.c.bf16 %v4062_v42, %v4060_v41  ;;  %v619_v55 = vld [vmem:[#allocation2 + $0xe1] sm:$0xff]  ;;  %v4133_v17 = vpack.c.bf16 %v4060_v41, %v4049_v35 }
  0x2a   : > { %v627_v50 = vpack.c.bf16 %v616_v48, %v615_v38  ;;  %v618_v54 = vld [vmem:[#allocation2 + $0xd1] sm:$0xff]  ;;  %3402 = vmatprep.subr.bf16.mxu1 %v3822_v52  ;;  %v621_v63 = vld [vmem:[#allocation2 + $0x101] sm:$0xff]  ;;  %v1278_v10 = vpack.c.bf16 %v617_v51, %v616_v48 }
  0x2b   : > { %v4086_v57 = vpack.c.bf16 %v618_v54, %v617_v51  ;;  %v620_v58 = vld [vmem:[#allocation2 + $0xf1] sm:$0xff]  ;;  %3403 = vmatpush3.bf16.msra.mxu1 %v3822_v52  ;;  %v4104_v4 = vld [vmem:[#allocation2 + $0x81] sm:$0xff]  ;;  %v1279_v14 = vpack.c.bf16 %v619_v55, %v618_v54 }
  0x2c   : > { %3463 = vmatpush3.bf16.msra.mxu0 %v3819_v29  ;;  %v4089_v59 = vpack.c.bf16 %v620_v58, %v619_v55  ;;  %v622_v0 = vld [vmem:[#allocation2 + $0x111] sm:$0xff]  ;;  %3420 = vmatprep.subr.bf16.mxu1 %v3825_v2  ;;  %v3824_v8 = vld [vmem:[%s3973_s23 + $0x60] sm:$0xff]   ;;  %v1277_v9 = vpack.c.bf16 %v4104_v4, %v4051_v37  ;;  %v1280_v15 = vpack.c.bf16 %v621_v63, %v620_v58 }
  0x2d   : > { %3480 = vmatprep.subr.bf16.mxu0 %v3820_v46  ;;  %v4101_v3 = vpack.c.bf16 %v622_v0, %v621_v63  ;;  %v587_v16 = vld [vmem:[#allocation2 + $0xa0] sm:$0xff]  ;;  %v4128_v18 = vld [vmem:[#allocation2 + $0xb0] sm:$0xff] }
  0x2e   : > { %3389 = vmatmul.mubr.msk.bf16.gmra.mrb[4].mxu1 %vm504_vm0, %v4058_v40  ;;  %v4136_v19 = vld [vmem:[#allocation2 + $0x121] sm:$0xff]  ;;  %v599_v20 = vpack.c.bf16 %v4128_v18, %v587_v16  ;;  %v1436_v21 = vld [vmem:[#allocation2 + $0x12] sm:$0xff] }
  0x2f   : > { %3392 = vmatprep.mubr.msk.bf16.mxu1 %vm504_vm0, %v627_v50  ;;  %3449 = vmatmul.mubr.msk.bf16.gmra.mrb[4].mxu0 %vm504_vm0, %v1099_v49  ;;  %v1437_v23 = vld [vmem:[#allocation2 + $0x22] sm:$0xff]  ;;  %v1281_v24 = vpack.c.bf16 %v4136_v19, %v622_v0  ;;  %v4146_v27 = vld [vmem:[#allocation2 + $0xd0] sm:$0xff]  ;;  %v918_v48 = vpack.c.bf16 %v1436_v21, %v902_v43 }
  0x30   : > { %3464 = vmatprep.mubr.msk.bf16.mxu0 %vm504_vm0, %v1274_v53  ;;  %v1452_v25 = vpack.c.bf16 %v1437_v23, %v1436_v21  ;;  %v4144_v26 = vld [vmem:[#allocation2 + $0xc0] sm:$0xff]  ;;  %v4150_v29 = vld [vmem:[#allocation2 + $0xf0] sm:$0xff] }
  0x31   : > { %v4148_v28 = vld [vmem:[#allocation2 + $0xe0] sm:$0xff]  ;;  %v4155_v30 = vpack.c.bf16 %v4146_v27, %v4144_v26  ;;  %v1438_v31 = vld [vmem:[#allocation2 + $0x32] sm:$0xff] }
  0x32   : > { %v1439_v32 = vld [vmem:[#allocation2 + $0x42] sm:$0xff]  ;;  %v4160_v33 = vpack.c.bf16 %v4150_v29, %v4148_v28  ;;  %v1440_v35 = vld [vmem:[#allocation2 + $0x52] sm:$0xff]  ;;  %v4185_v54 = vpack.c.bf16 %v1438_v31, %v1437_v23 }
  0x33   : > { %v1441_v36 = vld [vmem:[#allocation2 + $0x62] sm:$0xff]  ;;  %v1453_v37 = vpack.c.bf16 %v1439_v32, %v1438_v31  ;;  %v4168_v41 = vld [vmem:[#allocation2 + $0x110] sm:$0xff]  ;;  %v4188_v58 = vpack.c.bf16 %v1440_v35, %v1439_v32 }
  0x34   : > { %v1454_v38 = vpack.c.bf16 %v1441_v36, %v1440_v35  ;;  %v4166_v39 = vld [vmem:[#allocation2 + $0x100] sm:$0xff]  ;;  %v1444_v49 = vld [vmem:[#allocation2 + $0xb2] sm:$0xff]  ;;  %v3831_v23 = vld [vmem:[%s3973_s23 + $0x88] sm:$0xff]  }
  0x35   : > { %v4174_v45 = vpack.c.bf16 %v4168_v41, %v4166_v39  ;;  %v4177_v47 = vld [vmem:[#allocation2 + $0x82] sm:$0xff]  ;;  %v3828_v51 = vld [vmem:[%s3973_s23 + $0x70] sm:$0xff]  }
  0x36   : > { %3393 = vmatmul.mubr.msk.bf16.gmra.mrb[8].mxu1 %vm504_vm0, %v4086_v57  ;;  %v1445_v50 = vld [vmem:[#allocation2 + $0xc2] sm:$0xff]  ;;  %v1446_v55 = vld [vmem:[#allocation2 + $0xd2] sm:$0xff] }
  0x37   : > { %3396 = vmatprep.mubr.msk.bf16.mxu1 %vm504_vm0, %v4089_v59  ;;  %3465 = vmatmul.mubr.msk.bf16.vlgmr.msra.gmra.mrb[0].mxu0 %vm504_vm0, %v1275_v60  ;;  %v1456_v53 = vpack.c.bf16 %v1445_v50, %v1444_v49  ;;  %v1447_v56 = vld [vmem:[#allocation2 + $0xe2] sm:$0xff]  ;;  %v1448_v60 = vld [vmem:[#allocation2 + $0xf2] sm:$0xff] }
  0x38   : > { %3481 = vmatpush3.bf16.msra.mxu0 %v3820_v46  ;;  %3468 = vmatprep.mubr.msk.bf16.mxu0 %vm504_vm0, %v1276_v62  ;;  %v1442_v46 = vld [vmem:[#allocation2 + $0x72] sm:$0xff]  ;;  %v1449_v61 = vld [vmem:[#allocation2 + $0x102] sm:$0xff]  ;;  %v1457_v62 = vpack.c.bf16 %v1447_v56, %v1446_v55 }
  0x39   : > { %3482 = vmatprep.subr.bf16.mxu0 %v3823_v1  ;;  %v1455_v52 = vpack.c.bf16 %v4177_v47, %v1442_v46  ;;  %v1458_v63 = vpack.c.bf16 %v1449_v61, %v1448_v60  ;;  %v910_v0 = vld [vmem:[#allocation2 + $0xa2] sm:$0xff] }
  0x3a   : > { %v2324_v32 = vld [vmem:[%s478_s27] sm:$0xff] }
  0x3c   : > { %3483 = vmatpush3.bf16.msra.mxu0 %v3823_v1  ;;  %v921_v1 = vpack.c.bf16 %v1442_v46, %v1441_v36  ;;  %v2326_v36 = vld [vmem:[%s478_s27 + $0x10] sm:$0xff] }
  0x3d   : > { %3500 = vmatprep.subr.bf16.mxu0 %v3824_v8 }
  0x3e   : > { %3397 = vmatmul.mubr.msk.bf16.gmra.mrb[12].mxu1 %vm504_vm0, %v4101_v3 }
  0x3f   : > { %3404 = vmatprep.mubr.msk.bf16.mxu1 %vm504_vm0, %v595_v6  ;;  %3469 = vmatmul.mubr.msk.bf16.gmra.mrb[4].mxu0 %vm504_vm0, %v1277_v9  ;;  %v4198_v6 = vld [vmem:[#allocation2 + $0x122] sm:$0xff] }
  0x40   : > { %3472 = vmatprep.mubr.msk.bf16.mxu0 %vm504_vm0, %v1278_v10  ;;  %v924_v10 = vpack.c.bf16 %v1448_v60, %v1447_v56 }
  0x46   : > { %3405 = vmatmul.mubr.msk.bf16.vlgmr.msra.gmra.mrb[0].mxu1 %vm504_vm0, %v4116_v11 }
  0x47   : > { %3408 = vmatprep.mubr.msk.bf16.mxu1 %vm504_vm0, %v4121_v12  ;;  %3421 = vmatpush3.bf16.msra.mxu1 %v3825_v2  ;;  %v1450_v2 = vld [vmem:[#allocation2 + $0x112] sm:$0xff] }
  0x48   : > { %3422 = vmatprep.subr.bf16.mxu1 %v3826_v13  ;;  %3473 = vmatmul.mubr.msk.bf16.gmra.mrb[8].mxu0 %vm504_vm0, %v1279_v14  ;;  %v1459_v9 = vpack.c.bf16 %v4198_v6, %v1450_v2  ;;  %v1622_v14 = vld [vmem:[#allocation2 + $0x90] sm:$0xff] }
  0x49   : > { %3476 = vmatprep.mubr.msk.bf16.mxu0 %vm504_vm0, %v1280_v15  ;;  %v1100_v15 = vpack.c.bf16 %v4144_v26, %v4128_v18  ;;  %v1634_v16 = vpack.c.bf16 %v1622_v14, %v4062_v42  ;;  %v1102_v18 = vpack.c.bf16 %v4166_v39, %v4150_v29  ;;  %v1095_v42 = vld [vmem:[#allocation2 + $0x120] sm:$0xff] }
  0x4a   : > { %v2328_v39 = vld [vmem:[%s478_s27 + $0x20] sm:$0xff] }
  0x4b   : > { %3423 = vmatpush3.bf16.msra.mxu1 %v3826_v13  ;;  %v3829_v13 = vld [vmem:[%s3973_s23 + $0x78] sm:$0xff]  }
  0x4c   : > { %3672 = vmatprep.subr.bf16.mxu1 %v3983_v5 }
  0x4e   : > { %3409 = vmatmul.mubr.msk.bf16.gmra.mrb[4].mxu1 %vm504_vm0, %v4133_v17 }
  0x4f   : > { %3412 = vmatprep.mubr.msk.bf16.mxu1 %vm504_vm0, %v599_v20  ;;  %v1630_v20 = vld [vmem:[#allocation2 + $0x130] sm:$0xff] }
  0x50   : > { %3477 = vmatmul.mubr.msk.bf16.gmra.mrb[12].mxu0 %vm504_vm0, %v1281_v24  ;;  %v1638_v21 = vpack.c.bf16 %v1630_v20, %v1095_v42  ;;  %v1800_v24 = vld [vmem:[#allocation2 + $0x91] sm:$0xff] }
  0x51   : > { %3484 = vmatprep.mubr.msk.bf16.mxu0 %vm504_vm0, %v1452_v25  ;;  %v1812_v25 = vpack.c.bf16 %v1800_v24, %v4104_v4 }
  0x56   : > { %3413 = vmatmul.mubr.msk.bf16.gmra.mrb[8].mxu1 %vm504_vm0, %v4155_v30 }
  0x57   : > { %3416 = vmatprep.mubr.msk.bf16.mxu1 %vm504_vm0, %v4160_v33 }
  0x58   : > { %3485 = vmatmul.mubr.msk.bf16.vlgmr.msra.gmra.mrb[0].mxu0 %vm504_vm0, %v1453_v37  ;;  %v2327_v37 = vld [vmem:[%s478_s27 + $0x18] sm:$0xff] }
  0x59   : > { %3501 = vmatpush3.bf16.msra.mxu0 %v3824_v8  ;;  %3488 = vmatprep.mubr.msk.bf16.mxu0 %vm504_vm0, %v1454_v38  ;;  %v922_v8 = vpack.c.bf16 %v1444_v49, %v910_v0  ;;  %v3644_v38 = vpack.c.bf16 %v2327_v37, %v2326_v36 }
  0x5a   : > { %3502 = vmatprep.subr.bf16.mxu0 %v3827_v44 }
  0x5d   : > { %3503 = vmatpush3.bf16.msra.mxu0 %v3827_v44  ;;  %v2330_v44 = vld [vmem:[%s478_s27 + $0x30] sm:$0xff] }
  0x5e   : > { %3417 = vmatmul.mubr.msk.bf16.gmra.mrb[12].mxu1 %vm504_vm0, %v4174_v45  ;;  %3520 = vmatprep.subr.bf16.mxu0 %v3828_v51 }
  0x5f   : > { %3424 = vmatprep.mubr.msk.bf16.mxu1 %vm504_vm0, %v918_v48 }
  0x60   : > { %3489 = vmatmul.mubr.msk.bf16.gmra.mrb[4].mxu0 %vm504_vm0, %v1455_v52  ;;  %v2550_v52 = vld [vmem:[%s4286_s30 + $0x8] sm:$0xff] }
  0x61   : > { %3492 = vmatprep.mubr.msk.bf16.mxu0 %vm504_vm0, %v1456_v53 }
  0x66   : > { %3425 = vmatmul.mubr.msk.bf16.vlgmr.msra.gmra.mrb[0].mxu1 %vm504_vm0, %v4185_v54 }
  0x67   : > { %3428 = vmatprep.mubr.msk.bf16.mxu1 %vm504_vm0, %v4188_v58  ;;  %3674 = vmatpush3.bf16.msra.mxu1 %v3983_v5  ;;  %v923_v5 = vpack.c.bf16 %v1446_v55, %v1445_v50 }
  0x68   : > { %3673 = vmatprep.subr.bf16.mxu1 %v3988_v7  ;;  %3493 = vmatmul.mubr.msk.bf16.gmra.mrb[8].mxu0 %vm504_vm0, %v1457_v62 }
  0x69   : > { %3496 = vmatprep.mubr.msk.bf16.mxu0 %vm504_vm0, %v1458_v63 }
  0x6b   : > { %3675 = vmatpush3.bf16.msra.mxu1 %v3988_v7  ;;  %v925_v7 = vpack.c.bf16 %v1450_v2, %v1449_v61 }
  0x6e   : > { %3429 = vmatmul.mubr.msk.bf16.gmra.mrb[4].mxu1 %vm504_vm0, %v921_v1 }
  0x6f   : > { %3432 = vmatprep.mubr.msk.bf16.mxu1 %vm504_vm0, %v922_v8 }
  0x70   : > { %3497 = vmatmul.mubr.msk.bf16.gmra.mrb[12].mxu0 %vm504_vm0, %v1459_v9 }
  0x71   : > { %3504 = vmatprep.mubr.msk.bf16.mxu0 %vm504_vm0, %v4116_v11  ;;  %v3830_v11 = vld [vmem:[%s3973_s23 + $0x80] sm:$0xff]  }
  0x76   : > { %3433 = vmatmul.mubr.msk.bf16.gmra.mrb[8].mxu1 %vm504_vm0, %v923_v5 }
  0x77   : > { %3436 = vmatprep.mubr.msk.bf16.mxu1 %vm504_vm0, %v924_v10 }
  0x78   : > { %3505 = vmatmul.mubr.msk.bf16.vlgmr.msra.gmra.mrb[0].mxu0 %vm504_vm0, %v4121_v12  ;;  %v1101_v12 = vpack.c.bf16 %v4148_v28, %v4146_v27 }
  0x79   : > { %3521 = vmatpush3.bf16.msra.mxu0 %v3828_v51  ;;  %3508 = vmatprep.mubr.msk.bf16.mxu0 %vm504_vm0, %v4133_v17  ;;  %v1103_v17 = vpack.c.bf16 %v1095_v42, %v4168_v41  ;;  %v2329_v41 = vld [vmem:[%s478_s27 + $0x28] sm:$0xff]  ;;  %v2549_v51 = vld [vmem:[%s4286_s30] sm:$0xff] }
  0x7a   : > { %3522 = vmatprep.subr.bf16.mxu0 %v3829_v13  ;;  %v3648_v43 = vpack.c.bf16 %v2329_v41, %v2328_v39 }
  0x7d   : > { %3523 = vmatpush3.bf16.msra.mxu0 %v3829_v13 }
  0x7e   : > { %3437 = vmatmul.mubr.msk.bf16.gmra.mrb[12].mxu1 %vm504_vm0, %v925_v7  ;;  %3540 = vmatprep.subr.bf16.mxu0 %v3830_v11 }
  0x7f   : > { %3452 = vmatprep.mubr.msk.bf16.mxu1 %vm504_vm0, %v1100_v15 }
  0x80   : > { %3509 = vmatmul.mubr.msk.bf16.gmra.mrb[4].mxu0 %vm504_vm0, %v1634_v16 }
  0x81   : > { %3512 = vmatprep.mubr.msk.bf16.mxu0 %vm504_vm0, %v4155_v30 }
  0x86   : > { %3453 = vmatmul.mubr.msk.bf16.vlgmr.msra.gmra.mrb[8].mxu1 %vm504_vm0, %v1101_v12 }
  0x87   : > { %3456 = vmatprep.mubr.msk.bf16.mxu1 %vm504_vm0, %v1102_v18 }
  0x88   : > { %3513 = vmatmul.mubr.msk.bf16.gmra.mrb[8].mxu0 %vm504_vm0, %v4160_v33  ;;  %v2325_v33 = vld [vmem:[%s478_s27 + $0x8] sm:$0xff] }
  0x89   : > { %3516 = vmatprep.mubr.msk.bf16.mxu0 %vm504_vm0, %v4174_v45  ;;  %v3640_v35 = vpack.c.bf16 %v2325_v33, %v2324_v32  ;;  %v2331_v45 = vld [vmem:[%s478_s27 + $0x38] sm:$0xff] }
  0x8b   : > { %3641 = vmatprep.subr.bf16.mxu1 %v3640_v35 }
  0x8c   : > { %3643 = vmatpush3.bf16.msra.mxu1 %v3640_v35 }
  0x8d   : > { %3645 = vmatprep.subr.bf16.mxu1 %v3644_v38 }
  0x8e   : > { %3457 = vmatmul.mubr.msk.bf16.gmra.mrb[12].mxu1 %vm504_vm0, %v1103_v17 }
  0x90   : > { %3517 = vmatmul.mubr.msk.bf16.gmra.mrb[12].mxu0 %vm504_vm0, %v1638_v21  ;;  %3647 = vmatpush3.bf16.msra.mxu1 %v3644_v38 }
  0x91   : > { %3524 = vmatprep.mubr.msk.bf16.mxu0 %vm504_vm0, %v4019_v22  ;;  %v1808_v22 = vld [vmem:[#allocation2 + $0x131] sm:$0xff]  ;;  %3649 = vmatprep.subr.bf16.mxu1 %v3648_v43 }
  0x94   : > { %3651 = vmatpush3.bf16.msra.mxu1 %v3648_v43 }
  0x98   : > { %3525 = vmatmul.mubr.msk.bf16.vlgmr.msra.gmra.mrb[0].mxu0 %vm504_vm0, %v4047_v34  ;;  %v1816_v34 = vpack.c.bf16 %v1808_v22, %v4136_v19 }
  0x99   : > { %3541 = vmatpush3.bf16.msra.mxu0 %v3830_v11  ;;  %3528 = vmatprep.mubr.msk.bf16.mxu0 %vm504_vm0, %v4058_v40  ;;  %v1978_v40 = vld [vmem:[#allocation2 + $0x92] sm:$0xff] }
  0x9a   : > { %3542 = vmatprep.subr.bf16.mxu0 %v3831_v23 }
  0x9d   : > { %3543 = vmatpush3.bf16.msra.mxu0 %v3831_v23 }
  0xa0   : > { %3529 = vmatmul.mubr.msk.bf16.gmra.mrb[4].mxu0 %vm504_vm0, %v1812_v25 }
  0xa1   : > { %3532 = vmatprep.mubr.msk.bf16.mxu0 %vm504_vm0, %v4086_v57  ;;  %v1990_v57 = vpack.c.bf16 %v1978_v40, %v4177_v47  ;;  %v3652_v47 = vpack.c.bf16 %v2331_v45, %v2330_v44 }
  0xa3   : > { %3653 = vmatprep.subr.bf16.mxu1 %v3652_v47 }
  0xa4   : > { %3655 = vmatpush3.bf16.msra.mxu1 %v3652_v47 }
  0xa8   : > { %3533 = vmatmul.mubr.msk.bf16.gmra.mrb[8].mxu0 %vm504_vm0, %v4089_v59  ;;  %v1986_v59 = vld [vmem:[#allocation2 + $0x132] sm:$0xff] }
  0xa9   : > { %3536 = vmatprep.mubr.msk.bf16.mxu0 %vm504_vm0, %v4101_v3  ;;  %v1994_v3 = vpack.c.bf16 %v1986_v59, %v4198_v6 }
  0xb0   : > { %3537 = vmatmul.mubr.msk.bf16.gmra.mrb[12].mxu0 %vm504_vm0, %v1816_v34 }
  0xb1   : > { %3544 = vmatprep.mubr.msk.bf16.mxu0 %vm504_vm0, %v4185_v54  ;;  %v4292_v54 = vpack.c.bf16 %v2550_v52, %v2549_v51 }
  0xb3   : > { %3657 = vmatprep.subr.bf16.mxu1 %v4292_v54 }
  0xb8   : > { %3545 = vmatmul.mubr.msk.bf16.vlgmr.msra.gmra.mrb[0].mxu0 %vm504_vm0, %v4188_v58 }
  0xb9   : > { %3548 = vmatprep.mubr.msk.bf16.mxu0 %vm504_vm0, %v921_v1 }
  0xc0   : > { %3549 = vmatmul.mubr.msk.bf16.gmra.mrb[4].mxu0 %vm504_vm0, %v1990_v57 }
  0xc1   : > { %3552 = vmatprep.mubr.msk.bf16.mxu0 %vm504_vm0, %v923_v5 }
  0xc8   : > { %3553 = vmatmul.mubr.msk.bf16.gmra.mrb[8].mxu0 %vm504_vm0, %v924_v10 }
  0xc9   : > { %3556 = vmatprep.mubr.msk.bf16.mxu0 %vm504_vm0, %v925_v7 }
  0xd0   : > { %3557 = vmatmul.mubr.msk.bf16.gmra.mrb[12].mxu0 %vm504_vm0, %v1994_v3 }
 0x139   : > { %v3426_v4 = vpop.f32.mrb[0].mxu1 }
 0x13a   : > { %v1001_v19 = vpop.f32.mrb[1].mxu1 }
 0x13b   : > { %v3427_v26 = vpop.f32.mrb[2].mxu1 }
 0x13c   : > { %v1004_v27 = vpop.f32.mrb[3].mxu1 }
 0x141   : > { %v3430_v28 = vpop.f32.mrb[4].mxu1 }
 0x142   : > { %v4265_v29 = vpop.f32.mrb[5].mxu1 }
 0x143   : > { %v4267_v30 = vpop.f32.mrb[6].mxu1 }
 0x144   : > { %v4269_v31 = vpop.f32.mrb[7].mxu1 }
 0x159   : > { %v4275_v46 = vpop.f32.mrb[8].mxu1 }
 0x15a   : > { %v4277_v48 = vpop.f32.mrb[9].mxu1 }
 0x15b   : > { %v4279_v49 = vpop.f32.mrb[10].mxu1 }
 0x15c   : > { %v4281_v50 = vpop.f32.mrb[11].mxu1 }
 0x161   : > { %v4290_v53 = vpop.f32.mrb[12].mxu1 }
 0x162   : > { %v4294_v55 = vpop.f32.mrb[13].mxu1 }
 0x163   : > { %v4296_v56 = vpop.f32.mrb[14].mxu1 }
 0x164   : > { %v4299_v58 = vpop.f32.mrb[15].mxu1 }
 0x18b   : > { %v3546_v60 = vpop.f32.mrb[0].mxu0 }
 0x18c   : > { %v4301_v61 = vadd.f32 %v3546_v60, %v3426_v4  ;;  %v2070_v62 = vpop.f32.mrb[1].mxu0 }
 0x18d   : > { %v4303_v63 = vadd.f32 %v2070_v62, %v1001_v19  ;;  %v3547_v0 = vpop.f32.mrb[2].mxu0 }
 0x18e   : > { %v4305_v1 = vadd.f32 %v3547_v0, %v3427_v26  ;;  %v2073_v2 = vpop.f32.mrb[3].mxu0  ;;  %v2191_v9 = vmul.f32 %v4301_v61, %v4301_v61  ;;  %v2155_v15 = vsel %vm2151_vm2, %v4301_v61, 0.0 }
 0x18f   : > { %v2189_v6 = vmul.f32 %v4303_v63, %v4303_v63  ;;  %v4309_v8 = vadd.f32 %v2073_v2, %v1004_v27  ;;  %v2152_v5 = vsel %vm2151_vm2, %v4303_v63, 0.0 }
 0x190   : > { %v2192_v7 = vmul.f32 %v4305_v1, %v4305_v1  ;;  %v2208_v21 = vsel %vm2151_vm2, %v2191_v9, 0.0  ;;  %v2157_v23 = vsel %vm2151_vm2, %v4305_v1, 0.0 }
 0x191   : > { %v2153_v10 = vsel %vm2151_vm2, %v4309_v8, 0.0  ;;  %v2190_v13 = vmul.f32 %v4309_v8, %v4309_v8  ;;  %v2205_v11 = vsel %vm2151_vm2, %v2189_v6, 0.0 }
 0x192   : > { %v2154_v14 = vadd.f32 %v2153_v10, %v2152_v5  ;;  %v2210_v22 = vsel %vm2151_vm2, %v2192_v7, 0.0 }
 0x193   : > { %v2206_v16 = vsel %vm2151_vm2, %v2190_v13, 0.0  ;;  %v3550_v12 = vpop.f32.mrb[4].mxu0 }
 0x194   : > { %v2156_v18 = vadd.f32 %v2155_v15, %v2154_v14  ;;  %v2207_v42 = vadd.f32 %v2206_v16, %v2205_v11  ;;  %v4325_v17 = vadd.f32 %v3550_v12, %v3430_v28  ;;  %v2086_v20 = vpop.f32.mrb[5].mxu0 }
 0x195   : > { %v4331_v24 = vadd.f32 %v2086_v20, %v4265_v29  ;;  %v3551_v25 = vpop.f32.mrb[6].mxu0 }
 0x196   : > { %v2209_v34 = vadd.f32 %v2208_v21, %v2207_v42  ;;  %v2158_v40 = vadd.f32 %v2157_v23, %v2156_v18  ;;  %v2089_v57 = vpop.f32.mrb[7].mxu0  ;;  %v4339_v4 = vadd.f32 %v3551_v25, %v4267_v30  ;;  %v2195_v32 = vmul.f32 %v4325_v17, %v4325_v17 }
 0x197   : > { %v2159_v59 = vsel %vm2151_vm2, %v4331_v24, 0.0  ;;  %v2193_v3 = vmul.f32 %v4331_v24, %v4331_v24  ;;  %v4342_v19 = vadd.f32 %v2089_v57, %v4269_v31  ;;  %v2163_v30 = vsel %vm2151_vm2, %v4325_v17, 0.0 }
 0x198   : > { %v2160_v26 = vadd.f32 %v2159_v59, %v2158_v40  ;;  %v2211_v27 = vadd.f32 %v2210_v22, %v2209_v34  ;;  %v2196_v37 = vmul.f32 %v4339_v4, %v4339_v4  ;;  %v2165_v44 = vsel %vm2151_vm2, %v4339_v4, 0.0 }
 0x199   : > { %v2212_v28 = vsel %vm2151_vm2, %v2193_v3, 0.0  ;;  %v2161_v29 = vsel %vm2151_vm2, %v4342_v19, 0.0  ;;  %v2194_v36 = vmul.f32 %v4342_v19, %v4342_v19  ;;  %v2216_v52 = vsel %vm2151_vm2, %v2195_v32, 0.0 }
 0x19a   : > { %v2213_v33 = vadd.f32 %v2212_v28, %v2211_v27  ;;  %v2162_v35 = vadd.f32 %v2161_v29, %v2160_v26 }
 0x19b   : > { %v3554_v31 = vpop.f32.mrb[8].mxu0  ;;  %v2214_v39 = vsel %vm2151_vm2, %v2194_v36, 0.0 }
 0x19c   : > { %v2164_v38 = vadd.f32 %v2163_v30, %v2162_v35  ;;  %v4357_v41 = vadd.f32 %v3554_v31, %v4275_v46  ;;  %v2102_v43 = vpop.f32.mrb[9].mxu0  ;;  %v2215_v45 = vadd.f32 %v2214_v39, %v2213_v33 }
 0x19d   : > { %v4362_v47 = vadd.f32 %v2102_v43, %v4277_v48  ;;  %v3555_v51 = vpop.f32.mrb[10].mxu0  ;;  %v2218_v48 = vsel %vm2151_vm2, %v2196_v37, 0.0 }
 0x19e   : > { %v2166_v60 = vadd.f32 %v2165_v44, %v2164_v38  ;;  %v4366_v62 = vadd.f32 %v3555_v51, %v4279_v49  ;;  %v2105_v0 = vpop.f32.mrb[11].mxu0  ;;  %v2217_v2 = vadd.f32 %v2216_v52, %v2215_v45  ;;  %v2199_v14 = vmul.f32 %v4357_v41, %v4357_v41 }
 0x19f   : > { %v2167_v46 = vsel %vm2151_vm2, %v4362_v47, 0.0  ;;  %v2197_v6 = vmul.f32 %v4362_v47, %v4362_v47  ;;  %v4373_v9 = vadd.f32 %v2105_v0, %v4281_v50  ;;  %v2171_v50 = vsel %vm2151_vm2, %v4357_v41, 0.0 }
 0x1a0   : > { %v2168_v5 = vadd.f32 %v2167_v46, %v2166_v60  ;;  %v2219_v10 = vadd.f32 %v2218_v48, %v2217_v2  ;;  %v2200_v18 = vmul.f32 %v4366_v62, %v4366_v62  ;;  %v2173_v23 = vsel %vm2151_vm2, %v4366_v62, 0.0 }
 0x1a1   : > { %v2220_v13 = vsel %vm2151_vm2, %v2197_v6, 0.0  ;;  %v2169_v49 = vsel %vm2151_vm2, %v4373_v9, 0.0  ;;  %v2198_v7 = vmul.f32 %v4373_v9, %v4373_v9  ;;  %v2224_v40 = vsel %vm2151_vm2, %v2199_v14, 0.0 }
 0x1a2   : > { %v2170_v15 = vadd.f32 %v2169_v49, %v2168_v5  ;;  %v2221_v11 = vadd.f32 %v2220_v13, %v2219_v10 }
 0x1a3   : > { %v2222_v16 = vsel %vm2151_vm2, %v2198_v7, 0.0  ;;  %v3558_v12 = vpop.f32.mrb[12].mxu0 }
 0x1a4   : > { %v2172_v42 = vadd.f32 %v2171_v50, %v2170_v15  ;;  %v4389_v20 = vadd.f32 %v3558_v12, %v4290_v53  ;;  %v2118_v21 = vpop.f32.mrb[13].mxu0  ;;  %v2223_v25 = vadd.f32 %v2222_v16, %v2221_v11 }
 0x1a5   : > { %v4394_v22 = vadd.f32 %v2118_v21, %v4294_v55  ;;  %v3559_v34 = vpop.f32.mrb[14].mxu0  ;;  %v2226_v55 = vsel %vm2151_vm2, %v2200_v18, 0.0 }
 0x1a6   : > { %v2174_v57 = vadd.f32 %v2173_v23, %v2172_v42  ;;  %v4398_v59 = vadd.f32 %v3559_v34, %v4296_v56  ;;  %v2121_v3 = vpop.f32.mrb[15].mxu0  ;;  %v2225_v26 = vadd.f32 %v2224_v40, %v2223_v25  ;;  %v2203_v36 = vmul.f32 %v4389_v20, %v4389_v20 }
 0x1a7   : > { %v2175_v53 = vsel %vm2151_vm2, %v4394_v22, 0.0  ;;  %v2201_v27 = vmul.f32 %v4394_v22, %v4394_v22  ;;  %v4405_v28 = vadd.f32 %v2121_v3, %v4299_v58  ;;  %v2179_v58 = vsel %vm2151_vm2, %v4389_v20, 0.0 }
 0x1a8   : > { %v2176_v29 = vadd.f32 %v2175_v53, %v2174_v57  ;;  %v2227_v32 = vadd.f32 %v2226_v55, %v2225_v26  ;;  %v2204_v38 = vmul.f32 %v4398_v59, %v4398_v59  ;;  %v2181_v43 = vsel %vm2151_vm2, %v4398_v59, 0.0 }
 0x1a9   : > { %v2228_v33 = vsel %vm2151_vm2, %v2201_v27, 0.0  ;;  %v2177_v56 = vsel %vm2151_vm2, %v4405_v28, 0.0  ;;  %v2202_v35 = vmul.f32 %v4405_v28, %v4405_v28  ;;  %v2232_v45 = vsel %vm2151_vm2, %v2203_v36, 0.0 }
 0x1aa   : > { %v2178_v30 = vadd.f32 %v2177_v56, %v2176_v29  ;;  %v2229_v31 = vadd.f32 %v2228_v33, %v2227_v32  ;;  %v2234_v60 = vsel %vm2151_vm2, %v2204_v38, 0.0  ;;  %v2552_v38 = vld [vmem:[%s4286_s30 + $0x18] sm:$0xff] }
 0x1ab   : > { %v2230_v37 = vsel %vm2151_vm2, %v2202_v35, 0.0 }
 0x1ac   : > { %v2180_v39 = vadd.f32 %v2179_v58, %v2178_v30  ;;  %v2231_v44 = vadd.f32 %v2230_v37, %v2229_v31  ;;  %v2551_v37 = vld [vmem:[%s4286_s30 + $0x10] sm:$0xff] }
 0x1ae   : > { %v2182_v51 = vadd.f32 %v2181_v43, %v2180_v39  ;;  %v2233_v52 = vadd.f32 %v2232_v45, %v2231_v44 }
 0x1b0   : > { %v2183_v0 = vrot.slane %v2182_v51, 4  ;;  %v2235_v2 = vadd.f32 %v2234_v60, %v2233_v52  ;;  %v3660_v52 = vpack.c.bf16 %v2552_v38, %v2551_v37 }
 0x1b2   : > { %v2184_v46 = vadd.f32 %v2183_v0, %v2182_v51  ;;  %v2236_v6 = vrot.slane %v2235_v2, 4 }
 0x1b4   : > { %v2185_v48 = vrot.slane %v2184_v46, 2  ;;  %v2237_v5 = vadd.f32 %v2236_v6, %v2235_v2  ;;  %v2554_v6 = vld [vmem:[%s4286_s30 + $0x28] sm:$0xff] }
 0x1b6   : > { %v2186_v10 = vadd.f32 %v2185_v48, %v2184_v46  ;;  %v2238_v13 = vrot.slane %v2237_v5, 2  ;;  %v2553_v46 = vld [vmem:[%s4286_s30 + $0x20] sm:$0xff] }
 0x1b8   : > { %v2187_v49 = vrot.slane %v2186_v10, 1  ;;  %v2239_v7 = vadd.f32 %v2238_v13, %v2237_v5 }
 0x1ba   : > { %v2188_v14 = vadd.f32 %v2187_v49, %v2186_v10  ;;  %v2240_v15 = vrot.slane %v2239_v7, 1 }
 0x1bc   : > { %v4424_v50 = vmul.f32 0.0078125, %v2188_v14  ;;  %v2241_v11 = vadd.f32 %v2240_v15, %v2239_v7  ;;  %v3664_v14 = vpack.c.bf16 %v2554_v6, %v2553_v46 }
 0x1be   : > { %v2244_v16 = vmul.f32 %v4424_v50, %v4424_v50  ;;  %v2260_v12 = vsub.f32 %v4405_v28, %v4424_v50  ;;  %v2247_v18 = vsub.f32 %v4303_v63, %v4424_v50  ;;  %v2248_v42 = vsub.f32 %v4309_v8, %v4424_v50 }
 0x1bf   : > { %v2243_v21 = vmul.f32 0.0078125, %v2241_v11  ;;  %v2249_v23 = vsub.f32 %v4301_v61, %v4424_v50  ;;  %v2250_v25 = vsub.f32 %v4305_v1, %v4424_v50  ;;  %v2251_v34 = vsub.f32 %v4331_v24, %v4424_v50  ;;  %v2555_v11 = vld [vmem:[%s4286_s30 + $0x30] sm:$0xff] }
 0x1c0   : > { %v2252_v40 = vsub.f32 %v4342_v19, %v4424_v50  ;;  %v2253_v63 = vsub.f32 %v4325_v17, %v4424_v50  ;;  %v2254_v8 = vsub.f32 %v4339_v4, %v4424_v50  ;;  %v2255_v57 = vsub.f32 %v4362_v47, %v4424_v50 }
 0x1c1   : > { %v2245_v61 = vsub.f32 %v2243_v21, %v2244_v16  ;;  %v2256_v1 = vsub.f32 %v4373_v9, %v4424_v50  ;;  %v2257_v24 = vsub.f32 %v4357_v41, %v4424_v50  ;;  %v2258_v19 = vsub.f32 %v4366_v62, %v4424_v50  ;;  %v2149_v62 = vld [vmem:[%s470_s15] sm:$0x1]  ;;  %v2556_v16 = vld [vmem:[%s4286_s30 + $0x38] sm:$0xff]  ;;  %s4740_s15 = scalar_lea.vmem %s4787_s10, %s3962_s17 }
 0x1c2   : > { %v2259_v17 = vsub.f32 %v4394_v22, %v4424_v50  ;;  %v2261_v4 = vsub.f32 %v4389_v20, %v4424_v50  ;;  %v2262_v47 = vsub.f32 %v4398_v59, %v4424_v50  ;;  %v2266_v9 = vlaneseq  ;;  %v4473_v59 = vld [vmem:[%s473_s19] ss:$0 sm:$0xff] }
 0x1c3   : > { %v2246_v3 = vmax.f32 %v2245_v61, 0.0 }
 0x1c4   : > { %v4464_v41 = vshrl.u32 %v2266_v9, 7 }
 0x1c5   : > { %v2263_v26 = vadd.f32 1e-05, %v2246_v3 }
 0x1c6   : > { %v2268_v53 = vsub.s32 0, %v4464_v41 }
 0x1c7   : > { %3832 = vrsqrt.f32 %v2263_v26 }
 0x1d1   : > { %v3833_v22 = vpop.eup %3832 }
 0x1d2   : > { %v2265_v27 = vmul.f32 %v3833_v22, %v2149_v62  ;;  %v3201_v62 = vld [vmem:[%s481_s22] ss:$0 sm:$0xff] }
 0x1d4   : > { %v2269_v20 = vrot.slane %v2265_v27, %v2268_v53 }
 0x1d6   : > { %v4475_v28 = vmul.f32 %v2269_v20, %v2260_v12  ;;  %v2270_v55 = vmul.f32 %v2269_v20, %v2247_v18  ;;  %v2271_v29 = vmul.f32 %v2269_v20, %v2248_v42  ;;  %v2272_v32 = vmul.f32 %v2269_v20, %v2249_v23 }
 0x1d7   : > { %v2273_v33 = vmul.f32 %v2269_v20, %v2250_v25  ;;  %v2274_v56 = vmul.f32 %v2269_v20, %v2251_v34  ;;  %v2275_v35 = vmul.f32 %v2269_v20, %v2252_v40  ;;  %v2276_v36 = vmul.f32 %v2269_v20, %v2253_v63 }
 0x1d8   : > { %v4478_v30 = vadd.f32 %v4473_v59, %v2270_v55  ;;  %v4481_v58 = vadd.f32 %v4473_v59, %v2271_v29  ;;  %v4484_v31 = vadd.f32 %v4473_v59, %v2272_v32  ;;  %v2277_v39 = vmul.f32 %v2269_v20, %v2254_v8 }
 0x1d9   : > { %v4491_v45 = vadd.f32 %v4473_v59, %v2273_v33  ;;  %v4494_v51 = vadd.f32 %v4473_v59, %v2274_v56  ;;  %v2278_v0 = vmul.f32 %v2269_v20, %v2255_v57  ;;  %v2279_v2 = vmul.f32 %v2269_v20, %v2256_v1 }
 0x1da   : > { %v2308_v43 = vmax.f32 %v4478_v30, 0.0  ;;  %v2309_v44 = vmax.f32 %v4481_v58, 0.0  ;;  %v2310_v60 = vmax.f32 %v4484_v31, 0.0  ;;  %v2280_v48 = vmul.f32 %v2269_v20, %v2257_v24 }
 0x1db   : > { %v2281_v5 = vmul.f32 %v2269_v20, %v2258_v19  ;;  %v2282_v10 = vmul.f32 %v2269_v20, %v2259_v17  ;;  %v2284_v13 = vmul.f32 %v2269_v20, %v2261_v4  ;;  %v2311_v49 = vmax.f32 %v4491_v45, 0.0 }
 0x1dc   : > { %3576 = vmatprep.mubr.msk.f32.mxu1 %vm2151_vm2, %v2308_v43  ;;  %v2297_v7 = vadd.f32 %v4473_v59, %v2275_v35  ;;  %v2312_v15 = vmax.f32 %v4494_v51, 0.0  ;;  %v2298_v50 = vadd.f32 %v4473_v59, %v2276_v36  ;;  %v2285_v12 = vmul.f32 %v2269_v20, %v2262_v47 }
 0x1dd   : > { %3577 = vmatmul.mubr.msk.f32.vlgmr.msra.gmra.mrb[16].mxu1 %vm2151_vm2, %v2309_v44  ;;  %v3668_v42 = vpack.c.bf16 %v2556_v16, %v2555_v11  ;;  %v2300_v23 = vadd.f32 %v4473_v59, %v2278_v0  ;;  %v2301_v34 = vadd.f32 %v4473_v59, %v2279_v2  ;;  %v2302_v63 = vadd.f32 %v4473_v59, %v2280_v48 }
 0x1de   : > { %3579 = vmatprep.mubr.msk.f32.mxu1 %vm2151_vm2, %v2310_v60  ;;  %3659 = vmatpush3.bf16.msra.mxu1 %v4292_v54  ;;  %v2313_v18 = vmax.f32 %v2297_v7, 0.0  ;;  %v2299_v54 = vadd.f32 %v4473_v59, %v2277_v39  ;;  %v2314_v21 = vmax.f32 %v2298_v50, 0.0  ;;  %v2303_v57 = vadd.f32 %v4473_v59, %v2281_v5 }
 0x1df   : > { %3661 = vmatprep.subr.bf16.mxu1 %v3660_v52  ;;  %v2316_v40 = vmax.f32 %v2300_v23, 0.0  ;;  %v2317_v8 = vmax.f32 %v2301_v34, 0.0  ;;  %v2318_v61 = vmax.f32 %v2302_v63, 0.0  ;;  %v2304_v1 = vadd.f32 %v4473_v59, %v2282_v10 }
 0x1e0   : > { %v2315_v25 = vmax.f32 %v2299_v54, 0.0  ;;  %v2319_v24 = vmax.f32 %v2303_v57, 0.0  ;;  %v2305_v19 = vadd.f32 %v4473_v59, %v4475_v28  ;;  %v2306_v4 = vadd.f32 %v4473_v59, %v2284_v13 }
 0x1e1   : > { %3580 = vmatmul.mubr.msk.f32.gmra.mrb[18].mxu1 %vm2151_vm2, %v2311_v49  ;;  %v2320_v17 = vmax.f32 %v2304_v1, 0.0  ;;  %v2307_v3 = vadd.f32 %v4473_v59, %v2285_v12 }
 0x1e2   : > { %3582 = vmatprep.mubr.msk.f32.mxu1 %vm2151_vm2, %v2312_v15  ;;  %3663 = vmatpush3.bf16.msra.mxu1 %v3660_v52  ;;  %v2321_v47 = vmax.f32 %v2305_v19, 0.0  ;;  %v2322_v26 = vmax.f32 %v2306_v4, 0.0 }
 0x1e3   : > { %3665 = vmatprep.subr.bf16.mxu1 %v3664_v14  ;;  %v2323_v9 = vmax.f32 %v2307_v3, 0.0 }
 0x1e5   : > { %3583 = vmatmul.mubr.msk.f32.gmra.mrb[20].mxu1 %vm2151_vm2, %v2313_v18 }
 0x1e6   : > { %3585 = vmatprep.mubr.msk.f32.mxu1 %vm2151_vm2, %v2314_v21  ;;  %3667 = vmatpush3.bf16.msra.mxu1 %v3664_v14 }
 0x1e7   : > { %3669 = vmatprep.subr.bf16.mxu1 %v3668_v42 }
 0x1e9   : > { %3586 = vmatmul.mubr.msk.f32.gmra.mrb[22].mxu1 %vm2151_vm2, %v2315_v25 }
 0x1ea   : > { %3588 = vmatprep.mubr.msk.f32.mxu1 %vm2151_vm2, %v2316_v40  ;;  %3671 = vmatpush3.bf16.msra.mxu1 %v3668_v42 }
 0x1ed   : > { %3589 = vmatmul.mubr.msk.f32.gmra.mrb[24].mxu1 %vm2151_vm2, %v2317_v8 }
 0x1ee   : > { %3591 = vmatprep.mubr.msk.f32.mxu1 %vm2151_vm2, %v2318_v61 }
 0x1f1   : > { %3592 = vmatmul.mubr.msk.f32.gmra.mrb[26].mxu1 %vm2151_vm2, %v2319_v24 }
 0x1f2   : > { %3594 = vmatprep.mubr.msk.f32.mxu1 %vm2151_vm2, %v2320_v17 }
 0x1f5   : > { %3595 = vmatmul.mubr.msk.f32.gmra.mrb[28].mxu1 %vm2151_vm2, %v2321_v47 }
 0x1f6   : > { %3597 = vmatprep.mubr.msk.f32.mxu1 %vm2151_vm2, %v2322_v26 }
 0x1f9   : > { %3598 = vmatmul.mubr.msk.f32.gmra.mrb[30].mxu1 %vm2151_vm2, %v2323_v9 }
 0x1fa   : > { %3616 = vmatprep.mubr.msk.f32.mxu1 %vm2151_vm2, %v2308_v43 }
 0x1fd   : > { %3617 = vmatmul.mubr.msk.f32.vlgmr.msra.gmra.mrb[32].mxu1 %vm2151_vm2, %v2309_v44 }
 0x1fe   : > { %3619 = vmatprep.mubr.msk.f32.mxu1 %vm2151_vm2, %v2310_v60 }
 0x201   : > { %3620 = vmatmul.mubr.msk.f32.gmra.mrb[34].mxu1 %vm2151_vm2, %v2311_v49 }
 0x202   : > { %3622 = vmatprep.mubr.msk.f32.mxu1 %vm2151_vm2, %v2312_v15 }
 0x205   : > { %3623 = vmatmul.mubr.msk.f32.gmra.mrb[36].mxu1 %vm2151_vm2, %v2313_v18 }
 0x206   : > { %3625 = vmatprep.mubr.msk.f32.mxu1 %vm2151_vm2, %v2314_v21 }
 0x209   : > { %3626 = vmatmul.mubr.msk.f32.gmra.mrb[38].mxu1 %vm2151_vm2, %v2315_v25 }
 0x20a   : > { %3628 = vmatprep.mubr.msk.f32.mxu1 %vm2151_vm2, %v2316_v40 }
 0x20d   : > { %3629 = vmatmul.mubr.msk.f32.gmra.mrb[40].mxu1 %vm2151_vm2, %v2317_v8 }
 0x20e   : > { %3631 = vmatprep.mubr.msk.f32.mxu1 %vm2151_vm2, %v2318_v61 }
 0x211   : > { %3632 = vmatmul.mubr.msk.f32.gmra.mrb[42].mxu1 %vm2151_vm2, %v2319_v24 }
 0x212   : > { %3634 = vmatprep.mubr.msk.f32.mxu1 %vm2151_vm2, %v2320_v17 }
 0x215   : > { %3635 = vmatmul.mubr.msk.f32.gmra.mrb[44].mxu1 %vm2151_vm2, %v2321_v47 }
 0x216   : > { %3637 = vmatprep.mubr.msk.f32.mxu1 %vm2151_vm2, %v2322_v26 }
 0x219   : > { %3638 = vmatmul.mubr.msk.f32.gmra.mrb[46].mxu1 %vm2151_vm2, %v2323_v9 }
 0x2b0   : > { %v3578_v22 = vpop.f32.mrb[16].mxu1 }
 0x2b1   : > { %v2459_v27 = vadd.f32 %v3578_v22, %v3201_v62  ;;  %v2453_v20 = vpop.f32.mrb[17].mxu1 }
 0x2b2   : > { %v2454_v59 = vadd.f32 %v3201_v62, %v2453_v20 }
 0x2b3   : > { %2534 = vst.msk [vmem:[%s4564_s25 + $0x8] sm:$0xff] %vm2532_vm3, %v2459_v27 }
 0x2b4   : > { %2533 = vst.msk [vmem:[%s4564_s25] sm:$0xff] %vm2532_vm3, %v2454_v59  ;;  %v3581_v28 = vpop.f32.mrb[18].mxu1 }
 0x2b5   : > { %v2469_v55 = vadd.f32 %v3581_v28, %v3201_v62  ;;  %v2463_v29 = vpop.f32.mrb[19].mxu1 }
 0x2b6   : > { %v2464_v32 = vadd.f32 %v3201_v62, %v2463_v29 }
 0x2b7   : > { %2536 = vst.msk [vmem:[%s4564_s25 + $0x18] sm:$0xff] %vm2532_vm3, %v2469_v55 }
 0x2b8   : > { %2535 = vst.msk [vmem:[%s4564_s25 + $0x10] sm:$0xff] %vm2532_vm3, %v2464_v32  ;;  %v3584_v33 = vpop.f32.mrb[20].mxu1 }
 0x2b9   : > { %v2479_v56 = vadd.f32 %v3584_v33, %v3201_v62  ;;  %v2473_v35 = vpop.f32.mrb[21].mxu1 }
 0x2ba   : > { %v2474_v36 = vadd.f32 %v3201_v62, %v2473_v35 }
 0x2bb   : > { %2538 = vst.msk [vmem:[%s4564_s25 + $0x28] sm:$0xff] %vm2532_vm3, %v2479_v56 }
 0x2bc   : > { %2537 = vst.msk [vmem:[%s4564_s25 + $0x20] sm:$0xff] %vm2532_vm3, %v2474_v36  ;;  %v3587_v30 = vpop.f32.mrb[22].mxu1 }
 0x2bd   : > { %v2489_v58 = vadd.f32 %v3587_v30, %v3201_v62  ;;  %v2483_v31 = vpop.f32.mrb[23].mxu1 }
 0x2be   : > { %v2484_v37 = vadd.f32 %v3201_v62, %v2483_v31 }
 0x2bf   : > { %2540 = vst.msk [vmem:[%s4564_s25 + $0x38] sm:$0xff] %vm2532_vm3, %v2489_v58 }
 0x2c0   : > { %2539 = vst.msk [vmem:[%s4564_s25 + $0x30] sm:$0xff] %vm2532_vm3, %v2484_v37  ;;  %v3590_v38 = vpop.f32.mrb[24].mxu1 }
 0x2c1   : > { %v2499_v39 = vadd.f32 %v3590_v38, %v3201_v62  ;;  %v2493_v43 = vpop.f32.mrb[25].mxu1 }
 0x2c2   : > { %v2494_v44 = vadd.f32 %v3201_v62, %v2493_v43 }
 0x2c3   : > { %2542 = vst.msk [vmem:[%s4564_s25 + $0x48] sm:$0xff] %vm2532_vm3, %v2499_v39 }
 0x2c4   : > { %2541 = vst.msk [vmem:[%s4564_s25 + $0x40] sm:$0xff] %vm2532_vm3, %v2494_v44  ;;  %v3593_v45 = vpop.f32.mrb[26].mxu1 }
 0x2c5   : > { %v2509_v51 = vadd.f32 %v3593_v45, %v3201_v62  ;;  %v2503_v52 = vpop.f32.mrb[27].mxu1 }
 0x2c6   : > { %v2504_v60 = vadd.f32 %v3201_v62, %v2503_v52 }
 0x2c7   : > { %2544 = vst.msk [vmem:[%s4564_s25 + $0x58] sm:$0xff] %vm2532_vm3, %v2509_v51 }
 0x2c8   : > { %2543 = vst.msk [vmem:[%s4564_s25 + $0x50] sm:$0xff] %vm2532_vm3, %v2504_v60  ;;  %v3596_v0 = vpop.f32.mrb[28].mxu1 }
 0x2c9   : > { %v2519_v2 = vadd.f32 %v3596_v0, %v3201_v62  ;;  %v2513_v46 = vpop.f32.mrb[29].mxu1 }
 0x2ca   : > { %v2514_v6 = vadd.f32 %v3201_v62, %v2513_v46 }
 0x2cb   : > { %2546 = vst.msk [vmem:[%s4564_s25 + $0x68] sm:$0xff] %vm2532_vm3, %v2519_v2 }
 0x2cc   : > { %2545 = vst.msk [vmem:[%s4564_s25 + $0x60] sm:$0xff] %vm2532_vm3, %v2514_v6  ;;  %v3599_v48 = vpop.f32.mrb[30].mxu1 }
 0x2cd   : > { %v2529_v5 = vadd.f32 %v3599_v48, %v3201_v62  ;;  %v2523_v10 = vpop.f32.mrb[31].mxu1 }
 0x2ce   : > { %v2524_v13 = vadd.f32 %v3201_v62, %v2523_v10 }
 0x2cf   : > { %2548 = vst.msk [vmem:[%s4564_s25 + $0x78] sm:$0xff] %vm2532_vm3, %v2529_v5 }
 0x2d0   : > { %2547 = vst.msk [vmem:[%s4564_s25 + $0x70] sm:$0xff] %vm2532_vm3, %v2524_v13  ;;  %v4598_v49 = vpop.f32.mrb[32].mxu1 }
 0x2d1   : > { %v2706_v7 = vsel %vm2704_vm4, %v4598_v49, 0.0  ;;  %v2743_v14 = vmul.f32 %v4598_v49, %v4598_v49  ;;  %v4604_v15 = vpop.f32.mrb[33].mxu1 }
 0x2d2   : > { %v2705_v50 = vsel %vm2704_vm4, %v4604_v15, 0.0  ;;  %v2742_v11 = vmul.f32 %v4604_v15, %v4604_v15 }
 0x2d3   : > { %v2759_v16 = vsel %vm2704_vm4, %v2743_v14, 0.0  ;;  %v2707_v12 = vadd.f32 %v2706_v7, %v2705_v50 }
 0x2d4   : > { %v2758_v18 = vsel %vm2704_vm4, %v2742_v11, 0.0  ;;  %v4612_v54 = vpop.f32.mrb[34].mxu1 }
 0x2d5   : > { %v2760_v42 = vadd.f32 %v2759_v16, %v2758_v18  ;;  %v4614_v21 = vpop.f32.mrb[35].mxu1  ;;  %v2745_v23 = vmul.f32 %v4612_v54, %v4612_v54  ;;  %v2710_v63 = vsel %vm2704_vm4, %v4612_v54, 0.0 }
 0x2d6   : > { %v2708_v25 = vsel %vm2704_vm4, %v4614_v21, 0.0  ;;  %v2744_v34 = vmul.f32 %v4614_v21, %v4614_v21 }
 0x2d7   : > { %v2709_v40 = vadd.f32 %v2708_v25, %v2707_v12  ;;  %v2763_v19 = vsel %vm2704_vm4, %v2745_v23, 0.0 }
 0x2d8   : > { %v2761_v8 = vsel %vm2704_vm4, %v2744_v34, 0.0  ;;  %v4625_v57 = vpop.f32.mrb[36].mxu1 }
 0x2d9   : > { %v2762_v61 = vadd.f32 %v2761_v8, %v2760_v42  ;;  %v4627_v1 = vpop.f32.mrb[37].mxu1  ;;  %v2711_v24 = vadd.f32 %v2710_v63, %v2709_v40  ;;  %v2747_v17 = vmul.f32 %v4625_v57, %v4625_v57  ;;  %v2714_v9 = vsel %vm2704_vm4, %v4625_v57, 0.0 }
 0x2da   : > { %v2712_v4 = vsel %vm2704_vm4, %v4627_v1, 0.0  ;;  %v2746_v47 = vmul.f32 %v4627_v1, %v4627_v1 }
 0x2db   : > { %v2713_v3 = vadd.f32 %v2712_v4, %v2711_v24  ;;  %v2764_v26 = vadd.f32 %v2763_v19, %v2762_v61  ;;  %v2767_v28 = vsel %vm2704_vm4, %v2747_v17, 0.0 }
 0x2dc   : > { %v2765_v62 = vsel %vm2704_vm4, %v2746_v47, 0.0  ;;  %v4639_v22 = vpop.f32.mrb[38].mxu1 }
 0x2dd   : > { %v2766_v27 = vadd.f32 %v2765_v62, %v2764_v26  ;;  %v4641_v20 = vpop.f32.mrb[39].mxu1  ;;  %v2715_v59 = vadd.f32 %v2714_v9, %v2713_v3  ;;  %v2749_v55 = vmul.f32 %v4639_v22, %v4639_v22  ;;  %v2718_v35 = vsel %vm2704_vm4, %v4639_v22, 0.0 }
 0x2de   : > { %v2716_v29 = vsel %vm2704_vm4, %v4641_v20, 0.0  ;;  %v2748_v32 = vmul.f32 %v4641_v20, %v4641_v20 }
 0x2df   : > { %v2717_v33 = vadd.f32 %v2716_v29, %v2715_v59  ;;  %v2768_v56 = vadd.f32 %v2767_v28, %v2766_v27  ;;  %v2771_v38 = vsel %vm2704_vm4, %v2749_v55, 0.0 }
 0x2e0   : > { %v2769_v36 = vsel %vm2704_vm4, %v2748_v32, 0.0  ;;  %v4653_v30 = vpop.f32.mrb[40].mxu1 }
 0x2e1   : > { %v2770_v58 = vadd.f32 %v2769_v36, %v2768_v56  ;;  %v4655_v31 = vpop.f32.mrb[41].mxu1  ;;  %v2719_v37 = vadd.f32 %v2718_v35, %v2717_v33  ;;  %v2751_v39 = vmul.f32 %v4653_v30, %v4653_v30  ;;  %v2722_v52 = vsel %vm2704_vm4, %v4653_v30, 0.0 }
 0x2e2   : > { %v2720_v43 = vsel %vm2704_vm4, %v4655_v31, 0.0  ;;  %v2750_v44 = vmul.f32 %v4655_v31, %v4655_v31 }
 0x2e3   : > { %v2721_v45 = vadd.f32 %v2720_v43, %v2719_v37  ;;  %v2772_v51 = vadd.f32 %v2771_v38, %v2770_v58  ;;  %v2775_v48 = vsel %vm2704_vm4, %v2751_v39, 0.0 }
 0x2e4   : > { %v2773_v60 = vsel %vm2704_vm4, %v2750_v44, 0.0  ;;  %v4667_v0 = vpop.f32.mrb[42].mxu1 }
 0x2e5   : > { %v2774_v2 = vadd.f32 %v2773_v60, %v2772_v51  ;;  %v4669_v46 = vpop.f32.mrb[43].mxu1  ;;  %v2723_v6 = vadd.f32 %v2722_v52, %v2721_v45  ;;  %v2753_v5 = vmul.f32 %v4667_v0, %v4667_v0  ;;  %v2726_v50 = vsel %vm2704_vm4, %v4667_v0, 0.0 }
 0x2e6   : > { %v2724_v10 = vsel %vm2704_vm4, %v4669_v46, 0.0  ;;  %v2752_v13 = vmul.f32 %v4669_v46, %v4669_v46 }
 0x2e7   : > { %v2725_v7 = vadd.f32 %v2724_v10, %v2723_v6  ;;  %v2776_v14 = vadd.f32 %v2775_v48, %v2774_v2  ;;  %v2779_v23 = vsel %vm2704_vm4, %v2753_v5, 0.0 }
 0x2e8   : > { %v2777_v11 = vsel %vm2704_vm4, %v2752_v13, 0.0  ;;  %v4681_v16 = vpop.f32.mrb[44].mxu1 }
 0x2e9   : > { %v2778_v12 = vadd.f32 %v2777_v11, %v2776_v14  ;;  %v4683_v18 = vpop.f32.mrb[45].mxu1  ;;  %v2727_v42 = vadd.f32 %v2726_v50, %v2725_v7  ;;  %v2755_v25 = vmul.f32 %v4681_v16, %v4681_v16  ;;  %v2730_v61 = vsel %vm2704_vm4, %v4681_v16, 0.0 }
 0x2ea   : > { %v2728_v34 = vsel %vm2704_vm4, %v4683_v18, 0.0  ;;  %v2754_v40 = vmul.f32 %v4683_v18, %v4683_v18 }
 0x2eb   : > { %v2729_v63 = vadd.f32 %v2728_v34, %v2727_v42  ;;  %v2780_v8 = vadd.f32 %v2779_v23, %v2778_v12  ;;  %v2783_v3 = vsel %vm2704_vm4, %v2755_v25, 0.0 }
 0x2ec   : > { %v2781_v24 = vsel %vm2704_vm4, %v2754_v40, 0.0  ;;  %v4695_v19 = vpop.f32.mrb[46].mxu1 }
 0x2ed   : > { %v2782_v17 = vadd.f32 %v2781_v24, %v2780_v8  ;;  %v4697_v4 = vpop.f32.mrb[47].mxu1  ;;  %v2731_v47 = vadd.f32 %v2730_v61, %v2729_v63  ;;  %v2757_v26 = vmul.f32 %v4695_v19, %v4695_v19  ;;  %v2734_v28 = vsel %vm2704_vm4, %v4695_v19, 0.0  ;;  %v3234_v63 = vld [vmem:[%s492_s11] ss:$0 sm:$0xff] }
 0x2ee   : > { %v2732_v9 = vsel %vm2704_vm4, %v4697_v4, 0.0  ;;  %v2756_v62 = vmul.f32 %v4697_v4, %v4697_v4 }
 0x2ef   : > { %v2733_v27 = vadd.f32 %v2732_v9, %v2731_v47  ;;  %v2784_v59 = vadd.f32 %v2783_v3, %v2782_v17  ;;  %v2787_v33 = vsel %vm2704_vm4, %v2757_v26, 0.0 }
 0x2f0   : > { %v2785_v55 = vsel %vm2704_vm4, %v2756_v62, 0.0 }
 0x2f1   : > { %v2735_v29 = vadd.f32 %v2734_v28, %v2733_v27  ;;  %v2786_v32 = vadd.f32 %v2785_v55, %v2784_v59 }
 0x2f3   : > { %v2736_v56 = vrot.slane %v2735_v29, 4  ;;  %v2788_v35 = vadd.f32 %v2787_v33, %v2786_v32 }
 0x2f5   : > { %v2737_v36 = vadd.f32 %v2736_v56, %v2735_v29  ;;  %v2789_v58 = vrot.slane %v2788_v35, 4 }
 0x2f7   : > { %v2738_v37 = vrot.slane %v2737_v36, 2  ;;  %v2790_v38 = vadd.f32 %v2789_v58, %v2788_v35 }
 0x2f9   : > { %v2739_v39 = vadd.f32 %v2738_v37, %v2737_v36  ;;  %v2791_v43 = vrot.slane %v2790_v38, 2 }
 0x2fb   : > { %v2740_v44 = vrot.slane %v2739_v39, 1  ;;  %v2792_v45 = vadd.f32 %v2791_v43, %v2790_v38 }
 0x2fd   : > { %v2741_v51 = vadd.f32 %v2740_v44, %v2739_v39  ;;  %v2793_v52 = vrot.slane %v2792_v45, 1 }
 0x2ff   : > { %v2794_v60 = vadd.f32 %v2793_v52, %v2792_v45  ;;  %v2795_v2 = vmul.f32 0.0078125, %v2741_v51 }
 0x301   : > { %v2796_v6 = vmul.f32 0.0078125, %v2794_v60  ;;  %v2797_v48 = vmul.f32 %v2795_v2, %v2795_v2  ;;  %v2800_v5 = vsub.f32 %v4604_v15, %v2795_v2  ;;  %v2801_v10 = vsub.f32 %v4598_v49, %v2795_v2 }
 0x302   : > { %v2802_v13 = vsub.f32 %v4614_v21, %v2795_v2  ;;  %v2803_v7 = vsub.f32 %v4612_v54, %v2795_v2  ;;  %v2804_v14 = vsub.f32 %v4627_v1, %v2795_v2  ;;  %v2805_v50 = vsub.f32 %v4625_v57, %v2795_v2 }
 0x303   : > { %v2798_v11 = vsub.f32 %v2796_v6, %v2797_v48  ;;  %v2806_v12 = vsub.f32 %v4641_v20, %v2795_v2  ;;  %v2807_v42 = vsub.f32 %v4639_v22, %v2795_v2  ;;  %v2808_v23 = vsub.f32 %v4655_v31, %v2795_v2  ;;  %v2702_v22 = vld [vmem:[%s489_s28] sm:$0x1] }
 0x304   : > { %v2809_v15 = vsub.f32 %v4653_v30, %v2795_v2  ;;  %v2810_v49 = vsub.f32 %v4669_v46, %v2795_v2  ;;  %v2811_v21 = vsub.f32 %v4667_v0, %v2795_v2  ;;  %v2812_v54 = vsub.f32 %v4683_v18, %v2795_v2 }
 0x305   : > { %v2799_v1 = vmax.f32 %v2798_v11, 0.0  ;;  %v2813_v25 = vsub.f32 %v4681_v16, %v2795_v2  ;;  %v2814_v57 = vsub.f32 %v4697_v4, %v2795_v2  ;;  %v2815_v20 = vsub.f32 %v4695_v19, %v2795_v2 }
 0x307   : > { %v2816_v34 = vadd.f32 1e-05, %v2799_v1 }
 0x309   : > { %3834 = vrsqrt.f32 %v2816_v34 }
 0x313   : > { %v3835_v30 = vpop.eup %3834 }
 0x314   : > { %v2818_v31 = vmul.f32 %v3835_v30, %v2702_v22 }
 0x316   : > { %v2822_v0 = vrot.slane %v2818_v31, %v2268_v53 }
 0x318   : > { %v2823_v46 = vmul.f32 %v2822_v0, %v2800_v5  ;;  %v2824_v16 = vmul.f32 %v2822_v0, %v2801_v10  ;;  %v2825_v18 = vmul.f32 %v2822_v0, %v2802_v13  ;;  %v2826_v40 = vmul.f32 %v2822_v0, %v2803_v7 }
 0x319   : > { %v2827_v8 = vmul.f32 %v2822_v0, %v2804_v14  ;;  %v2828_v61 = vmul.f32 %v2822_v0, %v2805_v50  ;;  %v2829_v24 = vmul.f32 %v2822_v0, %v2806_v12  ;;  %v2830_v19 = vmul.f32 %v2822_v0, %v2807_v42 }
 0x31a   : > { %v2831_v17 = vmul.f32 %v2822_v0, %v2808_v23  ;;  %v2832_v4 = vmul.f32 %v2822_v0, %v2809_v15  ;;  %v2833_v47 = vmul.f32 %v2822_v0, %v2810_v49  ;;  %v2834_v3 = vmul.f32 %v2822_v0, %v2811_v21 }
 0x31b   : > { %v2835_v26 = vmul.f32 %v2822_v0, %v2812_v54  ;;  %v2836_v9 = vmul.f32 %v2822_v0, %v2813_v25  ;;  %v2837_v62 = vmul.f32 %v2822_v0, %v2814_v57  ;;  %v2838_v27 = vmul.f32 %v2822_v0, %v2815_v20 }
 0x31c   : > { %v2845_v41 = vadd.f32 %v3234_v63, %v2823_v46  ;;  %v2846_v53 = vadd.f32 %v3234_v63, %v2824_v16  ;;  %v2847_v59 = vadd.f32 %v3234_v63, %v2825_v18  ;;  %v2848_v28 = vadd.f32 %v3234_v63, %v2826_v40 }
 0x31d   : > { %v2849_v55 = vadd.f32 %v3234_v63, %v2827_v8  ;;  %v2850_v29 = vadd.f32 %v3234_v63, %v2828_v61  ;;  %v2851_v32 = vadd.f32 %v3234_v63, %v2829_v24  ;;  %v2852_v33 = vadd.f32 %v3234_v63, %v2830_v19 }
 0x31e   : > { %v2853_v56 = vadd.f32 %v3234_v63, %v2831_v17  ;;  %v2854_v35 = vadd.f32 %v3234_v63, %v2832_v4  ;;  %v2855_v36 = vadd.f32 %v3234_v63, %v2833_v47  ;;  %v2856_v58 = vadd.f32 %v3234_v63, %v2834_v3 }
 0x31f   : > { %v2857_v37 = vadd.f32 %v3234_v63, %v2835_v26  ;;  %v2858_v38 = vadd.f32 %v3234_v63, %v2836_v9  ;;  %v2859_v39 = vadd.f32 %v3234_v63, %v2837_v62  ;;  %v2860_v43 = vadd.f32 %v3234_v63, %v2838_v27 }
 0x320   : > { %v2861_v44 = vmax.f32 %v2845_v41, 0.0  ;;  %v2862_v45 = vmax.f32 %v2846_v53, 0.0  ;;  %v2863_v51 = vmax.f32 %v2847_v59, 0.0  ;;  %v2864_v52 = vmax.f32 %v2848_v28, 0.0 }
 0x321   : > { %v2865_v60 = vmax.f32 %v2849_v55, 0.0  ;;  %v2866_v2 = vmax.f32 %v2850_v29, 0.0  ;;  %v2867_v6 = vmax.f32 %v2851_v32, 0.0  ;;  %v2868_v48 = vmax.f32 %v2852_v33, 0.0 }
 0x322   : > { %v2869_v5 = vmax.f32 %v2853_v56, 0.0  ;;  %v2870_v10 = vmax.f32 %v2854_v35, 0.0  ;;  %v2871_v13 = vmax.f32 %v2855_v36, 0.0  ;;  %v2872_v7 = vmax.f32 %v2856_v58, 0.0  ;;  %2877 = vst.msk [vmem:[%s4740_s15] sm:$0xff] %vm2704_vm4, %v2861_v44  ;;  %2878 = vst.msk [vmem:[%s4740_s15 + $0x8] sm:$0xff] %vm2704_vm4, %v2862_v45 }
 0x323   : > { %2879 = vst.msk [vmem:[%s4740_s15 + $0x10] sm:$0xff] %vm2704_vm4, %v2863_v51  ;;  %2880 = vst.msk [vmem:[%s4740_s15 + $0x18] sm:$0xff] %vm2704_vm4, %v2864_v52  ;;  %v2873_v14 = vmax.f32 %v2857_v37, 0.0  ;;  %v2874_v50 = vmax.f32 %v2858_v38, 0.0  ;;  %v2875_v11 = vmax.f32 %v2859_v39, 0.0  ;;  %v2876_v12 = vmax.f32 %v2860_v43, 0.0 }
 0x324   : > { %2881 = vst.msk [vmem:[%s4740_s15 + $0x20] sm:$0xff] %vm2704_vm4, %v2865_v60  ;;  %2882 = vst.msk [vmem:[%s4740_s15 + $0x28] sm:$0xff] %vm2704_vm4, %v2866_v2 }
 0x325   : > { %2883 = vst.msk [vmem:[%s4740_s15 + $0x30] sm:$0xff] %vm2704_vm4, %v2867_v6  ;;  %2884 = vst.msk [vmem:[%s4740_s15 + $0x38] sm:$0xff] %vm2704_vm4, %v2868_v48 }
 0x326   : > { %2885 = vst.msk [vmem:[%s4740_s15 + $0x40] sm:$0xff] %vm2704_vm4, %v2869_v5  ;;  %2886 = vst.msk [vmem:[%s4740_s15 + $0x48] sm:$0xff] %vm2704_vm4, %v2870_v10 }
 0x327   : > { %2887 = vst.msk [vmem:[%s4740_s15 + $0x50] sm:$0xff] %vm2704_vm4, %v2871_v13  ;;  %2888 = vst.msk [vmem:[%s4740_s15 + $0x58] sm:$0xff] %vm2704_vm4, %v2872_v7 }
 0x328   : > { %2889 = vst.msk [vmem:[%s4740_s15 + $0x60] sm:$0xff] %vm2704_vm4, %v2873_v14  ;;  %2890 = vst.msk [vmem:[%s4740_s15 + $0x68] sm:$0xff] %vm2704_vm4, %v2874_v50 }
 0x329   : > { %2891 = vst.msk [vmem:[%s4740_s15 + $0x70] sm:$0xff] %vm2704_vm4, %v2875_v11  ;;  %2892 = vst.msk [vmem:[%s4740_s15 + $0x78] sm:$0xff] %vm2704_vm4, %v2876_v12 }
 0x32a PF: > { %s21_s13 = sadd.s32 1, %s3842_s13  }
 0x32b   : > { %p18_p4 = scmp.ge.s32.totalorder %s21_s13, 4  }
 0x32d   :  { %20 = sbr.rel (!%p18_p4) target bundleno = 1 (0x1), region = 132 }

// kernel: chess_resnet_forward.2
= control target key start
LH: loop header
LB: loop body
LE: loop exit
PB: predicated region body
PF: predicated region fallthrough
CT: control target
= control target key end

     0   :  { %s10451_s0 = inlined_call_operand.vmem [shape: f32[2,8,8,32], index: 0, kind: input, shape index: {}]   ;;  %s10452_s1 = inlined_call_operand.hbm [shape: bf16[13,9,32,32], index: 1, kind: input, shape index: {}]   ;;  %s10453_s2 = inlined_call_operand.vmem [shape: f32[13,1,32], index: 2, kind: input, shape index: {}]   ;;  %s10454_s3 = inlined_call_operand.vmem [shape: f32[13,1,32], index: 3, kind: input, shape index: {}]   ;;  %s10455_s4 = inlined_call_operand.hbm [shape: bf16[13,9,32,32], index: 4, kind: input, shape index: {}]   ;;  %s10456_s5 = inlined_call_operand.vmem [shape: f32[13,1,32], index: 5, kind: input, shape index: {}]   ;;  %s10457_s6 = inlined_call_operand.vmem [shape: f32[13,1,32], index: 6, kind: input, shape index: {}]   ;;  %s10458_s7 = inlined_call_operand.vmem [shape: f32[13,32,4], index: 7, kind: input, shape index: {}]   ;;  %s10459_s8 = inlined_call_operand.vmem [shape: f32[13,1,4], index: 8, kind: input, shape index: {}]   ;;  %s10460_s9 = inlined_call_operand.vmem [shape: f32[13,4,32], index: 9, kind: input, shape index: {}]   ;;  %s10461_s10 = inlined_call_operand.vmem [shape: f32[13,1,32], index: 10, kind: input, shape index: {}]   ;;  %s10462_s11 = inlined_call_operand.vmem [shape: f32[2,8,8,32], index: 11, kind: output, shape index: {0}]   ;;  %s10463_s12 = inlined_call_operand.vmem [shape: f32[2,8,8,32], index: 12, kind: output, shape index: {1}]  }
   0x1   :  { %10493 = sst [smem:[#allocation34_spill]] %s10452_s1 }
   0x2   :  { %10494 = sst [smem:[#allocation35_spill]] %s10453_s2 }
   0x3   :  { %10495 = sst [smem:[#allocation36_spill]] %s10454_s3 }
   0x4   :  { %10496 = sst [smem:[#allocation37_spill]] %s10455_s4 }
   0x5   :  { %18 = vsyncpa [#allocation5], 0 }
   0x6   :  { %20 = vsyncpa [#allocation5 + $0x1], 0 }
   0x7   :  { %21 = vsyncpa [#allocation7], 0 }
   0x8   :  { %23 = vsyncpa [#allocation7 + $0x1], 0  ;;  %s8393_s21 = smov 0   ;;  %s8395_s22 = smov 0  }
   0x9   :  { %s8397_s23 = smov 0   ;;  %s8399_s24 = smov 0  }
   0xa LB: > { %10497 = sst [smem:[#allocation10_spill]] %s8309_s22  ;;  %s8412_s25 = sadd.s32 4294967295, %s8317_s24   ;;  %s8317_s24 = sphi %s8399_s24, %s10568_s24   ;;  %s8313_s23 = sphi %s8397_s23, %s10571_s23   ;;  %s8309_s22 = sphi %s8395_s22, %s10570_s22   ;;  %s8305_s21 = sphi %s8393_s21, %s10569_s21  }
   0xb   : > { %10498 = sst [smem:[#allocation11_spill]] %s8313_s23  ;;  %s8415_s26 = sadd.s32 1, %s8317_s24  }
   0xc   : > { %10499 = sst [smem:[#allocation12_spill]] %s8415_s26  ;;  %s54_s27 = ssub.s32 %s8317_s24, %s8415_s26 }
   0xd   : > { %s57_s28 = sadd.s32 1, %s8313_s23  ;;  %p55_p0 = scmp.eq.s32.totalorder %s54_s27, 0 }
   0xe   : > { %p64_p1 = scmp.ne.s32.totalorder %s8313_s23, %s8309_s22  ;;  %p65_p2 = scmp.eq.s32.totalorder %s8317_s24, 0 }
   0xf   : > { %p70_p3 = scmp.ne.s32.totalorder %s8309_s22, %s8305_s21  ;;  %p71_p5 = scmp.eq.s32.totalorder %s8412_s25, 0 }
  0x10   : > { %s8425_s29 = scalar_select %p55_p0, %s8313_s23, %s57_s28  }
  0x11   : > { %p66_p4 = por %p65_p2, %p64_p1  ;;  %p8115_p6 = scmp.lt.s32.totalorder %s8317_s24, 13 }
  0x12   : > { %10500 = sst [smem:[#allocation13_spill]] %s8425_s29  ;;  %p8429_p7 = por %p71_p5, %p70_p3 }
  0x13   : > { %s8434_s13 = sand.u32 1, %s8313_s23   ;;  %s10464_s15 = smul.u32 2304, %s8317_s24 }
  0x14   : > { %s10501_s30 = scalar_select %p8429_p7, 1, 0 }
  0x15   : > { %s8099_s14 = smul.u32 144, %s8434_s13  ;;  %p8438_p8 = pnand %p8115_p6, %p66_p4 }
  0x16   : > { %s10503_s1 = sld [smem:[#allocation34_spill]]  ;;  %s374_s27 = scalar_lea.sflag [#allocation5], %s8434_s13 }
  0x17   : > { %s377_s20 = scalar_lea.vmem [#allocation4], %s8099_s14  ;;  %p8221_p11 = pneg %p8438_p8 }
  0x18   : > { %s384_s21 = sshll.u32 %s377_s20, 4  ;;  %s8451_s21 = int_to_ptr.vmem [resolvable:$true] %s384_s21 }
  0x1c   : > { %s8447_s19 = scalar_lea.hbm %s10503_s1, %s10464_s15  ;;  %s8224_s15 = scalar_lea.hbm %s10503_s1, 29952 }
  0x1d   : > { %s8219_s28 = scalar_lea.hbm %s8447_s19, 2304  ;;  %p8225_p0 = scmp.lt.u32.totalorder %s8447_s19, %s10503_s1 }
  0x1e   : > { %p8220_p10 = scmp.ne.s32.totalorder %s8447_s19, %s8219_s28  ;;  %p8226_p1 = scmp.lt.u32.totalorder %s8224_s15, %s8219_s28 }
  0x1f   : > { %p8228_p3 = scmp.lt.u32.totalorder %s8219_s28, %s8447_s19 }
  0x20   : > { %p8222_p12 = pnand %p8221_p11, %p8220_p10  ;;  %p8227_p2 = por %p8226_p1, %p8225_p0 }
  0x22   : > { %p8223_p13 = pneg %p8222_p12  ;;  %p8229_p4 = por %p8228_p3, %p8227_p2 }
  0x24   : > { %p8230_p5 = pnand %p8229_p4, %p8223_p13 }
  0x26   : > { %8233 = shalt.err (!%p8230_p5)
}
  0x27   : > { %s8234_s20 = scalar_lea.vmem %s8451_s21, 2304  ;;  %s8319_s17 = smov [#allocation4]  }
  0x28   : > { %p8235_p6 = scmp.ne.s32.totalorder %s8451_s21, %s8234_s20  ;;  %s8239_s18 = sshll.u32 %s8319_s17, 4  ;;  %s8240_s18 = int_to_ptr.vmem [resolvable:$false] %s8239_s18 }
  0x29   : > { %s8241_s23 = scalar_lea.vmem %s8240_s18, 4608  ;;  %p8242_p9 = scmp.lt.s32.totalorder %s8451_s21, %s8240_s18 }
  0x2a   : > { %p8237_p10 = pnand %p8235_p6, %p8221_p11  ;;  %p8243_p0 = scmp.lt.s32.totalorder %s8241_s23, %s8234_s20 }
  0x2c   : > { %p8238_p12 = pneg %p8237_p10  ;;  %p8244_p1 = por %p8243_p0, %p8242_p9 }
  0x2e   : > { %p8245_p2 = pnand %p8244_p1, %p8238_p12 }
  0x30   : > { %8248 = shalt.err (!%p8245_p2)
}
  0x31   : > { %s8320_s29 = smov 64   ;;  %s8321_s15 = smov 4  }
  0x32   : > { %8111 = dma.hbm_to_vmem [thread:$0]  (!%p8438_p8), %s8447_s19, 2304, %s8451_s21, %s374_s27, %s8320_s29, %s8320_s29, %s8321_s15  }
  0x33   : > { %p464_p9 = scmp.lt.s32.totalorder %s8317_s24, 14  ;;  %s10504_s28 = smul.u32 2304, %s8317_s24 }
  0x34   : > { %s10505_s4 = sld [smem:[#allocation37_spill]]  ;;  %p10506_p13 = scmp.ge.s32.totalorder %s8317_s24, 1 }
  0x35   : > { %s410_s1 = scalar_lea.vmem [#allocation6], %s8099_s14  ;;  %s407_s19 = scalar_lea.sflag [#allocation7], %s8434_s13 }
  0x36   : > { %p8495_p3 = pnand %p10506_p13, %p464_p9  ;;  %s417_s26 = sshll.u32 %s410_s1, 4  ;;  %s8501_s26 = int_to_ptr.vmem [resolvable:$true] %s417_s26 }
  0x3a   : > { %s8491_s18 = scalar_lea.hbm %s10505_s4, %s10504_s28  ;;  %s8254_s28 = scalar_lea.hbm %s10505_s4, 29952 }
  0x3b   : > { %s8249_s21 = scalar_lea.hbm %s8491_s18, 2304  ;;  %p8255_p10 = scmp.lt.u32.totalorder %s8491_s18, %s10505_s4 }
  0x3c   : > { %p8250_p4 = scmp.ne.s32.totalorder %s8491_s18, %s8249_s21  ;;  %p8256_p12 = scmp.lt.u32.totalorder %s8254_s28, %s8249_s21 }
  0x3d   : > { %p8258_p1 = scmp.lt.u32.totalorder %s8249_s21, %s8491_s18 }
  0x3e   : > { %p8252_p5 = pnand %p8250_p4, %p8221_p11  ;;  %p8257_p0 = por %p8256_p12, %p8255_p10 }
  0x40   : > { %p8253_p6 = pneg %p8252_p5  ;;  %p8259_p2 = por %p8258_p1, %p8257_p0 }
  0x42   : > { %p8260_p9 = pnand %p8259_p2, %p8253_p6 }
  0x44   : > { %8263 = shalt.err (!%p8260_p9)
}
  0x45   : > { %s8264_s1 = scalar_lea.vmem %s8501_s26, 2304  ;;  %s8322_s14 = smov [#allocation6]  }
  0x46   : > { %p8265_p13 = scmp.ne.s32.totalorder %s8501_s26, %s8264_s1  ;;  %s8269_s24 = sshll.u32 %s8322_s14, 4  ;;  %s8270_s24 = int_to_ptr.vmem [resolvable:$false] %s8269_s24 }
  0x47   : > { %s8271_s27 = scalar_lea.vmem %s8270_s24, 4608  ;;  %p8272_p7 = scmp.lt.s32.totalorder %s8501_s26, %s8270_s24 }
  0x48   : > { %p8267_p4 = pnand %p8265_p13, %p8221_p11  ;;  %p8273_p10 = scmp.lt.s32.totalorder %s8271_s27, %s8264_s1 }
  0x4a   : > { %p8268_p5 = pneg %p8267_p4  ;;  %p8274_p12 = por %p8273_p10, %p8272_p7 }
  0x4c   : > { %p8275_p0 = pnand %p8274_p12, %p8268_p5 }
  0x4e   : > { %8278 = shalt.err (!%p8275_p0)
}
  0x4f   : > { %8114 = dma.hbm_to_vmem [thread:$0]  (!%p8438_p8), %s8491_s18, 2304, %s8501_s26, %s407_s19, %s8320_s29, %s8320_s29, %s8321_s15  }
  0x50   : > { %468 = sbr.rel (%p8495_p3) target bundleno = 2198 (0x896), region = 64  ;;  %s470_s21 = sand.u32 (!%p8495_p3), 1, %s8309_s22  }
  0x51   : > { %s8103_s28 = smul.u32 (!%p8495_p3), 144, %s470_s21  ;;  %s471_s20 = scalar_lea.sflag (!%p8495_p3), [#allocation5], %s470_s21 }
  0x52   : > { %p10508_p7 = scmp.ne.s32.totalorder (!%p8495_p3), %s10501_s30, 0 }
  0x53   : > { %s8535_s17 = scalar_lea.vmem (!%p8495_p3), [#allocation4], %s8103_s28 }
  0x57   : > { %8296 = dma.done.wait (%p10508_p7), %s471_s20, 2304  }
  0x58   : > { %8298 = vsyncadd (%p10508_p7), %s471_s20, 4294964992  ;;  %s480_s13 = scalar_lea.sflag [#allocation7], %s470_s21  ;;  %s8541_s16 = scalar_lea.vmem [#allocation6], %s8103_s28 }
  0x59   : > { %8300 = dma.done.wait (%p10508_p7), %s480_s13, 2304  }
  0x5a   : > { %8302 = vsyncadd (%p10508_p7), %s480_s13, 4294964992  ;;  %p551_p8 = scmp.lt.s32.totalorder %s8412_s25, 12  ;;  %vm579_vm0 = vcmask 261120   ;;  %vm581_vm1 = vcmask 254976   ;;  %v8323_v0 = vmov 0.0   ;;  %s10509_s2 = sld [smem:[#allocation35_spill]] }
  0x5b   : > { %580 = vst.msk [vmem:[#allocation2] sm:$0xff] %vm579_vm0, %v8323_v0  ;;  %583 = vst.msk [vmem:[#allocation2 + $0x10] sm:$0xff] %vm579_vm0, %v8323_v0  ;;  %s10510_s3 = sld [smem:[#allocation36_spill]]  ;;  %p6491_p11 = scmp.ne.s32.totalorder %s8412_s25, 0 }
  0x5c   : > { %585 = vst.msk [vmem:[#allocation2 + $0x20] sm:$0xff] %vm579_vm0, %v8323_v0  ;;  %587 = vst.msk [vmem:[#allocation2 + $0x30] sm:$0xff] %vm579_vm0, %v8323_v0  ;;  %s8591_s26 = scalar_select %p551_p8, %s8412_s25, 12 }
  0x5d   : > { %589 = vst.msk [vmem:[#allocation2 + $0x40] sm:$0xff] %vm579_vm0, %v8323_v0  ;;  %591 = vst.msk [vmem:[#allocation2 + $0x50] sm:$0xff] %vm579_vm0, %v8323_v0  ;;  %v8155_v1 = vld [vmem:[%s8535_s17 + $0x10] sm:$0xff] (!%p6491_p11)   ;;  %v8636_v2 = vld [vmem:[%s8535_s17 + $0x40] sm:$0xff] (!%p6491_p11)  }
  0x5e   : > { %593 = vst.msk [vmem:[#allocation2 + $0x60] sm:$0xff] %vm579_vm0, %v8323_v0  ;;  %595 = vst.msk [vmem:[#allocation2 + $0x70] sm:$0xff] %vm579_vm0, %v8323_v0  ;;  %s562_s28 = scalar_lea.vmem %s10457_s6, %s8591_s26  ;;  %s6871_s20 = sshll.u32 %s8591_s26, 5  ;;  %7149 = vmatprep.subr.bf16.mxu1 (!%p6491_p11), %v8155_v1  ;;  %v8157_v3 = vld [vmem:[%s8535_s17 + $0x18] sm:$0xff] (!%p6491_p11)   ;;  %7229 = vmatprep.subr.bf16.mxu0 (!%p6491_p11), %v8636_v2  ;;  %v8641_v4 = vld [vmem:[%s8535_s17 + $0x48] sm:$0xff] (!%p6491_p11)  }
  0x5f   : > { %597 = vst.msk [vmem:[#allocation2 + $0x80] sm:$0xff] %vm579_vm0, %v8323_v0  ;;  %599 = vst.msk [vmem:[#allocation2 + $0x90] sm:$0xff] %vm579_vm0, %v8323_v0  ;;  %s570_s29 = scalar_lea.vmem %s10459_s8, %s8591_s26  ;;  %s8621_s22 = scalar_lea.vmem %s10458_s7, %s6871_s20  ;;  %7150 = vmatpush3.bf16.msra.mxu1 (!%p6491_p11), %v8155_v1  ;;  %7230 = vmatpush3.bf16.msra.mxu0 (!%p6491_p11), %v8636_v2  ;;  %v625_v5 = vld [vmem:[%s10451_s0] sm:$0xff] (!%p6491_p11)  ;;  %v626_v7 = vld [vmem:[%s10451_s0 + $0x8] sm:$0xff] (!%p6491_p11) }
  0x60   : > { %601 = vst.msk [vmem:[#allocation2 + $0xa0] sm:$0xff] %vm579_vm0, %v8323_v0  ;;  %603 = vst.msk [vmem:[#allocation2 + $0xb0] sm:$0xff] %vm579_vm0, %v8323_v0  ;;  %s8597_s15 = scalar_lea.vmem %s10509_s2, %s8591_s26  ;;  %s6490_s18 = sshll.u32 %s8591_s26, 2  ;;  %7151 = vmatprep.subr.bf16.mxu1 (!%p6491_p11), %v8157_v3  ;;  %7231 = vmatprep.subr.bf16.mxu0 (!%p6491_p11), %v8641_v4  ;;  %v8159_v6 = vld [vmem:[%s8535_s17] sm:$0xff] (!%p6491_p11)   ;;  %v8160_v8 = vld [vmem:[%s8535_s17 + $0x50] sm:$0xff] (!%p6491_p11)  }
  0x61   : > { %605 = vst.msk [vmem:[#allocation2 + $0xc0] sm:$0xff] %vm579_vm0, %v8323_v0  ;;  %607 = vst.msk [vmem:[#allocation2 + $0xd0] sm:$0xff] %vm579_vm0, %v8323_v0  ;;  %s8603_s19 = scalar_lea.vmem %s10510_s3, %s8591_s26  ;;  %s8627_s1 = scalar_lea.vmem %s10460_s9, %s6490_s18  ;;  %v627_v9 = vld [vmem:[%s10451_s0 + $0x10] sm:$0xff] (!%p6491_p11)  ;;  %v628_v10 = vld [vmem:[%s10451_s0 + $0x18] sm:$0xff] (!%p6491_p11) }
  0x62   : > { %609 = vst.msk [vmem:[#allocation2 + $0xe0] sm:$0xff] %vm579_vm0, %v8323_v0  ;;  %611 = vst.msk [vmem:[#allocation2 + $0xf0] sm:$0xff] %vm579_vm0, %v8323_v0  ;;  %s577_s27 = scalar_lea.vmem %s10461_s10, %s8591_s26  ;;  %v629_v11 = vld [vmem:[%s10451_s0 + $0x20] sm:$0xff] (!%p6491_p11)  ;;  %v630_v12 = vld [vmem:[%s10451_s0 + $0x28] sm:$0xff] (!%p6491_p11) }
  0x63   : > { %613 = vst.msk [vmem:[#allocation2 + $0x100] sm:$0xff] %vm579_vm0, %v8323_v0  ;;  %615 = vst.msk [vmem:[#allocation2 + $0x110] sm:$0xff] %vm579_vm0, %v8323_v0  ;;  %7152 = vmatpush3.bf16.msra.mxu1 (!%p6491_p11), %v8157_v3  ;;  %7232 = vmatpush3.bf16.msra.mxu0 (!%p6491_p11), %v8641_v4  ;;  %v631_v13 = vld [vmem:[%s10451_s0 + $0x30] sm:$0xff] (!%p6491_p11)  ;;  %v632_v14 = vld [vmem:[%s10451_s0 + $0x38] sm:$0xff] (!%p6491_p11) }
  0x64   : > { %617 = vst.msk [vmem:[#allocation2 + $0x120] sm:$0xff] %vm579_vm0, %v8323_v0  ;;  %619 = vst.msk [vmem:[#allocation2 + $0x130] sm:$0xff] %vm579_vm0, %v8323_v0  ;;  %7169 = vmatprep.subr.bf16.mxu1 (!%p6491_p11), %v8159_v6  ;;  %7249 = vmatprep.subr.bf16.mxu0 (!%p6491_p11), %v8160_v8  ;;  %v633_v16 = vld [vmem:[%s10451_s0 + $0x40] sm:$0xff] (!%p6491_p11)  ;;  %v634_v21 = vld [vmem:[%s10451_s0 + $0x48] sm:$0xff] (!%p6491_p11) }
  0x65   : > { %582 = vst.msk [vmem:[#allocation2 + $0x8] sm:$0x3] %vm581_vm1, %v8323_v0  ;;  %584 = vst.msk [vmem:[#allocation2 + $0x18] sm:$0x3] %vm581_vm1, %v8323_v0  ;;  %v635_v22 = vld [vmem:[%s10451_s0 + $0x50] sm:$0xff] (!%p6491_p11)  ;;  %v636_v23 = vld [vmem:[%s10451_s0 + $0x58] sm:$0xff] (!%p6491_p11) }
  0x66   : > { %586 = vst.msk [vmem:[#allocation2 + $0x28] sm:$0x3] %vm581_vm1, %v8323_v0  ;;  %588 = vst.msk [vmem:[#allocation2 + $0x38] sm:$0x3] %vm581_vm1, %v8323_v0  ;;  %v8161_v32 = vld [vmem:[%s8535_s17 + $0x58] sm:$0xff] (!%p6491_p11)   ;;  %v8162_v33 = vld [vmem:[%s8535_s17 + $0x8] sm:$0xff] (!%p6491_p11)  }
  0x67   : > { %590 = vst.msk [vmem:[#allocation2 + $0x48] sm:$0x3] %vm581_vm1, %v8323_v0  ;;  %592 = vst.msk [vmem:[#allocation2 + $0x58] sm:$0x3] %vm581_vm1, %v8323_v0  ;;  %v637_v34 = vld [vmem:[%s10451_s0 + $0x60] sm:$0xff] (!%p6491_p11)  ;;  %v638_v39 = vld [vmem:[%s10451_s0 + $0x68] sm:$0xff] (!%p6491_p11) }
  0x68   : > { %594 = vst.msk [vmem:[#allocation2 + $0x68] sm:$0x3] %vm581_vm1, %v8323_v0  ;;  %596 = vst.msk [vmem:[#allocation2 + $0x78] sm:$0x3] %vm581_vm1, %v8323_v0  ;;  %624 = sbr.rel (%p6491_p11) target bundleno = 538 (0x21a), region = 76  ;;  %v639_v40 = vld [vmem:[%s10451_s0 + $0x70] sm:$0xff] (!%p6491_p11) }
  0x69   : > { %598 = vst.msk [vmem:[#allocation2 + $0x88] sm:$0x3] %vm581_vm1, %v8323_v0  ;;  %600 = vst.msk [vmem:[#allocation2 + $0x98] sm:$0x3] %vm581_vm1, %v8323_v0  ;;  %v8163_v43 = vld [vmem:[%s8535_s17 + $0x60] sm:$0xff] (!%p6491_p11)   ;;  %v640_v61 = vld [vmem:[%s10451_s0 + $0x78] sm:$0xff] (!%p6491_p11) }
  0x6a   : > { %602 = vst.msk [vmem:[#allocation2 + $0xa8] sm:$0x3] %vm581_vm1, %v8323_v0  ;;  %604 = vst.msk [vmem:[#allocation2 + $0xb8] sm:$0x3] %vm581_vm1, %v8323_v0  ;;  %v8732_v44 = vld [vmem:[%s8535_s17 + $0x20] sm:$0xff] (!%p6491_p11)   ;;  %v8165_v3 = vld [vmem:[%s8535_s17 + $0x68] sm:$0xff] (!%p6491_p11)  }
  0x6b   : > { %606 = vst.msk [vmem:[#allocation2 + $0xc8] sm:$0x3] %vm581_vm1, %v8323_v0  ;;  %608 = vst.msk [vmem:[#allocation2 + $0xd8] sm:$0x3] %vm581_vm1, %v8323_v0 }
  0x6c   : > { %610 = vst.msk [vmem:[#allocation2 + $0xe8] sm:$0x3] %vm581_vm1, %v8323_v0  ;;  %612 = vst.msk [vmem:[#allocation2 + $0xf8] sm:$0x3] %vm581_vm1, %v8323_v0  ;;  %v686_v15 = vld [vmem:[#allocation2 + $0x1] sm:$0xff] (!%p6491_p11) }
  0x6d   : > { %614 = vst.msk [vmem:[#allocation2 + $0x108] sm:$0x3] %vm581_vm1, %v8323_v0  ;;  %616 = vst.msk [vmem:[#allocation2 + $0x118] sm:$0x3] %vm581_vm1, %v8323_v0 }
  0x6e   : > { %618 = vst.msk [vmem:[#allocation2 + $0x128] sm:$0x3] %vm581_vm1, %v8323_v0  ;;  %620 = vst.msk [vmem:[#allocation2 + $0x138] sm:$0x3] %vm581_vm1, %v8323_v0 }
  0x6f   : > { %642 = vst.msk [vmem:[#allocation2 + $0x11] sm:$0xff] %vm579_vm0, %v625_v5  ;;  %643 = vst.msk [vmem:[#allocation2 + $0x21] sm:$0xff] %vm579_vm0, %v626_v7  ;;  %v658_v7 = vld [vmem:[#allocation2] sm:$0xff] }
  0x70   : > { %644 = vst.msk [vmem:[#allocation2 + $0x31] sm:$0xff] %vm579_vm0, %v627_v9  ;;  %645 = vst.msk [vmem:[#allocation2 + $0x41] sm:$0xff] %vm579_vm0, %v628_v10 }
  0x71   : > { %646 = vst.msk [vmem:[#allocation2 + $0x51] sm:$0xff] %vm579_vm0, %v629_v11  ;;  %647 = vst.msk [vmem:[#allocation2 + $0x61] sm:$0xff] %vm579_vm0, %v630_v12  ;;  %v694_v41 = vld [vmem:[#allocation2 + $0xa1] sm:$0xff] }
  0x72   : > { %648 = vst.msk [vmem:[#allocation2 + $0x71] sm:$0xff] %vm579_vm0, %v631_v13  ;;  %649 = vst.msk [vmem:[#allocation2 + $0x81] sm:$0xff] %vm579_vm0, %v632_v14  ;;  %v8167_v12 = vld [vmem:[%s8535_s17 + $0x70] sm:$0xff]  }
  0x73   : > { %650 = vst.msk [vmem:[#allocation2 + $0xb1] sm:$0xff] %vm579_vm0, %v633_v16  ;;  %651 = vst.msk [vmem:[#allocation2 + $0xc1] sm:$0xff] %vm579_vm0, %v634_v21 }
  0x74   : > { %652 = vst.msk [vmem:[#allocation2 + $0xd1] sm:$0xff] %vm579_vm0, %v635_v22  ;;  %653 = vst.msk [vmem:[#allocation2 + $0xe1] sm:$0xff] %vm579_vm0, %v636_v23 }
  0x75   : > { %654 = vst.msk [vmem:[#allocation2 + $0xf1] sm:$0xff] %vm579_vm0, %v637_v34  ;;  %655 = vst.msk [vmem:[#allocation2 + $0x101] sm:$0xff] %vm579_vm0, %v638_v39  ;;  %v666_v39 = vld [vmem:[#allocation2 + $0xa0] sm:$0xff] }
  0x76   : > { %v687_v17 = vld [vmem:[#allocation2 + $0x11] sm:$0xff]  ;;  %v1338_v19 = vld [vmem:[#allocation2 + $0x21] sm:$0xff]  ;;  %656 = vst.msk [vmem:[#allocation2 + $0x111] sm:$0xff] %vm579_vm0, %v639_v40  ;;  %657 = vst.msk [vmem:[#allocation2 + $0x121] sm:$0xff] %vm579_vm0, %v640_v61 }
  0x77   : > { %v702_v18 = vpack.c.bf16 %v687_v17, %v686_v15  ;;  %v1353_v20 = vpack.c.bf16 %v1338_v19, %v687_v17  ;;  %v689_v24 = vld [vmem:[#allocation2 + $0x31] sm:$0xff]  ;;  %v1340_v25 = vld [vmem:[#allocation2 + $0x41] sm:$0xff] }
  0x78   : > { %v691_v26 = vld [vmem:[#allocation2 + $0x51] sm:$0xff]  ;;  %v8698_v27 = vpack.c.bf16 %v689_v24, %v1338_v19  ;;  %v1354_v28 = vpack.c.bf16 %v1340_v25, %v689_v24  ;;  %v1342_v30 = vld [vmem:[#allocation2 + $0x61] sm:$0xff] }
  0x79   : > { %7153 = vmatprep.mubr.msk.bf16.mxu1 %vm579_vm0, %v702_v18  ;;  %7233 = vmatprep.mubr.msk.bf16.mxu0 %vm579_vm0, %v1353_v20  ;;  %v8700_v29 = vpack.c.bf16 %v691_v26, %v1340_v25  ;;  %v1355_v31 = vpack.c.bf16 %v1342_v30, %v691_v26  ;;  %v693_v35 = vld [vmem:[#allocation2 + $0x71] sm:$0xff]  ;;  %v8712_v37 = vld [vmem:[#allocation2 + $0x22] sm:$0xff] }
  0x7a   : > { %7154 = vmatmul.mubr.msk.bf16.vlgmr.msra.gmra.mrb[0].mxu1 %vm579_vm0, %v8698_v27  ;;  %7234 = vmatmul.mubr.msk.bf16.vlgmr.msra.gmra.mrb[0].mxu0 %vm579_vm0, %v1354_v28  ;;  %v8710_v36 = vld [vmem:[#allocation2 + $0x12] sm:$0xff]  ;;  %v8715_v38 = vld [vmem:[#allocation2 + $0x81] sm:$0xff]  ;;  %v8734_v45 = vpack.c.bf16 %v693_v35, %v1342_v30 }
  0x7b   : > { %7170 = vmatpush3.bf16.msra.mxu1 %v8159_v6  ;;  %7250 = vmatpush3.bf16.msra.mxu0 %v8160_v8  ;;  %v8726_v42 = vld [vmem:[#allocation2 + $0xb1] sm:$0xff]  ;;  %v1356_v46 = vpack.c.bf16 %v8715_v38, %v693_v35  ;;  %v1531_v47 = vpack.c.bf16 %v8712_v37, %v8710_v36  ;;  %v8739_v48 = vld [vmem:[#allocation2 + $0xc1] sm:$0xff] }
  0x7c   : > { %7157 = vmatprep.mubr.msk.bf16.mxu1 %vm579_vm0, %v8700_v29  ;;  %7237 = vmatprep.mubr.msk.bf16.mxu0 %vm579_vm0, %v1355_v31  ;;  %v8741_v49 = vld [vmem:[#allocation2 + $0xd1] sm:$0xff]  ;;  %v8743_v50 = vld [vmem:[#allocation2 + $0xe1] sm:$0xff]  ;;  %v706_v51 = vpack.c.bf16 %v8726_v42, %v694_v41  ;;  %v1357_v52 = vpack.c.bf16 %v8739_v48, %v8726_v42 }
  0x7d   : > { %7251 = vmatprep.subr.bf16.mxu0 %v8161_v32  ;;  %7171 = vmatprep.subr.bf16.mxu1 %v8162_v33  ;;  %v1358_v53 = vpack.c.bf16 %v8743_v50, %v8741_v49  ;;  %v8754_v54 = vld [vmem:[#allocation2 + $0x32] sm:$0xff]  ;;  %v8758_v55 = vld [vmem:[#allocation2 + $0x42] sm:$0xff]  ;;  %v8775_v62 = vpack.c.bf16 %v8741_v49, %v8739_v48 }
  0x7e   : > { %v8760_v56 = vld [vmem:[#allocation2 + $0xf1] sm:$0xff]  ;;  %v8762_v57 = vld [vmem:[#allocation2 + $0x101] sm:$0xff]  ;;  %v1532_v63 = vpack.c.bf16 %v8758_v55, %v8754_v54 }
  0x7f   : > { %7252 = vmatpush3.bf16.msra.mxu0 %v8161_v32  ;;  %7172 = vmatpush3.bf16.msra.mxu1 %v8162_v33  ;;  %v1359_v58 = vpack.c.bf16 %v8762_v57, %v8760_v56  ;;  %v8766_v59 = vld [vmem:[#allocation2 + $0x52] sm:$0xff]  ;;  %v8768_v60 = vld [vmem:[#allocation2 + $0x62] sm:$0xff]  ;;  %v8782_v0 = vpack.c.bf16 %v8760_v56, %v8743_v50 }
  0x80   : > { %7269 = vmatprep.subr.bf16.mxu0 %v8163_v43  ;;  %7189 = vmatprep.subr.bf16.mxu1 %v8732_v44  ;;  %v1533_v1 = vpack.c.bf16 %v8768_v60, %v8766_v59  ;;  %v8787_v5 = vld [vmem:[#allocation2 + $0x72] sm:$0xff]  ;;  %v8789_v6 = vld [vmem:[#allocation2 + $0x82] sm:$0xff] }
  0x81   : > { %v8794_v8 = vld [vmem:[#allocation2 + $0x10] sm:$0xff]  ;;  %v8798_v10 = vld [vmem:[#allocation2 + $0xc2] sm:$0xff]  ;;  %v1534_v14 = vpack.c.bf16 %v8789_v6, %v8787_v5 }
  0x82   : > { %7158 = vmatmul.mubr.msk.bf16.gmra.mrb[4].mxu1 %vm579_vm0, %v8734_v45  ;;  %7238 = vmatmul.mubr.msk.bf16.gmra.mrb[4].mxu0 %vm579_vm0, %v1356_v46  ;;  %v8796_v9 = vld [vmem:[#allocation2 + $0xb2] sm:$0xff]  ;;  %v674_v15 = vpack.c.bf16 %v8794_v8, %v658_v7  ;;  %v8818_v17 = vld [vmem:[#allocation2 + $0x20] sm:$0xff] }
  0x83   : > { %7161 = vmatprep.mubr.msk.bf16.mxu1 %vm579_vm0, %v706_v51  ;;  %7253 = vmatprep.mubr.msk.bf16.mxu0 %vm579_vm0, %v1531_v47  ;;  %v8802_v11 = vld [vmem:[#allocation2 + $0x111] sm:$0xff]  ;;  %v1535_v16 = vpack.c.bf16 %v8798_v10, %v8796_v9  ;;  %v8826_v20 = vld [vmem:[#allocation2 + $0xe2] sm:$0xff] }
  0x84   : > { %v8808_v13 = vpack.c.bf16 %v8802_v11, %v8762_v57  ;;  %v8822_v18 = vld [vmem:[#allocation2 + $0x30] sm:$0xff]  ;;  %v8828_v21 = vld [vmem:[#allocation2 + $0x40] sm:$0xff]  ;;  %v8166_v31 = vld [vmem:[%s8535_s17 + $0x28] sm:$0xff]  }
  0x85   : > { %v8824_v19 = vld [vmem:[#allocation2 + $0xd2] sm:$0xff]  ;;  %v8834_v24 = vld [vmem:[#allocation2 + $0x102] sm:$0xff]  ;;  %v675_v25 = vpack.c.bf16 %v8822_v18, %v8818_v17 }
  0x86   : > { %v8830_v22 = vld [vmem:[#allocation2 + $0x50] sm:$0xff]  ;;  %v1536_v26 = vpack.c.bf16 %v8826_v20, %v8824_v19  ;;  %v8847_v32 = vld [vmem:[#allocation2 + $0x60] sm:$0xff]  ;;  %v8169_v7 = vld [vmem:[%s8535_s17 + $0x78] sm:$0xff]  }
  0x87   : > { %v8832_v23 = vld [vmem:[#allocation2 + $0xf2] sm:$0xff]  ;;  %v676_v28 = vpack.c.bf16 %v8830_v22, %v8828_v21  ;;  %v8855_v35 = vld [vmem:[#allocation2 + $0x122] sm:$0xff] }
  0x88   : > { %v1537_v30 = vpack.c.bf16 %v8834_v24, %v8832_v23  ;;  %v8851_v33 = vld [vmem:[#allocation2 + $0x70] sm:$0xff]  ;;  %v8870_v47 = vld [vmem:[#allocation2 + $0xc0] sm:$0xff] }
  0x89   : > { %v8853_v34 = vld [vmem:[#allocation2 + $0x112] sm:$0xff]  ;;  %v8874_v61 = vld [vmem:[#allocation2 + $0xe0] sm:$0xff] }
  0x8a   : > { %7162 = vmatmul.mubr.msk.bf16.gmra.mrb[8].mxu1 %vm579_vm0, %v8775_v62  ;;  %7254 = vmatmul.mubr.msk.bf16.vlgmr.msra.gmra.mrb[0].mxu0 %vm579_vm0, %v1532_v63  ;;  %v8858_v40 = vld [vmem:[#allocation2 + $0xb0] sm:$0xff] }
  0x8b   : > { %7270 = vmatpush3.bf16.msra.mxu0 %v8163_v43  ;;  %7165 = vmatprep.mubr.msk.bf16.mxu1 %vm579_vm0, %v8782_v0  ;;  %v8168_v41 = vld [vmem:[%s8535_s17 + $0x30] sm:$0xff]   ;;  %v677_v43 = vpack.c.bf16 %v8851_v33, %v8847_v32  ;;  %v678_v46 = vpack.c.bf16 %v8858_v40, %v666_v39  ;;  %v998_v39 = vpack.c.bf16 %v8754_v54, %v8712_v37 }
  0x8c   : > { %7257 = vmatprep.mubr.msk.bf16.mxu0 %vm579_vm0, %v1533_v1  ;;  %7271 = vmatprep.subr.bf16.mxu0 %v8165_v3  ;;  %v8872_v51 = vld [vmem:[#allocation2 + $0xd0] sm:$0xff]  ;;  %v1000_v37 = vpack.c.bf16 %v8787_v5, %v8768_v60  ;;  %v1003_v60 = vpack.c.bf16 %v8832_v23, %v8826_v20  ;;  %v8172_v5 = vld [vmem:[%s8535_s17 + $0x88] sm:$0xff]  }
  0x8d   : > { %v8876_v63 = vld [vmem:[#allocation2 + $0xf0] sm:$0xff]  ;;  %v679_v1 = vpack.c.bf16 %v8872_v51, %v8870_v47 }
  0x8f   : > { %7272 = vmatpush3.bf16.msra.mxu0 %v8165_v3  ;;  %v680_v3 = vpack.c.bf16 %v8876_v63, %v8874_v61 }
  0x90   : > { %7289 = vmatprep.subr.bf16.mxu0 %v8167_v12 }
  0x92   : > { %7166 = vmatmul.mubr.msk.bf16.gmra.mrb[12].mxu1 %vm579_vm0, %v8808_v13  ;;  %7258 = vmatmul.mubr.msk.bf16.gmra.mrb[4].mxu0 %vm579_vm0, %v1534_v14  ;;  %v8885_v14 = vld [vmem:[#allocation2 + $0x100] sm:$0xff] }
  0x93   : > { %7173 = vmatprep.mubr.msk.bf16.mxu1 %vm579_vm0, %v674_v15  ;;  %7261 = vmatprep.mubr.msk.bf16.mxu0 %vm579_vm0, %v1535_v16  ;;  %v8888_v15 = vld [vmem:[#allocation2 + $0x110] sm:$0xff]  ;;  %v8890_v16 = vld [vmem:[#allocation2 + $0x80] sm:$0xff] }
  0x9a   : > { %7174 = vmatmul.mubr.msk.bf16.vlgmr.msra.gmra.mrb[0].mxu1 %vm579_vm0, %v675_v25  ;;  %7262 = vmatmul.mubr.msk.bf16.gmra.mrb[8].mxu0 %vm579_vm0, %v1536_v26  ;;  %v981_v26 = vld [vmem:[#allocation2 + $0x2] sm:$0xff] }
  0x9b   : > { %7190 = vmatpush3.bf16.msra.mxu1 %v8732_v44  ;;  %7177 = vmatprep.mubr.msk.bf16.mxu1 %vm579_vm0, %v676_v28  ;;  %v1538_v44 = vpack.c.bf16 %v8855_v35, %v8853_v34 }
  0x9c   : > { %7265 = vmatprep.mubr.msk.bf16.mxu0 %vm579_vm0, %v1537_v30  ;;  %7191 = vmatprep.subr.bf16.mxu1 %v8166_v31  ;;  %v8171_v30 = vld [vmem:[%s8535_s17 + $0x80] sm:$0xff]  }
  0x9f   : > { %7192 = vmatpush3.bf16.msra.mxu1 %v8166_v31  ;;  %v681_v31 = vpack.c.bf16 %v8888_v15, %v8885_v14 }
  0xa0   : > { %7209 = vmatprep.subr.bf16.mxu1 %v8168_v41 }
  0xa2   : > { %7178 = vmatmul.mubr.msk.bf16.gmra.mrb[4].mxu1 %vm579_vm0, %v677_v43  ;;  %7266 = vmatmul.mubr.msk.bf16.gmra.mrb[12].mxu0 %vm579_vm0, %v1538_v44  ;;  %v8170_v44 = vld [vmem:[%s8535_s17 + $0x38] sm:$0xff]  }
  0xa3   : > { %7181 = vmatprep.mubr.msk.bf16.mxu1 %vm579_vm0, %v678_v46  ;;  %7273 = vmatprep.mubr.msk.bf16.mxu0 %vm579_vm0, %v675_v25  ;;  %v1701_v25 = vld [vmem:[#allocation2 + $0x90] sm:$0xff] }
  0xa4   : > { %v1709_v46 = vld [vmem:[#allocation2 + $0x130] sm:$0xff] }
  0xaa   : > { %7182 = vmatmul.mubr.msk.bf16.gmra.mrb[8].mxu1 %vm579_vm0, %v679_v1  ;;  %7274 = vmatmul.mubr.msk.bf16.vlgmr.msra.gmra.mrb[0].mxu0 %vm579_vm0, %v676_v28  ;;  %v1713_v28 = vpack.c.bf16 %v1701_v25, %v8890_v16 }
  0xab   : > { %7290 = vmatpush3.bf16.msra.mxu0 %v8167_v12  ;;  %7185 = vmatprep.mubr.msk.bf16.mxu1 %vm579_vm0, %v680_v3  ;;  %v997_v12 = vpack.c.bf16 %v8710_v36, %v981_v26  ;;  %v1708_v36 = vld [vmem:[#allocation2 + $0x120] sm:$0xff] }
  0xac   : > { %7277 = vmatprep.mubr.msk.bf16.mxu0 %vm579_vm0, %v677_v43  ;;  %7291 = vmatprep.subr.bf16.mxu0 %v8169_v7  ;;  %v999_v43 = vpack.c.bf16 %v8766_v59, %v8758_v55  ;;  %v1717_v54 = vpack.c.bf16 %v1709_v46, %v1708_v36  ;;  %v1002_v59 = vpack.c.bf16 %v8824_v19, %v8798_v10 }
  0xad   : > { %v1175_v19 = vpack.c.bf16 %v8818_v17, %v8794_v8  ;;  %v1887_v8 = vld [vmem:[#allocation2 + $0x131] sm:$0xff] }
  0xaf   : > { %7292 = vmatpush3.bf16.msra.mxu0 %v8169_v7 }
  0xb0   : > { %7309 = vmatprep.subr.bf16.mxu0 %v8171_v30 }
  0xb2   : > { %7186 = vmatmul.mubr.msk.bf16.gmra.mrb[12].mxu1 %vm579_vm0, %v681_v31  ;;  %7278 = vmatmul.mubr.msk.bf16.gmra.mrb[4].mxu0 %vm579_vm0, %v1713_v28 }
  0xb3   : > { %7193 = vmatprep.mubr.msk.bf16.mxu1 %vm579_vm0, %v997_v12  ;;  %7281 = vmatprep.mubr.msk.bf16.mxu0 %vm579_vm0, %v679_v1  ;;  %v989_v1 = vld [vmem:[#allocation2 + $0xa2] sm:$0xff] }
  0xb4   : > { %v1001_v55 = vpack.c.bf16 %v8796_v9, %v989_v1  ;;  %v1879_v9 = vld [vmem:[#allocation2 + $0x91] sm:$0xff] }
  0xb5   : > { %v1891_v10 = vpack.c.bf16 %v1879_v9, %v8715_v38  ;;  %v1886_v38 = vld [vmem:[#allocation2 + $0x121] sm:$0xff] }
  0xb6   : > { %v1895_v17 = vpack.c.bf16 %v1887_v8, %v1886_v38  ;;  %v1360_v42 = vpack.c.bf16 %v1886_v38, %v8802_v11 }
  0xba   : > { %7194 = vmatmul.mubr.msk.bf16.vlgmr.msra.gmra.mrb[0].mxu1 %vm579_vm0, %v998_v39  ;;  %7282 = vmatmul.mubr.msk.bf16.gmra.mrb[8].mxu0 %vm579_vm0, %v680_v3 }
  0xbb   : > { %7210 = vmatpush3.bf16.msra.mxu1 %v8168_v41  ;;  %7197 = vmatprep.mubr.msk.bf16.mxu1 %vm579_vm0, %v999_v43 }
  0xbc   : > { %7285 = vmatprep.mubr.msk.bf16.mxu0 %vm579_vm0, %v681_v31  ;;  %7211 = vmatprep.subr.bf16.mxu1 %v8170_v44 }
  0xbf   : > { %7212 = vmatpush3.bf16.msra.mxu1 %v8170_v44 }
  0xc0   : > { %7711 = vmatprep.subr.bf16.mxu1 %v8636_v2 }
  0xc2   : > { %7198 = vmatmul.mubr.msk.bf16.gmra.mrb[4].mxu1 %vm579_vm0, %v1000_v37  ;;  %7286 = vmatmul.mubr.msk.bf16.gmra.mrb[12].mxu0 %vm579_vm0, %v1717_v54 }
  0xc3   : > { %7201 = vmatprep.mubr.msk.bf16.mxu1 %vm579_vm0, %v1001_v55  ;;  %7293 = vmatprep.mubr.msk.bf16.mxu0 %vm579_vm0, %v8698_v27  ;;  %v1004_v27 = vpack.c.bf16 %v8853_v34, %v8834_v24 }
  0xca   : > { %7202 = vmatmul.mubr.msk.bf16.gmra.mrb[8].mxu1 %vm579_vm0, %v1002_v59  ;;  %7294 = vmatmul.mubr.msk.bf16.vlgmr.msra.gmra.mrb[0].mxu0 %vm579_vm0, %v8700_v29  ;;  %v1176_v29 = vpack.c.bf16 %v8828_v21, %v8822_v18  ;;  %v1179_v18 = vpack.c.bf16 %v8870_v47, %v8858_v40 }
  0xcb   : > { %7310 = vmatpush3.bf16.msra.mxu0 %v8171_v30  ;;  %7205 = vmatprep.mubr.msk.bf16.mxu1 %vm579_vm0, %v1003_v60 }
  0xcc   : > { %7297 = vmatprep.mubr.msk.bf16.mxu0 %vm579_vm0, %v8734_v45  ;;  %7311 = vmatprep.subr.bf16.mxu0 %v8172_v5  ;;  %v1177_v45 = vpack.c.bf16 %v8847_v32, %v8830_v22 }
  0xcf   : > { %7312 = vmatpush3.bf16.msra.mxu0 %v8172_v5 }
  0xd2   : > { %7206 = vmatmul.mubr.msk.bf16.gmra.mrb[12].mxu1 %vm579_vm0, %v1004_v27  ;;  %7298 = vmatmul.mubr.msk.bf16.gmra.mrb[4].mxu0 %vm579_vm0, %v1891_v10 }
  0xd3   : > { %7213 = vmatprep.mubr.msk.bf16.mxu1 %vm579_vm0, %v1175_v19  ;;  %7301 = vmatprep.mubr.msk.bf16.mxu0 %vm579_vm0, %v8775_v62  ;;  %v1178_v62 = vpack.c.bf16 %v8890_v16, %v8851_v33 }
  0xda   : > { %7214 = vmatmul.mubr.msk.bf16.vlgmr.msra.gmra.mrb[0].mxu1 %vm579_vm0, %v1176_v29  ;;  %7302 = vmatmul.mubr.msk.bf16.gmra.mrb[8].mxu0 %vm579_vm0, %v8782_v0  ;;  %v1181_v0 = vpack.c.bf16 %v8885_v14, %v8876_v63 }
  0xdb   : > { %7713 = vmatpush3.bf16.msra.mxu1 %v8636_v2  ;;  %7217 = vmatprep.mubr.msk.bf16.mxu1 %vm579_vm0, %v1177_v45  ;;  %v1180_v2 = vpack.c.bf16 %v8874_v61, %v8872_v51 }
  0xdc   : > { %7305 = vmatprep.mubr.msk.bf16.mxu0 %vm579_vm0, %v8808_v13  ;;  %7712 = vmatprep.subr.bf16.mxu1 %v8641_v4  ;;  %v1182_v13 = vpack.c.bf16 %v1708_v36, %v8888_v15 }
  0xdf   : > { %7714 = vmatpush3.bf16.msra.mxu1 %v8641_v4  ;;  %v2057_v4 = vld [vmem:[#allocation2 + $0x92] sm:$0xff] }
  0xe0   : > { %v2069_v20 = vpack.c.bf16 %v2057_v4, %v8789_v6  ;;  %v2065_v6 = vld [vmem:[#allocation2 + $0x132] sm:$0xff] }
  0xe1   : > { %v2073_v48 = vpack.c.bf16 %v2065_v6, %v8855_v35 }
  0xe2   : > { %7218 = vmatmul.mubr.msk.bf16.gmra.mrb[4].mxu1 %vm579_vm0, %v1178_v62  ;;  %7306 = vmatmul.mubr.msk.bf16.gmra.mrb[12].mxu0 %vm579_vm0, %v1895_v17 }
  0xe3   : > { %7221 = vmatprep.mubr.msk.bf16.mxu1 %vm579_vm0, %v1179_v18  ;;  %7313 = vmatprep.mubr.msk.bf16.mxu0 %vm579_vm0, %v998_v39 }
  0xea   : > { %7222 = vmatmul.mubr.msk.bf16.gmra.mrb[8].mxu1 %vm579_vm0, %v1180_v2  ;;  %7314 = vmatmul.mubr.msk.bf16.vlgmr.msra.gmra.mrb[0].mxu0 %vm579_vm0, %v999_v43 }
  0xeb   : > { %7225 = vmatprep.mubr.msk.bf16.mxu1 %vm579_vm0, %v1181_v0  ;;  %7317 = vmatprep.mubr.msk.bf16.mxu0 %vm579_vm0, %v1000_v37 }
  0xf2   : > { %7226 = vmatmul.mubr.msk.bf16.gmra.mrb[12].mxu1 %vm579_vm0, %v1182_v13  ;;  %7318 = vmatmul.mubr.msk.bf16.gmra.mrb[4].mxu0 %vm579_vm0, %v2069_v20 }
  0xf3   : > { %7241 = vmatprep.mubr.msk.bf16.mxu1 %vm579_vm0, %v1357_v52  ;;  %7321 = vmatprep.mubr.msk.bf16.mxu0 %vm579_vm0, %v1002_v59 }
  0xfa   : > { %7242 = vmatmul.mubr.msk.bf16.vlgmr.msra.gmra.mrb[8].mxu1 %vm579_vm0, %v1358_v53  ;;  %7322 = vmatmul.mubr.msk.bf16.gmra.mrb[8].mxu0 %vm579_vm0, %v1003_v60 }
  0xfb   : > { %7245 = vmatprep.mubr.msk.bf16.mxu1 %vm579_vm0, %v1359_v58  ;;  %7325 = vmatprep.mubr.msk.bf16.mxu0 %vm579_vm0, %v1004_v27 }
 0x102   : > { %7246 = vmatmul.mubr.msk.bf16.gmra.mrb[12].mxu1 %vm579_vm0, %v1360_v42  ;;  %7326 = vmatmul.mubr.msk.bf16.gmra.mrb[12].mxu0 %vm579_vm0, %v2073_v48 }
 0x1ad   : > { %v7215_v49 = vpop.f32.mrb[0].mxu1 }
 0x1ae   : > { %v1258_v50 = vpop.f32.mrb[1].mxu1 }
 0x1af   : > { %v7216_v52 = vpop.f32.mrb[2].mxu1 }
 0x1b0   : > { %v1261_v53 = vpop.f32.mrb[3].mxu1 }
 0x1b5   : > { %v7219_v21 = vpop.f32.mrb[4].mxu1 }
 0x1b6   : > { %v1274_v22 = vpop.f32.mrb[5].mxu1 }
 0x1b7   : > { %v7220_v56 = vpop.f32.mrb[6].mxu1 }
 0x1b8   : > { %v1277_v57 = vpop.f32.mrb[7].mxu1 }
 0x1bd   : > { %v7315_v58 = vpop.f32.mrb[0].mxu0 }
 0x1be   : > { %v8993_v23 = vadd.f32 %v7315_v58, %v7215_v49  ;;  %v2149_v24 = vpop.f32.mrb[1].mxu0 }
 0x1bf   : > { %v8995_v32 = vadd.f32 %v2149_v24, %v1258_v50  ;;  %v7316_v11 = vpop.f32.mrb[2].mxu0 }
 0x1c0   : > { %v8997_v33 = vadd.f32 %v7316_v11, %v7216_v52  ;;  %v2152_v34 = vpop.f32.mrb[3].mxu0  ;;  %v2269_v41 = vmul.f32 %v8993_v23, %v8993_v23  ;;  %v2233_v7 = vsel %vm579_vm0, %v8993_v23, 0.0 }
 0x1c1   : > { %v2267_v35 = vmul.f32 %v8995_v32, %v8995_v32  ;;  %v9001_v40 = vadd.f32 %v2152_v34, %v1261_v53  ;;  %v2230_v47 = vsel %vm579_vm0, %v8995_v32, 0.0 }
 0x1c2   : > { %v2270_v63 = vmul.f32 %v8997_v33, %v8997_v33  ;;  %v2286_v28 = vsel %vm579_vm0, %v2269_v41, 0.0  ;;  %v2235_v12 = vsel %vm579_vm0, %v8997_v33, 0.0 }
 0x1c3   : > { %v2231_v51 = vsel %vm579_vm0, %v9001_v40, 0.0  ;;  %v2268_v61 = vmul.f32 %v9001_v40, %v9001_v40  ;;  %v2283_v14 = vsel %vm579_vm0, %v2267_v35, 0.0 }
 0x1c4   : > { %v2232_v3 = vadd.f32 %v2231_v51, %v2230_v47  ;;  %v2288_v44 = vsel %vm579_vm0, %v2270_v63, 0.0 }
 0x1c5   : > { %v2284_v15 = vsel %vm579_vm0, %v2268_v61, 0.0  ;;  %v7319_v16 = vpop.f32.mrb[4].mxu0 }
 0x1c6   : > { %v2234_v25 = vadd.f32 %v2233_v7, %v2232_v3  ;;  %v2285_v26 = vadd.f32 %v2284_v15, %v2283_v14  ;;  %v9017_v30 = vadd.f32 %v7319_v16, %v7219_v21  ;;  %v2165_v31 = vpop.f32.mrb[5].mxu0 }
 0x1c7   : > { %v9022_v39 = vadd.f32 %v2165_v31, %v1274_v22  ;;  %v7320_v43 = vpop.f32.mrb[6].mxu0 }
 0x1c8   : > { %v2287_v36 = vadd.f32 %v2286_v28, %v2285_v26  ;;  %v2236_v46 = vadd.f32 %v2235_v12, %v2234_v25  ;;  %v2168_v1 = vpop.f32.mrb[7].mxu0  ;;  %v9029_v55 = vadd.f32 %v7320_v43, %v7220_v56  ;;  %v2273_v10 = vmul.f32 %v9017_v30, %v9017_v30 }
 0x1c9   : > { %v2237_v37 = vsel %vm579_vm0, %v9022_v39, 0.0  ;;  %v2271_v54 = vmul.f32 %v9022_v39, %v9022_v39  ;;  %v9031_v59 = vadd.f32 %v2168_v1, %v1277_v57  ;;  %v2241_v38 = vsel %vm579_vm0, %v9017_v30, 0.0 }
 0x1ca   : > { %v2238_v60 = vadd.f32 %v2237_v37, %v2236_v46  ;;  %v2289_v5 = vadd.f32 %v2288_v44, %v2287_v36  ;;  %v2274_v17 = vmul.f32 %v9029_v55, %v9029_v55  ;;  %v2243_v20 = vsel %vm579_vm0, %v9029_v55, 0.0 }
 0x1cb   : > { %v2290_v9 = vsel %vm579_vm0, %v2271_v54, 0.0  ;;  %v2239_v27 = vsel %vm579_vm0, %v9031_v59, 0.0  ;;  %v2272_v45 = vmul.f32 %v9031_v59, %v9031_v59  ;;  %v2294_v50 = vsel %vm579_vm0, %v2273_v10, 0.0 }
 0x1cc   : > { %v2291_v19 = vadd.f32 %v2290_v9, %v2289_v5  ;;  %v2240_v29 = vadd.f32 %v2239_v27, %v2238_v60  ;;  %v2296_v11 = vsel %vm579_vm0, %v2274_v17, 0.0 }
 0x1cd   : > { %v7243_v8 = vpop.f32.mrb[8].mxu1  ;;  %v7323_v62 = vpop.f32.mrb[8].mxu0  ;;  %v2292_v2 = vsel %vm579_vm0, %v2272_v45, 0.0 }
 0x1ce   : > { %v2242_v18 = vadd.f32 %v2241_v38, %v2240_v29  ;;  %v9045_v0 = vadd.f32 %v7323_v62, %v7243_v8  ;;  %v1468_v4 = vpop.f32.mrb[9].mxu1  ;;  %v2181_v13 = vpop.f32.mrb[9].mxu0  ;;  %v2293_v6 = vadd.f32 %v2292_v2, %v2291_v19 }
 0x1cf   : > { %v9049_v42 = vadd.f32 %v2181_v13, %v1468_v4  ;;  %v7244_v48 = vpop.f32.mrb[10].mxu1  ;;  %v7324_v49 = vpop.f32.mrb[10].mxu0 }
 0x1d0   : > { %v2244_v52 = vadd.f32 %v2243_v20, %v2242_v18  ;;  %v9052_v53 = vadd.f32 %v7324_v49, %v7244_v48  ;;  %v1471_v21 = vpop.f32.mrb[11].mxu1  ;;  %v2184_v22 = vpop.f32.mrb[11].mxu0  ;;  %v2295_v56 = vadd.f32 %v2294_v50, %v2293_v6  ;;  %v2277_v61 = vmul.f32 %v9045_v0, %v9045_v0 }
 0x1d1   : > { %v2245_v57 = vsel %vm579_vm0, %v9049_v42, 0.0  ;;  %v2275_v58 = vmul.f32 %v9049_v42, %v9049_v42  ;;  %v9058_v24 = vadd.f32 %v2184_v22, %v1471_v21  ;;  %v2249_v3 = vsel %vm579_vm0, %v9045_v0, 0.0 }
 0x1d2   : > { %v2246_v34 = vadd.f32 %v2245_v57, %v2244_v52  ;;  %v2297_v35 = vadd.f32 %v2296_v11, %v2295_v56  ;;  %v2278_v25 = vmul.f32 %v9052_v53, %v9052_v53  ;;  %v2251_v43 = vsel %vm579_vm0, %v9052_v53, 0.0 }
 0x1d3   : > { %v2298_v41 = vsel %vm579_vm0, %v2275_v58, 0.0  ;;  %v2247_v47 = vsel %vm579_vm0, %v9058_v24, 0.0  ;;  %v2276_v51 = vmul.f32 %v9058_v24, %v9058_v24  ;;  %v2302_v37 = vsel %vm579_vm0, %v2277_v61, 0.0 }
 0x1d4   : > { %v2248_v63 = vadd.f32 %v2247_v47, %v2246_v34  ;;  %v2299_v7 = vadd.f32 %v2298_v41, %v2297_v35  ;;  %v2304_v45 = vsel %vm579_vm0, %v2278_v25, 0.0 }
 0x1d5   : > { %v2300_v14 = vsel %vm579_vm0, %v2276_v51, 0.0  ;;  %v7247_v15 = vpop.f32.mrb[12].mxu1  ;;  %v7327_v16 = vpop.f32.mrb[12].mxu0 }
 0x1d6   : > { %v2250_v26 = vadd.f32 %v2249_v3, %v2248_v63  ;;  %v9073_v31 = vadd.f32 %v7327_v16, %v7247_v15  ;;  %v1484_v28 = vpop.f32.mrb[13].mxu1  ;;  %v2197_v12 = vpop.f32.mrb[13].mxu0  ;;  %v2301_v44 = vadd.f32 %v2300_v14, %v2299_v7 }
 0x1d7   : > { %v9077_v36 = vadd.f32 %v2197_v12, %v1484_v28  ;;  %v7248_v46 = vpop.f32.mrb[14].mxu1  ;;  %v7328_v1 = vpop.f32.mrb[14].mxu0 }
 0x1d8   : > { %v2252_v54 = vadd.f32 %v2251_v43, %v2250_v26  ;;  %v9080_v60 = vadd.f32 %v7328_v1, %v7248_v46  ;;  %v1487_v5 = vpop.f32.mrb[15].mxu1  ;;  %v2200_v9 = vpop.f32.mrb[15].mxu0  ;;  %v2303_v27 = vadd.f32 %v2302_v37, %v2301_v44  ;;  %v2281_v2 = vmul.f32 %v9073_v31, %v9073_v31 }
 0x1d9   : > { %v2253_v10 = vsel %vm579_vm0, %v9077_v36, 0.0  ;;  %v2279_v19 = vmul.f32 %v9077_v36, %v9077_v36  ;;  %v9086_v29 = vadd.f32 %v2200_v9, %v1487_v5  ;;  %v2257_v13 = vsel %vm579_vm0, %v9073_v31, 0.0 }
 0x1da   : > { %v2254_v38 = vadd.f32 %v2253_v10, %v2252_v54  ;;  %v2305_v8 = vadd.f32 %v2304_v45, %v2303_v27  ;;  %v2282_v48 = vmul.f32 %v9080_v60, %v9080_v60  ;;  %v2259_v50 = vsel %vm579_vm0, %v9080_v60, 0.0 }
 0x1db   : > { %v2306_v62 = vsel %vm579_vm0, %v2279_v19, 0.0  ;;  %v2255_v17 = vsel %vm579_vm0, %v9086_v29, 0.0  ;;  %v2280_v18 = vmul.f32 %v9086_v29, %v9086_v29  ;;  %v2310_v21 = vsel %vm579_vm0, %v2281_v2, 0.0 }
 0x1dc   : > { %v2256_v4 = vadd.f32 %v2255_v17, %v2254_v38  ;;  %v2307_v20 = vadd.f32 %v2306_v62, %v2305_v8  ;;  %v2312_v57 = vsel %vm579_vm0, %v2282_v48, 0.0 }
 0x1dd   : > { %v2308_v6 = vsel %vm579_vm0, %v2280_v18, 0.0 }
 0x1de   : > { %v2258_v49 = vadd.f32 %v2257_v13, %v2256_v4  ;;  %v2309_v52 = vadd.f32 %v2308_v6, %v2307_v20 }
 0x1e0   : > { %v2260_v22 = vadd.f32 %v2259_v50, %v2258_v49  ;;  %v2311_v56 = vadd.f32 %v2310_v21, %v2309_v52 }
 0x1e2   : > { %v2261_v58 = vrot.slane %v2260_v22, 4  ;;  %v2313_v11 = vadd.f32 %v2312_v57, %v2311_v56 }
 0x1e4   : > { %v2262_v34 = vadd.f32 %v2261_v58, %v2260_v22  ;;  %v2314_v35 = vrot.slane %v2313_v11, 4 }
 0x1e6   : > { %v2263_v41 = vrot.slane %v2262_v34, 2  ;;  %v2315_v47 = vadd.f32 %v2314_v35, %v2313_v11 }
 0x1e8   : > { %v2264_v51 = vadd.f32 %v2263_v41, %v2262_v34  ;;  %v2316_v61 = vrot.slane %v2315_v47, 2 }
 0x1ea   : > { %v2265_v63 = vrot.slane %v2264_v51, 1  ;;  %v2317_v3 = vadd.f32 %v2316_v61, %v2315_v47 }
 0x1ec   : > { %v2266_v7 = vadd.f32 %v2265_v63, %v2264_v51  ;;  %v2318_v14 = vrot.slane %v2317_v3, 1 }
 0x1ee   : > { %v2320_v15 = vmul.f32 0.0078125, %v2266_v7  ;;  %v2319_v16 = vadd.f32 %v2318_v14, %v2317_v3 }
 0x1f0   : > { %v2322_v25 = vmul.f32 %v2320_v15, %v2320_v15  ;;  %v2325_v26 = vsub.f32 %v8995_v32, %v2320_v15  ;;  %v2326_v28 = vsub.f32 %v9001_v40, %v2320_v15  ;;  %v2327_v12 = vsub.f32 %v8993_v23, %v2320_v15 }
 0x1f1   : > { %v2321_v43 = vmul.f32 0.0078125, %v2319_v16  ;;  %v2328_v44 = vsub.f32 %v8997_v33, %v2320_v15  ;;  %v2329_v46 = vsub.f32 %v9022_v39, %v2320_v15  ;;  %v2330_v1 = vsub.f32 %v9031_v59, %v2320_v15 }
 0x1f2   : > { %v2331_v37 = vsub.f32 %v9017_v30, %v2320_v15  ;;  %v2332_v54 = vsub.f32 %v9029_v55, %v2320_v15  ;;  %v2333_v5 = vsub.f32 %v9049_v42, %v2320_v15  ;;  %v2334_v32 = vsub.f32 %v9058_v24, %v2320_v15  ;;  %v2228_v24 = vld [vmem:[%s8597_s15] sm:$0x1] }
 0x1f3   : > { %v2323_v9 = vsub.f32 %v2321_v43, %v2322_v25  ;;  %v2335_v40 = vsub.f32 %v9045_v0, %v2320_v15  ;;  %v2336_v23 = vsub.f32 %v9052_v53, %v2320_v15  ;;  %v2337_v33 = vsub.f32 %v9077_v36, %v2320_v15 }
 0x1f4   : > { %v2338_v39 = vsub.f32 %v9086_v29, %v2320_v15  ;;  %v2339_v59 = vsub.f32 %v9073_v31, %v2320_v15  ;;  %v2340_v30 = vsub.f32 %v9080_v60, %v2320_v15  ;;  %v2344_v42 = vlaneseq  ;;  %v6614_v29 = vld [vmem:[%s8603_s19] ss:$0 sm:$0xff] }
 0x1f5   : > { %v2324_v27 = vmax.f32 %v2323_v9, 0.0 }
 0x1f6   : > { %v2345_v10 = vshrl.u32 %v2344_v42, 7 }
 0x1f7   : > { %v2341_v55 = vadd.f32 1e-05, %v2324_v27 }
 0x1f8   : > { %v2346_v19 = vsub.s32 0, %v2345_v10 }
 0x1f9   : > { %8173 = vrsqrt.f32 %v2341_v55 }
 0x203   : > { %v8174_v45 = vpop.eup %8173 }
 0x204   : > { %v2343_v0 = vmul.f32 %v8174_v45, %v2228_v24 }
 0x206   : > { %v2347_v38 = vrot.slane %v2343_v0, %v2346_v19 }
 0x208   : > { %v2348_v53 = vmul.f32 %v2347_v38, %v2325_v26  ;;  %v2349_v8 = vmul.f32 %v2347_v38, %v2326_v28  ;;  %v2350_v36 = vmul.f32 %v2347_v38, %v2327_v12  ;;  %v2351_v62 = vmul.f32 %v2347_v38, %v2328_v44 }
 0x209   : > { %v2352_v17 = vmul.f32 %v2347_v38, %v2329_v46  ;;  %v2353_v31 = vmul.f32 %v2347_v38, %v2330_v1  ;;  %v2354_v18 = vmul.f32 %v2347_v38, %v2331_v37  ;;  %v2355_v2 = vmul.f32 %v2347_v38, %v2332_v54 }
 0x20a   : > { %v2356_v60 = vmul.f32 %v2347_v38, %v2333_v5  ;;  %v2357_v4 = vmul.f32 %v2347_v38, %v2334_v32  ;;  %v2358_v13 = vmul.f32 %v2347_v38, %v2335_v40  ;;  %v2359_v20 = vmul.f32 %v2347_v38, %v2336_v23 }
 0x20b   : > { %v2360_v6 = vmul.f32 %v2347_v38, %v2337_v33  ;;  %v2361_v48 = vmul.f32 %v2347_v38, %v2338_v39  ;;  %v2362_v49 = vmul.f32 %v2347_v38, %v2339_v59  ;;  %v2363_v50 = vmul.f32 %v2347_v38, %v2340_v30 }
 0x20c   : > { %v2370_v52 = vadd.f32 %v6614_v29, %v2348_v53  ;;  %v2371_v21 = vadd.f32 %v6614_v29, %v2349_v8  ;;  %v2372_v22 = vadd.f32 %v6614_v29, %v2350_v36  ;;  %v2373_v56 = vadd.f32 %v6614_v29, %v2351_v62 }
 0x20d   : > { %v2374_v57 = vadd.f32 %v6614_v29, %v2352_v17  ;;  %v2375_v58 = vadd.f32 %v6614_v29, %v2353_v31  ;;  %v2376_v11 = vadd.f32 %v6614_v29, %v2354_v18  ;;  %v2377_v34 = vadd.f32 %v6614_v29, %v2355_v2 }
 0x20e   : > { %v2378_v35 = vadd.f32 %v6614_v29, %v2356_v60  ;;  %v2379_v41 = vadd.f32 %v6614_v29, %v2357_v4  ;;  %v2380_v47 = vadd.f32 %v6614_v29, %v2358_v13  ;;  %v2381_v51 = vadd.f32 %v6614_v29, %v2359_v20 }
 0x20f   : > { %v2382_v61 = vadd.f32 %v6614_v29, %v2360_v6  ;;  %v2383_v63 = vadd.f32 %v6614_v29, %v2361_v48  ;;  %v2384_v3 = vadd.f32 %v6614_v29, %v2362_v49  ;;  %v2385_v7 = vadd.f32 %v6614_v29, %v2363_v50 }
 0x210   : > { %v2386_v14 = vmax.f32 %v2370_v52, 0.0  ;;  %v2387_v15 = vmax.f32 %v2371_v21, 0.0  ;;  %v2388_v16 = vmax.f32 %v2372_v22, 0.0  ;;  %v2389_v25 = vmax.f32 %v2373_v56, 0.0 }
 0x211   : > { %v2390_v26 = vmax.f32 %v2374_v57, 0.0  ;;  %v2391_v28 = vmax.f32 %v2375_v58, 0.0  ;;  %v2392_v12 = vmax.f32 %v2376_v11, 0.0  ;;  %v2393_v43 = vmax.f32 %v2377_v34, 0.0 }
 0x212   : > { %v2394_v44 = vmax.f32 %v2378_v35, 0.0  ;;  %v2395_v46 = vmax.f32 %v2379_v41, 0.0  ;;  %v2396_v1 = vmax.f32 %v2380_v47, 0.0  ;;  %v2397_v37 = vmax.f32 %v2381_v51, 0.0  ;;  %2402 = vst.msk [vmem:[#allocation3] sm:$0xff] %vm579_vm0, %v2386_v14  ;;  %2403 = vst.msk [vmem:[#allocation3 + $0x8] sm:$0xff] %vm579_vm0, %v2387_v15 }
 0x213   : > { %2404 = vst.msk [vmem:[#allocation3 + $0x10] sm:$0xff] %vm579_vm0, %v2388_v16  ;;  %2405 = vst.msk [vmem:[#allocation3 + $0x18] sm:$0xff] %vm579_vm0, %v2389_v25  ;;  %v2398_v54 = vmax.f32 %v2382_v61, 0.0  ;;  %v2399_v5 = vmax.f32 %v2383_v63, 0.0  ;;  %v2400_v32 = vmax.f32 %v2384_v3, 0.0  ;;  %v2401_v9 = vmax.f32 %v2385_v7, 0.0 }
 0x214   : > { %2406 = vst.msk [vmem:[#allocation3 + $0x20] sm:$0xff] %vm579_vm0, %v2390_v26  ;;  %2407 = vst.msk [vmem:[#allocation3 + $0x28] sm:$0xff] %vm579_vm0, %v2391_v28 }
 0x215   : > { %2408 = vst.msk [vmem:[#allocation3 + $0x30] sm:$0xff] %vm579_vm0, %v2392_v12  ;;  %2409 = vst.msk [vmem:[#allocation3 + $0x38] sm:$0xff] %vm579_vm0, %v2393_v43 }
 0x216   : > { %2410 = vst.msk [vmem:[#allocation3 + $0x40] sm:$0xff] %vm579_vm0, %v2394_v44  ;;  %2411 = vst.msk [vmem:[#allocation3 + $0x48] sm:$0xff] %vm579_vm0, %v2395_v46 }
 0x217   : > { %2412 = vst.msk [vmem:[#allocation3 + $0x50] sm:$0xff] %vm579_vm0, %v2396_v1  ;;  %2413 = vst.msk [vmem:[#allocation3 + $0x58] sm:$0xff] %vm579_vm0, %v2397_v37 }
 0x218   : > { %2414 = vst.msk [vmem:[#allocation3 + $0x60] sm:$0xff] %vm579_vm0, %v2398_v54  ;;  %2415 = vst.msk [vmem:[#allocation3 + $0x68] sm:$0xff] %vm579_vm0, %v2399_v5 }
 0x219   : > { %2416 = vst.msk [vmem:[#allocation3 + $0x70] sm:$0xff] %vm579_vm0, %v2400_v32  ;;  %2417 = vst.msk [vmem:[#allocation3 + $0x78] sm:$0xff] %vm579_vm0, %v2401_v9 }
 0x21a PF: > { %p6615_p3 = scmp.le.s32.totalorder %s8412_s25, 0 }
 0x21c   : > { %2421 = sbr.rel (%p6615_p3) target bundleno = 2178 (0x882), region = 80 }
 0x223   : > { %v8175_v40 = vld [vmem:[%s8535_s17 + $0x10] sm:$0xff]   ;;  %v8176_v23 = vld [vmem:[%s8535_s17 + $0x18] sm:$0xff]   ;;  %v8177_v39 = vld [vmem:[%s8535_s17] sm:$0xff]   ;;  %vm8325_vm2 = vmmov 0   ;;  %vm6087_vm3 = vcmask 1043456   ;;  %vm6000_vm4 = vcmask 1041409  }
 0x224   : > { %7329 = vmatprep.subr.bf16.mxu0 %v8175_v40  ;;  %v9142_v33 = vld [vmem:[#allocation3] sm:$0xff]  ;;  %v9147_v59 = vld [vmem:[#allocation3 + $0x8] sm:$0xff]  ;;  %v9149_v30 = vld [vmem:[#allocation3 + $0x10] sm:$0xff]  ;;  %vm6083_vm5 = vcmask 31744  }
 0x225   : > { %10511 = vst [vmem:[#allocation14_spill] sm:$0xff] %v9142_v33  ;;  %7330 = vmatpush3.bf16.msra.mxu0 %v8175_v40  ;;  %2439 = vst.msk [vmem:[#allocation2 + $0x11] sm:$0xff] %vm579_vm0, %v9142_v33  ;;  %v9153_v27 = vld [vmem:[#allocation3 + $0x18] sm:$0xff]  ;;  %v9155_v55 = vld [vmem:[#allocation3 + $0x20] sm:$0xff] }
 0x226   : > { %10512 = vst [vmem:[#allocation15_spill] sm:$0xff] %v9147_v59  ;;  %7331 = vmatprep.subr.bf16.mxu0 %v8176_v23  ;;  %10513 = vst [vmem:[#allocation16_spill] sm:$0xff] %v9149_v30  ;;  %v9163_v42 = vld [vmem:[#allocation3 + $0x28] sm:$0xff]  ;;  %v9165_v10 = vld [vmem:[#allocation3 + $0x30] sm:$0xff] }
 0x227   : > { %2440 = vst.msk [vmem:[#allocation2 + $0x21] sm:$0xff] %vm579_vm0, %v9147_v59  ;;  %10514 = vst [vmem:[#allocation17_spill] sm:$0xff] %v9153_v27  ;;  %v9167_v24 = vld [vmem:[#allocation3 + $0x40] sm:$0xff]  ;;  %v9175_v45 = vld [vmem:[#allocation3 + $0x48] sm:$0xff] }
 0x228   : > { %10515 = vst [vmem:[#allocation18_spill] sm:$0xff] %v9155_v55  ;;  %2441 = vst.msk [vmem:[#allocation2 + $0x31] sm:$0xff] %vm579_vm0, %v9149_v30  ;;  %v2483_v19 = vld [vmem:[#allocation2 + $0x1] sm:$0xff]  ;;  %v9177_v0 = vld [vmem:[#allocation3 + $0x50] sm:$0xff] }
 0x229   : > { %2442 = vst.msk [vmem:[#allocation2 + $0x41] sm:$0xff] %vm579_vm0, %v9153_v27  ;;  %2443 = vst.msk [vmem:[#allocation2 + $0x51] sm:$0xff] %vm579_vm0, %v9155_v55  ;;  %7332 = vmatpush3.bf16.msra.mxu0 %v8176_v23  ;;  %v9183_v38 = vld [vmem:[#allocation3 + $0x58] sm:$0xff]  ;;  %v9185_v53 = vld [vmem:[#allocation3 + $0x60] sm:$0xff] }
 0x22a   : > { %10516 = vst [vmem:[#allocation19_spill] sm:$0xff] %v9163_v42  ;;  %10517 = vst [vmem:[#allocation20_spill] sm:$0xff] %v9165_v10  ;;  %7349 = vmatprep.subr.bf16.mxu0 %v8177_v39  ;;  %v9187_v8 = vld [vmem:[#allocation3 + $0x68] sm:$0xff]  ;;  %v9193_v36 = vld [vmem:[#allocation3 + $0x70] sm:$0xff] }
 0x22b   : > { %10518 = vst [vmem:[#allocation21_spill] sm:$0xff] %v9167_v24  ;;  %2444 = vst.msk [vmem:[#allocation2 + $0x61] sm:$0xff] %vm579_vm0, %v9163_v42  ;;  %v8178_v13 = vld [vmem:[%s8535_s17 + $0x8] sm:$0xff]   ;;  %v8179_v50 = vld [vmem:[%s8535_s17 + $0x20] sm:$0xff]  }
 0x22c   : > { %2445 = vst.msk [vmem:[#allocation2 + $0x71] sm:$0xff] %vm579_vm0, %v9165_v10  ;;  %2447 = vst.msk [vmem:[#allocation2 + $0xb1] sm:$0xff] %vm579_vm0, %v9167_v24  ;;  %v9197_v62 = vld [vmem:[#allocation2 + $0x11] sm:$0xff]  ;;  %v2491_v48 = vld [vmem:[#allocation2 + $0xa1] sm:$0xff] }
 0x22d   : > { %10519 = vst [vmem:[#allocation22_spill] sm:$0xff] %v9175_v45  ;;  %10520 = vst [vmem:[#allocation23_spill] sm:$0xff] %v9177_v0  ;;  %v2499_v29 = vpack.c.bf16 %v9197_v62, %v2483_v19  ;;  %v9255_v35 = vld [vmem:[#allocation3 + $0x38] sm:$0xff]  ;;  %v2455_v47 = vld [vmem:[#allocation2] sm:$0xff] }
 0x22e   : > { %2448 = vst.msk [vmem:[#allocation2 + $0xc1] sm:$0xff] %vm579_vm0, %v9175_v45  ;;  %2449 = vst.msk [vmem:[#allocation2 + $0xd1] sm:$0xff] %vm579_vm0, %v9177_v0  ;;  %v9202_v17 = vld [vmem:[#allocation2 + $0x21] sm:$0xff]  ;;  %v9263_v51 = vld [vmem:[#allocation3 + $0x78] sm:$0xff] }
 0x22f   : > { %10521 = vst [vmem:[#allocation24_spill] sm:$0xff] %v9183_v38  ;;  %10522 = vst [vmem:[#allocation25_spill] sm:$0xff] %v9185_v53  ;;  %v9204_v31 = vld [vmem:[#allocation2 + $0x31] sm:$0xff]  ;;  %7333 = vmatprep.mubr.msk.bf16.mxu0 %vm579_vm0, %v2499_v29  ;;  %v9278_v14 = vld [vmem:[#allocation2 + $0x20] sm:$0xff] }
 0x230   : > { %10523 = vst [vmem:[#allocation26_spill] sm:$0xff] %v9187_v8  ;;  %2450 = vst.msk [vmem:[#allocation2 + $0xe1] sm:$0xff] %vm579_vm0, %v9183_v38  ;;  %v9206_v18 = vld [vmem:[#allocation2 + $0x41] sm:$0xff]  ;;  %v9208_v2 = vld [vmem:[#allocation2 + $0x51] sm:$0xff]  ;;  %v9213_v60 = vpack.c.bf16 %v9204_v31, %v9202_v17 }
 0x231   : > { %2451 = vst.msk [vmem:[#allocation2 + $0xf1] sm:$0xff] %vm579_vm0, %v9185_v53  ;;  %10524 = vst [vmem:[#allocation27_spill] sm:$0xff] %v9193_v36  ;;  %v9217_v4 = vpack.c.bf16 %v9208_v2, %v9206_v18  ;;  %v9271_v63 = vld [vmem:[#allocation2 + $0x10] sm:$0xff]  ;;  %v9284_v16 = vld [vmem:[#allocation2 + $0x40] sm:$0xff] }
 0x232   : > { %2452 = vst.msk [vmem:[#allocation2 + $0x101] sm:$0xff] %vm579_vm0, %v9187_v8  ;;  %2453 = vst.msk [vmem:[#allocation2 + $0x111] sm:$0xff] %vm579_vm0, %v9193_v36  ;;  %7334 = vmatmul.mubr.msk.bf16.vlgmr.msra.gmra.mrb[0].mxu0 %vm579_vm0, %v9213_v60  ;;  %v9224_v20 = vld [vmem:[#allocation2 + $0x61] sm:$0xff]  ;;  %v2471_v7 = vpack.c.bf16 %v9271_v63, %v2455_v47  ;;  %v9282_v15 = vld [vmem:[#allocation2 + $0x30] sm:$0xff]  ;;  %v2972_v30 = vpack.c.bf16 %v9278_v14, %v9271_v63 }
 0x233   : > { %7350 = vmatpush3.bf16.msra.mxu0 %v8177_v39  ;;  %7337 = vmatprep.mubr.msk.bf16.mxu0 %vm579_vm0, %v9217_v4  ;;  %v9226_v6 = vld [vmem:[#allocation2 + $0x71] sm:$0xff]  ;;  %10525 = vst [vmem:[#allocation28_spill] sm:$0xff] %v9255_v35  ;;  %2446 = vst.msk [vmem:[#allocation2 + $0x81] sm:$0xff] %vm579_vm0, %v9255_v35  ;;  %v9291_v26 = vpack.c.bf16 %v9282_v15, %v9278_v14  ;;  %v9298_v43 = vld [vmem:[#allocation2 + $0x60] sm:$0xff]  ;;  %v2973_v59 = vpack.c.bf16 %v9284_v16, %v9282_v15 }
 0x234   : > { %v9228_v49 = vld [vmem:[#allocation2 + $0xb1] sm:$0xff]  ;;  %7351 = vmatprep.subr.bf16.mxu0 %v8178_v13  ;;  %v9233_v52 = vpack.c.bf16 %v9226_v6, %v9224_v20  ;;  %10526 = vst [vmem:[#allocation29_spill] sm:$0xff] %v9263_v51  ;;  %2454 = vst.msk [vmem:[#allocation2 + $0x121] sm:$0xff] %vm579_vm0, %v9263_v51  ;;  %v2463_v46 = vld [vmem:[#allocation2 + $0xa0] sm:$0xff] }
 0x235   : > { %v2503_v21 = vpack.c.bf16 %v9228_v49, %v2491_v48  ;;  %v9239_v22 = vld [vmem:[#allocation2 + $0xc1] sm:$0xff]  ;;  %v9241_v56 = vld [vmem:[#allocation2 + $0xd1] sm:$0xff] }
 0x236   : > { %v9249_v11 = vpack.c.bf16 %v9241_v56, %v9239_v22  ;;  %v9287_v25 = vld [vmem:[#allocation2 + $0x50] sm:$0xff]  ;;  %v8180_v28 = vld [vmem:[%s8535_s17 + $0x28] sm:$0xff]   ;;  %v9317_v32 = vld [vmem:[#allocation2 + $0xc0] sm:$0xff] }
 0x237   : > { %7352 = vmatpush3.bf16.msra.mxu0 %v8178_v13  ;;  %v9243_v57 = vld [vmem:[#allocation2 + $0xe1] sm:$0xff]  ;;  %v9296_v12 = vpack.c.bf16 %v9287_v25, %v9284_v16  ;;  %v9300_v44 = vld [vmem:[#allocation2 + $0x70] sm:$0xff]  ;;  %v2974_v33 = vpack.c.bf16 %v9298_v43, %v9287_v25  ;;  %v3150_v16 = vpack.c.bf16 %v9202_v17, %v9197_v62  ;;  %v3151_v25 = vpack.c.bf16 %v9206_v18, %v9204_v31 }
 0x238   : > { %7369 = vmatprep.subr.bf16.mxu0 %v8179_v50  ;;  %v9245_v58 = vld [vmem:[#allocation2 + $0xf1] sm:$0xff]  ;;  %v9311_v54 = vpack.c.bf16 %v9300_v44, %v9298_v43  ;;  %v9321_v40 = vld [vmem:[#allocation2 + $0xe0] sm:$0xff]  ;;  %v3152_v43 = vpack.c.bf16 %v9224_v20, %v9208_v2  ;;  %v3155_v31 = vpack.c.bf16 %v9243_v57, %v9241_v56 }
 0x239   : > { %v9253_v34 = vpack.c.bf16 %v9245_v58, %v9243_v57  ;;  %v9257_v41 = vld [vmem:[#allocation2 + $0x101] sm:$0xff]  ;;  %v9267_v61 = vld [vmem:[#allocation2 + $0x111] sm:$0xff] }
 0x23a   : > { %7338 = vmatmul.mubr.msk.bf16.gmra.mrb[4].mxu0 %vm579_vm0, %v9233_v52  ;;  %v9275_v3 = vpack.c.bf16 %v9267_v61, %v9257_v41  ;;  %v9304_v1 = vld [vmem:[#allocation2 + $0xb0] sm:$0xff]  ;;  %v9337_v29 = vld [vmem:[#allocation2 + $0x100] sm:$0xff]  ;;  %v8182_v36 = vld [vmem:[%s8535_s17 + $0x38] sm:$0xff]   ;;  %v3156_v18 = vpack.c.bf16 %v9257_v41, %v9245_v58 }
 0x23b   : > { %7341 = vmatprep.mubr.msk.bf16.mxu0 %vm579_vm0, %v2503_v21  ;;  %v8181_v37 = vld [vmem:[%s8535_s17 + $0x30] sm:$0xff]   ;;  %v2475_v5 = vpack.c.bf16 %v9304_v1, %v2463_v46  ;;  %v8183_v0 = vld [vmem:[%s8535_s17 + $0x40] sm:$0xff]   ;;  %v8188_v56 = vld [vmem:[%s8535_s17 + $0x68] sm:$0xff]  }
 0x23c   : > { %v9319_v9 = vld [vmem:[#allocation2 + $0xd0] sm:$0xff]  ;;  %v2778_v48 = vld [vmem:[#allocation2 + $0x2] sm:$0xff] }
 0x23d   : > { %v9323_v23 = vld [vmem:[#allocation2 + $0xf0] sm:$0xff]  ;;  %v9327_v39 = vpack.c.bf16 %v9319_v9, %v9317_v32  ;;  %v9355_v46 = vld [vmem:[#allocation2 + $0x42] sm:$0xff] }
 0x23e   : > { %v9331_v19 = vpack.c.bf16 %v9323_v23, %v9321_v40  ;;  %v9339_v13 = vld [vmem:[#allocation2 + $0x110] sm:$0xff]  ;;  %v2786_v53 = vld [vmem:[#allocation2 + $0xa2] sm:$0xff] }
 0x23f   : > { %v9345_v21 = vpack.c.bf16 %v9339_v13, %v9337_v29  ;;  %v9374_v8 = vld [vmem:[#allocation2 + $0x72] sm:$0xff]  ;;  %v9391_v10 = vld [vmem:[#allocation2 + $0xe2] sm:$0xff] }
 0x240   : > { %v9376_v38 = vld [vmem:[#allocation2 + $0xb2] sm:$0xff]  ;;  %v3149_v2 = vld [vmem:[#allocation2 + $0x121] sm:$0xff] }
 0x241   : > { %v2798_v24 = vpack.c.bf16 %v9376_v38, %v2786_v53  ;;  %v9389_v35 = vld [vmem:[#allocation2 + $0xd2] sm:$0xff]  ;;  %v3157_v20 = vpack.c.bf16 %v3149_v2, %v9267_v61  ;;  %v3319_v57 = vld [vmem:[#allocation2 + $0x82] sm:$0xff] }
 0x242   : > { %7342 = vmatmul.mubr.msk.bf16.gmra.mrb[8].mxu0 %vm579_vm0, %v9249_v11  ;;  %v9393_v42 = vld [vmem:[#allocation2 + $0xf2] sm:$0xff]  ;;  %v3331_v41 = vpack.c.bf16 %v3319_v57, %v9374_v8 }
 0x243   : > { %7345 = vmatprep.mubr.msk.bf16.mxu0 %vm579_vm0, %v9253_v34  ;;  %v9401_v53 = vpack.c.bf16 %v9393_v42, %v9391_v10  ;;  %v8185_v63 = vld [vmem:[%s8535_s17 + $0x50] sm:$0xff]   ;;  %v8187_v62 = vld [vmem:[%s8535_s17 + $0x60] sm:$0xff]  }
 0x244   : > { %v8189_v58 = vld [vmem:[%s8535_s17 + $0x70] sm:$0xff]  }
 0x245   : > { %10528 = vst [vmem:[#allocation31_spill] sm:$0xff] %v9401_v53 }
 0x24a   : > { %7346 = vmatmul.mubr.msk.bf16.gmra.mrb[12].mxu0 %vm579_vm0, %v9275_v3 }
 0x24b   : > { %7353 = vmatprep.mubr.msk.bf16.mxu0 %vm579_vm0, %v2471_v7  ;;  %v9351_v7 = vld [vmem:[#allocation2 + $0x22] sm:$0xff] }
 0x252   : > { %7354 = vmatmul.mubr.msk.bf16.vlgmr.msra.gmra.mrb[0].mxu0 %vm579_vm0, %v9291_v26 }
 0x253   : > { %7370 = vmatpush3.bf16.msra.mxu0 %v8179_v50  ;;  %7357 = vmatprep.mubr.msk.bf16.mxu0 %vm579_vm0, %v9296_v12  ;;  %v9341_v50 = vld [vmem:[#allocation2 + $0x12] sm:$0xff] }
 0x254   : > { %7371 = vmatprep.subr.bf16.mxu0 %v8180_v28  ;;  %v2794_v47 = vpack.c.bf16 %v9341_v50, %v2778_v48 }
 0x257   : > { %7372 = vmatpush3.bf16.msra.mxu0 %v8180_v28  ;;  %v9353_v28 = vld [vmem:[#allocation2 + $0x32] sm:$0xff] }
 0x258   : > { %7389 = vmatprep.subr.bf16.mxu0 %v8181_v37  ;;  %v9361_v51 = vpack.c.bf16 %v9353_v28, %v9351_v7 }
 0x25a   : > { %7358 = vmatmul.mubr.msk.bf16.gmra.mrb[4].mxu0 %vm579_vm0, %v9311_v54 }
 0x25b   : > { %7361 = vmatprep.mubr.msk.bf16.mxu0 %vm579_vm0, %v2475_v5  ;;  %v9357_v5 = vld [vmem:[#allocation2 + $0x52] sm:$0xff] }
 0x25c   : > { %v9365_v48 = vpack.c.bf16 %v9357_v5, %v9355_v46 }
 0x262   : > { %7362 = vmatmul.mubr.msk.bf16.gmra.mrb[8].mxu0 %vm579_vm0, %v9327_v39 }
 0x263   : > { %7365 = vmatprep.mubr.msk.bf16.mxu0 %vm579_vm0, %v9331_v19 }
 0x26a   : > { %7366 = vmatmul.mubr.msk.bf16.gmra.mrb[12].mxu0 %vm579_vm0, %v9345_v21 }
 0x26b   : > { %7373 = vmatprep.mubr.msk.bf16.mxu0 %vm579_vm0, %v2794_v47  ;;  %v9372_v47 = vld [vmem:[#allocation2 + $0x62] sm:$0xff] }
 0x26c   : > { %v9381_v45 = vpack.c.bf16 %v9374_v8, %v9372_v47  ;;  %v3327_v8 = vld [vmem:[#allocation2 + $0x122] sm:$0xff] }
 0x272   : > { %7374 = vmatmul.mubr.msk.bf16.vlgmr.msra.gmra.mrb[0].mxu0 %vm579_vm0, %v9361_v51 }
 0x273   : > { %7390 = vmatpush3.bf16.msra.mxu0 %v8181_v37  ;;  %7377 = vmatprep.mubr.msk.bf16.mxu0 %vm579_vm0, %v9365_v48  ;;  %v9387_v37 = vld [vmem:[#allocation2 + $0xc2] sm:$0xff] }
 0x274   : > { %7391 = vmatprep.subr.bf16.mxu0 %v8182_v36  ;;  %v9397_v55 = vpack.c.bf16 %v9389_v35, %v9387_v37  ;;  %v3332_v61 = vpack.c.bf16 %v9387_v37, %v9376_v38 }
 0x276   : > { %10527 = vst [vmem:[#allocation30_spill] sm:$0xff] %v9397_v55 }
 0x277   : > { %7392 = vmatpush3.bf16.msra.mxu0 %v8182_v36  ;;  %v9409_v36 = vld [vmem:[#allocation2 + $0x112] sm:$0xff] }
 0x278   : > { %7409 = vmatprep.subr.bf16.mxu0 %v8183_v0  ;;  %v3335_v38 = vpack.c.bf16 %v3327_v8, %v9409_v36 }
 0x27a   : > { %7378 = vmatmul.mubr.msk.bf16.gmra.mrb[4].mxu0 %vm579_vm0, %v9381_v45 }
 0x27b   : > { %7381 = vmatprep.mubr.msk.bf16.mxu0 %vm579_vm0, %v2798_v24  ;;  %v9407_v24 = vld [vmem:[#allocation2 + $0x102] sm:$0xff] }
 0x27c   : > { %v9413_v27 = vpack.c.bf16 %v9409_v36, %v9407_v24 }
 0x282   : > { %7382 = vmatmul.mubr.msk.bf16.gmra.mrb[8].mxu0 %vm579_vm0, %v9397_v55  ;;  %v9427_v55 = vld [vmem:[#allocation2 + $0x80] sm:$0xff] }
 0x283   : > { %7385 = vmatprep.mubr.msk.bf16.mxu0 %vm579_vm0, %v9401_v53  ;;  %v8184_v53 = vld [vmem:[%s8535_s17 + $0x48] sm:$0xff]   ;;  %v2975_v14 = vpack.c.bf16 %v9427_v55, %v9300_v44  ;;  %v8186_v44 = vld [vmem:[%s8535_s17 + $0x58] sm:$0xff]  }
 0x28a   : > { %7386 = vmatmul.mubr.msk.bf16.gmra.mrb[12].mxu0 %vm579_vm0, %v9413_v27 }
 0x28b   : > { %7393 = vmatprep.mubr.msk.bf16.mxu0 %vm579_vm0, %v2972_v30  ;;  %v2976_v30 = vpack.c.bf16 %v9317_v32, %v9304_v1  ;;  %v9457_v1 = vld [vmem:[#allocation2 + $0x81] sm:$0xff]  ;;  %v3154_v32 = vpack.c.bf16 %v9239_v22, %v9228_v49  ;;  %v3329_v49 = vpack.c.bf16 %v9355_v46, %v9353_v28  ;;  %v3330_v22 = vpack.c.bf16 %v9372_v47, %v9357_v5 }
 0x28c   : > { %v3153_v17 = vpack.c.bf16 %v9457_v1, %v9226_v6  ;;  %v3328_v6 = vpack.c.bf16 %v9351_v7, %v9341_v50 }
 0x292   : > { %7394 = vmatmul.mubr.msk.bf16.vlgmr.msra.gmra.mrb[0].mxu0 %vm579_vm0, %v2973_v59  ;;  %v2978_v59 = vpack.c.bf16 %v9337_v29, %v9323_v23  ;;  %v8190_v23 = vld [vmem:[%s8535_s17 + $0x78] sm:$0xff]   ;;  %v8193_v29 = vld [vmem:[%s8541_s16 + $0x10] sm:$0xff]  }
 0x293   : > { %7410 = vmatpush3.bf16.msra.mxu0 %v8183_v0  ;;  %7397 = vmatprep.mubr.msk.bf16.mxu0 %vm579_vm0, %v2974_v33  ;;  %v2977_v33 = vpack.c.bf16 %v9321_v40, %v9319_v9  ;;  %v9442_v0 = vld [vmem:[#allocation2 + $0x120] sm:$0xff]  ;;  %v3333_v9 = vpack.c.bf16 %v9391_v10, %v9389_v35  ;;  %v3334_v40 = vpack.c.bf16 %v9407_v24, %v9393_v42  ;;  %v3498_v42 = vld [vmem:[#allocation2 + $0x90] sm:$0xff] }
 0x294   : > { %7411 = vmatprep.subr.bf16.mxu0 %v8184_v53  ;;  %v2979_v15 = vpack.c.bf16 %v9442_v0, %v9339_v13  ;;  %v8191_v10 = vld [vmem:[%s8535_s17 + $0x80] sm:$0xff]   ;;  %v3510_v35 = vpack.c.bf16 %v3498_v42, %v9427_v55  ;;  %v8192_v55 = vld [vmem:[%s8535_s17 + $0x88] sm:$0xff]   ;;  %7509 = vmatprep.subr.bf16.mxu1 %v8193_v29 }
 0x295   : > { %7510 = vmatpush3.bf16.msra.mxu1 %v8193_v29  ;;  %v9549_v13 = vld [vmem:[%s8541_s16] sm:$0xff]  }
 0x297   : > { %7412 = vmatpush3.bf16.msra.mxu0 %v8184_v53 }
 0x298   : > { %7429 = vmatprep.subr.bf16.mxu0 %v8185_v63 }
 0x29a   : > { %7398 = vmatmul.mubr.msk.bf16.gmra.mrb[4].mxu0 %vm579_vm0, %v2975_v14 }
 0x29b   : > { %7401 = vmatprep.mubr.msk.bf16.mxu0 %vm579_vm0, %v2976_v30 }
 0x2a2   : > { %7402 = vmatmul.mubr.msk.bf16.gmra.mrb[8].mxu0 %vm579_vm0, %v2977_v33 }
 0x2a3   : > { %7405 = vmatprep.mubr.msk.bf16.mxu0 %vm579_vm0, %v2978_v59 }
 0x2aa   : > { %7406 = vmatmul.mubr.msk.bf16.gmra.mrb[12].mxu0 %vm579_vm0, %v2979_v15 }
 0x2ab   : > { %7413 = vmatprep.mubr.msk.bf16.mxu0 %vm579_vm0, %v3150_v16 }
 0x2b2   : > { %7414 = vmatmul.mubr.msk.bf16.vlgmr.msra.gmra.mrb[0].mxu0 %vm579_vm0, %v3151_v25 }
 0x2b3   : > { %7430 = vmatpush3.bf16.msra.mxu0 %v8185_v63  ;;  %7417 = vmatprep.mubr.msk.bf16.mxu0 %vm579_vm0, %v3152_v43 }
 0x2b4   : > { %7431 = vmatprep.subr.bf16.mxu0 %v8186_v44 }
 0x2b7   : > { %7432 = vmatpush3.bf16.msra.mxu0 %v8186_v44 }
 0x2b8   : > { %7449 = vmatprep.subr.bf16.mxu0 %v8187_v62 }
 0x2ba   : > { %7418 = vmatmul.mubr.msk.bf16.gmra.mrb[4].mxu0 %vm579_vm0, %v3153_v17 }
 0x2bb   : > { %7421 = vmatprep.mubr.msk.bf16.mxu0 %vm579_vm0, %v3154_v32 }
 0x2c2   : > { %7422 = vmatmul.mubr.msk.bf16.gmra.mrb[8].mxu0 %vm579_vm0, %v3155_v31 }
 0x2c3   : > { %7425 = vmatprep.mubr.msk.bf16.mxu0 %vm579_vm0, %v3156_v18 }
 0x2ca   : > { %7426 = vmatmul.mubr.msk.bf16.gmra.mrb[12].mxu0 %vm579_vm0, %v3157_v20 }
 0x2cb   : > { %7433 = vmatprep.mubr.msk.bf16.mxu0 %vm579_vm0, %v3328_v6 }
 0x2d2   : > { %7434 = vmatmul.mubr.msk.bf16.vlgmr.msra.gmra.mrb[0].mxu0 %vm579_vm0, %v3329_v49 }
 0x2d3   : > { %7450 = vmatpush3.bf16.msra.mxu0 %v8187_v62  ;;  %7437 = vmatprep.mubr.msk.bf16.mxu0 %vm579_vm0, %v3330_v22 }
 0x2d4   : > { %7451 = vmatprep.subr.bf16.mxu0 %v8188_v56 }
 0x2d7   : > { %7452 = vmatpush3.bf16.msra.mxu0 %v8188_v56 }
 0x2d8   : > { %7469 = vmatprep.subr.bf16.mxu0 %v8189_v58 }
 0x2da   : > { %7438 = vmatmul.mubr.msk.bf16.gmra.mrb[4].mxu0 %vm579_vm0, %v3331_v41 }
 0x2db   : > { %7441 = vmatprep.mubr.msk.bf16.mxu0 %vm579_vm0, %v3332_v61 }
 0x2e2   : > { %7442 = vmatmul.mubr.msk.bf16.gmra.mrb[8].mxu0 %vm579_vm0, %v3333_v9 }
 0x2e3   : > { %7445 = vmatprep.mubr.msk.bf16.mxu0 %vm579_vm0, %v3334_v40 }
 0x2ea   : > { %7446 = vmatmul.mubr.msk.bf16.gmra.mrb[12].mxu0 %vm579_vm0, %v3335_v38 }
 0x2eb   : > { %7453 = vmatprep.mubr.msk.bf16.mxu0 %vm579_vm0, %v9291_v26  ;;  %v3506_v26 = vld [vmem:[#allocation2 + $0x130] sm:$0xff] }
 0x2f2   : > { %7454 = vmatmul.mubr.msk.bf16.vlgmr.msra.gmra.mrb[0].mxu0 %vm579_vm0, %v9296_v12  ;;  %v3514_v12 = vpack.c.bf16 %v3506_v26, %v9442_v0 }
 0x2f3   : > { %7470 = vmatpush3.bf16.msra.mxu0 %v8189_v58  ;;  %7457 = vmatprep.mubr.msk.bf16.mxu0 %vm579_vm0, %v9311_v54  ;;  %v3676_v54 = vld [vmem:[#allocation2 + $0x91] sm:$0xff] }
 0x2f4   : > { %7471 = vmatprep.subr.bf16.mxu0 %v8190_v23 }
 0x2f7   : > { %7472 = vmatpush3.bf16.msra.mxu0 %v8190_v23 }
 0x2f8   : > { %7489 = vmatprep.subr.bf16.mxu0 %v8191_v10 }
 0x2fa   : > { %7458 = vmatmul.mubr.msk.bf16.gmra.mrb[4].mxu0 %vm579_vm0, %v3510_v35 }
 0x2fb   : > { %7461 = vmatprep.mubr.msk.bf16.mxu0 %vm579_vm0, %v9327_v39  ;;  %v3688_v39 = vpack.c.bf16 %v3676_v54, %v9457_v1 }
 0x302   : > { %7462 = vmatmul.mubr.msk.bf16.gmra.mrb[8].mxu0 %vm579_vm0, %v9331_v19 }
 0x303   : > { %7465 = vmatprep.mubr.msk.bf16.mxu0 %vm579_vm0, %v9345_v21 }
 0x30a   : > { %7466 = vmatmul.mubr.msk.bf16.gmra.mrb[12].mxu0 %vm579_vm0, %v3514_v12 }
 0x30b   : > { %7473 = vmatprep.mubr.msk.bf16.mxu0 %vm579_vm0, %v9213_v60  ;;  %v3684_v60 = vld [vmem:[#allocation2 + $0x131] sm:$0xff] }
 0x312   : > { %7474 = vmatmul.mubr.msk.bf16.vlgmr.msra.gmra.mrb[0].mxu0 %vm579_vm0, %v9217_v4  ;;  %v3692_v4 = vpack.c.bf16 %v3684_v60, %v3149_v2 }
 0x313   : > { %7490 = vmatpush3.bf16.msra.mxu0 %v8191_v10  ;;  %7477 = vmatprep.mubr.msk.bf16.mxu0 %vm579_vm0, %v9233_v52  ;;  %v3854_v52 = vld [vmem:[#allocation2 + $0x92] sm:$0xff] }
 0x314   : > { %7491 = vmatprep.subr.bf16.mxu0 %v8192_v55 }
 0x317   : > { %7492 = vmatpush3.bf16.msra.mxu0 %v8192_v55 }
 0x31a   : > { %7478 = vmatmul.mubr.msk.bf16.gmra.mrb[4].mxu0 %vm579_vm0, %v3688_v39 }
 0x31b   : > { %7481 = vmatprep.mubr.msk.bf16.mxu0 %vm579_vm0, %v9249_v11  ;;  %v3866_v11 = vpack.c.bf16 %v3854_v52, %v3319_v57 }
 0x322   : > { %7482 = vmatmul.mubr.msk.bf16.gmra.mrb[8].mxu0 %vm579_vm0, %v9253_v34  ;;  %v10529_v34 = vld [vmem:[#allocation30_spill] sm:$0xff] }
 0x323   : > { %7485 = vmatprep.mubr.msk.bf16.mxu0 %vm579_vm0, %v9275_v3  ;;  %v10530_v3 = vld [vmem:[#allocation31_spill] sm:$0xff] }
 0x32a   : > { %7486 = vmatmul.mubr.msk.bf16.gmra.mrb[12].mxu0 %vm579_vm0, %v3692_v4 }
 0x32b   : > { %7493 = vmatprep.mubr.msk.bf16.mxu0 %vm579_vm0, %v9361_v51  ;;  %v3862_v51 = vld [vmem:[#allocation2 + $0x132] sm:$0xff] }
 0x32c   : > { %v3870_v19 = vpack.c.bf16 %v3862_v51, %v3327_v8 }
 0x332   : > { %7494 = vmatmul.mubr.msk.bf16.vlgmr.msra.gmra.mrb[0].mxu0 %vm579_vm0, %v9365_v48 }
 0x333   : > { %7497 = vmatprep.mubr.msk.bf16.mxu0 %vm579_vm0, %v9381_v45  ;;  %v8194_v45 = vld [vmem:[%s8541_s16 + $0x18] sm:$0xff]  }
 0x334   : > { %7511 = vmatprep.subr.bf16.mxu1 %v8194_v45 }
 0x335   : > { %7512 = vmatpush3.bf16.msra.mxu1 %v8194_v45 }
 0x336   : > { %7529 = vmatprep.subr.bf16.mxu1 %v9549_v13 }
 0x33a   : > { %7498 = vmatmul.mubr.msk.bf16.gmra.mrb[4].mxu0 %vm579_vm0, %v3866_v11 }
 0x33b   : > { %7501 = vmatprep.mubr.msk.bf16.mxu0 %vm579_vm0, %v10529_v34 }
 0x342   : > { %7502 = vmatmul.mubr.msk.bf16.gmra.mrb[8].mxu0 %vm579_vm0, %v10530_v3 }
 0x343   : > { %7505 = vmatprep.mubr.msk.bf16.mxu0 %vm579_vm0, %v9413_v27 }
 0x34a   : > { %7506 = vmatmul.mubr.msk.bf16.gmra.mrb[12].mxu0 %vm579_vm0, %v3870_v19 }
 0x405   : > { %v9552_v50 = vpop.f32.mrb[0].mxu0 }
 0x406   : > { %v9554_v21 = vpop.f32.mrb[1].mxu0  ;;  %v4066_v46 = vmul.f32 %v9552_v50, %v9552_v50  ;;  %v4030_v53 = vsel %vm579_vm0, %v9552_v50, 0.0 }
 0x407   : > { %v4064_v27 = vmul.f32 %v9554_v21, %v9554_v21  ;;  %v9558_v7 = vpop.f32.mrb[2].mxu0  ;;  %v4027_v5 = vsel %vm579_vm0, %v9554_v21, 0.0 }
 0x408   : > { %v9560_v28 = vpop.f32.mrb[3].mxu0  ;;  %v4067_v36 = vmul.f32 %v9558_v7, %v9558_v7  ;;  %v4083_v33 = vsel %vm579_vm0, %v4066_v46, 0.0  ;;  %v4032_v59 = vsel %vm579_vm0, %v9558_v7, 0.0 }
 0x409   : > { %v4028_v48 = vsel %vm579_vm0, %v9560_v28, 0.0  ;;  %v4065_v47 = vmul.f32 %v9560_v28, %v9560_v28  ;;  %v4080_v24 = vsel %vm579_vm0, %v4064_v27, 0.0 }
 0x40a   : > { %v4029_v37 = vadd.f32 %v4028_v48, %v4027_v5  ;;  %v4085_v43 = vsel %vm579_vm0, %v4067_v36, 0.0 }
 0x40b   : > { %v4081_v63 = vsel %vm579_vm0, %v4065_v47, 0.0 }
 0x40c   : > { %v4031_v14 = vadd.f32 %v4030_v53, %v4029_v37  ;;  %v4082_v30 = vadd.f32 %v4081_v63, %v4080_v24 }
 0x40d   : > { %v9579_v0 = vpop.f32.mrb[4].mxu0 }
 0x40e   : > { %v4084_v15 = vadd.f32 %v4083_v33, %v4082_v30  ;;  %v9581_v16 = vpop.f32.mrb[5].mxu0  ;;  %v4033_v25 = vadd.f32 %v4032_v59, %v4031_v14  ;;  %v4070_v18 = vmul.f32 %v9579_v0, %v9579_v0  ;;  %v4038_v56 = vsel %vm579_vm0, %v9579_v0, 0.0 }
 0x40f   : > { %v4034_v44 = vsel %vm579_vm0, %v9581_v16, 0.0  ;;  %v4068_v1 = vmul.f32 %v9581_v16, %v9581_v16  ;;  %v9588_v62 = vpop.f32.mrb[6].mxu0 }
 0x410   : > { %v4035_v17 = vadd.f32 %v4034_v44, %v4033_v25  ;;  %v4086_v32 = vadd.f32 %v4085_v43, %v4084_v15  ;;  %v9590_v31 = vpop.f32.mrb[7].mxu0  ;;  %v4071_v57 = vmul.f32 %v9588_v62, %v9588_v62  ;;  %v4091_v9 = vsel %vm579_vm0, %v4070_v18, 0.0 }
 0x411   : > { %v4087_v2 = vsel %vm579_vm0, %v4068_v1, 0.0  ;;  %v4036_v20 = vsel %vm579_vm0, %v9590_v31, 0.0  ;;  %v4069_v6 = vmul.f32 %v9590_v31, %v9590_v31  ;;  %v4040_v40 = vsel %vm579_vm0, %v9588_v62, 0.0 }
 0x412   : > { %v4088_v49 = vadd.f32 %v4087_v2, %v4086_v32  ;;  %v4037_v22 = vadd.f32 %v4036_v20, %v4035_v17  ;;  %v4093_v10 = vsel %vm579_vm0, %v4071_v57, 0.0 }
 0x413   : > { %v4089_v58 = vsel %vm579_vm0, %v4069_v6, 0.0 }
 0x414   : > { %v4039_v41 = vadd.f32 %v4038_v56, %v4037_v22  ;;  %v4090_v61 = vadd.f32 %v4089_v58, %v4088_v49 }
 0x415   : > { %v9607_v8 = vpop.f32.mrb[8].mxu0 }
 0x416   : > { %v4092_v38 = vadd.f32 %v4091_v9, %v4090_v61  ;;  %v9609_v23 = vpop.f32.mrb[9].mxu0  ;;  %v4041_v42 = vadd.f32 %v4040_v40, %v4039_v41  ;;  %v4074_v60 = vmul.f32 %v9607_v8, %v9607_v8  ;;  %v4046_v51 = vsel %vm579_vm0, %v9607_v8, 0.0 }
 0x417   : > { %v4042_v35 = vsel %vm579_vm0, %v9609_v23, 0.0  ;;  %v4072_v26 = vmul.f32 %v9609_v23, %v9609_v23  ;;  %v9616_v12 = vpop.f32.mrb[10].mxu0 }
 0x418   : > { %v4043_v55 = vadd.f32 %v4042_v35, %v4041_v42  ;;  %v4094_v54 = vadd.f32 %v4093_v10, %v4092_v38  ;;  %v9618_v39 = vpop.f32.mrb[11].mxu0  ;;  %v4075_v19 = vmul.f32 %v9616_v12, %v9616_v12  ;;  %v4099_v46 = vsel %vm579_vm0, %v4074_v60, 0.0 }
 0x419   : > { %v4095_v4 = vsel %vm579_vm0, %v4072_v26, 0.0  ;;  %v4044_v52 = vsel %vm579_vm0, %v9618_v39, 0.0  ;;  %v4073_v11 = vmul.f32 %v9618_v39, %v9618_v39  ;;  %v4048_v5 = vsel %vm579_vm0, %v9616_v12, 0.0 }
 0x41a   : > { %v4096_v34 = vadd.f32 %v4095_v4, %v4094_v54  ;;  %v4045_v3 = vadd.f32 %v4044_v52, %v4043_v55  ;;  %v4101_v24 = vsel %vm579_vm0, %v4075_v19, 0.0 }
 0x41b   : > { %v4097_v29 = vsel %vm579_vm0, %v4073_v11, 0.0 }
 0x41c   : > { %v4047_v45 = vadd.f32 %v4046_v51, %v4045_v3  ;;  %v4098_v27 = vadd.f32 %v4097_v29, %v4096_v34 }
 0x41d   : > { %v9635_v48 = vpop.f32.mrb[12].mxu0 }
 0x41e   : > { %v4100_v47 = vadd.f32 %v4099_v46, %v4098_v27  ;;  %v9637_v37 = vpop.f32.mrb[13].mxu0  ;;  %v4049_v53 = vadd.f32 %v4048_v5, %v4047_v45  ;;  %v4078_v15 = vmul.f32 %v9635_v48, %v9635_v48  ;;  %v4054_v32 = vsel %vm579_vm0, %v9635_v48, 0.0 }
 0x41f   : > { %v4050_v36 = vsel %vm579_vm0, %v9637_v37, 0.0  ;;  %v4076_v63 = vmul.f32 %v9637_v37, %v9637_v37  ;;  %v9644_v14 = vpop.f32.mrb[14].mxu0 }
 0x420   : > { %v4051_v30 = vadd.f32 %v4050_v36, %v4049_v53  ;;  %v4102_v33 = vadd.f32 %v4101_v24, %v4100_v47  ;;  %v3997_v59 = vpop.f32.mrb[15].mxu0  ;;  %v4079_v18 = vmul.f32 %v9644_v14, %v9644_v14  ;;  %v4107_v49 = vsel %vm579_vm0, %v4078_v15, 0.0  ;;  %v4025_v36 = vld [vmem:[%s8597_s15] sm:$0x1] }
 0x421   : > { %v4103_v25 = vsel %vm579_vm0, %v4076_v63, 0.0  ;;  %v4052_v43 = vsel %vm579_vm0, %v3997_v59, 0.0  ;;  %v4077_v44 = vmul.f32 %v3997_v59, %v3997_v59  ;;  %v4056_v22 = vsel %vm579_vm0, %v9644_v14, 0.0 }
 0x422   : > { %v4104_v1 = vadd.f32 %v4103_v25, %v4102_v33  ;;  %v4053_v17 = vadd.f32 %v4052_v43, %v4051_v30  ;;  %v4109_v58 = vsel %vm579_vm0, %v4079_v18, 0.0 }
 0x423   : > { %v4105_v2 = vsel %vm579_vm0, %v4077_v44, 0.0 }
 0x424   : > { %v4055_v20 = vadd.f32 %v4054_v32, %v4053_v17  ;;  %v4106_v6 = vadd.f32 %v4105_v2, %v4104_v1 }
 0x426   : > { %v4057_v56 = vadd.f32 %v4056_v22, %v4055_v20  ;;  %v4108_v57 = vadd.f32 %v4107_v49, %v4106_v6 }
 0x428   : > { %v4058_v41 = vrot.slane %v4057_v56, 4  ;;  %v4110_v61 = vadd.f32 %v4109_v58, %v4108_v57 }
 0x42a   : > { %v4059_v9 = vadd.f32 %v4058_v41, %v4057_v56  ;;  %v4111_v40 = vrot.slane %v4110_v61, 4 }
 0x42c   : > { %v4060_v38 = vrot.slane %v4059_v9, 2  ;;  %v4112_v42 = vadd.f32 %v4111_v40, %v4110_v61 }
 0x42e   : > { %v4061_v10 = vadd.f32 %v4060_v38, %v4059_v9  ;;  %v4113_v35 = vrot.slane %v4112_v42, 2 }
 0x430   : > { %v4062_v26 = vrot.slane %v4061_v10, 1  ;;  %v4114_v55 = vadd.f32 %v4113_v35, %v4112_v42 }
 0x432   : > { %v4063_v54 = vadd.f32 %v4062_v26, %v4061_v10  ;;  %v4115_v60 = vrot.slane %v4114_v55, 1 }
 0x434   : > { %v4116_v4 = vadd.f32 %v4115_v60, %v4114_v55  ;;  %v9659_v52 = vmul.f32 0.0078125, %v4063_v54 }
 0x436   : > { %v4118_v11 = vmul.f32 0.0078125, %v4116_v4  ;;  %v4119_v34 = vmul.f32 %v9659_v52, %v9659_v52  ;;  %v4135_v3 = vsub.f32 %v3997_v59, %v9659_v52  ;;  %v4122_v51 = vsub.f32 %v9554_v21, %v9659_v52 }
 0x437   : > { %v4123_v19 = vsub.f32 %v9560_v28, %v9659_v52  ;;  %v4124_v29 = vsub.f32 %v9552_v50, %v9659_v52  ;;  %v4125_v45 = vsub.f32 %v9558_v7, %v9659_v52  ;;  %v4126_v27 = vsub.f32 %v9581_v16, %v9659_v52 }
 0x438   : > { %v4120_v46 = vsub.f32 %v4118_v11, %v4119_v34  ;;  %v4127_v5 = vsub.f32 %v9590_v31, %v9659_v52  ;;  %v4128_v21 = vsub.f32 %v9579_v0, %v9659_v52  ;;  %v4130_v28 = vsub.f32 %v9609_v23, %v9659_v52 }
 0x439   : > { %v4131_v50 = vsub.f32 %v9618_v39, %v9659_v52  ;;  %v4132_v7 = vsub.f32 %v9607_v8, %v9659_v52  ;;  %v4133_v16 = vsub.f32 %v9616_v12, %v9659_v52  ;;  %v4134_v47 = vsub.f32 %v9637_v37, %v9659_v52 }
 0x43a   : > { %v4121_v31 = vmax.f32 %v4120_v46, 0.0  ;;  %v4136_v0 = vsub.f32 %v9635_v48, %v9659_v52  ;;  %v4129_v23 = vsub.f32 %v9588_v62, %v9659_v52  ;;  %v4137_v39 = vsub.f32 %v9644_v14, %v9659_v52  ;;  %v6738_v48 = vld [vmem:[%s8603_s19] ss:$0 sm:$0xff] }
 0x43b   : > { %v4141_v8 = vlaneseq }
 0x43c   : > { %v4138_v53 = vadd.f32 1e-05, %v4121_v31 }
 0x43d   : > { %v9694_v24 = vshrl.u32 %v4141_v8, 7 }
 0x43e   : > { %8211 = vrsqrt.f32 %v4138_v53 }
 0x43f   : > { %10531 = vst [vmem:[#allocation30_spill] sm:$0xff] %v9694_v24  ;;  %v9698_v12 = vsub.s32 0, %v9694_v24 }
 0x441   : > { %10532 = vst [vmem:[#allocation31_spill] sm:$0xff] %v9698_v12 }
 0x448   : > { %v8212_v37 = vpop.eup %8211 }
 0x449   : > { %v4140_v63 = vmul.f32 %v8212_v37, %v4025_v36 }
 0x44b   : > { %v4144_v30 = vrot.slane %v4140_v63, %v9698_v12  ;;  %v8196_v63 = vld [vmem:[%s8541_s16 + $0x8] sm:$0xff]  }
 0x44c   : > { %v8202_v12 = vld [vmem:[%s8541_s16 + $0x48] sm:$0xff]  }
 0x44d   : > { %v4158_v33 = vmul.f32 %v4144_v30, %v4135_v3  ;;  %v4145_v59 = vmul.f32 %v4144_v30, %v4122_v51  ;;  %v4146_v62 = vmul.f32 %v4144_v30, %v4123_v19  ;;  %v4147_v15 = vmul.f32 %v4144_v30, %v4124_v29 }
 0x44e   : > { %v4148_v25 = vmul.f32 %v4144_v30, %v4125_v45  ;;  %v4149_v14 = vmul.f32 %v4144_v30, %v4126_v27  ;;  %v4150_v43 = vmul.f32 %v4144_v30, %v4127_v5  ;;  %v4151_v44 = vmul.f32 %v4144_v30, %v4128_v21  ;;  %v4243_v21 = vld [vmem:[#allocation2 + $0x1] sm:$0xff] }
 0x44f   : > { %v4180_v1 = vadd.f32 %v6738_v48, %v4158_v33  ;;  %v4167_v17 = vadd.f32 %v6738_v48, %v4145_v59  ;;  %v4168_v32 = vadd.f32 %v6738_v48, %v4146_v62  ;;  %v4169_v18 = vadd.f32 %v6738_v48, %v4147_v15  ;;  %v8197_v59 = vld [vmem:[%s8541_s16 + $0x20] sm:$0xff]  }
 0x450   : > { %v4170_v2 = vadd.f32 %v6738_v48, %v4148_v25  ;;  %v4171_v20 = vadd.f32 %v6738_v48, %v4149_v14  ;;  %v4172_v6 = vadd.f32 %v6738_v48, %v4150_v43  ;;  %v4173_v49 = vadd.f32 %v6738_v48, %v4151_v44 }
 0x451   : > { %v4196_v22 = vmax.f32 %v4180_v1, 0.0  ;;  %v4183_v56 = vmax.f32 %v4167_v17, 0.0  ;;  %v4184_v57 = vmax.f32 %v4168_v32, 0.0  ;;  %v4185_v58 = vmax.f32 %v4169_v18, 0.0 }
 0x452   : > { %v4186_v41 = vmax.f32 %v4170_v2, 0.0  ;;  %v4187_v61 = vmax.f32 %v4171_v20, 0.0  ;;  %v4188_v9 = vmax.f32 %v4172_v6, 0.0  ;;  %v4189_v40 = vmax.f32 %v4173_v49, 0.0  ;;  %v4251_v2 = vld [vmem:[#allocation2 + $0xa1] sm:$0xff] }
 0x453   : > { %4212 = vst.msk [vmem:[#allocation2 + $0x101] sm:$0xff] %vm579_vm0, %v4196_v22  ;;  %4199 = vst.msk [vmem:[#allocation2 + $0x11] sm:$0xff] %vm579_vm0, %v4183_v56  ;;  %v4153_v38 = vmul.f32 %v4144_v30, %v4130_v28  ;;  %v4154_v42 = vmul.f32 %v4144_v30, %v4131_v50  ;;  %v4155_v10 = vmul.f32 %v4144_v30, %v4132_v7  ;;  %v8200_v6 = vld [vmem:[%s8541_s16 + $0x38] sm:$0xff]  }
 0x454   : > { %4200 = vst.msk [vmem:[#allocation2 + $0x21] sm:$0xff] %vm579_vm0, %v4184_v57  ;;  %4201 = vst.msk [vmem:[#allocation2 + $0x31] sm:$0xff] %vm579_vm0, %v4185_v58  ;;  %v4156_v35 = vmul.f32 %v4144_v30, %v4133_v16  ;;  %v4157_v26 = vmul.f32 %v4144_v30, %v4134_v47  ;;  %v4159_v55 = vmul.f32 %v4144_v30, %v4136_v0 }
 0x455   : > { %4202 = vst.msk [vmem:[#allocation2 + $0x41] sm:$0xff] %vm579_vm0, %v4186_v41  ;;  %4203 = vst.msk [vmem:[#allocation2 + $0x51] sm:$0xff] %vm579_vm0, %v4187_v61  ;;  %v4152_v54 = vmul.f32 %v4144_v30, %v4129_v23  ;;  %v4160_v60 = vmul.f32 %v4144_v30, %v4137_v39  ;;  %v4175_v4 = vadd.f32 %v6738_v48, %v4153_v38 }
 0x456   : > { %4204 = vst.msk [vmem:[#allocation2 + $0x61] sm:$0xff] %vm579_vm0, %v4188_v9  ;;  %4205 = vst.msk [vmem:[#allocation2 + $0x71] sm:$0xff] %vm579_vm0, %v4189_v40  ;;  %v4176_v52 = vadd.f32 %v6738_v48, %v4154_v42  ;;  %v4177_v11 = vadd.f32 %v6738_v48, %v4155_v10  ;;  %v4178_v34 = vadd.f32 %v6738_v48, %v4156_v35  ;;  %v4538_v10 = vld [vmem:[#allocation2 + $0x2] sm:$0xff] }
 0x457   : > { %v4179_v3 = vadd.f32 %v6738_v48, %v4157_v26  ;;  %v4181_v51 = vadd.f32 %v6738_v48, %v4159_v55  ;;  %v4174_v19 = vadd.f32 %v6738_v48, %v4152_v54  ;;  %v4182_v29 = vadd.f32 %v6738_v48, %v4160_v60 }
 0x458   : > { %v4191_v45 = vmax.f32 %v4175_v4, 0.0  ;;  %v4192_v27 = vmax.f32 %v4176_v52, 0.0  ;;  %v4193_v46 = vmax.f32 %v4177_v11, 0.0  ;;  %v4194_v5 = vmax.f32 %v4178_v34, 0.0  ;;  %v4215_v34 = vld [vmem:[#allocation2] sm:$0xff] }
 0x459   : > { %v4195_v28 = vmax.f32 %v4179_v3, 0.0  ;;  %v4197_v50 = vmax.f32 %v4181_v51, 0.0  ;;  %v4190_v7 = vmax.f32 %v4174_v19, 0.0  ;;  %v4198_v16 = vmax.f32 %v4182_v29, 0.0 }
 0x45a   : > { %4207 = vst.msk [vmem:[#allocation2 + $0xb1] sm:$0xff] %vm579_vm0, %v4191_v45  ;;  %4208 = vst.msk [vmem:[#allocation2 + $0xc1] sm:$0xff] %vm579_vm0, %v4192_v27  ;;  %v9714_v47 = vld [vmem:[#allocation2 + $0x11] sm:$0xff]  ;;  %v9753_v62 = vld [vmem:[#allocation2 + $0x101] sm:$0xff] }
 0x45b   : > { %4209 = vst.msk [vmem:[#allocation2 + $0xd1] sm:$0xff] %vm579_vm0, %v4193_v46  ;;  %4210 = vst.msk [vmem:[#allocation2 + $0xe1] sm:$0xff] %vm579_vm0, %v4194_v5  ;;  %v9716_v31 = vld [vmem:[#allocation2 + $0x21] sm:$0xff]  ;;  %v9718_v0 = vld [vmem:[#allocation2 + $0x31] sm:$0xff]  ;;  %v4259_v23 = vpack.c.bf16 %v9714_v47, %v4243_v21 }
 0x45c   : > { %4211 = vst.msk [vmem:[#allocation2 + $0xf1] sm:$0xff] %vm579_vm0, %v4195_v28  ;;  %4213 = vst.msk [vmem:[#allocation2 + $0x111] sm:$0xff] %vm579_vm0, %v4197_v50  ;;  %v9727_v39 = vpack.c.bf16 %v9718_v0, %v9716_v31  ;;  %v9729_v53 = vld [vmem:[#allocation2 + $0x41] sm:$0xff]  ;;  %v9731_v8 = vld [vmem:[#allocation2 + $0x51] sm:$0xff] }
 0x45d   : > { %4206 = vst.msk [vmem:[#allocation2 + $0x81] sm:$0xff] %vm579_vm0, %v4190_v7  ;;  %4214 = vst.msk [vmem:[#allocation2 + $0x121] sm:$0xff] %vm579_vm0, %v4198_v16  ;;  %v9733_v36 = vld [vmem:[#allocation2 + $0x61] sm:$0xff]  ;;  %7513 = vmatprep.mubr.msk.bf16.mxu1 %vm579_vm0, %v4259_v23  ;;  %v9745_v33 = vpack.c.bf16 %v9731_v8, %v9729_v53  ;;  %v9755_v15 = vld [vmem:[#allocation2 + $0x12] sm:$0xff] }
 0x45e   : > { %7514 = vmatmul.mubr.msk.bf16.vlgmr.msra.gmra.mrb[0].mxu1 %vm579_vm0, %v9727_v39  ;;  %v9757_v25 = vld [vmem:[#allocation2 + $0x22] sm:$0xff]  ;;  %v9783_v22 = vld [vmem:[#allocation2 + $0x32] sm:$0xff]  ;;  %v4554_v9 = vpack.c.bf16 %v9755_v15, %v4538_v10 }
 0x45f   : > { %7530 = vmatpush3.bf16.msra.mxu1 %v9549_v13  ;;  %7517 = vmatprep.mubr.msk.bf16.mxu1 %vm579_vm0, %v9745_v33  ;;  %v9767_v13 = vld [vmem:[#allocation2 + $0x71] sm:$0xff]  ;;  %v9785_v56 = vld [vmem:[#allocation2 + $0x42] sm:$0xff]  ;;  %v9884_v1 = vpack.c.bf16 %v9783_v22, %v9757_v25 }
 0x460   : > { %7531 = vmatprep.subr.bf16.mxu1 %v8196_v63  ;;  %v9781_v49 = vpack.c.bf16 %v9767_v13, %v9733_v36  ;;  %v9787_v57 = vld [vmem:[#allocation2 + $0x52] sm:$0xff]  ;;  %v9790_v41 = vld [vmem:[#allocation2 + $0x62] sm:$0xff] }
 0x461   : > { %v9759_v14 = vld [vmem:[#allocation2 + $0xb1] sm:$0xff]  ;;  %v9761_v43 = vld [vmem:[#allocation2 + $0xc1] sm:$0xff]  ;;  %v9889_v20 = vpack.c.bf16 %v9787_v57, %v9785_v56 }
 0x462   : > { %v9763_v44 = vld [vmem:[#allocation2 + $0xd1] sm:$0xff]  ;;  %v9769_v17 = vld [vmem:[#allocation2 + $0xe1] sm:$0xff]  ;;  %v4263_v58 = vpack.c.bf16 %v9759_v14, %v4251_v2 }
 0x463   : > { %v9771_v32 = vld [vmem:[#allocation2 + $0xf1] sm:$0xff]  ;;  %7532 = vmatpush3.bf16.msra.mxu1 %v8196_v63  ;;  %v9798_v40 = vld [vmem:[#allocation2 + $0xc2] sm:$0xff]  ;;  %v9819_v4 = vpack.c.bf16 %v9763_v44, %v9761_v43 }
 0x464   : > { %7549 = vmatprep.subr.bf16.mxu1 %v8197_v59  ;;  %v9792_v61 = vld [vmem:[#allocation2 + $0xb2] sm:$0xff]  ;;  %v9802_v42 = vld [vmem:[#allocation2 + $0xe2] sm:$0xff]  ;;  %v9823_v52 = vpack.c.bf16 %v9771_v32, %v9769_v17 }
 0x465   : > { %v9800_v38 = vld [vmem:[#allocation2 + $0xd2] sm:$0xff]  ;;  %v9809_v26 = vld [vmem:[#allocation2 + $0x102] sm:$0xff] }
 0x466   : > { %7518 = vmatmul.mubr.msk.bf16.gmra.mrb[4].mxu1 %vm579_vm0, %v9781_v49  ;;  %v9807_v35 = vld [vmem:[#allocation2 + $0xf2] sm:$0xff]  ;;  %v4217_v29 = vld [vmem:[#allocation2 + $0x20] sm:$0xff] }
 0x467   : > { %7521 = vmatprep.mubr.msk.bf16.mxu1 %vm579_vm0, %v4263_v58  ;;  %v9829_v11 = vld [vmem:[#allocation2 + $0x111] sm:$0xff]  ;;  %v9843_v27 = vld [vmem:[#allocation2 + $0x40] sm:$0xff] }
 0x468   : > { %v9831_v3 = vld [vmem:[#allocation2 + $0x10] sm:$0xff]  ;;  %v9835_v51 = vpack.c.bf16 %v9829_v11, %v9753_v62  ;;  %v8198_v21 = vld [vmem:[%s8541_s16 + $0x28] sm:$0xff]   ;;  %v4221_v7 = vld [vmem:[#allocation2 + $0x60] sm:$0xff] }
 0x469   : > { %v4231_v19 = vpack.c.bf16 %v9831_v3, %v4215_v34  ;;  %v9841_v45 = vld [vmem:[#allocation2 + $0x30] sm:$0xff]  ;;  %v4223_v23 = vld [vmem:[#allocation2 + $0xa0] sm:$0xff]  ;;  %v4732_v37 = vpack.c.bf16 %v4217_v29, %v9831_v3 }
 0x46a   : > { %v9845_v46 = vld [vmem:[#allocation2 + $0x50] sm:$0xff]  ;;  %v9848_v5 = vpack.c.bf16 %v9841_v45, %v4217_v29  ;;  %v4733_v24 = vpack.c.bf16 %v9843_v27, %v9841_v45  ;;  %v4723_v3 = vld [vmem:[#allocation2 + $0x80] sm:$0xff] }
 0x46b   : > { %v9853_v28 = vpack.c.bf16 %v9845_v46, %v9843_v27  ;;  %v8199_v50 = vld [vmem:[%s8541_s16 + $0x30] sm:$0xff]   ;;  %v8201_v10 = vld [vmem:[%s8541_s16 + $0x40] sm:$0xff]  }
 0x46c   : > { %v9860_v16 = vld [vmem:[#allocation2 + $0x70] sm:$0xff] }
 0x46d   : > { %v4224_v63 = vld [vmem:[#allocation2 + $0xb0] sm:$0xff]  ;;  %v9863_v2 = vpack.c.bf16 %v9860_v16, %v4221_v7  ;;  %v4735_v29 = vpack.c.bf16 %v4723_v3, %v9860_v16  ;;  %v10536_v16 = vpack.c.bf16 %v9729_v53, %v9718_v0  ;;  %v10539_v0 = vpack.c.bf16 %v9769_v17, %v9763_v44  ;;  %v5079_v17 = vld [vmem:[#allocation2 + $0x82] sm:$0xff] }
 0x46e   : > { %7522 = vmatmul.mubr.msk.bf16.gmra.mrb[8].mxu1 %vm579_vm0, %v9819_v4  ;;  %v4235_v58 = vpack.c.bf16 %v4224_v63, %v4223_v23  ;;  %v4226_v34 = vld [vmem:[#allocation2 + $0xd0] sm:$0xff]  ;;  %v10540_v53 = vpack.c.bf16 %v9753_v62, %v9771_v32  ;;  %v10542_v44 = vpack.c.bf16 %v9785_v56, %v9783_v22  ;;  %v10543_v62 = vpack.c.bf16 %v9790_v41, %v9787_v57  ;;  %v5087_v56 = vld [vmem:[#allocation2 + $0x122] sm:$0xff] }
 0x46f   : > { %7525 = vmatprep.mubr.msk.bf16.mxu1 %vm579_vm0, %v9823_v52  ;;  %v4228_v60 = vld [vmem:[#allocation2 + $0xf0] sm:$0xff]  ;;  %v10545_v32 = vpack.c.bf16 %v9802_v42, %v9800_v38  ;;  %v10546_v22 = vpack.c.bf16 %v9809_v26, %v9807_v35  ;;  %v8208_v57 = vld [vmem:[%s8541_s16 + $0x78] sm:$0xff]  }
 0x470   : > { %v4230_v23 = vld [vmem:[#allocation2 + $0x110] sm:$0xff] }
 0x471   : > { %v9896_v18 = vld [vmem:[#allocation2 + $0x72] sm:$0xff] }
 0x472   : > { %v9900_v48 = vpack.c.bf16 %v9896_v18, %v9790_v41  ;;  %v8209_v41 = vld [vmem:[%s8541_s16 + $0x80] sm:$0xff]  }
 0x476   : > { %7526 = vmatmul.mubr.msk.bf16.gmra.mrb[12].mxu1 %vm579_vm0, %v9835_v51 }
 0x477   : > { %7533 = vmatprep.mubr.msk.bf16.mxu1 %vm579_vm0, %v4231_v19  ;;  %v4227_v19 = vld [vmem:[#allocation2 + $0xe0] sm:$0xff] }
 0x478   : > { %v9870_v55 = vpack.c.bf16 %v4228_v60, %v4227_v19  ;;  %v4737_v45 = vpack.c.bf16 %v4227_v19, %v4226_v34 }
 0x47e   : > { %7534 = vmatmul.mubr.msk.bf16.vlgmr.msra.gmra.mrb[0].mxu1 %vm579_vm0, %v9848_v5 }
 0x47f   : > { %7550 = vmatpush3.bf16.msra.mxu1 %v8197_v59  ;;  %7537 = vmatprep.mubr.msk.bf16.mxu1 %vm579_vm0, %v9853_v28  ;;  %v4225_v59 = vld [vmem:[#allocation2 + $0xc0] sm:$0xff] }
 0x480   : > { %7551 = vmatprep.subr.bf16.mxu1 %v8198_v21  ;;  %v9868_v54 = vpack.c.bf16 %v4226_v34, %v4225_v59  ;;  %v8326_v34 = vmov 0.0  }
 0x481   : > { %7697 = vmatprep.mubr.msk.f32.mxu0 %vm8325_vm2, %v8326_v34 }
 0x483   : > { %7552 = vmatpush3.bf16.msra.mxu1 %v8198_v21  ;;  %v4229_v21 = vld [vmem:[#allocation2 + $0x100] sm:$0xff] }
 0x484   : > { %7569 = vmatprep.subr.bf16.mxu1 %v8199_v50  ;;  %v4738_v27 = vpack.c.bf16 %v4229_v21, %v4228_v60  ;;  %v10537_v60 = vpack.c.bf16 %v9733_v36, %v9731_v8  ;;  %v4909_v8 = vld [vmem:[#allocation2 + $0x121] sm:$0xff] }
 0x485   : > { %v4917_v36 = vpack.c.bf16 %v4909_v8, %v9829_v11 }
 0x486   : > { %7538 = vmatmul.mubr.msk.bf16.gmra.mrb[4].mxu1 %vm579_vm0, %v9863_v2 }
 0x487   : > { %7541 = vmatprep.mubr.msk.bf16.mxu1 %vm579_vm0, %v4235_v58  ;;  %v9876_v58 = vpack.c.bf16 %v4230_v23, %v4229_v21  ;;  %v6075_v21 = vld [vmem:[%s8627_s1] sm:$0xf] }
 0x48e   : > { %7542 = vmatmul.mubr.msk.bf16.gmra.mrb[8].mxu1 %vm579_vm0, %v9868_v54 }
 0x48f   : > { %7545 = vmatprep.mubr.msk.bf16.mxu1 %vm579_vm0, %v9870_v55 }
 0x496   : > { %7546 = vmatmul.mubr.msk.bf16.gmra.mrb[12].mxu1 %vm579_vm0, %v9876_v58 }
 0x497   : > { %7553 = vmatprep.mubr.msk.bf16.mxu1 %vm579_vm0, %v4554_v9  ;;  %v4546_v9 = vld [vmem:[#allocation2 + $0xa2] sm:$0xff] }
 0x498   : > { %v4558_v30 = vpack.c.bf16 %v9792_v61, %v4546_v9  ;;  %v9918_v9 = vld [vmem:[#allocation2 + $0x112] sm:$0xff] }
 0x49e   : > { %7554 = vmatmul.mubr.msk.bf16.vlgmr.msra.gmra.mrb[0].mxu1 %vm579_vm0, %v9884_v1 }
 0x49f   : > { %7570 = vmatpush3.bf16.msra.mxu1 %v8199_v50  ;;  %7557 = vmatprep.mubr.msk.bf16.mxu1 %vm579_vm0, %v9889_v20  ;;  %v9908_v50 = vpack.c.bf16 %v9800_v38, %v9798_v40  ;;  %v5265_v38 = vld [vmem:[#allocation2 + $0x130] sm:$0xff] }
 0x4a0   : > { %7571 = vmatprep.subr.bf16.mxu1 %v8200_v6 }
 0x4a1   : > { %10533 = vst [vmem:[#allocation32_spill] sm:$0xff] %v9908_v50 }
 0x4a3   : > { %7572 = vmatpush3.bf16.msra.mxu1 %v8200_v6  ;;  %v9912_v6 = vpack.c.bf16 %v9807_v35, %v9802_v42  ;;  %v8210_v35 = vld [vmem:[%s8541_s16 + $0x88] sm:$0xff]  }
 0x4a4   : > { %7589 = vmatprep.subr.bf16.mxu1 %v8201_v10 }
 0x4a5   : > { %10534 = vst [vmem:[#allocation33_spill] sm:$0xff] %v9912_v6 }
 0x4a6   : > { %7558 = vmatmul.mubr.msk.bf16.gmra.mrb[4].mxu1 %vm579_vm0, %v9900_v48 }
 0x4a7   : > { %7561 = vmatprep.mubr.msk.bf16.mxu1 %vm579_vm0, %v4558_v30  ;;  %v9922_v30 = vpack.c.bf16 %v9918_v9, %v9809_v26  ;;  %v5435_v26 = vld [vmem:[#allocation2 + $0x91] sm:$0xff] }
 0x4ae   : > { %7562 = vmatmul.mubr.msk.bf16.gmra.mrb[8].mxu1 %vm579_vm0, %v9908_v50  ;;  %v4734_v50 = vpack.c.bf16 %v4221_v7, %v9845_v46  ;;  %v8204_v7 = vld [vmem:[%s8541_s16 + $0x58] sm:$0xff]  }
 0x4af   : > { %7565 = vmatprep.mubr.msk.bf16.mxu1 %vm579_vm0, %v9912_v6  ;;  %v8203_v6 = vld [vmem:[%s8541_s16 + $0x50] sm:$0xff]  }
 0x4b6   : > { %7566 = vmatmul.mubr.msk.bf16.gmra.mrb[12].mxu1 %vm579_vm0, %v9922_v30 }
 0x4b7   : > { %7573 = vmatprep.mubr.msk.bf16.mxu1 %vm579_vm0, %v4732_v37  ;;  %v4736_v37 = vpack.c.bf16 %v4225_v59, %v4224_v63  ;;  %v8205_v63 = vld [vmem:[%s8541_s16 + $0x60] sm:$0xff]  }
 0x4b8   : > { %v4901_v59 = vld [vmem:[#allocation2 + $0x81] sm:$0xff] }
 0x4be   : > { %7574 = vmatmul.mubr.msk.bf16.vlgmr.msra.gmra.mrb[0].mxu1 %vm579_vm0, %v4733_v24  ;;  %v4731_v24 = vld [vmem:[#allocation2 + $0x120] sm:$0xff] }
 0x4bf   : > { %7590 = vmatpush3.bf16.msra.mxu1 %v8201_v10  ;;  %7577 = vmatprep.mubr.msk.bf16.mxu1 %vm579_vm0, %v4734_v50  ;;  %v4739_v46 = vpack.c.bf16 %v4731_v24, %v4230_v23  ;;  %v5273_v42 = vpack.c.bf16 %v5265_v38, %v4731_v24 }
 0x4c0   : > { %7591 = vmatprep.subr.bf16.mxu1 %v8202_v12 }
 0x4c3   : > { %7592 = vmatpush3.bf16.msra.mxu1 %v8202_v12  ;;  %v10535_v12 = vpack.c.bf16 %v9716_v31, %v9714_v47  ;;  %v4913_v47 = vpack.c.bf16 %v4901_v59, %v9767_v13  ;;  %v10538_v31 = vpack.c.bf16 %v9761_v43, %v9759_v14  ;;  %v10541_v14 = vpack.c.bf16 %v9757_v25, %v9755_v15  ;;  %v8206_v43 = vld [vmem:[%s8541_s16 + $0x68] sm:$0xff]   ;;  %v8207_v13 = vld [vmem:[%s8541_s16 + $0x70] sm:$0xff]   ;;  %s10549_s16 = scalar_lea.vmem %s10456_s5, %s8591_s26 }
 0x4c4   : > { %7609 = vmatprep.subr.bf16.mxu1 %v8203_v6  ;;  %v5091_v15 = vpack.c.bf16 %v5079_v17, %v9896_v18  ;;  %v10544_v25 = vpack.c.bf16 %v9798_v40, %v9792_v61  ;;  %v5095_v18 = vpack.c.bf16 %v5087_v56, %v9918_v9  ;;  %v5257_v61 = vld [vmem:[#allocation2 + $0x90] sm:$0xff] }
 0x4c5   : > { %v5269_v40 = vpack.c.bf16 %v5257_v61, %v4723_v3 }
 0x4c6   : > { %7578 = vmatmul.mubr.msk.bf16.gmra.mrb[4].mxu1 %vm579_vm0, %v4735_v29 }
 0x4c7   : > { %7581 = vmatprep.mubr.msk.bf16.mxu1 %vm579_vm0, %v4736_v37 }
 0x4ce   : > { %7582 = vmatmul.mubr.msk.bf16.gmra.mrb[8].mxu1 %vm579_vm0, %v4737_v45 }
 0x4cf   : > { %7585 = vmatprep.mubr.msk.bf16.mxu1 %vm579_vm0, %v4738_v27 }
 0x4d6   : > { %7586 = vmatmul.mubr.msk.bf16.gmra.mrb[12].mxu1 %vm579_vm0, %v4739_v46 }
 0x4d7   : > { %7593 = vmatprep.mubr.msk.bf16.mxu1 %vm579_vm0, %v10535_v12 }
 0x4de   : > { %7594 = vmatmul.mubr.msk.bf16.vlgmr.msra.gmra.mrb[0].mxu1 %vm579_vm0, %v10536_v16 }
 0x4df   : > { %7610 = vmatpush3.bf16.msra.mxu1 %v8203_v6  ;;  %7597 = vmatprep.mubr.msk.bf16.mxu1 %vm579_vm0, %v10537_v60 }
 0x4e0   : > { %7611 = vmatprep.subr.bf16.mxu1 %v8204_v7 }
 0x4e3   : > { %7612 = vmatpush3.bf16.msra.mxu1 %v8204_v7 }
 0x4e4   : > { %7629 = vmatprep.subr.bf16.mxu1 %v8205_v63 }
 0x4e6   : > { %7598 = vmatmul.mubr.msk.bf16.gmra.mrb[4].mxu1 %vm579_vm0, %v4913_v47 }
 0x4e7   : > { %7601 = vmatprep.mubr.msk.bf16.mxu1 %vm579_vm0, %v10538_v31 }
 0x4ee   : > { %7602 = vmatmul.mubr.msk.bf16.gmra.mrb[8].mxu1 %vm579_vm0, %v10539_v0 }
 0x4ef   : > { %7605 = vmatprep.mubr.msk.bf16.mxu1 %vm579_vm0, %v10540_v53 }
 0x4f6   : > { %7606 = vmatmul.mubr.msk.bf16.gmra.mrb[12].mxu1 %vm579_vm0, %v4917_v36 }
 0x4f7   : > { %7613 = vmatprep.mubr.msk.bf16.mxu1 %vm579_vm0, %v10541_v14 }
 0x4fe   : > { %7614 = vmatmul.mubr.msk.bf16.vlgmr.msra.gmra.mrb[0].mxu1 %vm579_vm0, %v10542_v44 }
 0x4ff   : > { %7630 = vmatpush3.bf16.msra.mxu1 %v8205_v63  ;;  %7617 = vmatprep.mubr.msk.bf16.mxu1 %vm579_vm0, %v10543_v62 }
 0x500   : > { %7631 = vmatprep.subr.bf16.mxu1 %v8206_v43 }
 0x503   : > { %7632 = vmatpush3.bf16.msra.mxu1 %v8206_v43 }
 0x504   : > { %7649 = vmatprep.subr.bf16.mxu1 %v8207_v13 }
 0x506   : > { %7618 = vmatmul.mubr.msk.bf16.gmra.mrb[4].mxu1 %vm579_vm0, %v5091_v15 }
 0x507   : > { %7621 = vmatprep.mubr.msk.bf16.mxu1 %vm579_vm0, %v10544_v25 }
 0x50e   : > { %7622 = vmatmul.mubr.msk.bf16.gmra.mrb[8].mxu1 %vm579_vm0, %v10545_v32 }
 0x50f   : > { %7625 = vmatprep.mubr.msk.bf16.mxu1 %vm579_vm0, %v10546_v22 }
 0x516   : > { %7626 = vmatmul.mubr.msk.bf16.gmra.mrb[12].mxu1 %vm579_vm0, %v5095_v18 }
 0x517   : > { %7633 = vmatprep.mubr.msk.bf16.mxu1 %vm579_vm0, %v9848_v5  ;;  %v8324_v5 = vmov 0.0|0.0  }
 0x518   : > { %7705 = vmatprep.subr.bf16.mxu0 %v8324_v5 }
 0x51e   : > { %7634 = vmatmul.mubr.msk.bf16.vlgmr.msra.gmra.mrb[0].mxu1 %vm579_vm0, %v9853_v28 }
 0x51f   : > { %7650 = vmatpush3.bf16.msra.mxu1 %v8207_v13  ;;  %7637 = vmatprep.mubr.msk.bf16.mxu1 %vm579_vm0, %v9863_v2  ;;  %v5990_v2 = vld [vmem:[%s8621_s22 + $0x18] sm:$0xff] }
 0x520   : > { %7651 = vmatprep.subr.bf16.mxu1 %v8208_v57 }
 0x523   : > { %7652 = vmatpush3.bf16.msra.mxu1 %v8208_v57 }
 0x524   : > { %7669 = vmatprep.subr.bf16.mxu1 %v8209_v41 }
 0x526   : > { %7638 = vmatmul.mubr.msk.bf16.gmra.mrb[4].mxu1 %vm579_vm0, %v5269_v40 }
 0x527   : > { %7641 = vmatprep.mubr.msk.bf16.mxu1 %vm579_vm0, %v9868_v54 }
 0x52e   : > { %7642 = vmatmul.mubr.msk.bf16.gmra.mrb[8].mxu1 %vm579_vm0, %v9870_v55  ;;  %v5447_v55 = vpack.c.bf16 %v5435_v26, %v4901_v59 }
 0x52f   : > { %7645 = vmatprep.mubr.msk.bf16.mxu1 %vm579_vm0, %v9876_v58 }
 0x536   : > { %7646 = vmatmul.mubr.msk.bf16.gmra.mrb[12].mxu1 %vm579_vm0, %v5273_v42 }
 0x537   : > { %7653 = vmatprep.mubr.msk.bf16.mxu1 %vm579_vm0, %v9727_v39  ;;  %v5443_v39 = vld [vmem:[#allocation2 + $0x131] sm:$0xff] }
 0x53e   : > { %7654 = vmatmul.mubr.msk.bf16.vlgmr.msra.gmra.mrb[0].mxu1 %vm579_vm0, %v9745_v33  ;;  %v5451_v33 = vpack.c.bf16 %v5443_v39, %v4909_v8 }
 0x53f   : > { %7670 = vmatpush3.bf16.msra.mxu1 %v8209_v41  ;;  %7657 = vmatprep.mubr.msk.bf16.mxu1 %vm579_vm0, %v9781_v49  ;;  %v5613_v49 = vld [vmem:[#allocation2 + $0x92] sm:$0xff] }
 0x540   : > { %7671 = vmatprep.subr.bf16.mxu1 %v8210_v35  ;;  %v5625_v54 = vpack.c.bf16 %v5613_v49, %v5079_v17 }
 0x543   : > { %7672 = vmatpush3.bf16.msra.mxu1 %v8210_v35 }
 0x544   : > { %7700 = vmatprep.subr.mxu1 %v8326_v34 }
 0x546   : > { %7658 = vmatmul.mubr.msk.bf16.gmra.mrb[4].mxu1 %vm579_vm0, %v5447_v55 }
 0x547   : > { %7661 = vmatprep.mubr.msk.bf16.mxu1 %vm579_vm0, %v9819_v4  ;;  %v10547_v4 = vld [vmem:[#allocation32_spill] sm:$0xff] }
 0x54e   : > { %7662 = vmatmul.mubr.msk.bf16.gmra.mrb[8].mxu1 %vm579_vm0, %v9823_v52  ;;  %v10548_v52 = vld [vmem:[#allocation33_spill] sm:$0xff] }
 0x54f   : > { %7665 = vmatprep.mubr.msk.bf16.mxu1 %vm579_vm0, %v9835_v51  ;;  %v5989_v51 = vld [vmem:[%s8621_s22 + $0x10] sm:$0xff] }
 0x550   : > { %v7709_v19 = vpack.c.bf16 %v5990_v2, %v5989_v51 }
 0x556   : > { %7666 = vmatmul.mubr.msk.bf16.gmra.mrb[12].mxu1 %vm579_vm0, %v5451_v33 }
 0x557   : > { %7673 = vmatprep.mubr.msk.bf16.mxu1 %vm579_vm0, %v9884_v1  ;;  %v5621_v1 = vld [vmem:[#allocation2 + $0x132] sm:$0xff] }
 0x558   : > { %v5629_v11 = vpack.c.bf16 %v5621_v1, %v5087_v56 }
 0x55e   : > { %7674 = vmatmul.mubr.msk.bf16.vlgmr.msra.gmra.mrb[0].mxu1 %vm579_vm0, %v9889_v20  ;;  %v5987_v20 = vld [vmem:[%s8621_s22] sm:$0xff] }
 0x55f   : > { %7677 = vmatprep.mubr.msk.bf16.mxu1 %vm579_vm0, %v9900_v48  ;;  %v5988_v48 = vld [vmem:[%s8621_s22 + $0x8] sm:$0xff]  ;;  %7701 = vmatpush3.msk.msra.mxu1 %vm6087_vm3, %v6075_v21 }
 0x560   : > { %v7706_v28 = vpack.c.bf16 %v5988_v48, %v5987_v20 }
 0x562   : > { %7707 = vmatpush3.bf16.msra.mxu0 %v7706_v28 }
 0x563   : > { %7708 = vmatprep.subr.bf16.mxu0 %v8324_v5 }
 0x566   : > { %7678 = vmatmul.mubr.msk.bf16.gmra.mrb[4].mxu1 %vm579_vm0, %v5625_v54  ;;  %7710 = vmatpush3.bf16.msra.mxu0 %v7709_v19 }
 0x567   : > { %7681 = vmatprep.mubr.msk.bf16.mxu1 %vm579_vm0, %v10547_v4 }
 0x56e   : > { %7682 = vmatmul.mubr.msk.bf16.gmra.mrb[8].mxu1 %vm579_vm0, %v10548_v52 }
 0x56f   : > { %7685 = vmatprep.mubr.msk.bf16.mxu1 %vm579_vm0, %v9922_v30 }
 0x576   : > { %7686 = vmatmul.mubr.msk.bf16.gmra.mrb[12].mxu1 %vm579_vm0, %v5629_v11 }
 0x577   : > { %7702 = vmatprep.mubr.msk.f32.mxu1 %vm8325_vm2, %v8326_v34 }
 0x631   : > { %v10051_v23 = vpop.f32.mrb[0].mxu1 }
 0x632   : > { %v10053_v58 = vpop.f32.mrb[1].mxu1  ;;  %v5825_v9 = vmul.f32 %v10051_v23, %v10051_v23  ;;  %v5789_v45 = vsel %vm579_vm0, %v10051_v23, 0.0 }
 0x633   : > { %v5823_v10 = vmul.f32 %v10053_v58, %v10053_v58  ;;  %v10057_v50 = vpop.f32.mrb[2].mxu1  ;;  %v5786_v30 = vsel %vm579_vm0, %v10053_v58, 0.0 }
 0x634   : > { %v10059_v6 = vpop.f32.mrb[3].mxu1  ;;  %v5826_v24 = vmul.f32 %v10057_v50, %v10057_v50  ;;  %v5842_v16 = vsel %vm579_vm0, %v5825_v9, 0.0  ;;  %v5791_v60 = vsel %vm579_vm0, %v10057_v50, 0.0 }
 0x635   : > { %v5787_v3 = vsel %vm579_vm0, %v10059_v6, 0.0  ;;  %v5824_v29 = vmul.f32 %v10059_v6, %v10059_v6  ;;  %v5839_v27 = vsel %vm579_vm0, %v5823_v10, 0.0 }
 0x636   : > { %v5788_v37 = vadd.f32 %v5787_v3, %v5786_v30  ;;  %v5844_v0 = vsel %vm579_vm0, %v5826_v24, 0.0 }
 0x637   : > { %v5840_v46 = vsel %vm579_vm0, %v5824_v29, 0.0 }
 0x638   : > { %v5790_v12 = vadd.f32 %v5789_v45, %v5788_v37  ;;  %v5841_v7 = vadd.f32 %v5840_v46, %v5839_v27 }
 0x639   : > { %v10078_v63 = vpop.f32.mrb[4].mxu1 }
 0x63a   : > { %v5843_v59 = vadd.f32 %v5842_v16, %v5841_v7  ;;  %v10080_v47 = vpop.f32.mrb[5].mxu1  ;;  %v5792_v31 = vadd.f32 %v5791_v60, %v5790_v12  ;;  %v5829_v62 = vmul.f32 %v10078_v63, %v10078_v63  ;;  %v5797_v22 = vsel %vm579_vm0, %v10078_v63, 0.0 }
 0x63b   : > { %v5793_v53 = vsel %vm579_vm0, %v10080_v47, 0.0  ;;  %v5827_v8 = vmul.f32 %v10080_v47, %v10080_v47  ;;  %v10087_v36 = vpop.f32.mrb[6].mxu1 }
 0x63c   : > { %v5794_v14 = vadd.f32 %v5793_v53, %v5792_v31  ;;  %v5845_v43 = vadd.f32 %v5844_v0, %v5843_v59  ;;  %v10089_v44 = vpop.f32.mrb[7].mxu1  ;;  %v5830_v56 = vmul.f32 %v10087_v36, %v10087_v36  ;;  %v5850_v61 = vsel %vm579_vm0, %v5829_v62, 0.0 }
 0x63d   : > { %v5846_v13 = vsel %vm579_vm0, %v5827_v8, 0.0  ;;  %v5795_v17 = vsel %vm579_vm0, %v10089_v44, 0.0  ;;  %v5828_v15 = vmul.f32 %v10089_v44, %v10089_v44  ;;  %v5799_v40 = vsel %vm579_vm0, %v10087_v36, 0.0 }
 0x63e   : > { %v5847_v25 = vadd.f32 %v5846_v13, %v5845_v43  ;;  %v5796_v32 = vadd.f32 %v5795_v17, %v5794_v14  ;;  %v5852_v55 = vsel %vm579_vm0, %v5830_v56, 0.0 }
 0x63f   : > { %v5848_v18 = vsel %vm579_vm0, %v5828_v15, 0.0 }
 0x640   : > { %v5798_v57 = vadd.f32 %v5797_v22, %v5796_v32  ;;  %v5849_v41 = vadd.f32 %v5848_v18, %v5847_v25 }
 0x641   : > { %v10106_v38 = vpop.f32.mrb[8].mxu1 }
 0x642   : > { %v5851_v42 = vadd.f32 %v5850_v61, %v5849_v41  ;;  %v10108_v35 = vpop.f32.mrb[9].mxu1  ;;  %v5800_v26 = vadd.f32 %v5799_v40, %v5798_v57  ;;  %v5833_v1 = vmul.f32 %v10106_v38, %v10106_v38  ;;  %v5805_v28 = vsel %vm579_vm0, %v10106_v38, 0.0 }
 0x643   : > { %v5801_v39 = vsel %vm579_vm0, %v10108_v35, 0.0  ;;  %v5831_v33 = vmul.f32 %v10108_v35, %v10108_v35  ;;  %v10115_v49 = vpop.f32.mrb[10].mxu1 }
 0x644   : > { %v5802_v54 = vadd.f32 %v5801_v39, %v5800_v26  ;;  %v5853_v4 = vadd.f32 %v5852_v55, %v5851_v42  ;;  %v10117_v52 = vpop.f32.mrb[11].mxu1  ;;  %v5834_v2 = vmul.f32 %v10115_v49, %v10115_v49  ;;  %v5858_v10 = vsel %vm579_vm0, %v5833_v1, 0.0 }
 0x645   : > { %v5854_v11 = vsel %vm579_vm0, %v5831_v33, 0.0  ;;  %v5803_v20 = vsel %vm579_vm0, %v10117_v52, 0.0  ;;  %v5832_v48 = vmul.f32 %v10117_v52, %v10117_v52  ;;  %v5807_v9 = vsel %vm579_vm0, %v10115_v49, 0.0 }
 0x646   : > { %v5855_v51 = vadd.f32 %v5854_v11, %v5853_v4  ;;  %v5804_v5 = vadd.f32 %v5803_v20, %v5802_v54  ;;  %v5860_v45 = vsel %vm579_vm0, %v5834_v2, 0.0 }
 0x647   : > { %v5856_v34 = vsel %vm579_vm0, %v5832_v48, 0.0 }
 0x648   : > { %v5806_v19 = vadd.f32 %v5805_v28, %v5804_v5  ;;  %v5857_v21 = vadd.f32 %v5856_v34, %v5855_v51 }
 0x649   : > { %v10134_v30 = vpop.f32.mrb[12].mxu1 }
 0x64a   : > { %v5859_v3 = vadd.f32 %v5858_v10, %v5857_v21  ;;  %v10136_v29 = vpop.f32.mrb[13].mxu1  ;;  %v5808_v37 = vadd.f32 %v5807_v9, %v5806_v19  ;;  %v5837_v60 = vmul.f32 %v10134_v30, %v10134_v30  ;;  %v5813_v14 = vsel %vm579_vm0, %v10134_v30, 0.0 }
 0x64b   : > { %v5809_v27 = vsel %vm579_vm0, %v10136_v29, 0.0  ;;  %v5835_v24 = vmul.f32 %v10136_v29, %v10136_v29  ;;  %v10143_v46 = vpop.f32.mrb[14].mxu1 }
 0x64c   : > { %v5810_v12 = vadd.f32 %v5809_v27, %v5808_v37  ;;  %v5861_v7 = vadd.f32 %v5860_v45, %v5859_v3  ;;  %v10145_v16 = vpop.f32.mrb[15].mxu1  ;;  %v5838_v43 = vmul.f32 %v10143_v46, %v10143_v46  ;;  %v5866_v15 = vsel %vm579_vm0, %v5837_v60, 0.0 }
 0x64d   : > { %v5862_v59 = vsel %vm579_vm0, %v5835_v24, 0.0  ;;  %v5811_v31 = vsel %vm579_vm0, %v10145_v16, 0.0  ;;  %v5836_v0 = vmul.f32 %v10145_v16, %v10145_v16  ;;  %v5815_v25 = vsel %vm579_vm0, %v10143_v46, 0.0  ;;  %v10550_v24 = vld [vmem:[#allocation31_spill] sm:$0xff] }
 0x64e   : > { %v5863_v53 = vadd.f32 %v5862_v59, %v5861_v7  ;;  %v5812_v8 = vadd.f32 %v5811_v31, %v5810_v12  ;;  %v5868_v56 = vsel %vm579_vm0, %v5838_v43, 0.0 }
 0x64f   : > { %v5864_v62 = vsel %vm579_vm0, %v5836_v0, 0.0 }
 0x650   : > { %v5814_v13 = vadd.f32 %v5813_v14, %v5812_v8  ;;  %v5865_v17 = vadd.f32 %v5864_v62, %v5863_v53 }
 0x652   : > { %v5816_v32 = vadd.f32 %v5815_v25, %v5814_v13  ;;  %v5867_v22 = vadd.f32 %v5866_v15, %v5865_v17 }
 0x654   : > { %v5817_v18 = vrot.slane %v5816_v32, 4  ;;  %v5869_v57 = vadd.f32 %v5868_v56, %v5867_v22 }
 0x656   : > { %v5818_v41 = vadd.f32 %v5817_v18, %v5816_v32  ;;  %v5870_v61 = vrot.slane %v5869_v57, 4 }
 0x658   : > { %v5819_v40 = vrot.slane %v5818_v41, 2  ;;  %v5871_v42 = vadd.f32 %v5870_v61, %v5869_v57 }
 0x65a   : > { %v5820_v26 = vadd.f32 %v5819_v40, %v5818_v41  ;;  %v5872_v55 = vrot.slane %v5871_v42, 2 }
 0x65c   : > { %v5821_v39 = vrot.slane %v5820_v26, 1  ;;  %v5873_v33 = vadd.f32 %v5872_v55, %v5871_v42 }
 0x65e   : > { %v5822_v54 = vadd.f32 %v5821_v39, %v5820_v26  ;;  %v5874_v4 = vrot.slane %v5873_v33, 1 }
 0x660   : > { %v5875_v1 = vadd.f32 %v5874_v4, %v5873_v33  ;;  %v5876_v11 = vmul.f32 0.0078125, %v5822_v54 }
 0x662   : > { %v5877_v20 = vmul.f32 0.0078125, %v5875_v1  ;;  %v5878_v48 = vmul.f32 %v5876_v11, %v5876_v11  ;;  %v5889_v51 = vsub.f32 %v10108_v35, %v5876_v11  ;;  %v5890_v5 = vsub.f32 %v10117_v52, %v5876_v11 }
 0x663   : > { %v5891_v28 = vsub.f32 %v10106_v38, %v5876_v11  ;;  %v5892_v2 = vsub.f32 %v10115_v49, %v5876_v11  ;;  %v5893_v34 = vsub.f32 %v10136_v29, %v5876_v11  ;;  %v5894_v19 = vsub.f32 %v10145_v16, %v5876_v11 }
 0x664   : > { %v5879_v21 = vsub.f32 %v5877_v20, %v5878_v48  ;;  %v5895_v10 = vsub.f32 %v10134_v30, %v5876_v11  ;;  %v5896_v9 = vsub.f32 %v10143_v46, %v5876_v11  ;;  %v5881_v3 = vsub.f32 %v10053_v58, %v5876_v11  ;;  %v5784_v58 = vld [vmem:[%s10549_s16] sm:$0x1] }
 0x665   : > { %v5882_v35 = vsub.f32 %v10059_v6, %v5876_v11  ;;  %v5883_v52 = vsub.f32 %v10051_v23, %v5876_v11  ;;  %v5884_v38 = vsub.f32 %v10057_v50, %v5876_v11  ;;  %v5885_v49 = vsub.f32 %v10080_v47, %v5876_v11  ;;  %v6861_v47 = vld [vmem:[%s562_s28] ss:$0 sm:$0xff] }
 0x666   : > { %v5880_v29 = vmax.f32 %v5879_v21, 0.0  ;;  %v5886_v37 = vsub.f32 %v10089_v44, %v5876_v11  ;;  %v5887_v45 = vsub.f32 %v10078_v63, %v5876_v11  ;;  %v5888_v30 = vsub.f32 %v10087_v36, %v5876_v11 }
 0x668   : > { %v5897_v27 = vadd.f32 1e-05, %v5880_v29 }
 0x66a   : > { %8213 = vrsqrt.f32 %v5897_v27 }
 0x674   : > { %v8214_v6 = vpop.eup %8213 }
 0x675   : > { %v5899_v23 = vmul.f32 %v8214_v6, %v5784_v58 }
 0x677   : > { %v5903_v50 = vrot.slane %v5899_v23, %v10550_v24 }
 0x679   : > { %v5912_v44 = vmul.f32 %v5903_v50, %v5889_v51  ;;  %v5913_v63 = vmul.f32 %v5903_v50, %v5890_v5  ;;  %v5914_v46 = vmul.f32 %v5903_v50, %v5891_v28  ;;  %v5915_v36 = vmul.f32 %v5903_v50, %v5892_v2 }
 0x67a   : > { %v5916_v12 = vmul.f32 %v5903_v50, %v5893_v34  ;;  %v5917_v7 = vmul.f32 %v5903_v50, %v5894_v19  ;;  %v5918_v16 = vmul.f32 %v5903_v50, %v5895_v10  ;;  %v5919_v60 = vmul.f32 %v5903_v50, %v5896_v9 }
 0x67b   : > { %v10190_v59 = vadd.f32 %v6861_v47, %v5912_v44  ;;  %v10192_v31 = vadd.f32 %v6861_v47, %v5913_v63  ;;  %v10194_v0 = vadd.f32 %v6861_v47, %v5914_v46  ;;  %v10196_v53 = vadd.f32 %v6861_v47, %v5915_v36 }
 0x67c   : > { %v10202_v43 = vadd.f32 %v6861_v47, %v5916_v12  ;;  %v10204_v62 = vadd.f32 %v6861_v47, %v5917_v7  ;;  %v5904_v25 = vmul.f32 %v5903_v50, %v5881_v3  ;;  %v5905_v32 = vmul.f32 %v5903_v50, %v5882_v35 }
 0x67d   : > { %v5963_v8 = vsel %vm579_vm0, %v10190_v59, 0.0  ;;  %v5964_v14 = vsel %vm579_vm0, %v10192_v31, 0.0  ;;  %v5966_v17 = vsel %vm579_vm0, %v10194_v0, 0.0  ;;  %v5968_v15 = vsel %vm579_vm0, %v10196_v53, 0.0 }
 0x67e   : > { %v5965_v13 = vadd.f32 %v5964_v14, %v5963_v8  ;;  %v5906_v22 = vmul.f32 %v5903_v50, %v5883_v52  ;;  %v5907_v18 = vmul.f32 %v5903_v50, %v5884_v38  ;;  %v5908_v57 = vmul.f32 %v5903_v50, %v5885_v49 }
 0x67f   : > { %v5909_v41 = vmul.f32 %v5903_v50, %v5886_v37  ;;  %v5910_v61 = vmul.f32 %v5903_v50, %v5887_v45  ;;  %v5911_v40 = vmul.f32 %v5903_v50, %v5888_v30  ;;  %v10210_v42 = vadd.f32 %v6861_v47, %v5904_v25 }
 0x680   : > { %v5967_v56 = vadd.f32 %v5966_v17, %v5965_v13  ;;  %v10212_v26 = vadd.f32 %v6861_v47, %v5905_v32  ;;  %v10214_v39 = vadd.f32 %v6861_v47, %v5906_v22  ;;  %v10216_v33 = vadd.f32 %v6861_v47, %v5918_v16  ;;  %v6862_v32 = vld [vmem:[%s570_s29] ss:$0 sm:$0xff] }
 0x681   : > { %v5970_v54 = vsel %vm579_vm0, %v10202_v43, 0.0  ;;  %v5942_v4 = vsel %vm579_vm0, %v10210_v42, 0.0  ;;  %v10222_v11 = vadd.f32 %v6861_v47, %v5907_v18  ;;  %v10226_v48 = vadd.f32 %v6861_v47, %v5919_v60 }
 0x682   : > { %v5969_v55 = vadd.f32 %v5968_v15, %v5967_v56  ;;  %v5943_v20 = vsel %vm579_vm0, %v10212_v26, 0.0  ;;  %v5972_v51 = vsel %vm579_vm0, %v10204_v62, 0.0  ;;  %v10230_v2 = vadd.f32 %v6861_v47, %v5908_v57 }
 0x683   : > { %v5944_v5 = vadd.f32 %v5943_v20, %v5942_v4  ;;  %v5945_v34 = vsel %vm579_vm0, %v10214_v39, 0.0  ;;  %v5974_v19 = vsel %vm579_vm0, %v10216_v33, 0.0  ;;  %v10236_v9 = vadd.f32 %v6861_v47, %v5909_v41  ;;  %v6864_v41 = vld [vmem:[%s577_s27] ss:$0 sm:$0xff] }
 0x684   : > { %v5971_v1 = vadd.f32 %v5970_v54, %v5969_v55  ;;  %v5947_v3 = vsel %vm579_vm0, %v10222_v11, 0.0  ;;  %v5976_v35 = vsel %vm579_vm0, %v10226_v48, 0.0  ;;  %v5932_v49 = vadd.f32 %v6861_v47, %v5910_v61 }
 0x685   : > { %v5946_v21 = vadd.f32 %v5945_v34, %v5944_v5  ;;  %v5949_v29 = vsel %vm579_vm0, %v10230_v2, 0.0  ;;  %v5933_v30 = vadd.f32 %v6861_v47, %v5911_v40  ;;  %v5951_v27 = vsel %vm579_vm0, %v10236_v9, 0.0  ;;  %v10551_v34 = vld [vmem:[#allocation30_spill] sm:$0xff] }
 0x686   : > { %v5973_v28 = vadd.f32 %v5972_v51, %v5971_v1  ;;  %v5953_v6 = vsel %vm579_vm0, %v5932_v49, 0.0  ;;  %v8327_v51 = vmov 1966171168  }
 0x687   : > { %v5948_v52 = vadd.f32 %v5947_v3, %v5946_v21  ;;  %v5955_v44 = vsel %vm579_vm0, %v5933_v30, 0.0  ;;  %v6169_v5 = vunpack.c.l.s4 %v8327_v51 }
 0x688   : > { %v5975_v10 = vadd.f32 %v5974_v19, %v5973_v28 }
 0x689   : > { %v5950_v37 = vadd.f32 %v5949_v29, %v5948_v52  ;;  %v6170_v28 = vunpack.c.0.s8 %v6169_v5 }
 0x68a   : > { %v5977_v38 = vadd.f32 %v5976_v35, %v5975_v10 }
 0x68b   : > { %v5952_v58 = vadd.f32 %v5951_v27, %v5950_v37  ;;  %v6173_v19 = vsub.s32 %v6170_v28, %v10551_v34 }
 0x68c   : > { %v5978_v45 = vrot.slane %v5977_v38, 4 }
 0x68d   : > { %v5954_v50 = vadd.f32 %v5953_v6, %v5952_v58 }
 0x68e   : > { %v5979_v23 = vadd.f32 %v5978_v45, %v5977_v38 }
 0x68f   : > { %v5956_v46 = vadd.f32 %v5955_v44, %v5954_v50 }
 0x690   : > { %v5980_v63 = vrot.slane %v5979_v23, 2 }
 0x691   : > { %v5957_v12 = vrot.slane %v5956_v46, 4 }
 0x692   : > { %v5981_v36 = vadd.f32 %v5980_v63, %v5979_v23 }
 0x693   : > { %v5958_v7 = vadd.f32 %v5957_v12, %v5956_v46  ;;  %v10554_v12 = vld [vmem:[#allocation16_spill] sm:$0xff] }
 0x694   : > { %v5982_v16 = vrot.slane %v5981_v36, 1 }
 0x695   : > { %v5959_v60 = vrot.slane %v5958_v7, 2 }
 0x696   : > { %v5983_v47 = vadd.f32 %v5982_v16, %v5981_v36  ;;  %v10552_v36 = vld [vmem:[#allocation14_spill] sm:$0xff] }
 0x697   : > { %v5960_v8 = vadd.f32 %v5959_v60, %v5958_v7  ;;  %v10555_v7 = vld [vmem:[#allocation17_spill] sm:$0xff]  ;;  %v10556_v16 = vld [vmem:[#allocation18_spill] sm:$0xff]  ;;  %v10557_v60 = vld [vmem:[#allocation19_spill] sm:$0xff] }
 0x698   : > { %v5986_v17 = vmul.f32 0.015625, %v5983_v47  ;;  %v10559_v47 = vld [vmem:[#allocation28_spill] sm:$0xff] }
 0x699   : > { %v5961_v14 = vrot.slane %v5960_v8, 1 }
 0x69b   : > { %v5962_v13 = vadd.f32 %v5961_v14, %v5960_v8  ;;  %v10558_v8 = vld [vmem:[#allocation20_spill] sm:$0xff]  ;;  %v10560_v14 = vld [vmem:[#allocation21_spill] sm:$0xff] }
 0x69d   : > { %v5985_v15 = vmul.f32 0.015625, %v5962_v13  ;;  %v10561_v13 = vld [vmem:[#allocation22_spill] sm:$0xff] }
 0x69f   : > { %v6001_v25 = vsel %vm6000_vm4, %v5986_v17, %v5985_v15  ;;  %v10562_v17 = vld [vmem:[#allocation23_spill] sm:$0xff] }
 0x6a0   : > { %7698 = vmatmul.mubr.msk.f32.vlgmr.msra.gmra.mrb[16].mxu0 %vm579_vm0, %v6001_v25  ;;  %v10563_v25 = vld [vmem:[#allocation24_spill] sm:$0xff] }
 0x773   : > { %v6070_v22 = vpop.f32.mrb[16].mxu0 }
 0x774   : > { %v6071_v56 = vadd.f32 %v6862_v32, %v6070_v22  ;;  %v7699_v18 = vpop.f32.mrb[17].mxu0  ;;  %v10564_v22 = vld [vmem:[#allocation25_spill] sm:$0xff] }
 0x775   : > { %v10565_v18 = vld [vmem:[#allocation26_spill] sm:$0xff] }
 0x776   : > { %v6074_v57 = vmax.f32 %v6071_v56, 0.0 }
 0x778   : > { %7703 = vmatmul.mubr.msk.f32.vlgmr.msra.gmra.mrb[16].mxu1 %vm6083_vm5, %v6074_v57 }
 0x84b   : > { %v6157_v61 = vpop.f32.mrb[16].mxu1 }
 0x84c   : > { %v6158_v40 = vadd.f32 %v6864_v41, %v6157_v61  ;;  %v7704_v55 = vpop.f32.mrb[17].mxu1  ;;  %v10566_v41 = vld [vmem:[#allocation27_spill] sm:$0xff] }
 0x84e   : > { %v6161_v54 = vsub.f32 0.0, %v6158_v40  ;;  %v10567_v40 = vld [vmem:[#allocation29_spill] sm:$0xff] }
 0x850   : > { %v6162_v4 = vmul.f32 1.442695, %v6161_v54 }
 0x852   : > { %8215 = vpow2.f32 %v6162_v4 }
 0x85c   : > { %v8216_v1 = vpop.eup %8215 }
 0x85d   : > { %v6164_v20 = vadd.f32 1.0, %v8216_v1 }
 0x85f   : > { %8217 = vrcp.f32 %v6164_v20 }
 0x869   : > { %v8218_v21 = vpop.eup %8217 }
 0x86a   : > { %v6174_v10 = vrot.slane %v8218_v21, %v6173_v19 }
 0x86c   : > { %v6175_v3 = vcombine.high %v6174_v10, %v6174_v10  ;;  %v6182_v35 = vrot.slane %v6174_v10, %v6173_v19 }
 0x86e   : > { %v6189_v52 = vrot.slane %v6175_v3, %v6173_v19  ;;  %v6193_v38 = vrot.slane %v6182_v35, %v10550_v24 }
 0x870   : > { %v6197_v29 = vrot.slane %v6189_v52, %v10550_v24  ;;  %v6200_v37 = vmul.f32 %v6193_v38, %v10210_v42  ;;  %v6201_v45 = vmul.f32 %v6193_v38, %v10212_v26  ;;  %v6202_v27 = vmul.f32 %v6193_v38, %v10214_v39 }
 0x871   : > { %v6203_v58 = vmul.f32 %v6193_v38, %v10222_v11  ;;  %v6204_v6 = vmul.f32 %v6193_v38, %v10230_v2  ;;  %v6205_v23 = vmul.f32 %v6193_v38, %v10236_v9  ;;  %v6206_v50 = vmul.f32 %v6193_v38, %v5932_v49  ;;  %v10553_v49 = vld [vmem:[#allocation15_spill] sm:$0xff] }
 0x872   : > { %v6207_v44 = vmul.f32 %v6193_v38, %v5933_v30  ;;  %v6208_v63 = vmul.f32 %v6197_v29, %v10190_v59  ;;  %v6209_v46 = vmul.f32 %v6197_v29, %v10192_v31  ;;  %v6210_v24 = vmul.f32 %v6197_v29, %v10194_v0 }
 0x873   : > { %v6211_v42 = vmul.f32 %v6197_v29, %v10196_v53  ;;  %v6212_v26 = vmul.f32 %v6197_v29, %v10202_v43  ;;  %v6213_v39 = vmul.f32 %v6197_v29, %v10204_v62  ;;  %v6214_v11 = vmul.f32 %v6197_v29, %v10216_v33 }
 0x874   : > { %v6215_v2 = vmul.f32 %v6197_v29, %v10226_v48  ;;  %v6216_v9 = vadd.f32 %v6200_v37, %v10552_v36  ;;  %v6217_v30 = vadd.f32 %v6201_v45, %v10553_v49  ;;  %v6218_v59 = vadd.f32 %v6202_v27, %v10554_v12 }
 0x875   : > { %v6219_v31 = vadd.f32 %v6203_v58, %v10555_v7  ;;  %v6220_v0 = vadd.f32 %v6204_v6, %v10556_v16  ;;  %v6221_v53 = vadd.f32 %v6205_v23, %v10557_v60  ;;  %v6222_v43 = vadd.f32 %v6206_v50, %v10558_v8 }
 0x876   : > { %v6223_v62 = vadd.f32 %v6207_v44, %v10559_v47  ;;  %v6224_v33 = vadd.f32 %v6208_v63, %v10560_v14  ;;  %v6225_v48 = vadd.f32 %v6209_v46, %v10561_v13  ;;  %v6226_v15 = vadd.f32 %v6210_v24, %v10562_v17 }
 0x877   : > { %v6227_v32 = vadd.f32 %v6211_v42, %v10563_v25  ;;  %v6228_v56 = vadd.f32 %v6212_v26, %v10564_v22  ;;  %v6229_v57 = vadd.f32 %v6213_v39, %v10565_v18  ;;  %v6230_v61 = vadd.f32 %v6214_v11, %v10566_v41 }
 0x878   : > { %v6231_v55 = vadd.f32 %v6215_v2, %v10567_v40  ;;  %v6232_v54 = vmax.f32 %v6216_v9, 0.0  ;;  %v6233_v4 = vmax.f32 %v6217_v30, 0.0  ;;  %v6234_v1 = vmax.f32 %v6218_v59, 0.0 }
 0x879   : > { %v6235_v20 = vmax.f32 %v6219_v31, 0.0  ;;  %v6236_v51 = vmax.f32 %v6220_v0, 0.0  ;;  %v6237_v5 = vmax.f32 %v6221_v53, 0.0  ;;  %v6238_v28 = vmax.f32 %v6222_v43, 0.0 }
 0x87a   : > { %v6239_v34 = vmax.f32 %v6223_v62, 0.0  ;;  %v6240_v19 = vmax.f32 %v6224_v33, 0.0  ;;  %v6241_v21 = vmax.f32 %v6225_v48, 0.0  ;;  %v6242_v10 = vmax.f32 %v6226_v15, 0.0  ;;  %6248 = vst.msk [vmem:[#allocation3] sm:$0xff] %vm579_vm0, %v6232_v54  ;;  %6249 = vst.msk [vmem:[#allocation3 + $0x8] sm:$0xff] %vm579_vm0, %v6233_v4 }
 0x87b   : > { %6250 = vst.msk [vmem:[#allocation3 + $0x10] sm:$0xff] %vm579_vm0, %v6234_v1  ;;  %v6243_v3 = vmax.f32 %v6227_v32, 0.0  ;;  %v6244_v35 = vmax.f32 %v6228_v56, 0.0  ;;  %v6245_v52 = vmax.f32 %v6229_v57, 0.0  ;;  %v6246_v38 = vmax.f32 %v6230_v61, 0.0  ;;  %6251 = vst.msk [vmem:[#allocation3 + $0x18] sm:$0xff] %vm579_vm0, %v6235_v20 }
 0x87c   : > { %6252 = vst.msk [vmem:[#allocation3 + $0x20] sm:$0xff] %vm579_vm0, %v6236_v51  ;;  %6253 = vst.msk [vmem:[#allocation3 + $0x28] sm:$0xff] %vm579_vm0, %v6237_v5  ;;  %v6247_v29 = vmax.f32 %v6231_v55, 0.0 }
 0x87d   : > { %6254 = vst.msk [vmem:[#allocation3 + $0x30] sm:$0xff] %vm579_vm0, %v6238_v28  ;;  %6255 = vst.msk [vmem:[#allocation3 + $0x38] sm:$0xff] %vm579_vm0, %v6239_v34 }
 0x87e   : > { %6256 = vst.msk [vmem:[#allocation3 + $0x40] sm:$0xff] %vm579_vm0, %v6240_v19  ;;  %6257 = vst.msk [vmem:[#allocation3 + $0x48] sm:$0xff] %vm579_vm0, %v6241_v21 }
 0x87f   : > { %6258 = vst.msk [vmem:[#allocation3 + $0x50] sm:$0xff] %vm579_vm0, %v6242_v10  ;;  %6259 = vst.msk [vmem:[#allocation3 + $0x58] sm:$0xff] %vm579_vm0, %v6243_v3 }
 0x880   : > { %6260 = vst.msk [vmem:[#allocation3 + $0x60] sm:$0xff] %vm579_vm0, %v6244_v35  ;;  %6261 = vst.msk [vmem:[#allocation3 + $0x68] sm:$0xff] %vm579_vm0, %v6245_v52 }
 0x881   : > { %6262 = vst.msk [vmem:[#allocation3 + $0x70] sm:$0xff] %vm579_vm0, %v6246_v38  ;;  %6263 = vst.msk [vmem:[#allocation3 + $0x78] sm:$0xff] %vm579_vm0, %v6247_v29 }
 0x882 PF: > { %p6867_p6 = scmp.ne.s32.totalorder %s8412_s25, 4 }
 0x883   : > { %v6268_v37 = vld [vmem:[#allocation3] sm:$0xff] (!%p6867_p6)  ;;  %v6269_v45 = vld [vmem:[#allocation3 + $0x8] sm:$0xff] (!%p6867_p6)  ;;  %v6270_v27 = vld [vmem:[#allocation3 + $0x10] sm:$0xff] (!%p6867_p6) }
 0x884   : > { %6267 = sbr.rel (%p6867_p6) target bundleno = 2188 (0x88c), region = 84  ;;  %6284 = vst.msk [vmem:[%s10462_s11] sm:$0xff] (!%p6867_p6), %vm579_vm0, %v6268_v37  ;;  %6285 = vst.msk [vmem:[%s10462_s11 + $0x8] sm:$0xff] (!%p6867_p6), %vm579_vm0, %v6269_v45  ;;  %v6271_v58 = vld [vmem:[#allocation3 + $0x18] sm:$0xff] (!%p6867_p6)  ;;  %v6272_v6 = vld [vmem:[#allocation3 + $0x20] sm:$0xff] (!%p6867_p6) }
 0x885   : > { %6286 = vst.msk [vmem:[%s10462_s11 + $0x10] sm:$0xff] (!%p6867_p6), %vm579_vm0, %v6270_v27  ;;  %v6273_v23 = vld [vmem:[#allocation3 + $0x28] sm:$0xff] (!%p6867_p6)  ;;  %6287 = vst.msk [vmem:[%s10462_s11 + $0x18] sm:$0xff] (!%p6867_p6), %vm579_vm0, %v6271_v58  ;;  %v6274_v50 = vld [vmem:[#allocation3 + $0x30] sm:$0xff] (!%p6867_p6) }
 0x886   : > { %6288 = vst.msk [vmem:[%s10462_s11 + $0x20] sm:$0xff] (!%p6867_p6), %vm579_vm0, %v6272_v6  ;;  %6289 = vst.msk [vmem:[%s10462_s11 + $0x28] sm:$0xff] (!%p6867_p6), %vm579_vm0, %v6273_v23  ;;  %v6275_v44 = vld [vmem:[#allocation3 + $0x38] sm:$0xff] (!%p6867_p6)  ;;  %v6276_v63 = vld [vmem:[#allocation3 + $0x40] sm:$0xff] (!%p6867_p6) }
 0x887   : > { %6290 = vst.msk [vmem:[%s10462_s11 + $0x30] sm:$0xff] (!%p6867_p6), %vm579_vm0, %v6274_v50  ;;  %6291 = vst.msk [vmem:[%s10462_s11 + $0x38] sm:$0xff] (!%p6867_p6), %vm579_vm0, %v6275_v44  ;;  %v6277_v46 = vld [vmem:[#allocation3 + $0x48] sm:$0xff] (!%p6867_p6)  ;;  %v6278_v24 = vld [vmem:[#allocation3 + $0x50] sm:$0xff] (!%p6867_p6) }
 0x888   : > { %6292 = vst.msk [vmem:[%s10462_s11 + $0x40] sm:$0xff] (!%p6867_p6), %vm579_vm0, %v6276_v63  ;;  %v6279_v42 = vld [vmem:[#allocation3 + $0x58] sm:$0xff] (!%p6867_p6)  ;;  %6293 = vst.msk [vmem:[%s10462_s11 + $0x48] sm:$0xff] (!%p6867_p6), %vm579_vm0, %v6277_v46  ;;  %v6280_v26 = vld [vmem:[#allocation3 + $0x60] sm:$0xff] (!%p6867_p6) }
 0x889   : > { %6294 = vst.msk [vmem:[%s10462_s11 + $0x50] sm:$0xff] (!%p6867_p6), %vm579_vm0, %v6278_v24  ;;  %6295 = vst.msk [vmem:[%s10462_s11 + $0x58] sm:$0xff] (!%p6867_p6), %vm579_vm0, %v6279_v42  ;;  %v6281_v39 = vld [vmem:[#allocation3 + $0x68] sm:$0xff] (!%p6867_p6)  ;;  %v6282_v11 = vld [vmem:[#allocation3 + $0x70] sm:$0xff] (!%p6867_p6) }
 0x88a   : > { %6296 = vst.msk [vmem:[%s10462_s11 + $0x60] sm:$0xff] (!%p6867_p6), %vm579_vm0, %v6280_v26  ;;  %6297 = vst.msk [vmem:[%s10462_s11 + $0x68] sm:$0xff] (!%p6867_p6), %vm579_vm0, %v6281_v39  ;;  %v6283_v2 = vld [vmem:[#allocation3 + $0x78] sm:$0xff] (!%p6867_p6) }
 0x88b   : > { %6298 = vst.msk [vmem:[%s10462_s11 + $0x70] sm:$0xff] %vm579_vm0, %v6282_v11  ;;  %6299 = vst.msk [vmem:[%s10462_s11 + $0x78] sm:$0xff] %vm579_vm0, %v6283_v2 }
 0x88c PF: > { %p6868_p1 = scmp.ne.s32.totalorder %s8412_s25, 12 }
 0x88d   : > { %v6304_v36 = vld [vmem:[#allocation3] sm:$0xff] (!%p6868_p1)  ;;  %v6305_v9 = vld [vmem:[#allocation3 + $0x8] sm:$0xff] (!%p6868_p1)  ;;  %v6306_v49 = vld [vmem:[#allocation3 + $0x10] sm:$0xff] (!%p6868_p1) }
 0x88e   : > { %6303 = sbr.rel (%p6868_p1) target bundleno = 2198 (0x896), region = 88  ;;  %6320 = vst.msk [vmem:[%s10463_s12] sm:$0xff] (!%p6868_p1), %vm579_vm0, %v6304_v36  ;;  %6321 = vst.msk [vmem:[%s10463_s12 + $0x8] sm:$0xff] (!%p6868_p1), %vm579_vm0, %v6305_v9  ;;  %v6307_v30 = vld [vmem:[#allocation3 + $0x18] sm:$0xff] (!%p6868_p1)  ;;  %v6308_v12 = vld [vmem:[#allocation3 + $0x20] sm:$0xff] (!%p6868_p1) }
 0x88f   : > { %6322 = vst.msk [vmem:[%s10463_s12 + $0x10] sm:$0xff] (!%p6868_p1), %vm579_vm0, %v6306_v49  ;;  %v6309_v59 = vld [vmem:[#allocation3 + $0x28] sm:$0xff] (!%p6868_p1)  ;;  %6323 = vst.msk [vmem:[%s10463_s12 + $0x18] sm:$0xff] (!%p6868_p1), %vm579_vm0, %v6307_v30  ;;  %v6310_v7 = vld [vmem:[#allocation3 + $0x30] sm:$0xff] (!%p6868_p1) }
 0x890   : > { %6324 = vst.msk [vmem:[%s10463_s12 + $0x20] sm:$0xff] (!%p6868_p1), %vm579_vm0, %v6308_v12  ;;  %6325 = vst.msk [vmem:[%s10463_s12 + $0x28] sm:$0xff] (!%p6868_p1), %vm579_vm0, %v6309_v59  ;;  %v6311_v31 = vld [vmem:[#allocation3 + $0x38] sm:$0xff] (!%p6868_p1)  ;;  %v6312_v16 = vld [vmem:[#allocation3 + $0x40] sm:$0xff] (!%p6868_p1) }
 0x891   : > { %6326 = vst.msk [vmem:[%s10463_s12 + $0x30] sm:$0xff] (!%p6868_p1), %vm579_vm0, %v6310_v7  ;;  %6327 = vst.msk [vmem:[%s10463_s12 + $0x38] sm:$0xff] (!%p6868_p1), %vm579_vm0, %v6311_v31  ;;  %v6313_v0 = vld [vmem:[#allocation3 + $0x48] sm:$0xff] (!%p6868_p1)  ;;  %v6314_v60 = vld [vmem:[#allocation3 + $0x50] sm:$0xff] (!%p6868_p1) }
 0x892   : > { %6328 = vst.msk [vmem:[%s10463_s12 + $0x40] sm:$0xff] (!%p6868_p1), %vm579_vm0, %v6312_v16  ;;  %v6315_v53 = vld [vmem:[#allocation3 + $0x58] sm:$0xff] (!%p6868_p1)  ;;  %6329 = vst.msk [vmem:[%s10463_s12 + $0x48] sm:$0xff] (!%p6868_p1), %vm579_vm0, %v6313_v0  ;;  %v6316_v8 = vld [vmem:[#allocation3 + $0x60] sm:$0xff] (!%p6868_p1) }
 0x893   : > { %6330 = vst.msk [vmem:[%s10463_s12 + $0x50] sm:$0xff] (!%p6868_p1), %vm579_vm0, %v6314_v60  ;;  %6331 = vst.msk [vmem:[%s10463_s12 + $0x58] sm:$0xff] (!%p6868_p1), %vm579_vm0, %v6315_v53  ;;  %v6317_v43 = vld [vmem:[#allocation3 + $0x68] sm:$0xff] (!%p6868_p1)  ;;  %v6318_v47 = vld [vmem:[#allocation3 + $0x70] sm:$0xff] (!%p6868_p1) }
 0x894   : > { %6332 = vst.msk [vmem:[%s10463_s12 + $0x60] sm:$0xff] (!%p6868_p1), %vm579_vm0, %v6316_v8  ;;  %6333 = vst.msk [vmem:[%s10463_s12 + $0x68] sm:$0xff] (!%p6868_p1), %vm579_vm0, %v6317_v43  ;;  %v6319_v62 = vld [vmem:[#allocation3 + $0x78] sm:$0xff] (!%p6868_p1) }
 0x895   : > { %6334 = vst.msk [vmem:[%s10463_s12 + $0x70] sm:$0xff] %vm579_vm0, %v6318_v47  ;;  %6335 = vst.msk [vmem:[%s10463_s12 + $0x78] sm:$0xff] %vm579_vm0, %v6319_v62 }
 0x896 PF: > { %s10568_s24 = sld [smem:[#allocation12_spill]]  ;;  %s10569_s21 = sld [smem:[#allocation10_spill]] }
 0x897   : > { %s10570_s22 = sld [smem:[#allocation11_spill]]  ;;  %s10571_s23 = sld [smem:[#allocation13_spill]] }
 0x89c   : > { %p26_p2 = scmp.ge.s32.totalorder %s10568_s24, 15  }
 0x89e   :  { %28 = sbr.rel (!%p26_p2) target bundleno = 10 (0xa), region = 189 }
 0x8a5   :  { %6353 = vsyncpa [#allocation5], 1 }
 0x8a6   :  { %6355 = vsyncpa [#allocation5 + $0x1], 1 }
 0x8a7   :  { %6356 = vsyncpa [#allocation7], 1 }
 0x8a8   :  { %6358 = vsyncpa [#allocation7 + $0x1], 1 }

</bundles_post_ra>
